<compile_context>
chip_gen: v7x
topology: tpu7x:2x2x1
jax: 0.10.0
libtpu: 0.0.40
codegen_flags: <defaults>
</compile_context>

<pallas_src>
import numpy as np
import jax
import jax.numpy as jnp
from jax import lax
from jax.experimental import pallas as pl
from jax.experimental.pallas import tpu as pltpu

PATCH = 16
FRAG = 96
GRID3 = FRAG // PATCH                    # 6 patches per fragment side
N_PATCH = GRID3 * GRID3                  # 36 patches per fragment
PATCH_DIM = 3 * PATCH * PATCH            # 768
STEM_DIM = 1280
EMB_DIM = 64
BN_EPS = 1e-5

HIDDEN1 = 64
HIDDEN2 = 32

FRAG_TILE = 8                            # whole fragments per stem row tile
ROW_TILE = FRAG_TILE * N_PATCH           # 288 patch rows (mult. of 8, >=256 MXU fill)
CHUNK = 256                              # hidden-dim chunk (multiple of 128)

HORI_SET = [(i, i + 1) for i in range(9) if i % 3 != 2]        # 6 pairs
VERT_SET = [(i, i + 3) for i in range(6)]                      # 6 pairs
PAIR_SLOTS = tuple(x for a, b in HORI_SET + VERT_SET for x in (a, b))  # 24 ids


# ------------------------------------------------------------------ kernel A
def _stem_kernel(p_ref, pool_ref, wstem_ref, bstem_ref, wcls_ref, out_ref):
    """Patch-embed stem + ReLU + per-fragment avg-pool + classifier projection.

    p_ref:     (ROW_TILE, 768)        bf16 patch rows (8 whole fragments)
    pool_ref:  (FRAG_TILE, ROW_TILE)  f32 block-diagonal 1/36 averaging matrix
    wstem_ref: (768, 1280)            bf16
    bstem_ref: (1, 1280)              f32
    wcls_ref:  (1280, 64)             bf16
    out_ref:   (FRAG_TILE, 64)        f32 pooled fragment embeddings
    """
    p = p_ref[...]                                          # (288, 768) bf16
    pool = pool_ref[...]                                    # (8, 288)   f32
    acc = jnp.zeros((FRAG_TILE, EMB_DIM), jnp.float32)
    # Unrolled hidden-dim chunking: live f32 activation is only (288, 256)
    # instead of (288, 1280); all slices are static and lane/sublane aligned.
    for c in range(STEM_DIM // CHUNK):
        lo = c * CHUNK
        h = jnp.dot(p, wstem_ref[:, lo:lo + CHUNK],
                    preferred_element_type=jnp.float32)     # (288, 256) f32
        h = jnp.maximum(h + bstem_ref[:, lo:lo + CHUNK], 0.0)
        pooled = jnp.dot(pool, h, preferred_element_type=jnp.float32)  # (8, 256)
        acc = acc + jnp.dot(pooled.astype(jnp.bfloat16),
                            wcls_ref[lo:lo + CHUNK, :],
                            preferred_element_type=jnp.float32)        # (8, 64)
    out_ref[...] = acc


def stem_forward(patches, pool, wstem, bstem, wcls, *, n_tiles):
    """patches: (n_tiles*ROW_TILE, 768) bf16 -> (n_tiles*FRAG_TILE, 64) f32."""
    R = patches.shape[0]
    assert R == n_tiles * ROW_TILE
    n_frag_pad = n_tiles * FRAG_TILE
    flops = (2 * R * PATCH_DIM * STEM_DIM                 # stem GEMM
             + 2 * n_frag_pad * ROW_TILE * STEM_DIM       # pooling matmul
             + 2 * n_frag_pad * STEM_DIM * EMB_DIM)       # classifier GEMM
    bytes_accessed = (R * PATCH_DIM * 2 + PATCH_DIM * STEM_DIM * 2
                      + STEM_DIM * 4 + STEM_DIM * EMB_DIM * 2
                      + FRAG_TILE * ROW_TILE * 4 + n_frag_pad * EMB_DIM * 4)
    return pl.pallas_call(
        _stem_kernel,
        out_shape=jax.ShapeDtypeStruct((n_frag_pad, EMB_DIM), jnp.float32),
        grid_spec=pltpu.PrefetchScalarGridSpec(
            num_scalar_prefetch=0,
            grid=(n_tiles,),
            in_specs=[
                pl.BlockSpec((ROW_TILE, PATCH_DIM), lambda i: (i, 0)),
                pl.BlockSpec((FRAG_TILE, ROW_TILE), lambda i: (0, 0)),
                pl.BlockSpec((PATCH_DIM, STEM_DIM), lambda i: (0, 0)),
                pl.BlockSpec((1, STEM_DIM), lambda i: (0, 0)),
                pl.BlockSpec((STEM_DIM, EMB_DIM), lambda i: (0, 0)),
            ],
            out_specs=pl.BlockSpec((FRAG_TILE, EMB_DIM), lambda i: (i, 0)),
        ),
        compiler_params=pltpu.CompilerParams(
            dimension_semantics=("parallel",)),
        cost_estimate=pl.CostEstimate(flops=int(flops), transcendentals=0,
                                      bytes_accessed=int(bytes_accessed)),
    )(patches, pool, wstem, bstem, wcls)


# ------------------------------------------------------------------ kernel B
def _head_kernel(x_ref, w1_ref, b1_ref, gamma_ref, beta_ref, mean_ref, var_ref,
                 w2_ref, b2_ref, out_ref):
    x = x_ref[...]                                                 # (B, 576)
    # Dropout1d -> identity (eval mode)
    h = jnp.dot(x, w1_ref[...], preferred_element_type=jnp.float32) + b1_ref[...]
    # Dropout1d -> identity (eval mode); BatchNorm1d with running stats
    inv_std = lax.rsqrt(var_ref[...] + BN_EPS)
    h = (h - mean_ref[...]) * inv_std * gamma_ref[...] + beta_ref[...]
    h = jnp.maximum(h, 0.0)                                        # ReLU
    out_ref[...] = (jnp.dot(h, w2_ref[...], preferred_element_type=jnp.float32)
                    + b2_ref[...])


def head_forward(x, w1, b1, gamma, beta, mean, var, w2, b2):
    b, d = x.shape
    h1 = w1.shape[1]
    h2 = w2.shape[1]
    vec1 = pl.BlockSpec((1, h1), lambda i: (0, 0))
    return pl.pallas_call(
        _head_kernel,
        out_shape=jax.ShapeDtypeStruct((b, h2), jnp.float32),
        grid_spec=pltpu.PrefetchScalarGridSpec(
            num_scalar_prefetch=0,
            grid=(1,),
            in_specs=[
                pl.BlockSpec((b, d), lambda i: (0, 0)),
                pl.BlockSpec((d, h1), lambda i: (0, 0)),
                vec1, vec1, vec1, vec1, vec1,
                pl.BlockSpec((h1, h2), lambda i: (0, 0)),
                pl.BlockSpec((1, h2), lambda i: (0, 0)),
            ],
            out_specs=pl.BlockSpec((b, h2), lambda i: (0, 0)),
        ),
        compiler_params=pltpu.CompilerParams(
            dimension_semantics=("arbitrary",)),
    )(x, w1, b1, gamma, beta, mean, var, w2, b2)


# ------------------------------------------------------------------ params
def init_params(key):
    ks = jax.random.split(key, 8)

    def lin(k, fan_in, fan_out):
        return (jax.random.normal(k, (fan_in, fan_out), jnp.float32)
                * (1.0 / jnp.sqrt(jnp.float32(fan_in))))

    return {
        "wstem": lin(ks[0], PATCH_DIM, STEM_DIM),
        "bstem": jnp.zeros((1, STEM_DIM), jnp.float32),
        "wcls":  lin(ks[1], STEM_DIM, EMB_DIM),          # ef.classifier 1280->64
        "bcls":  0.01 * jax.random.normal(ks[2], (1, EMB_DIM), jnp.float32),
        "w1":    lin(ks[3], 128 * 12, HIDDEN1),          # fc1 (1536 -> hidden1)
        "b1":    0.01 * jax.random.normal(ks[4], (1, HIDDEN1), jnp.float32),
        "gamma": jnp.ones((1, HIDDEN1), jnp.float32),    # BatchNorm1d affine
        "beta":  jnp.zeros((1, HIDDEN1), jnp.float32),
        "mean":  jnp.zeros((1, HIDDEN1), jnp.float32),   # running stats (eval)
        "var":   jnp.ones((1, HIDDEN1), jnp.float32),
        "w2":    lin(ks[5], HIDDEN1, HIDDEN2),           # fc2 (hidden1 -> hidden2)
        "b2":    0.01 * jax.random.normal(ks[6], (1, HIDDEN2), jnp.float32),
    }


def prepare_params(params):
    """Hoist every parameter-only transform out of the per-forward path."""
    h1 = params["w1"].shape[1]
    # Fold the 24-slot hori/vert pair concatenation into fc1's weight: fragment
    # f's fc1 contribution is emb[:, f] @ sum of the w1 slices of every slot
    # that references f.  Exact in eval mode (dropout = identity).
    slots = jnp.array(PAIR_SLOTS, jnp.int32)                       # (24,)
    w1_blocks = params["w1"].reshape(24, EMB_DIM, h1)
    w_eff = jnp.zeros((9, EMB_DIM, h1), params["w1"].dtype).at[slots].add(w1_blocks)
    w_eff = w_eff.reshape(9 * EMB_DIM, h1)                         # (576, h1)
    # Fold the fragment-independent classifier bias into fc1's bias.
    b1_eff = params["b1"] + jnp.tile(params["bcls"], (1, 9)) @ w_eff
    # Block-diagonal 36-patch averaging matrix used by the in-kernel pool.
    pool = np.zeros((FRAG_TILE, ROW_TILE), np.float32)
    for f in range(FRAG_TILE):
        pool[f, f * N_PATCH:(f + 1) * N_PATCH] = 1.0 / N_PATCH
    return {
        "wstem": params["wstem"].astype(jnp.bfloat16),
        "bstem": params["bstem"],
        "wcls":  params["wcls"].astype(jnp.bfloat16),
        "pool":  jnp.asarray(pool),
        "w1":    w_eff,
        "b1":    b1_eff,
        "gamma": params["gamma"], "beta": params["beta"],
        "mean":  params["mean"], "var": params["var"],
        "w2":    params["w2"], "b2": params["b2"],
    }


# ------------------------------------------------------------------ wrapper
def fen_model_forward(image, prep):
    B = image.shape[0]

    # 3x3 grid of 96x96 fragments (same row-major order as the torch slicing),
    # patchified into 36 x 768 rows each and flattened fragment-major so every
    # stem row tile covers whole fragments.  bf16 cast BEFORE the relayout
    # halves the transpose's HBM traffic.
    x = image.astype(jnp.bfloat16)
    x = x.reshape(B, 3, 3, GRID3, PATCH, 3, GRID3, PATCH)   # B C FR GR ph FC GC pw
    x = x.transpose(0, 2, 5, 3, 6, 1, 4, 7)                 # B FR FC GR GC C ph pw
    p = x.reshape(B * 9 * N_PATCH, PATCH_DIM)

    # Pad to whole row tiles and an EVEN tile count (v7x has 2 TensorCores);
    # padded fragments produce garbage embeddings that are sliced off below.
    n_frag = B * 9
    n_tiles = -(-n_frag // FRAG_TILE)
    if n_tiles % 2:
        n_tiles += 1
    pad_rows = n_tiles * ROW_TILE - p.shape[0]
    if pad_rows:
        p = jnp.pad(p, ((0, pad_rows), (0, 0)))

    emb = stem_forward(p, prep["pool"], prep["wstem"], prep["bstem"],
                       prep["wcls"], n_tiles=n_tiles)        # (n_frag_pad, 64)
    emb_flat = emb[:n_frag].reshape(B, 9 * EMB_DIM)          # (B, 576)

    return head_forward(emb_flat, prep["w1"], prep["b1"],
                        prep["gamma"], prep["beta"],
                        prep["mean"], prep["var"],
                        prep["w2"], prep["b2"])              # (B, hidden2)


if __name__ == "__main__":
    key = jax.random.PRNGKey(0)
    k_img, k_par = jax.random.split(key)
    image = jax.random.normal(k_img, (2, 3, 288, 288), jnp.float32)  # NCHW
    params = init_params(k_par)
    prep = prepare_params(params)            # hoisted parameter-only transforms

    out = jax.jit(fen_model_forward)(image, prep)
    out = jax.block_until_ready(out)
    assert out.shape == (2, HIDDEN2) and out.dtype == jnp.float32
    print("KERNEL_OK")
</pallas_src>

<mosaic_0001>
module attributes {stable_mosaic.version = 11 : i64} {
  func.func @_stem_kernel(%arg0: i32, %arg1: memref<288x768xbf16, #tpu.memory_space<vmem>>, %arg2: memref<8x288xf32, #tpu.memory_space<vmem>>, %arg3: memref<768x1280xbf16, #tpu.memory_space<vmem>>, %arg4: memref<1x1280xf32, #tpu.memory_space<vmem>>, %arg5: memref<1280x64xbf16, #tpu.memory_space<vmem>>, %arg6: memref<8x64xf32, #tpu.memory_space<vmem>>) attributes {dimension_semantics = [#tpu.dimension_semantics<parallel>], iteration_bounds = array<i64: 4>, scalar_prefetch = 0 : i64, scratch_operands = 0 : i64, tpu.core_type = #tpu.core_type<tc>, window_params = [{transform_indices = @transform_0, window_bounds = array<i64: 288, 768>}, {pipeline_mode = #tpu.pipeline_mode<synchronous>, transform_indices = @transform_1, window_bounds = array<i64: 8, 288>}, {pipeline_mode = #tpu.pipeline_mode<synchronous>, transform_indices = @transform_2, window_bounds = array<i64: 768, 1280>}, {pipeline_mode = #tpu.pipeline_mode<synchronous>, transform_indices = @transform_3, window_bounds = array<i64: 1, 1280>}, {pipeline_mode = #tpu.pipeline_mode<synchronous>, transform_indices = @transform_4, window_bounds = array<i64: 1280, 64>}, {transform_indices = @transform_5, window_bounds = array<i64: 8, 64>}]} {
    %c0 = arith.constant 0 : index
    %c0_0 = arith.constant 0 : index
    %0 = vector.load %arg1[%c0, %c0_0] : memref<288x768xbf16, #tpu.memory_space<vmem>>, vector<288x768xbf16>
    %c0_1 = arith.constant 0 : index
    %c0_2 = arith.constant 0 : index
    %1 = vector.load %arg2[%c0_1, %c0_2] : memref<8x288xf32, #tpu.memory_space<vmem>>, vector<8x288xf32>
    %cst = arith.constant 0.000000e+00 : f32
    %2 = vector.broadcast %cst : f32 to vector<8x64xf32>
    %c0_3 = arith.constant 0 : index
    %c0_4 = arith.constant 0 : index
    %3 = vector.load %arg3[%c0_3, %c0_4] : memref<768x1280xbf16, #tpu.memory_space<vmem>>, vector<768x256xbf16>
    %cst_5 = arith.constant dense<0.000000e+00> : vector<288x256xf32>
    %4 = tpu.matmul %0, %3, %cst_5 {dimension_numbers = #tpu.dot_dimension_numbers<[1], [0], [0], [1], [0, 0, 1, 1], [], []>} : vector<288x768xbf16>, vector<768x256xbf16>, vector<288x256xf32> -> vector<288x256xf32>
    %c0_6 = arith.constant 0 : index
    %c0_7 = arith.constant 0 : index
    %5 = vector.load %arg4[%c0_6, %c0_7] : memref<1x1280xf32, #tpu.memory_space<vmem>>, vector<1x256xf32>
    %6 = vector.broadcast %5 : vector<1x256xf32> to vector<288x256xf32>
    %7 = arith.addf %4, %6 : vector<288x256xf32>
    %cst_8 = arith.constant 0.000000e+00 : f32
    %8 = vector.broadcast %cst_8 : f32 to vector<288x256xf32>
    %9 = arith.maximumf %7, %8 : vector<288x256xf32>
    %cst_9 = arith.constant dense<0.000000e+00> : vector<8x256xf32>
    %10 = tpu.matmul %1, %9, %cst_9 {dimension_numbers = #tpu.dot_dimension_numbers<[1], [0], [0], [1], [0, 0, 1, 1], [], []>} : vector<8x288xf32>, vector<288x256xf32>, vector<8x256xf32> -> vector<8x256xf32>
    %11 = arith.truncf %10 : vector<8x256xf32> to vector<8x256xbf16>
    %c0_10 = arith.constant 0 : index
    %c0_11 = arith.constant 0 : index
    %12 = vector.load %arg5[%c0_10, %c0_11] : memref<1280x64xbf16, #tpu.memory_space<vmem>>, vector<256x64xbf16>
    %cst_12 = arith.constant dense<0.000000e+00> : vector<8x64xf32>
    %13 = tpu.matmul %11, %12, %cst_12 {dimension_numbers = #tpu.dot_dimension_numbers<[1], [0], [0], [1], [0, 0, 1, 1], [], []>} : vector<8x256xbf16>, vector<256x64xbf16>, vector<8x64xf32> -> vector<8x64xf32>
    %14 = arith.addf %2, %13 : vector<8x64xf32>
    %c0_13 = arith.constant 0 : index
    %c256 = arith.constant 256 : index
    %15 = vector.load %arg3[%c0_13, %c256] : memref<768x1280xbf16, #tpu.memory_space<vmem>>, vector<768x256xbf16>
    %cst_14 = arith.constant dense<0.000000e+00> : vector<288x256xf32>
    %16 = tpu.matmul %0, %15, %cst_14 {dimension_numbers = #tpu.dot_dimension_numbers<[1], [0], [0], [1], [0, 0, 1, 1], [], []>} : vector<288x768xbf16>, vector<768x256xbf16>, vector<288x256xf32> -> vector<288x256xf32>
    %c0_15 = arith.constant 0 : index
    %c256_16 = arith.constant 256 : index
    %17 = vector.load %arg4[%c0_15, %c256_16] : memref<1x1280xf32, #tpu.memory_space<vmem>>, vector<1x256xf32>
    %18 = vector.broadcast %17 : vector<1x256xf32> to vector<288x256xf32>
    %19 = arith.addf %16, %18 : vector<288x256xf32>
    %cst_17 = arith.constant 0.000000e+00 : f32
    %20 = vector.broadcast %cst_17 : f32 to vector<288x256xf32>
    %21 = arith.maximumf %19, %20 : vector<288x256xf32>
    %cst_18 = arith.constant dense<0.000000e+00> : vector<8x256xf32>
    %22 = tpu.matmul %1, %21, %cst_18 {dimension_numbers = #tpu.dot_dimension_numbers<[1], [0], [0], [1], [0, 0, 1, 1], [], []>} : vector<8x288xf32>, vector<288x256xf32>, vector<8x256xf32> -> vector<8x256xf32>
    %23 = arith.truncf %22 : vector<8x256xf32> to vector<8x256xbf16>
    %c256_19 = arith.constant 256 : index
    %c0_20 = arith.constant 0 : index
    %24 = vector.load %arg5[%c256_19, %c0_20] : memref<1280x64xbf16, #tpu.memory_space<vmem>>, vector<256x64xbf16>
    %cst_21 = arith.constant dense<0.000000e+00> : vector<8x64xf32>
    %25 = tpu.matmul %23, %24, %cst_21 {dimension_numbers = #tpu.dot_dimension_numbers<[1], [0], [0], [1], [0, 0, 1, 1], [], []>} : vector<8x256xbf16>, vector<256x64xbf16>, vector<8x64xf32> -> vector<8x64xf32>
    %26 = arith.addf %14, %25 : vector<8x64xf32>
    %c0_22 = arith.constant 0 : index
    %c512 = arith.constant 512 : index
    %27 = vector.load %arg3[%c0_22, %c512] : memref<768x1280xbf16, #tpu.memory_space<vmem>>, vector<768x256xbf16>
    %cst_23 = arith.constant dense<0.000000e+00> : vector<288x256xf32>
    %28 = tpu.matmul %0, %27, %cst_23 {dimension_numbers = #tpu.dot_dimension_numbers<[1], [0], [0], [1], [0, 0, 1, 1], [], []>} : vector<288x768xbf16>, vector<768x256xbf16>, vector<288x256xf32> -> vector<288x256xf32>
    %c0_24 = arith.constant 0 : index
    %c512_25 = arith.constant 512 : index
    %29 = vector.load %arg4[%c0_24, %c512_25] : memref<1x1280xf32, #tpu.memory_space<vmem>>, vector<1x256xf32>
    %30 = vector.broadcast %29 : vector<1x256xf32> to vector<288x256xf32>
    %31 = arith.addf %28, %30 : vector<288x256xf32>
    %cst_26 = arith.constant 0.000000e+00 : f32
    %32 = vector.broadcast %cst_26 : f32 to vector<288x256xf32>
    %33 = arith.maximumf %31, %32 : vector<288x256xf32>
    %cst_27 = arith.constant dense<0.000000e+00> : vector<8x256xf32>
    %34 = tpu.matmul %1, %33, %cst_27 {dimension_numbers = #tpu.dot_dimension_numbers<[1], [0], [0], [1], [0, 0, 1, 1], [], []>} : vector<8x288xf32>, vector<288x256xf32>, vector<8x256xf32> -> vector<8x256xf32>
    %35 = arith.truncf %34 : vector<8x256xf32> to vector<8x256xbf16>
    %c512_28 = arith.constant 512 : index
    %c0_29 = arith.constant 0 : index
    %36 = vector.load %arg5[%c512_28, %c0_29] : memref<1280x64xbf16, #tpu.memory_space<vmem>>, vector<256x64xbf16>
    %cst_30 = arith.constant dense<0.000000e+00> : vector<8x64xf32>
    %37 = tpu.matmul %35, %36, %cst_30 {dimension_numbers = #tpu.dot_dimension_numbers<[1], [0], [0], [1], [0, 0, 1, 1], [], []>} : vector<8x256xbf16>, vector<256x64xbf16>, vector<8x64xf32> -> vector<8x64xf32>
    %38 = arith.addf %26, %37 : vector<8x64xf32>
    %c0_31 = arith.constant 0 : index
    %c768 = arith.constant 768 : index
    %39 = vector.load %arg3[%c0_31, %c768] : memref<768x1280xbf16, #tpu.memory_space<vmem>>, vector<768x256xbf16>
    %cst_32 = arith.constant dense<0.000000e+00> : vector<288x256xf32>
    %40 = tpu.matmul %0, %39, %cst_32 {dimension_numbers = #tpu.dot_dimension_numbers<[1], [0], [0], [1], [0, 0, 1, 1], [], []>} : vector<288x768xbf16>, vector<768x256xbf16>, vector<288x256xf32> -> vector<288x256xf32>
    %c0_33 = arith.constant 0 : index
    %c768_34 = arith.constant 768 : index
    %41 = vector.load %arg4[%c0_33, %c768_34] : memref<1x1280xf32, #tpu.memory_space<vmem>>, vector<1x256xf32>
    %42 = vector.broadcast %41 : vector<1x256xf32> to vector<288x256xf32>
    %43 = arith.addf %40, %42 : vector<288x256xf32>
    %cst_35 = arith.constant 0.000000e+00 : f32
    %44 = vector.broadcast %cst_35 : f32 to vector<288x256xf32>
    %45 = arith.maximumf %43, %44 : vector<288x256xf32>
    %cst_36 = arith.constant dense<0.000000e+00> : vector<8x256xf32>
    %46 = tpu.matmul %1, %45, %cst_36 {dimension_numbers = #tpu.dot_dimension_numbers<[1], [0], [0], [1], [0, 0, 1, 1], [], []>} : vector<8x288xf32>, vector<288x256xf32>, vector<8x256xf32> -> vector<8x256xf32>
    %47 = arith.truncf %46 : vector<8x256xf32> to vector<8x256xbf16>
    %c768_37 = arith.constant 768 : index
    %c0_38 = arith.constant 0 : index
    %48 = vector.load %arg5[%c768_37, %c0_38] : memref<1280x64xbf16, #tpu.memory_space<vmem>>, vector<256x64xbf16>
    %cst_39 = arith.constant dense<0.000000e+00> : vector<8x64xf32>
    %49 = tpu.matmul %47, %48, %cst_39 {dimension_numbers = #tpu.dot_dimension_numbers<[1], [0], [0], [1], [0, 0, 1, 1], [], []>} : vector<8x256xbf16>, vector<256x64xbf16>, vector<8x64xf32> -> vector<8x64xf32>
    %50 = arith.addf %38, %49 : vector<8x64xf32>
    %c0_40 = arith.constant 0 : index
    %c1024 = arith.constant 1024 : index
    %51 = vector.load %arg3[%c0_40, %c1024] : memref<768x1280xbf16, #tpu.memory_space<vmem>>, vector<768x256xbf16>
    %cst_41 = arith.constant dense<0.000000e+00> : vector<288x256xf32>
    %52 = tpu.matmul %0, %51, %cst_41 {dimension_numbers = #tpu.dot_dimension_numbers<[1], [0], [0], [1], [0, 0, 1, 1], [], []>} : vector<288x768xbf16>, vector<768x256xbf16>, vector<288x256xf32> -> vector<288x256xf32>
    %c0_42 = arith.constant 0 : index
    %c1024_43 = arith.constant 1024 : index
    %53 = vector.load %arg4[%c0_42, %c1024_43] : memref<1x1280xf32, #tpu.memory_space<vmem>>, vector<1x256xf32>
    %54 = vector.broadcast %53 : vector<1x256xf32> to vector<288x256xf32>
    %55 = arith.addf %52, %54 : vector<288x256xf32>
    %cst_44 = arith.constant 0.000000e+00 : f32
    %56 = vector.broadcast %cst_44 : f32 to vector<288x256xf32>
    %57 = arith.maximumf %55, %56 : vector<288x256xf32>
    %cst_45 = arith.constant dense<0.000000e+00> : vector<8x256xf32>
    %58 = tpu.matmul %1, %57, %cst_45 {dimension_numbers = #tpu.dot_dimension_numbers<[1], [0], [0], [1], [0, 0, 1, 1], [], []>} : vector<8x288xf32>, vector<288x256xf32>, vector<8x256xf32> -> vector<8x256xf32>
    %59 = arith.truncf %58 : vector<8x256xf32> to vector<8x256xbf16>
    %c1024_46 = arith.constant 1024 : index
    %c0_47 = arith.constant 0 : index
    %60 = vector.load %arg5[%c1024_46, %c0_47] : memref<1280x64xbf16, #tpu.memory_space<vmem>>, vector<256x64xbf16>
    %cst_48 = arith.constant dense<0.000000e+00> : vector<8x64xf32>
    %61 = tpu.matmul %59, %60, %cst_48 {dimension_numbers = #tpu.dot_dimension_numbers<[1], [0], [0], [1], [0, 0, 1, 1], [], []>} : vector<8x256xbf16>, vector<256x64xbf16>, vector<8x64xf32> -> vector<8x64xf32>
    %62 = arith.addf %50, %61 : vector<8x64xf32>
    %c0_49 = arith.constant 0 : index
    %c0_50 = arith.constant 0 : index
    %63 = vector.load %arg6[%c0_49, %c0_50] : memref<8x64xf32, #tpu.memory_space<vmem>>, vector<8x64xf32>
    tpu.vector_store %arg6[%c0_49, %c0_50], %62 {strides = array<i32>} : memref<8x64xf32, #tpu.memory_space<vmem>>, vector<8x64xf32>,
    return
  }
  func.func @transform_0(%arg0: i32) -> (i32, i32) {
    %c0_i32 = arith.constant 0 : i32
    %c0_i32_0 = arith.constant 0 : i32
    return %arg0, %c0_i32 : i32, i32
  }
  func.func @transform_1(%arg0: i32) -> (i32, i32) {
    %c0_i32 = arith.constant 0 : i32
    %c0_i32_0 = arith.constant 0 : i32
    %c0_i32_1 = arith.constant 0 : i32
    return %c0_i32, %c0_i32_0 : i32, i32
  }
  func.func @transform_2(%arg0: i32) -> (i32, i32) {
    %c0_i32 = arith.constant 0 : i32
    %c0_i32_0 = arith.constant 0 : i32
    %c0_i32_1 = arith.constant 0 : i32
    return %c0_i32, %c0_i32_0 : i32, i32
  }
  func.func @transform_3(%arg0: i32) -> (i32, i32) {
    %c0_i32 = arith.constant 0 : i32
    %c0_i32_0 = arith.constant 0 : i32
    %c0_i32_1 = arith.constant 0 : i32
    return %c0_i32, %c0_i32_0 : i32, i32
  }
  func.func @transform_4(%arg0: i32) -> (i32, i32) {
    %c0_i32 = arith.constant 0 : i32
    %c0_i32_0 = arith.constant 0 : i32
    %c0_i32_1 = arith.constant 0 : i32
    return %c0_i32, %c0_i32_0 : i32, i32
  }
  func.func @transform_5(%arg0: i32) -> (i32, i32) {
    %c0_i32 = arith.constant 0 : i32
    %c0_i32_0 = arith.constant 0 : i32
    return %arg0, %c0_i32 : i32, i32
  }
}

module attributes {stable_mosaic.version = 11 : i64} {
  func.func @_head_kernel(%arg0: i32, %arg1: memref<2x576xf32, #tpu.memory_space<vmem>>, %arg2: memref<576x64xf32, #tpu.memory_space<vmem>>, %arg3: memref<1x64xf32, #tpu.memory_space<vmem>>, %arg4: memref<1x64xf32, #tpu.memory_space<vmem>>, %arg5: memref<1x64xf32, #tpu.memory_space<vmem>>, %arg6: memref<1x64xf32, #tpu.memory_space<vmem>>, %arg7: memref<1x64xf32, #tpu.memory_space<vmem>>, %arg8: memref<64x32xf32, #tpu.memory_space<vmem>>, %arg9: memref<1x32xf32, #tpu.memory_space<vmem>>, %arg10: memref<2x32xf32, #tpu.memory_space<vmem>>) attributes {dimension_semantics = [#tpu.dimension_semantics<arbitrary>], iteration_bounds = array<i64: 1>, scalar_prefetch = 0 : i64, scratch_operands = 0 : i64, tpu.core_type = #tpu.core_type<tc>, window_params = [{pipeline_mode = #tpu.pipeline_mode<synchronous>, transform_indices = @transform_0, window_bounds = array<i64: 2, 576>}, {pipeline_mode = #tpu.pipeline_mode<synchronous>, transform_indices = @transform_1, window_bounds = array<i64: 576, 64>}, {pipeline_mode = #tpu.pipeline_mode<synchronous>, transform_indices = @transform_2, window_bounds = array<i64: 1, 64>}, {pipeline_mode = #tpu.pipeline_mode<synchronous>, transform_indices = @transform_3, window_bounds = array<i64: 1, 64>}, {pipeline_mode = #tpu.pipeline_mode<synchronous>, transform_indices = @transform_4, window_bounds = array<i64: 1, 64>}, {pipeline_mode = #tpu.pipeline_mode<synchronous>, transform_indices = @transform_5, window_bounds = array<i64: 1, 64>}, {pipeline_mode = #tpu.pipeline_mode<synchronous>, transform_indices = @transform_6, window_bounds = array<i64: 1, 64>}, {pipeline_mode = #tpu.pipeline_mode<synchronous>, transform_indices = @transform_7, window_bounds = array<i64: 64, 32>}, {pipeline_mode = #tpu.pipeline_mode<synchronous>, transform_indices = @transform_8, window_bounds = array<i64: 1, 32>}, {pipeline_mode = #tpu.pipeline_mode<synchronous>, transform_indices = @transform_9, window_bounds = array<i64: 2, 32>}]} {
    %c0 = arith.constant 0 : index
    %c0_0 = arith.constant 0 : index
    %0 = vector.load %arg1[%c0, %c0_0] : memref<2x576xf32, #tpu.memory_space<vmem>>, vector<2x576xf32>
    %c0_1 = arith.constant 0 : index
    %c0_2 = arith.constant 0 : index
    %1 = vector.load %arg2[%c0_1, %c0_2] : memref<576x64xf32, #tpu.memory_space<vmem>>, vector<576x64xf32>
    %cst = arith.constant dense<0.000000e+00> : vector<2x64xf32>
    %2 = tpu.matmul %0, %1, %cst {dimension_numbers = #tpu.dot_dimension_numbers<[1], [0], [0], [1], [0, 0, 1, 1], [], []>} : vector<2x576xf32>, vector<576x64xf32>, vector<2x64xf32> -> vector<2x64xf32>
    %c0_3 = arith.constant 0 : index
    %c0_4 = arith.constant 0 : index
    %3 = vector.load %arg3[%c0_3, %c0_4] : memref<1x64xf32, #tpu.memory_space<vmem>>, vector<1x64xf32>
    %4 = vector.broadcast %3 : vector<1x64xf32> to vector<2x64xf32>
    %5 = arith.addf %2, %4 : vector<2x64xf32>
    %c0_5 = arith.constant 0 : index
    %c0_6 = arith.constant 0 : index
    %6 = vector.load %arg7[%c0_5, %c0_6] : memref<1x64xf32, #tpu.memory_space<vmem>>, vector<1x64xf32>
    %cst_7 = arith.constant 9.99999974E-6 : f32
    %7 = vector.broadcast %cst_7 : f32 to vector<1x64xf32>
    %8 = arith.addf %6, %7 : vector<1x64xf32>
    %9 = math.rsqrt %8 : vector<1x64xf32>
    %c0_8 = arith.constant 0 : index
    %c0_9 = arith.constant 0 : index
    %10 = vector.load %arg6[%c0_8, %c0_9] : memref<1x64xf32, #tpu.memory_space<vmem>>, vector<1x64xf32>
    %11 = vector.broadcast %10 : vector<1x64xf32> to vector<2x64xf32>
    %12 = arith.subf %5, %11 : vector<2x64xf32>
    %13 = vector.broadcast %9 : vector<1x64xf32> to vector<2x64xf32>
    %14 = arith.mulf %12, %13 : vector<2x64xf32>
    %c0_10 = arith.constant 0 : index
    %c0_11 = arith.constant 0 : index
    %15 = vector.load %arg4[%c0_10, %c0_11] : memref<1x64xf32, #tpu.memory_space<vmem>>, vector<1x64xf32>
    %16 = vector.broadcast %15 : vector<1x64xf32> to vector<2x64xf32>
    %17 = arith.mulf %14, %16 : vector<2x64xf32>
    %c0_12 = arith.constant 0 : index
    %c0_13 = arith.constant 0 : index
    %18 = vector.load %arg5[%c0_12, %c0_13] : memref<1x64xf32, #tpu.memory_space<vmem>>, vector<1x64xf32>
    %19 = vector.broadcast %18 : vector<1x64xf32> to vector<2x64xf32>
    %20 = arith.addf %17, %19 : vector<2x64xf32>
    %cst_14 = arith.constant 0.000000e+00 : f32
    %21 = vector.broadcast %cst_14 : f32 to vector<2x64xf32>
    %22 = arith.maximumf %20, %21 : vector<2x64xf32>
    %c0_15 = arith.constant 0 : index
    %c0_16 = arith.constant 0 : index
    %23 = vector.load %arg8[%c0_15, %c0_16] : memref<64x32xf32, #tpu.memory_space<vmem>>, vector<64x32xf32>
    %cst_17 = arith.constant dense<0.000000e+00> : vector<2x32xf32>
    %24 = tpu.matmul %22, %23, %cst_17 {dimension_numbers = #tpu.dot_dimension_numbers<[1], [0], [0], [1], [0, 0, 1, 1], [], []>} : vector<2x64xf32>, vector<64x32xf32>, vector<2x32xf32> -> vector<2x32xf32>
    %c0_18 = arith.constant 0 : index
    %c0_19 = arith.constant 0 : index
    %25 = vector.load %arg9[%c0_18, %c0_19] : memref<1x32xf32, #tpu.memory_space<vmem>>, vector<1x32xf32>
    %26 = vector.broadcast %25 : vector<1x32xf32> to vector<2x32xf32>
    %27 = arith.addf %24, %26 : vector<2x32xf32>
    %c0_20 = arith.constant 0 : index
    %c0_21 = arith.constant 0 : index
    %28 = vector.load %arg10[%c0_20, %c0_21] : memref<2x32xf32, #tpu.memory_space<vmem>>, vector<2x32xf32>
    tpu.vector_store %arg10[%c0_20, %c0_21], %27 {strides = array<i32>} : memref<2x32xf32, #tpu.memory_space<vmem>>, vector<2x32xf32>,
    return
  }
  func.func @transform_0(%arg0: i32) -> (i32, i32) {
    %c0_i32 = arith.constant 0 : i32
    %c0_i32_0 = arith.constant 0 : i32
    %c0_i32_1 = arith.constant 0 : i32
    return %c0_i32, %c0_i32_0 : i32, i32
  }
  func.func @transform_1(%arg0: i32) -> (i32, i32) {
    %c0_i32 = arith.constant 0 : i32
    %c0_i32_0 = arith.constant 0 : i32
    %c0_i32_1 = arith.constant 0 : i32
    return %c0_i32, %c0_i32_0 : i32, i32
  }
  func.func @transform_2(%arg0: i32) -> (i32, i32) {
    %c0_i32 = arith.constant 0 : i32
    %c0_i32_0 = arith.constant 0 : i32
    %c0_i32_1 = arith.constant 0 : i32
    return %c0_i32, %c0_i32_0 : i32, i32
  }
  func.func @transform_3(%arg0: i32) -> (i32, i32) {
    %c0_i32 = arith.constant 0 : i32
    %c0_i32_0 = arith.constant 0 : i32
    %c0_i32_1 = arith.constant 0 : i32
    return %c0_i32, %c0_i32_0 : i32, i32
  }
  func.func @transform_4(%arg0: i32) -> (i32, i32) {
    %c0_i32 = arith.constant 0 : i32
    %c0_i32_0 = arith.constant 0 : i32
    %c0_i32_1 = arith.constant 0 : i32
    return %c0_i32, %c0_i32_0 : i32, i32
  }
  func.func @transform_5(%arg0: i32) -> (i32, i32) {
    %c0_i32 = arith.constant 0 : i32
    %c0_i32_0 = arith.constant 0 : i32
    %c0_i32_1 = arith.constant 0 : i32
    return %c0_i32, %c0_i32_0 : i32, i32
  }
  func.func @transform_6(%arg0: i32) -> (i32, i32) {
    %c0_i32 = arith.constant 0 : i32
    %c0_i32_0 = arith.constant 0 : i32
    %c0_i32_1 = arith.constant 0 : i32
    return %c0_i32, %c0_i32_0 : i32, i32
  }
  func.func @transform_7(%arg0: i32) -> (i32, i32) {
    %c0_i32 = arith.constant 0 : i32
    %c0_i32_0 = arith.constant 0 : i32
    %c0_i32_1 = arith.constant 0 : i32
    return %c0_i32, %c0_i32_0 : i32, i32
  }
  func.func @transform_8(%arg0: i32) -> (i32, i32) {
    %c0_i32 = arith.constant 0 : i32
    %c0_i32_0 = arith.constant 0 : i32
    %c0_i32_1 = arith.constant 0 : i32
    return %c0_i32, %c0_i32_0 : i32, i32
  }
  func.func @transform_9(%arg0: i32) -> (i32, i32) {
    %c0_i32 = arith.constant 0 : i32
    %c0_i32_0 = arith.constant 0 : i32
    %c0_i32_1 = arith.constant 0 : i32
    return %c0_i32, %c0_i32_0 : i32, i32
  }
}

</mosaic_0001>

<bundles_post_ra>
// kernel: fen_model_forward.3
= control target key start
LH: loop header
LB: loop body
LE: loop exit
PB: predicated region body
PF: predicated region fallthrough
CT: control target
= control target key end

     0   :  { %v750_v43 = vmov 1983009808   ;;  %v120_v45 = vlaneseq  ;;  %s1087_s0 = inlined_call_operand.vmem [shape: f32[2,576], index: 0, kind: input, shape index: {}]   ;;  %s1088_s1 = inlined_call_operand.vmem [shape: f32[576,64], index: 1, kind: input, shape index: {}]   ;;  %s1089_s2 = inlined_call_operand.vmem [shape: f32[1,64], index: 2, kind: input, shape index: {}]   ;;  %s1090_s3 = inlined_call_operand.vmem [shape: f32[1,64], index: 3, kind: input, shape index: {}]   ;;  %s1091_s4 = inlined_call_operand.vmem [shape: f32[1,64], index: 4, kind: input, shape index: {}]   ;;  %s1092_s5 = inlined_call_operand.vmem [shape: f32[1,64], index: 5, kind: input, shape index: {}]   ;;  %s1093_s6 = inlined_call_operand.vmem [shape: f32[1,64], index: 6, kind: input, shape index: {}]   ;;  %s1094_s7 = inlined_call_operand.vmem [shape: f32[64,32], index: 7, kind: input, shape index: {}]   ;;  %s1095_s8 = inlined_call_operand.vmem [shape: f32[1,32], index: 8, kind: input, shape index: {}]   ;;  %s1096_s9 = inlined_call_operand.hbm [shape: f32[2,32], index: 9, kind: output, shape index: {}]  }
   0x1   :  { %v51_v0 = vld [vmem:[%s1088_s1 + $0x80] sm:$0xff]  ;;  %v52_v1 = vld [vmem:[%s1088_s1 + $0x88] sm:$0xff]  ;;  %v53_v11 = vld [vmem:[%s1088_s1 + $0x90] sm:$0xff]  ;;  %v118_v44 = vunpack.c.l.s4 %v750_v43 }
   0x2   :  { %v35_v2 = vld [vmem:[%s1088_s1] sm:$0xff]  ;;  %v630_v3 = vpack.c.bf16 %v52_v1, %v51_v0  ;;  %v36_v4 = vld [vmem:[%s1088_s1 + $0x8] sm:$0xff]  ;;  %v54_v13 = vld [vmem:[%s1088_s1 + $0x98] sm:$0xff]  ;;  %v922_v60 = vshrl.u32 %v120_v45, 7 }
   0x3   :  { %v83_v5 = vld [vmem:[%s1088_s1 + $0x180] sm:$0xff]  ;;  %v84_v6 = vld [vmem:[%s1088_s1 + $0x188] sm:$0xff]  ;;  %v632_v7 = vpack.c.bf16 %v36_v4, %v35_v2  ;;  %v37_v14 = vld [vmem:[%s1088_s1 + $0x10] sm:$0xff]  ;;  %v634_v16 = vpack.c.bf16 %v54_v13, %v53_v11  ;;  %v119_v59 = vunpack.c.0.s8 %v118_v44 }
   0x4   :  { %v662_v8 = vpack.c.bf16 %v84_v6, %v83_v5  ;;  %v67_v9 = vld [vmem:[%s1088_s1 + $0x100] sm:$0xff]  ;;  %v68_v10 = vld [vmem:[%s1088_s1 + $0x108] sm:$0xff]  ;;  %631 = vmatprep.subr.bf16.mxu0 %v630_v3  ;;  %v38_v15 = vld [vmem:[%s1088_s1 + $0x18] sm:$0xff] }
   0x5   :  { %v664_v12 = vpack.c.bf16 %v68_v10, %v67_v9  ;;  %633 = vmatpush3.bf16.msra.mxu0 %v632_v7  ;;  %v636_v17 = vpack.c.bf16 %v38_v15, %v37_v14  ;;  %v85_v18 = vld [vmem:[%s1088_s1 + $0x190] sm:$0xff]  ;;  %v86_v19 = vld [vmem:[%s1088_s1 + $0x198] sm:$0xff]  ;;  %v55_v23 = vld [vmem:[%s1088_s1 + $0xa0] sm:$0xff]  ;;  %v122_v10 = vsub.s32 %v119_v59, %v922_v60 }
   0x6   :  { %663 = vmatprep.subr.bf16.mxu1 %v662_v8  ;;  %v69_v20 = vld [vmem:[%s1088_s1 + $0x110] sm:$0xff]  ;;  %v666_v21 = vpack.c.bf16 %v86_v19, %v85_v18  ;;  %v70_v22 = vld [vmem:[%s1088_s1 + $0x118] sm:$0xff]  ;;  %v56_v24 = vld [vmem:[%s1088_s1 + $0xa8] sm:$0xff]  ;;  %635 = vmatprep.subr.bf16.mxu0 %v634_v16 }
   0x7   :  { %665 = vmatpush3.bf16.msra.mxu1 %v664_v12  ;;  %v668_v25 = vpack.c.bf16 %v70_v22, %v69_v20  ;;  %v638_v26 = vpack.c.bf16 %v56_v24, %v55_v23  ;;  %v39_v27 = vld [vmem:[%s1088_s1 + $0x20] sm:$0xff]  ;;  %v40_v28 = vld [vmem:[%s1088_s1 + $0x28] sm:$0xff]  ;;  %v57_v35 = vld [vmem:[%s1088_s1 + $0xb0] sm:$0xff] }
   0x8   :  { %v87_v29 = vld [vmem:[%s1088_s1 + $0x1a0] sm:$0xff]  ;;  %667 = vmatprep.subr.bf16.mxu1 %v666_v21  ;;  %v88_v30 = vld [vmem:[%s1088_s1 + $0x1a8] sm:$0xff]  ;;  %v640_v33 = vpack.c.bf16 %v40_v28, %v39_v27  ;;  %v58_v36 = vld [vmem:[%s1088_s1 + $0xb8] sm:$0xff] }
   0x9   :  { %v71_v31 = vld [vmem:[%s1088_s1 + $0x120] sm:$0xff]  ;;  %v72_v32 = vld [vmem:[%s1088_s1 + $0x128] sm:$0xff]  ;;  %637 = vmatpush3.bf16.msra.mxu0 %v636_v17  ;;  %v670_v34 = vpack.c.bf16 %v88_v30, %v87_v29  ;;  %v41_v37 = vld [vmem:[%s1088_s1 + $0x30] sm:$0xff]  ;;  %v642_v39 = vpack.c.bf16 %v58_v36, %v57_v35 }
   0xa   :  { %639 = vmatprep.subr.bf16.mxu0 %v638_v26  ;;  %v672_v38 = vpack.c.bf16 %v72_v32, %v71_v31  ;;  %v42_v40 = vld [vmem:[%s1088_s1 + $0x38] sm:$0xff]  ;;  %v89_v41 = vld [vmem:[%s1088_s1 + $0x1b0] sm:$0xff]  ;;  %v59_v49 = vld [vmem:[%s1088_s1 + $0xc0] sm:$0xff] }
   0xb   :  { %669 = vmatpush3.bf16.msra.mxu1 %v668_v25  ;;  %v90_v42 = vld [vmem:[%s1088_s1 + $0x1b8] sm:$0xff]  ;;  %v73_v47 = vld [vmem:[%s1088_s1 + $0x130] sm:$0xff]  ;;  %v60_v50 = vld [vmem:[%s1088_s1 + $0xc8] sm:$0xff]  ;;  %v644_v51 = vpack.c.bf16 %v42_v40, %v41_v37 }
   0xc   :  { %671 = vmatprep.subr.bf16.mxu1 %v670_v34  ;;  %v674_v46 = vpack.c.bf16 %v90_v42, %v89_v41  ;;  %v74_v48 = vld [vmem:[%s1088_s1 + $0x138] sm:$0xff]  ;;  %v91_v52 = vld [vmem:[%s1088_s1 + $0x1c0] sm:$0xff]  ;;  %v92_v53 = vld [vmem:[%s1088_s1 + $0x1c8] sm:$0xff]  ;;  %v646_v55 = vpack.c.bf16 %v60_v50, %v59_v49 }
   0xd   :  { %641 = vmatpush3.bf16.msra.mxu0 %v640_v33  ;;  %v676_v54 = vpack.c.bf16 %v74_v48, %v73_v47  ;;  %v43_v56 = vld [vmem:[%s1088_s1 + $0x40] sm:$0xff]  ;;  %v44_v57 = vld [vmem:[%s1088_s1 + $0x48] sm:$0xff]  ;;  %v678_v61 = vpack.c.bf16 %v92_v53, %v91_v52  ;;  %v61_v63 = vld [vmem:[%s1088_s1 + $0xd0] sm:$0xff] }
   0xe   :  { %643 = vmatprep.subr.bf16.mxu0 %v642_v39  ;;  %v75_v58 = vld [vmem:[%s1088_s1 + $0x140] sm:$0xff]  ;;  %v76_v62 = vld [vmem:[%s1088_s1 + $0x148] sm:$0xff]  ;;  %v62_v0 = vld [vmem:[%s1088_s1 + $0xd8] sm:$0xff]  ;;  %v648_v3 = vpack.c.bf16 %v44_v57, %v43_v56 }
   0xf   :  { %673 = vmatpush3.bf16.msra.mxu1 %v672_v38  ;;  %v93_v1 = vld [vmem:[%s1088_s1 + $0x1d0] sm:$0xff]  ;;  %v94_v2 = vld [vmem:[%s1088_s1 + $0x1d8] sm:$0xff]  ;;  %v680_v5 = vpack.c.bf16 %v76_v62, %v75_v58  ;;  %v650_v6 = vpack.c.bf16 %v62_v0, %v61_v63  ;;  %v63_v12 = vld [vmem:[%s1088_s1 + $0xe0] sm:$0xff] }
  0x10   :  { %675 = vmatprep.subr.bf16.mxu1 %v674_v46  ;;  %v45_v4 = vld [vmem:[%s1088_s1 + $0x50] sm:$0xff]  ;;  %v46_v7 = vld [vmem:[%s1088_s1 + $0x58] sm:$0xff]  ;;  %v682_v11 = vpack.c.bf16 %v94_v2, %v93_v1  ;;  %v64_v13 = vld [vmem:[%s1088_s1 + $0xe8] sm:$0xff] }
  0x11   :  { %645 = vmatpush3.bf16.msra.mxu0 %v644_v51  ;;  %v77_v8 = vld [vmem:[%s1088_s1 + $0x150] sm:$0xff]  ;;  %v78_v9 = vld [vmem:[%s1088_s1 + $0x158] sm:$0xff]  ;;  %v95_v14 = vld [vmem:[%s1088_s1 + $0x1e0] sm:$0xff]  ;;  %v652_v16 = vpack.c.bf16 %v46_v7, %v45_v4  ;;  %v654_v19 = vpack.c.bf16 %v64_v13, %v63_v12 }
  0x12   :  { %647 = vmatprep.subr.bf16.mxu0 %v646_v55  ;;  %v96_v15 = vld [vmem:[%s1088_s1 + $0x1e8] sm:$0xff]  ;;  %v684_v17 = vpack.c.bf16 %v78_v9, %v77_v8  ;;  %v33_v18 = vld [vmem:[%s1087_s0] sm:$0xff]  ;;  %v65_v27 = vld [vmem:[%s1088_s1 + $0xf0] sm:$0xff] }
  0x13   :  { %677 = vmatpush3.bf16.msra.mxu1 %v676_v54  ;;  %v47_v20 = vld [vmem:[%s1088_s1 + $0x60] sm:$0xff]  ;;  %v48_v21 = vld [vmem:[%s1088_s1 + $0x68] sm:$0xff]  ;;  %v123_v23 = vrot.slane %v33_v18, %v122_v10  ;;  %v116_v24 = vcombine.high %v33_v18, %v33_v18  ;;  %v686_v25 = vpack.c.bf16 %v96_v15, %v95_v14  ;;  %v66_v28 = vld [vmem:[%s1088_s1 + $0xf8] sm:$0xff] }
  0x14   :  { %679 = vmatprep.subr.bf16.mxu1 %v678_v61  ;;  %v79_v22 = vld [vmem:[%s1088_s1 + $0x160] sm:$0xff]  ;;  %v80_v26 = vld [vmem:[%s1088_s1 + $0x168] sm:$0xff]  ;;  %v97_v29 = vld [vmem:[%s1088_s1 + $0x1f0] sm:$0xff]  ;;  %v656_v33 = vpack.c.bf16 %v48_v21, %v47_v20  ;;  %v658_v35 = vpack.c.bf16 %v66_v28, %v65_v27 }
  0x15   :  { %649 = vmatpush3.bf16.msra.mxu0 %v648_v3  ;;  %v98_v30 = vld [vmem:[%s1088_s1 + $0x1f8] sm:$0xff]  ;;  %v131_v31 = vcombine.high %v123_v23, %v123_v23  ;;  %v130_v32 = vrot.slane %v116_v24, %v122_v10  ;;  %v688_v34 = vpack.c.bf16 %v80_v26, %v79_v22  ;;  %v49_v36 = vld [vmem:[%s1088_s1 + $0x70] sm:$0xff] }
  0x16   :  { %651 = vmatprep.subr.bf16.mxu0 %v650_v6  ;;  %v50_v37 = vld [vmem:[%s1088_s1 + $0x78] sm:$0xff] }
  0x17   :  { %681 = vmatpush3.bf16.msra.mxu1 %v680_v5  ;;  %v132_v38 = vcombine.high %v130_v32, %v130_v32 }
  0x18   :  { %683 = vmatprep.subr.bf16.mxu1 %v682_v11 }
  0x19   :  { %653 = vmatpush3.bf16.msra.mxu0 %v652_v16 }
  0x1a   :  { %655 = vmatprep.subr.bf16.mxu0 %v654_v19 }
  0x1b   :  { %685 = vmatpush3.bf16.msra.mxu1 %v684_v17 }
  0x1c   :  { %14 = vsyncpa [#allocation3], 0  ;;  %687 = vmatprep.subr.bf16.mxu1 %v686_v25  ;;  %v690_v39 = vpack.c.bf16 %v98_v30, %v97_v29  ;;  %211 = vmatprep.mubr.f32.mxu0 %v131_v31  ;;  %v81_v40 = vld [vmem:[%s1088_s1 + $0x170] sm:$0xff]  ;;  %v82_v41 = vld [vmem:[%s1088_s1 + $0x178] sm:$0xff]  ;;  %v660_v42 = vpack.c.bf16 %v50_v37, %v49_v36  ;;  %v751_v47 = vmov 0.0|0.0   ;;  %vm752_vm0 = vmmov 0  }
  0x1d   :  { %281 = vmatprep.mubr.f32.mxu1 %v132_v38  ;;  %657 = vmatpush3.bf16.msra.mxu0 %v656_v33  ;;  %v692_v43 = vpack.c.bf16 %v82_v41, %v81_v40  ;;  %v99_v44 = vld [vmem:[%s1088_s1 + $0x200] sm:$0xff]  ;;  %v100_v45 = vld [vmem:[%s1088_s1 + $0x208] sm:$0xff]  ;;  %v101_v48 = vld [vmem:[%s1088_s1 + $0x210] sm:$0xff]  ;;  %v753_v53 = vmov 0.0   ;;  %vm144_vm1 = vcmask 523264   ;;  %v371_v19 = vsub.s32 0, %v922_v60 }
  0x1e   :  { %659 = vmatprep.subr.bf16.mxu0 %v658_v35  ;;  %v695_v46 = vpack.c.bf16 %v100_v45, %v99_v44  ;;  %v102_v49 = vld [vmem:[%s1088_s1 + $0x218] sm:$0xff]  ;;  %v103_v51 = vld [vmem:[%s1088_s1 + $0x220] sm:$0xff]  ;;  %v104_v52 = vld [vmem:[%s1088_s1 + $0x228] sm:$0xff]  ;;  %s754_s11 = smov [#allocation2]   ;;  %vm480_vm2 = vcmask 254976  }
  0x1f   :  { %689 = vmatpush3.bf16.msra.mxu1 %v688_v34  ;;  %v698_v50 = vpack.c.bf16 %v102_v49, %v101_v48  ;;  %v701_v54 = vpack.c.bf16 %v104_v52, %v103_v51  ;;  %v105_v55 = vld [vmem:[%s1088_s1 + $0x230] sm:$0xff]  ;;  %v106_v56 = vld [vmem:[%s1088_s1 + $0x238] sm:$0xff]  ;;  %v497_v58 = vld.sshfl [vmem:[%s1087_s0 + $0x8] sm:$0x3 pattern:$0x76325410] }
  0x20   :  { %691 = vmatprep.subr.bf16.mxu1 %v690_v39  ;;  %v704_v57 = vpack.c.bf16 %v106_v56, %v105_v55  ;;  %v392_v59 = vld [vmem:[%s1094_s7] sm:$0xff]  ;;  %v393_v61 = vld [vmem:[%s1094_s7 + $0x8] sm:$0xff]  ;;  %v394_v63 = vld [vmem:[%s1094_s7 + $0x10] sm:$0xff]  ;;  %s488_s12 = sshll.u32 %s754_s11, 4  ;;  %s489_s12 = int_to_ptr.vmem [resolvable:$true] %s488_s12 }
  0x21   :  { %661 = vmatpush3.bf16.msra.mxu0 %v660_v42  ;;  %v707_v62 = vpack.c.bf16 %v393_v61, %v392_v59  ;;  %v395_v0 = vld [vmem:[%s1094_s7 + $0x18] sm:$0xff]  ;;  %v396_v2 = vld [vmem:[%s1094_s7 + $0x20] sm:$0xff]  ;;  %v397_v3 = vld [vmem:[%s1094_s7 + $0x28] sm:$0xff]  ;;  %p731_p1 = scmp.lt.s32.totalorder %s489_s12, %s489_s12 }
  0x22   :  { %694 = vmatprep.subr.bf16.mxu0 %v751_v47  ;;  %v710_v1 = vpack.c.bf16 %v395_v0, %v394_v63  ;;  %v713_v4 = vpack.c.bf16 %v397_v3, %v396_v2  ;;  %v398_v5 = vld [vmem:[%s1094_s7 + $0x30] sm:$0xff]  ;;  %v399_v6 = vld [vmem:[%s1094_s7 + $0x38] sm:$0xff]  ;;  %v357_v8 = vld [vmem:[%s1093_s6] sm:$0x1] }
  0x23   :  { %693 = vmatpush3.bf16.msra.mxu1 %v692_v43  ;;  %v716_v7 = vpack.c.bf16 %v399_v6, %v398_v5  ;;  %v358_v10 = vadd.f32 1e-05, %v357_v8  ;;  %v496_v11 = vld [vmem:[%s1089_s2] ss:$0 sm:$0xff] }
  0x24   :  { %706 = vmatprep.subr.bf16.mxu1 %v751_v47  ;;  %212 = vmatmul.mubr.f32.vlgmr.msra.gmra.mrb[0].mxu0 %v123_v23  ;;  %v499_v22 = vld [vmem:[%s1092_s5] ss:$0 sm:$0xff] }
  0x25   :  { %696 = vmatpush3.bf16.msra.mxu0 %v695_v46  ;;  %608 = vmatprep.mubr.msk.f32.mxu0 %vm752_vm0, %v753_v53  ;;  %724 = vrsqrt.f32 %v358_v10  ;;  %v500_v27 = vld [vmem:[%s1090_s3] ss:$0 sm:$0xff]  ;;  %s726_s3 = scalar_lea.vmem %s489_s12, 32 }
  0x26   :  { %282 = vmatmul.mubr.f32.vlgmr.msra.gmra.mrb[0].mxu1 %v130_v32  ;;  %697 = vmatprep.subr.bf16.mxu0 %v751_v47  ;;  %v501_v29 = vld [vmem:[%s1091_s4] ss:$0 sm:$0xff]  ;;  %p727_p0 = scmp.ne.s32.totalorder %s489_s12, %s726_s3  ;;  %p732_p2 = scmp.lt.s32.totalorder %s726_s3, %s726_s3 }
  0x27   :  { %627 = vmatprep.mubr.msk.f32.mxu1 %vm752_vm0, %v753_v53  ;;  %708 = vmatpush3.bf16.msra.mxu1 %v707_v62  ;;  %v502_v32 = vld [vmem:[%s1095_s8] ss:$0 sm:$0xff] }
  0x28   :  { %709 = vmatprep.subr.bf16.mxu1 %v751_v47  ;;  %p733_p3 = por %p732_p2, %p731_p1 }
  0x29   :  { %699 = vmatpush3.bf16.msra.mxu0 %v698_v50 }
  0x2a   :  { %700 = vmatprep.subr.bf16.mxu0 %v751_v47  ;;  %p734_p4 = pnand %p733_p3, %p727_p0 }
  0x2b   :  { %711 = vmatpush3.bf16.msra.mxu1 %v710_v1 }
  0x2c   :  { %712 = vmatprep.subr.bf16.mxu1 %v751_v47 }
  0x2d   :  { %702 = vmatpush3.bf16.msra.mxu0 %v701_v54 }
  0x2e   :  { %703 = vmatprep.subr.bf16.mxu0 %v751_v47 }
  0x2f   :  { %714 = vmatpush3.bf16.msra.mxu1 %v713_v4  ;;  %v725_v20 = vpop.eup %724 }
  0x30   :  { %715 = vmatprep.subr.bf16.mxu1 %v751_v47  ;;  %v372_v24 = vrot.slane %v725_v20, %v371_v19 }
  0x31   :  { %705 = vmatpush3.bf16.msra.mxu0 %v704_v57 }
  0x33   :  { %717 = vmatpush3.bf16.msra.mxu1 %v716_v7 }
  0x34   :  { %609 = vmatmul.mubr.msk.f32.vlgmr.msra.gmra.mrb[2].mxu0 %vm144_vm1, %v497_v58 }
  0xf7   :  { %v536_v9 = vpop.f32.mrb[0].mxu0 }
  0xf8   :  { %v537_v12 = vpop.f32.mrb[1].mxu0 }
  0xf9   :  { %v571_v13 = vpop.f32.mrb[0].mxu1  ;;  %v538_v14 = vadd.f32 %v537_v12, %v536_v9 }
  0xfa   :  { %v572_v15 = vpop.f32.mrb[1].mxu1 }
  0xfb   :  { %v573_v16 = vadd.f32 %v572_v15, %v571_v13  ;;  %v214_v17 = vadd.f32 %v538_v14, %v496_v11 }
  0xfd   :  { %v284_v18 = vadd.f32 %v573_v16, %v214_v17 }
 0x107   :  { %v353_v21 = vpop.f32.mrb[2].mxu0 }
 0x108   :  { %v354_v23 = vadd.f32 %v353_v21, %v284_v18  ;;  %v610_v25 = vpop.f32.mrb[3].mxu0 }
 0x10a   :  { %v367_v26 = vsub.f32 %v354_v23, %v499_v22 }
 0x10c   :  { %v374_v28 = vmul.f32 %v372_v24, %v367_v26 }
 0x10e   :  { %v382_v60 = vmul.f32 %v500_v27, %v374_v28 }
 0x110   :  { %v390_v30 = vadd.f32 %v501_v29, %v382_v60 }
 0x112   :  { %v391_v31 = vmax.f32 %v390_v30, 0.0 }
 0x114   :  { %628 = vmatmul.mubr.msk.f32.vlgmr.msra.gmra.mrb[2].mxu1 %vm144_vm1, %v391_v31 }
 0x1e7   :  { %v476_v33 = vpop.f32.mrb[2].mxu1 }
 0x1e8   :  { %v477_v34 = vadd.f32 %v502_v32, %v476_v33  ;;  %v629_v35 = vpop.f32.mrb[3].mxu1 }
 0x1ea   :  { %481 = vst.msk [vmem:[#allocation2] sm:$0x3] %vm480_vm2, %v477_v34 }
 0x1eb   :  { %737 = shalt.err (!%p734_p4)
}
 0x1ec   :  { %s738_s1 = scalar_lea.hbm %s1096_s9, 32 }
 0x1ed   :  { %p739_p5 = scmp.ne.s32.totalorder %s1096_s9, %s738_s1  ;;  %p742_p6 = scmp.lt.u32.totalorder %s738_s1, %s1096_s9 }
 0x1ef   :  { %p744_p7 = pnand %p742_p6, %p739_p5 }
 0x1f1   :  { %747 = shalt.err (!%p744_p7)
}
 0x1f2   :  { %491 = dma.vmem_to_hbm [thread:$0]  %s489_s12, 32, %s1096_s9, [#allocation3]  }
 0x1f3   :  { %748 = dma.done.wait [#allocation3], 32  }
 0x1f4   :  { %749 = vsyncadd [#allocation3], 4294967264 }
 0x1f5   :  { %495 = vsyncpa [#allocation3], 1 }

// kernel: fen_model_forward.2
= control target key start
LH: loop header
LB: loop body
LE: loop exit
PB: predicated region body
PF: predicated region fallthrough
CT: control target
= control target key end

     0   :  { %s12656_s18 = smov 0   ;;  %s15701_s0 = inlined_call_operand.vmem [shape: bf16[1152,768], index: 0, kind: input, shape index: {}]   ;;  %s15702_s1 = inlined_call_operand.vmem [shape: f32[8,288], index: 1, kind: input, shape index: {}]   ;;  %s15703_s2 = inlined_call_operand.vmem [shape: bf16[768,1280], index: 2, kind: input, shape index: {}]   ;;  %s15704_s3 = inlined_call_operand.vmem [shape: f32[1,1280], index: 3, kind: input, shape index: {}]   ;;  %s15705_s4 = inlined_call_operand.vmem [shape: bf16[1280,64], index: 4, kind: input, shape index: {}]   ;;  %s15706_s5 = inlined_call_operand.vmem [shape: f32[32,64], index: 5, kind: output, shape index: {}]  }
   0x1 LB: > { %s12662_s19 = sadd.s32 4294967295, %s12623_s18   ;;  %p9001_p0 = scmp.ge.s32.totalorder %s12623_s18, 1  ;;  %s12623_s18 = sphi %s12656_s18, %s15_s18  }
   0x2   : > { %p189_p1 = scmp.lt.s32.totalorder %s12623_s18, 5 }
   0x4   : > { %p190_p2 = pnand %p9001_p0, %p189_p1 }
   0x6   : > { %193 = sbr.rel (%p190_p2) target bundleno = 4020 (0xfb4), region = 40 }
   0xd   : > { %v11249_v0 = vld [vmem:[%s15703_s2 + $0x4] ss:$40 sps:$4 sm:$0xff]   ;;  %v11251_v1 = vld [vmem:[%s15703_s2] ss:$40 sps:$4 sm:$0xff]   ;;  %v11252_v2 = vld [vmem:[%s15703_s2 + $0x54] ss:$40 sps:$4 sm:$0xff]  }
   0xe   : > { %1468 = vmatprep.subr.bf16.mxu0 %v11249_v0  ;;  %v11254_v3 = vld [vmem:[%s15703_s2 + $0x50] ss:$40 sps:$4 sm:$0xff]   ;;  %s217_s28 = smul.u32 36, %s12662_s19  ;;  %v11255_v4 = vld [vmem:[%s15703_s2 + $0xa4] ss:$40 sps:$4 sm:$0xff]   ;;  %vm2179_vm0 = vcmask 261120  }
   0xf   : > { %1469 = vmatpush1.bf16.msra.mxu0 %v11251_v1  ;;  %v11257_v5 = vld [vmem:[%s15703_s2 + $0xa0] ss:$40 sps:$4 sm:$0xff]   ;;  %v11258_v6 = vld [vmem:[%s15703_s2 + $0xf4] ss:$40 sps:$4 sm:$0xff]   ;;  %v11260_v7 = vld [vmem:[%s15703_s2 + $0xf0] ss:$40 sps:$4 sm:$0xff]  }
  0x10   : > { %1470 = vmatprep.subr.bf16.mxu0 %v11252_v2  ;;  %p218_p3 = scmp.lt.s32.totalorder %s217_s28, 143  ;;  %v11261_v8 = vld [vmem:[%s15703_s2 + $0x144] ss:$40 sps:$4 sm:$0xff]   ;;  %v11263_v9 = vld [vmem:[%s15703_s2 + $0x140] ss:$40 sps:$4 sm:$0xff]   ;;  %p224_p4 = scmp.lt.s32.totalorder %s12662_s19, 3 }
  0x11   : > { %v11264_v10 = vld [vmem:[%s15703_s2 + $0x194] ss:$40 sps:$4 sm:$0xff]   ;;  %v11266_v11 = vld [vmem:[%s15703_s2 + $0x190] ss:$40 sps:$4 sm:$0xff]   ;;  %v11267_v12 = vld [vmem:[%s15703_s2 + $0x1e4] ss:$40 sps:$4 sm:$0xff]  }
  0x12   : > { %s15802_s28 = smov (!%p218_p3, %s217_s28), 143  ;;  %v11269_v14 = vld [vmem:[%s15703_s2 + $0x1e0] ss:$40 sps:$4 sm:$0xff]   ;;  %v11270_v15 = vld [vmem:[%s15703_s2 + $0x234] ss:$40 sps:$4 sm:$0xff]   ;;  %s15804_s19 = smov (!%p224_p4, %s12662_s19), 3 }
  0x13   : > { %1471 = vmatpush1.bf16.msra.mxu0 %v11254_v3  ;;  %s11239_s16 = smul.u32 24, %s15802_s28  ;;  %v11272_v16 = vld [vmem:[%s15703_s2 + $0x230] ss:$40 sps:$4 sm:$0xff]   ;;  %v11273_v17 = vld [vmem:[%s15703_s2 + $0x284] ss:$40 sps:$4 sm:$0xff]   ;;  %s9003_s7 = sshll.u32 %s15804_s19, 3 }
  0x14   : > { %1472 = vmatprep.subr.bf16.mxu0 %v11255_v4  ;;  %v11275_v18 = vld [vmem:[%s15703_s2 + $0x280] ss:$40 sps:$4 sm:$0xff]   ;;  %v11276_v19 = vld [vmem:[%s15703_s2 + $0x2d4] ss:$40 sps:$4 sm:$0xff]   ;;  %v11278_v20 = vld [vmem:[%s15703_s2 + $0x2d0] ss:$40 sps:$4 sm:$0xff]   ;;  %s227_s10 = scalar_lea.vmem %s15706_s5, %s9003_s7 }
  0x15   : > { %s12706_s25 = scalar_lea.vmem %s15701_s0, %s11239_s16  ;;  %v11279_v21 = vld [vmem:[%s15703_s2 + $0x324] ss:$40 sps:$4 sm:$0xff]   ;;  %v11281_v22 = vld [vmem:[%s15703_s2 + $0x320] ss:$40 sps:$4 sm:$0xff]   ;;  %v11282_v23 = vld [vmem:[%s15703_s2 + $0x374] ss:$40 sps:$4 sm:$0xff]  }
  0x16   : > { %v11297_v13 = vld [vmem:[%s12706_s25 + $0x4] ss:$24 sps:$4 sm:$0xff]   ;;  %v11284_v24 = vld [vmem:[%s15703_s2 + $0x370] ss:$40 sps:$4 sm:$0xff]   ;;  %v11287_v26 = vld [vmem:[%s15703_s2 + $0x3c0] ss:$40 sps:$4 sm:$0xff]  }
  0x17   : > { %1473 = vmatpush1.bf16.msra.mxu0 %v11257_v5  ;;  %1500 = vmatprep.mubr.bf16.mxu0 %v11297_v13  ;;  %v11285_v25 = vld [vmem:[%s15703_s2 + $0x3c4] ss:$40 sps:$4 sm:$0xff]   ;;  %v11288_v27 = vld [vmem:[%s15703_s2 + $0x414] ss:$40 sps:$4 sm:$0xff]   ;;  %v11290_v28 = vld [vmem:[%s15703_s2 + $0x410] ss:$40 sps:$4 sm:$0xff]  }
  0x18   : > { %1474 = vmatprep.subr.bf16.mxu0 %v11258_v6  ;;  %v11291_v29 = vld [vmem:[%s15703_s2 + $0x464] ss:$40 sps:$4 sm:$0xff]   ;;  %v11293_v30 = vld [vmem:[%s15703_s2 + $0x460] ss:$40 sps:$4 sm:$0xff]   ;;  %v11294_v31 = vld [vmem:[%s15703_s2 + $0x4b4] ss:$40 sps:$4 sm:$0xff]  }
  0x19   : > { %v11296_v32 = vld [vmem:[%s15703_s2 + $0x4b0] ss:$40 sps:$4 sm:$0xff]   ;;  %v11305_v34 = vld [vmem:[%s15703_s2 + $0x504] ss:$40 sps:$4 sm:$0xff]   ;;  %v11303_v36 = vld [vmem:[%s15703_s2 + $0x500] ss:$40 sps:$4 sm:$0xff]  }
  0x1a   : > { %v11299_v33 = vld [vmem:[%s12706_s25] ss:$24 sps:$4 sm:$0xff]   ;;  %v11300_v35 = vld [vmem:[%s12706_s25 + $0x34] ss:$24 sps:$4 sm:$0xff]   ;;  %v11302_v40 = vld [vmem:[%s12706_s25 + $0x30] ss:$24 sps:$4 sm:$0xff]  }
  0x1b   : > { %1475 = vmatpush1.bf16.msra.mxu0 %v11260_v7  ;;  %v11311_v37 = vld [vmem:[%s15703_s2 + $0x554] ss:$40 sps:$4 sm:$0xff]   ;;  %v11309_v38 = vld [vmem:[%s15703_s2 + $0x550] ss:$40 sps:$4 sm:$0xff]   ;;  %v11317_v39 = vld [vmem:[%s15703_s2 + $0x5a4] ss:$40 sps:$4 sm:$0xff]  }
  0x1c   : > { %1476 = vmatprep.subr.bf16.mxu0 %v11261_v8  ;;  %v11306_v41 = vld [vmem:[%s12706_s25 + $0x64] ss:$24 sps:$4 sm:$0xff]   ;;  %v11315_v42 = vld [vmem:[%s15703_s2 + $0x5a0] ss:$40 sps:$4 sm:$0xff]   ;;  %v11323_v44 = vld [vmem:[%s15703_s2 + $0x5f0] ss:$40 sps:$4 sm:$0xff]  }
  0x1d   : > { %v11325_v43 = vld [vmem:[%s15703_s2 + $0x5f4] ss:$40 sps:$4 sm:$0xff]   ;;  %v11332_v45 = vld [vmem:[%s15703_s2 + $0x644] ss:$40 sps:$4 sm:$0xff]   ;;  %v11308_v46 = vld [vmem:[%s12706_s25 + $0x60] ss:$24 sps:$4 sm:$0xff]  }
  0x1e   : > { %v11312_v47 = vld [vmem:[%s12706_s25 + $0x94] ss:$24 sps:$4 sm:$0xff]   ;;  %v11330_v48 = vld [vmem:[%s15703_s2 + $0x640] ss:$40 sps:$4 sm:$0xff]   ;;  %v11336_v50 = vld [vmem:[%s15703_s2 + $0x690] ss:$40 sps:$4 sm:$0xff]  }
  0x1f   : > { %1477 = vmatpush1.bf16.msra.mxu0 %v11263_v9  ;;  %v11338_v49 = vld [vmem:[%s15703_s2 + $0x694] ss:$40 sps:$4 sm:$0xff]   ;;  %v11344_v51 = vld [vmem:[%s15703_s2 + $0x6e4] ss:$40 sps:$4 sm:$0xff]   ;;  %v11314_v52 = vld [vmem:[%s12706_s25 + $0x90] ss:$24 sps:$4 sm:$0xff]  }
  0x20   : > { %1478 = vmatprep.subr.bf16.mxu0 %v11264_v10  ;;  %v11318_v53 = vld [vmem:[%s12706_s25 + $0xc4] ss:$24 sps:$4 sm:$0xff]   ;;  %v11342_v54 = vld [vmem:[%s15703_s2 + $0x6e0] ss:$40 sps:$4 sm:$0xff]   ;;  %v11348_v56 = vld [vmem:[%s15703_s2 + $0x730] ss:$40 sps:$4 sm:$0xff]  }
  0x21   : > { %v11350_v55 = vld [vmem:[%s15703_s2 + $0x734] ss:$40 sps:$4 sm:$0xff]   ;;  %v11356_v57 = vld [vmem:[%s15703_s2 + $0x784] ss:$40 sps:$4 sm:$0xff]   ;;  %v11320_v58 = vld [vmem:[%s12706_s25 + $0xc0] ss:$24 sps:$4 sm:$0xff]  }
  0x22   : > { %v11321_v59 = vld [vmem:[%s12706_s25 + $0xf4] ss:$24 sps:$4 sm:$0xff]   ;;  %v11354_v60 = vld [vmem:[%s15703_s2 + $0x780] ss:$40 sps:$4 sm:$0xff]   ;;  %v11360_v62 = vld [vmem:[%s15703_s2 + $0x7d0] ss:$40 sps:$4 sm:$0xff]  }
  0x23   : > { %1479 = vmatpush1.bf16.msra.mxu0 %v11266_v11  ;;  %v11362_v61 = vld [vmem:[%s15703_s2 + $0x7d4] ss:$40 sps:$4 sm:$0xff]   ;;  %v11368_v63 = vld [vmem:[%s15703_s2 + $0x824] ss:$40 sps:$4 sm:$0xff]   ;;  %v11326_v0 = vld [vmem:[%s12706_s25 + $0xf0] ss:$24 sps:$4 sm:$0xff]  }
  0x24   : > { %1480 = vmatprep.subr.bf16.mxu0 %v11267_v12  ;;  %v11327_v1 = vld [vmem:[%s12706_s25 + $0x124] ss:$24 sps:$4 sm:$0xff]   ;;  %v11366_v2 = vld [vmem:[%s15703_s2 + $0x820] ss:$40 sps:$4 sm:$0xff]   ;;  %v11374_v4 = vld [vmem:[%s15703_s2 + $0x870] ss:$40 sps:$4 sm:$0xff]  }
  0x25   : > { %v11376_v3 = vld [vmem:[%s15703_s2 + $0x874] ss:$40 sps:$4 sm:$0xff]   ;;  %v11383_v5 = vld [vmem:[%s15703_s2 + $0x8c4] ss:$40 sps:$4 sm:$0xff]   ;;  %v11329_v6 = vld [vmem:[%s12706_s25 + $0x120] ss:$24 sps:$4 sm:$0xff]  }
  0x26   : > { %v11333_v7 = vld [vmem:[%s12706_s25 + $0x154] ss:$24 sps:$4 sm:$0xff]   ;;  %v11381_v8 = vld [vmem:[%s15703_s2 + $0x8c0] ss:$40 sps:$4 sm:$0xff]   ;;  %v11387_v10 = vld [vmem:[%s15703_s2 + $0x910] ss:$40 sps:$4 sm:$0xff]  }
  0x27   : > { %1481 = vmatpush1.bf16.msra.mxu0 %v11269_v14  ;;  %v11389_v9 = vld [vmem:[%s15703_s2 + $0x914] ss:$40 sps:$4 sm:$0xff]   ;;  %v11395_v11 = vld [vmem:[%s15703_s2 + $0x964] ss:$40 sps:$4 sm:$0xff]   ;;  %v11335_v12 = vld [vmem:[%s12706_s25 + $0x150] ss:$24 sps:$4 sm:$0xff]  }
  0x28   : > { %1482 = vmatprep.subr.bf16.mxu0 %v11270_v15  ;;  %v11339_v13 = vld [vmem:[%s12706_s25 + $0x184] ss:$24 sps:$4 sm:$0xff]   ;;  %v11393_v14 = vld [vmem:[%s15703_s2 + $0x960] ss:$40 sps:$4 sm:$0xff]   ;;  %vm8942_vm1 = vcmask 523264  }
  0x29   : > { %v11398_v15 = vld [vmem:[%s15703_s2 + $0x9b4] ss:$40 sps:$4 sm:$0xff]  }
  0x2b   : > { %1483 = vmatpush1.bf16.msra.mxu0 %v11272_v16  ;;  %v11396_v16 = vld [vmem:[%s15703_s2 + $0x9b0] ss:$40 sps:$4 sm:$0xff]  }
  0x2c   : > { %1484 = vmatprep.subr.bf16.mxu0 %v11273_v17  ;;  %v11407_v17 = vld [vmem:[%s15703_s2 + $0xa04] ss:$40 sps:$4 sm:$0xff]  }
  0x2f   : > { %1485 = vmatpush1.bf16.msra.mxu0 %v11275_v18  ;;  %v11341_v18 = vld [vmem:[%s12706_s25 + $0x180] ss:$24 sps:$4 sm:$0xff]  }
  0x30   : > { %1486 = vmatprep.subr.bf16.mxu0 %v11276_v19  ;;  %v11345_v19 = vld [vmem:[%s12706_s25 + $0x1b4] ss:$24 sps:$4 sm:$0xff]  }
  0x33   : > { %1487 = vmatpush1.bf16.msra.mxu0 %v11278_v20  ;;  %v11347_v20 = vld [vmem:[%s12706_s25 + $0x1b0] ss:$24 sps:$4 sm:$0xff]  }
  0x34   : > { %1488 = vmatprep.subr.bf16.mxu0 %v11279_v21  ;;  %v11351_v21 = vld [vmem:[%s12706_s25 + $0x1e4] ss:$24 sps:$4 sm:$0xff]  }
  0x37   : > { %1489 = vmatpush1.bf16.msra.mxu0 %v11281_v22  ;;  %v11353_v22 = vld [vmem:[%s12706_s25 + $0x1e0] ss:$24 sps:$4 sm:$0xff]  }
  0x38   : > { %1490 = vmatprep.subr.bf16.mxu0 %v11282_v23  ;;  %v11357_v23 = vld [vmem:[%s12706_s25 + $0x214] ss:$24 sps:$4 sm:$0xff]  }
  0x3b   : > { %1491 = vmatpush1.bf16.msra.mxu0 %v11284_v24  ;;  %v11359_v24 = vld [vmem:[%s12706_s25 + $0x210] ss:$24 sps:$4 sm:$0xff]  }
  0x3c   : > { %1492 = vmatprep.subr.bf16.mxu0 %v11285_v25  ;;  %v11363_v25 = vld [vmem:[%s12706_s25 + $0x244] ss:$24 sps:$4 sm:$0xff]  }
  0x3f   : > { %1493 = vmatpush1.bf16.msra.mxu0 %v11287_v26  ;;  %v11365_v26 = vld [vmem:[%s12706_s25 + $0x240] ss:$24 sps:$4 sm:$0xff]  }
  0x40   : > { %1494 = vmatprep.subr.bf16.mxu0 %v11288_v27  ;;  %v11369_v27 = vld [vmem:[%s12706_s25 + $0x274] ss:$24 sps:$4 sm:$0xff]  }
  0x43   : > { %1495 = vmatpush1.bf16.msra.mxu0 %v11290_v28  ;;  %v11371_v28 = vld [vmem:[%s12706_s25 + $0x270] ss:$24 sps:$4 sm:$0xff]  }
  0x44   : > { %1496 = vmatprep.subr.bf16.mxu0 %v11291_v29  ;;  %v11372_v29 = vld [vmem:[%s12706_s25 + $0x2a4] ss:$24 sps:$4 sm:$0xff]  }
  0x47   : > { %1497 = vmatpush1.bf16.msra.mxu0 %v11293_v30  ;;  %v11377_v30 = vld [vmem:[%s12706_s25 + $0x2a0] ss:$24 sps:$4 sm:$0xff]  }
  0x48   : > { %1498 = vmatprep.subr.bf16.mxu0 %v11294_v31  ;;  %v11378_v31 = vld [vmem:[%s12706_s25 + $0x2d4] ss:$24 sps:$4 sm:$0xff]  }
  0x4b   : > { %1499 = vmatpush1.bf16.msra.mxu0 %v11296_v32  ;;  %v11380_v32 = vld [vmem:[%s12706_s25 + $0x2d0] ss:$24 sps:$4 sm:$0xff]  }
  0x4c   : > { %1681 = vmatprep.subr.bf16.mxu0 %v11305_v34  ;;  %v11386_v34 = vld [vmem:[%s12706_s25 + $0x300] ss:$24 sps:$4 sm:$0xff]  }
  0x4e   : > { %1501 = vmatmul.mubr.bf16.vlgmr.msra.gmra.mrb[0].mxu0 %v11299_v33  ;;  %v11384_v33 = vld [vmem:[%s12706_s25 + $0x304] ss:$24 sps:$4 sm:$0xff]  }
  0x4f   : > { %1510 = vmatprep.mubr.bf16.mxu0 %v11300_v35  ;;  %1682 = vmatpush1.bf16.msra.mxu0 %v11303_v36  ;;  %v11390_v35 = vld [vmem:[%s12706_s25 + $0x334] ss:$24 sps:$4 sm:$0xff]   ;;  %v11392_v36 = vld [vmem:[%s12706_s25 + $0x330] ss:$24 sps:$4 sm:$0xff]  }
  0x50   : > { %1683 = vmatprep.subr.bf16.mxu0 %v11311_v37  ;;  %v11399_v37 = vld [vmem:[%s12706_s25 + $0xc] ss:$24 sps:$4 sm:$0xff]  }
  0x53   : > { %1684 = vmatpush1.bf16.msra.mxu0 %v11309_v38  ;;  %v11401_v38 = vld [vmem:[%s12706_s25 + $0x8] ss:$24 sps:$4 sm:$0xff]  }
  0x54   : > { %1685 = vmatprep.subr.bf16.mxu0 %v11317_v39  ;;  %v11402_v39 = vld [vmem:[%s12706_s25 + $0x3c] ss:$24 sps:$4 sm:$0xff]  }
  0x56   : > { %1511 = vmatmul.mubr.bf16.gmra.mrb[4].mxu0 %v11302_v40  ;;  %v11405_v40 = vld [vmem:[%s15703_s2 + $0xa00] ss:$40 sps:$4 sm:$0xff]  }
  0x57   : > { %1520 = vmatprep.mubr.bf16.mxu0 %v11306_v41  ;;  %1686 = vmatpush1.bf16.msra.mxu0 %v11315_v42  ;;  %v11413_v41 = vld [vmem:[%s15703_s2 + $0xa54] ss:$40 sps:$4 sm:$0xff]   ;;  %v11411_v42 = vld [vmem:[%s15703_s2 + $0xa50] ss:$40 sps:$4 sm:$0xff]  }
  0x58   : > { %1687 = vmatprep.subr.bf16.mxu0 %v11325_v43  ;;  %v11419_v43 = vld [vmem:[%s15703_s2 + $0xaa4] ss:$40 sps:$4 sm:$0xff]  }
  0x5b   : > { %1688 = vmatpush1.bf16.msra.mxu0 %v11323_v44  ;;  %v11404_v44 = vld [vmem:[%s12706_s25 + $0x38] ss:$24 sps:$4 sm:$0xff]  }
  0x5c   : > { %1689 = vmatprep.subr.bf16.mxu0 %v11332_v45  ;;  %v11408_v45 = vld [vmem:[%s12706_s25 + $0x6c] ss:$24 sps:$4 sm:$0xff]  }
  0x5e   : > { %1521 = vmatmul.mubr.bf16.gmra.mrb[8].mxu0 %v11308_v46  ;;  %v11417_v46 = vld [vmem:[%s15703_s2 + $0xaa0] ss:$40 sps:$4 sm:$0xff]  }
  0x5f   : > { %1530 = vmatprep.mubr.bf16.mxu0 %v11312_v47  ;;  %1690 = vmatpush1.bf16.msra.mxu0 %v11330_v48  ;;  %v11427_v47 = vld [vmem:[%s15703_s2 + $0xaf4] ss:$40 sps:$4 sm:$0xff]   ;;  %v11425_v48 = vld [vmem:[%s15703_s2 + $0xaf0] ss:$40 sps:$4 sm:$0xff]  }
  0x60   : > { %1691 = vmatprep.subr.bf16.mxu0 %v11338_v49  ;;  %v11434_v49 = vld [vmem:[%s15703_s2 + $0xb44] ss:$40 sps:$4 sm:$0xff]  }
  0x63   : > { %1692 = vmatpush1.bf16.msra.mxu0 %v11336_v50  ;;  %v11410_v50 = vld [vmem:[%s12706_s25 + $0x68] ss:$24 sps:$4 sm:$0xff]  }
  0x64   : > { %1693 = vmatprep.subr.bf16.mxu0 %v11344_v51  ;;  %v11414_v51 = vld [vmem:[%s12706_s25 + $0x9c] ss:$24 sps:$4 sm:$0xff]  }
  0x66   : > { %1531 = vmatmul.mubr.bf16.gmra.mrb[12].mxu0 %v11314_v52  ;;  %v11432_v52 = vld [vmem:[%s15703_s2 + $0xb40] ss:$40 sps:$4 sm:$0xff]  }
  0x67   : > { %1540 = vmatprep.mubr.bf16.mxu0 %v11318_v53  ;;  %1694 = vmatpush1.bf16.msra.mxu0 %v11342_v54  ;;  %v11440_v53 = vld [vmem:[%s15703_s2 + $0xb94] ss:$40 sps:$4 sm:$0xff]   ;;  %v11438_v54 = vld [vmem:[%s15703_s2 + $0xb90] ss:$40 sps:$4 sm:$0xff]  }
  0x68   : > { %1695 = vmatprep.subr.bf16.mxu0 %v11350_v55  ;;  %v11446_v55 = vld [vmem:[%s15703_s2 + $0xbe4] ss:$40 sps:$4 sm:$0xff]  }
  0x6b   : > { %1696 = vmatpush1.bf16.msra.mxu0 %v11348_v56  ;;  %v11416_v56 = vld [vmem:[%s12706_s25 + $0x98] ss:$24 sps:$4 sm:$0xff]  }
  0x6c   : > { %1697 = vmatprep.subr.bf16.mxu0 %v11356_v57  ;;  %v11420_v57 = vld [vmem:[%s12706_s25 + $0xcc] ss:$24 sps:$4 sm:$0xff]  }
  0x6e   : > { %1541 = vmatmul.mubr.bf16.gmra.mrb[16].mxu0 %v11320_v58  ;;  %v11444_v58 = vld [vmem:[%s15703_s2 + $0xbe0] ss:$40 sps:$4 sm:$0xff]  }
  0x6f   : > { %1550 = vmatprep.mubr.bf16.mxu0 %v11321_v59  ;;  %1698 = vmatpush1.bf16.msra.mxu0 %v11354_v60  ;;  %v11452_v59 = vld [vmem:[%s15703_s2 + $0xc34] ss:$40 sps:$4 sm:$0xff]   ;;  %v11450_v60 = vld [vmem:[%s15703_s2 + $0xc30] ss:$40 sps:$4 sm:$0xff]  }
  0x70   : > { %1699 = vmatprep.subr.bf16.mxu0 %v11362_v61  ;;  %v11458_v61 = vld [vmem:[%s15703_s2 + $0xc84] ss:$40 sps:$4 sm:$0xff]  }
  0x73   : > { %1700 = vmatpush1.bf16.msra.mxu0 %v11360_v62  ;;  %v11422_v62 = vld [vmem:[%s12706_s25 + $0xc8] ss:$24 sps:$4 sm:$0xff]  }
  0x74   : > { %1701 = vmatprep.subr.bf16.mxu0 %v11368_v63  ;;  %v11423_v63 = vld [vmem:[%s12706_s25 + $0xfc] ss:$24 sps:$4 sm:$0xff]  }
  0x76   : > { %1551 = vmatmul.mubr.bf16.gmra.mrb[20].mxu0 %v11326_v0  ;;  %v11456_v0 = vld [vmem:[%s15703_s2 + $0xc80] ss:$40 sps:$4 sm:$0xff]  }
  0x77   : > { %1560 = vmatprep.mubr.bf16.mxu0 %v11327_v1  ;;  %1702 = vmatpush1.bf16.msra.mxu0 %v11366_v2  ;;  %v11464_v1 = vld [vmem:[%s15703_s2 + $0xcd4] ss:$40 sps:$4 sm:$0xff]   ;;  %v11462_v2 = vld [vmem:[%s15703_s2 + $0xcd0] ss:$40 sps:$4 sm:$0xff]  }
  0x78   : > { %1703 = vmatprep.subr.bf16.mxu0 %v11376_v3  ;;  %v11470_v3 = vld [vmem:[%s15703_s2 + $0xd24] ss:$40 sps:$4 sm:$0xff]  }
  0x7b   : > { %1704 = vmatpush1.bf16.msra.mxu0 %v11374_v4  ;;  %v11428_v4 = vld [vmem:[%s12706_s25 + $0xf8] ss:$24 sps:$4 sm:$0xff]  }
  0x7c   : > { %1705 = vmatprep.subr.bf16.mxu0 %v11383_v5  ;;  %v11429_v5 = vld [vmem:[%s12706_s25 + $0x12c] ss:$24 sps:$4 sm:$0xff]  }
  0x7e   : > { %1561 = vmatmul.mubr.bf16.gmra.mrb[24].mxu0 %v11329_v6  ;;  %v11468_v6 = vld [vmem:[%s15703_s2 + $0xd20] ss:$40 sps:$4 sm:$0xff]  }
  0x7f   : > { %1570 = vmatprep.mubr.bf16.mxu0 %v11333_v7  ;;  %1706 = vmatpush1.bf16.msra.mxu0 %v11381_v8  ;;  %v11478_v7 = vld [vmem:[%s15703_s2 + $0xd74] ss:$40 sps:$4 sm:$0xff]   ;;  %v11476_v8 = vld [vmem:[%s15703_s2 + $0xd70] ss:$40 sps:$4 sm:$0xff]  }
  0x80   : > { %1707 = vmatprep.subr.bf16.mxu0 %v11389_v9  ;;  %v11485_v9 = vld [vmem:[%s15703_s2 + $0xdc4] ss:$40 sps:$4 sm:$0xff]  }
  0x83   : > { %1708 = vmatpush1.bf16.msra.mxu0 %v11387_v10  ;;  %v11431_v10 = vld [vmem:[%s12706_s25 + $0x128] ss:$24 sps:$4 sm:$0xff]  }
  0x84   : > { %1709 = vmatprep.subr.bf16.mxu0 %v11395_v11  ;;  %v11435_v11 = vld [vmem:[%s12706_s25 + $0x15c] ss:$24 sps:$4 sm:$0xff]  }
  0x86   : > { %1571 = vmatmul.mubr.bf16.gmra.mrb[28].mxu0 %v11335_v12  ;;  %v11483_v12 = vld [vmem:[%s15703_s2 + $0xdc0] ss:$40 sps:$4 sm:$0xff]  }
  0x87   : > { %1580 = vmatprep.mubr.bf16.mxu0 %v11339_v13  ;;  %1710 = vmatpush1.bf16.msra.mxu0 %v11393_v14  ;;  %v11491_v13 = vld [vmem:[%s15703_s2 + $0xe14] ss:$40 sps:$4 sm:$0xff]   ;;  %v11489_v14 = vld [vmem:[%s15703_s2 + $0xe10] ss:$40 sps:$4 sm:$0xff]  }
  0x88   : > { %1711 = vmatprep.subr.bf16.mxu0 %v11398_v15  ;;  %v11497_v15 = vld [vmem:[%s15703_s2 + $0xe64] ss:$40 sps:$4 sm:$0xff]  }
  0x8b   : > { %1712 = vmatpush1.bf16.msra.mxu0 %v11396_v16  ;;  %v11437_v16 = vld [vmem:[%s12706_s25 + $0x158] ss:$24 sps:$4 sm:$0xff]  }
  0x8c   : > { %1894 = vmatprep.subr.bf16.mxu0 %v11407_v17  ;;  %v11441_v17 = vld [vmem:[%s12706_s25 + $0x18c] ss:$24 sps:$4 sm:$0xff]  }
  0x8e   : > { %1581 = vmatmul.mubr.bf16.gmra.mrb[32].mxu0 %v11341_v18  ;;  %v11495_v18 = vld [vmem:[%s15703_s2 + $0xe60] ss:$40 sps:$4 sm:$0xff]  }
  0x8f   : > { %1590 = vmatprep.mubr.bf16.mxu0 %v11345_v19  ;;  %v11500_v19 = vld [vmem:[%s15703_s2 + $0xeb4] ss:$40 sps:$4 sm:$0xff]  }
  0x96   : > { %1591 = vmatmul.mubr.bf16.gmra.mrb[36].mxu0 %v11347_v20  ;;  %v11498_v20 = vld [vmem:[%s15703_s2 + $0xeb0] ss:$40 sps:$4 sm:$0xff]  }
  0x97   : > { %1600 = vmatprep.mubr.bf16.mxu0 %v11351_v21  ;;  %v11443_v21 = vld [vmem:[%s12706_s25 + $0x188] ss:$24 sps:$4 sm:$0xff]  }
  0x9e   : > { %1601 = vmatmul.mubr.bf16.gmra.mrb[40].mxu0 %v11353_v22  ;;  %v11447_v22 = vld [vmem:[%s12706_s25 + $0x1bc] ss:$24 sps:$4 sm:$0xff]  }
  0x9f   : > { %1610 = vmatprep.mubr.bf16.mxu0 %v11357_v23  ;;  %v11449_v23 = vld [vmem:[%s12706_s25 + $0x1b8] ss:$24 sps:$4 sm:$0xff]  }
  0xa6   : > { %1611 = vmatmul.mubr.bf16.gmra.mrb[44].mxu0 %v11359_v24  ;;  %v11453_v24 = vld [vmem:[%s12706_s25 + $0x1ec] ss:$24 sps:$4 sm:$0xff]  }
  0xa7   : > { %1620 = vmatprep.mubr.bf16.mxu0 %v11363_v25  ;;  %v11455_v25 = vld [vmem:[%s12706_s25 + $0x1e8] ss:$24 sps:$4 sm:$0xff]  }
  0xae   : > { %1621 = vmatmul.mubr.bf16.gmra.mrb[48].mxu0 %v11365_v26  ;;  %v11459_v26 = vld [vmem:[%s12706_s25 + $0x21c] ss:$24 sps:$4 sm:$0xff]  }
  0xaf   : > { %1630 = vmatprep.mubr.bf16.mxu0 %v11369_v27  ;;  %v11461_v27 = vld [vmem:[%s12706_s25 + $0x218] ss:$24 sps:$4 sm:$0xff]  }
  0xb6   : > { %1631 = vmatmul.mubr.bf16.gmra.mrb[52].mxu0 %v11371_v28  ;;  %v11465_v28 = vld [vmem:[%s12706_s25 + $0x24c] ss:$24 sps:$4 sm:$0xff]  }
  0xb7   : > { %1640 = vmatprep.mubr.bf16.mxu0 %v11372_v29  ;;  %v11467_v29 = vld [vmem:[%s12706_s25 + $0x248] ss:$24 sps:$4 sm:$0xff]  }
  0xbe   : > { %1641 = vmatmul.mubr.bf16.gmra.mrb[56].mxu0 %v11377_v30  ;;  %v11471_v30 = vld [vmem:[%s12706_s25 + $0x27c] ss:$24 sps:$4 sm:$0xff]  }
  0xbf   : > { %1650 = vmatprep.mubr.bf16.mxu0 %v11378_v31  ;;  %v11473_v31 = vld [vmem:[%s12706_s25 + $0x278] ss:$24 sps:$4 sm:$0xff]  }
  0xc6   : > { %1651 = vmatmul.mubr.bf16.gmra.mrb[60].mxu0 %v11380_v32  ;;  %v11474_v32 = vld [vmem:[%s12706_s25 + $0x2ac] ss:$24 sps:$4 sm:$0xff]  }
  0xc7   : > { %1660 = vmatprep.mubr.bf16.mxu0 %v11384_v33  ;;  %v11479_v33 = vld [vmem:[%s12706_s25 + $0x2a8] ss:$24 sps:$4 sm:$0xff]  }
  0xce   : > { %1661 = vmatmul.mubr.bf16.gmra.mrb[64].mxu0 %v11386_v34  ;;  %v11480_v34 = vld [vmem:[%s12706_s25 + $0x2dc] ss:$24 sps:$4 sm:$0xff]  }
  0xcf   : > { %1670 = vmatprep.mubr.bf16.mxu0 %v11390_v35  ;;  %v11482_v35 = vld [vmem:[%s12706_s25 + $0x2d8] ss:$24 sps:$4 sm:$0xff]  }
  0xd6   : > { %1671 = vmatmul.mubr.bf16.gmra.mrb[68].mxu0 %v11392_v36  ;;  %v11486_v36 = vld [vmem:[%s12706_s25 + $0x30c] ss:$24 sps:$4 sm:$0xff]  }
  0xd7   : > { %1713 = vmatprep.mubr.bf16.mxu0 %v11399_v37  ;;  %v11488_v37 = vld [vmem:[%s12706_s25 + $0x308] ss:$24 sps:$4 sm:$0xff]  }
  0xde   : > { %1714 = vmatmul.mubr.bf16.vlgmr.msra.gmra.mrb[0].mxu0 %v11401_v38  ;;  %v11492_v38 = vld [vmem:[%s12706_s25 + $0x33c] ss:$24 sps:$4 sm:$0xff]  }
  0xdf   : > { %1723 = vmatprep.mubr.bf16.mxu0 %v11402_v39  ;;  %1895 = vmatpush1.bf16.msra.mxu0 %v11405_v40  ;;  %v11494_v39 = vld [vmem:[%s12706_s25 + $0x338] ss:$24 sps:$4 sm:$0xff]   ;;  %v11501_v40 = vld [vmem:[%s12706_s25 + $0x14] ss:$24 sps:$4 sm:$0xff]  }
  0xe0   : > { %1896 = vmatprep.subr.bf16.mxu0 %v11413_v41  ;;  %v11503_v41 = vld [vmem:[%s12706_s25 + $0x10] ss:$24 sps:$4 sm:$0xff]  }
  0xe3   : > { %1897 = vmatpush1.bf16.msra.mxu0 %v11411_v42  ;;  %v11504_v42 = vld [vmem:[%s12706_s25 + $0x44] ss:$24 sps:$4 sm:$0xff]  }
  0xe4   : > { %1898 = vmatprep.subr.bf16.mxu0 %v11419_v43  ;;  %v11506_v43 = vld [vmem:[%s12706_s25 + $0x40] ss:$24 sps:$4 sm:$0xff]  }
  0xe6   : > { %1724 = vmatmul.mubr.bf16.gmra.mrb[4].mxu0 %v11404_v44  ;;  %v11507_v44 = vld [vmem:[%s12706_s25 + $0x74] ss:$24 sps:$4 sm:$0xff]  }
  0xe7   : > { %1733 = vmatprep.mubr.bf16.mxu0 %v11408_v45  ;;  %1899 = vmatpush1.bf16.msra.mxu0 %v11417_v46  ;;  %v11509_v45 = vld [vmem:[%s12706_s25 + $0x70] ss:$24 sps:$4 sm:$0xff]   ;;  %v11510_v46 = vld [vmem:[%s12706_s25 + $0xa4] ss:$24 sps:$4 sm:$0xff]  }
  0xe8   : > { %1900 = vmatprep.subr.bf16.mxu0 %v11427_v47  ;;  %v11512_v47 = vld [vmem:[%s12706_s25 + $0xa0] ss:$24 sps:$4 sm:$0xff]  }
  0xeb   : > { %1901 = vmatpush1.bf16.msra.mxu0 %v11425_v48  ;;  %v11513_v48 = vld [vmem:[%s12706_s25 + $0xd4] ss:$24 sps:$4 sm:$0xff]  }
  0xec   : > { %1902 = vmatprep.subr.bf16.mxu0 %v11434_v49  ;;  %v11515_v49 = vld [vmem:[%s12706_s25 + $0xd0] ss:$24 sps:$4 sm:$0xff]  }
  0xee   : > { %1734 = vmatmul.mubr.bf16.gmra.mrb[8].mxu0 %v11410_v50  ;;  %v11516_v50 = vld [vmem:[%s12706_s25 + $0x104] ss:$24 sps:$4 sm:$0xff]  }
  0xef   : > { %1743 = vmatprep.mubr.bf16.mxu0 %v11414_v51  ;;  %1903 = vmatpush1.bf16.msra.mxu0 %v11432_v52  ;;  %v11518_v51 = vld [vmem:[%s12706_s25 + $0x100] ss:$24 sps:$4 sm:$0xff]   ;;  %v11519_v52 = vld [vmem:[%s12706_s25 + $0x134] ss:$24 sps:$4 sm:$0xff]  }
  0xf0   : > { %1904 = vmatprep.subr.bf16.mxu0 %v11440_v53  ;;  %v11521_v53 = vld [vmem:[%s12706_s25 + $0x130] ss:$24 sps:$4 sm:$0xff]  }
  0xf3   : > { %1905 = vmatpush1.bf16.msra.mxu0 %v11438_v54  ;;  %v11522_v54 = vld [vmem:[%s12706_s25 + $0x164] ss:$24 sps:$4 sm:$0xff]  }
  0xf4   : > { %1906 = vmatprep.subr.bf16.mxu0 %v11446_v55  ;;  %v11524_v55 = vld [vmem:[%s12706_s25 + $0x160] ss:$24 sps:$4 sm:$0xff]  }
  0xf6   : > { %1744 = vmatmul.mubr.bf16.gmra.mrb[12].mxu0 %v11416_v56  ;;  %v11525_v56 = vld [vmem:[%s12706_s25 + $0x194] ss:$24 sps:$4 sm:$0xff]  }
  0xf7   : > { %1753 = vmatprep.mubr.bf16.mxu0 %v11420_v57  ;;  %1907 = vmatpush1.bf16.msra.mxu0 %v11444_v58  ;;  %v11527_v57 = vld [vmem:[%s12706_s25 + $0x190] ss:$24 sps:$4 sm:$0xff]   ;;  %v11528_v58 = vld [vmem:[%s12706_s25 + $0x1c4] ss:$24 sps:$4 sm:$0xff]  }
  0xf8   : > { %1908 = vmatprep.subr.bf16.mxu0 %v11452_v59  ;;  %v11530_v59 = vld [vmem:[%s12706_s25 + $0x1c0] ss:$24 sps:$4 sm:$0xff]  }
  0xfb   : > { %1909 = vmatpush1.bf16.msra.mxu0 %v11450_v60  ;;  %v11531_v60 = vld [vmem:[%s12706_s25 + $0x1f4] ss:$24 sps:$4 sm:$0xff]  }
  0xfc   : > { %1910 = vmatprep.subr.bf16.mxu0 %v11458_v61  ;;  %v11533_v61 = vld [vmem:[%s12706_s25 + $0x1f0] ss:$24 sps:$4 sm:$0xff]  }
  0xfe   : > { %1754 = vmatmul.mubr.bf16.gmra.mrb[16].mxu0 %v11422_v62  ;;  %v11534_v62 = vld [vmem:[%s12706_s25 + $0x224] ss:$24 sps:$4 sm:$0xff]  }
  0xff   : > { %1763 = vmatprep.mubr.bf16.mxu0 %v11423_v63  ;;  %1911 = vmatpush1.bf16.msra.mxu0 %v11456_v0  ;;  %v11536_v63 = vld [vmem:[%s12706_s25 + $0x220] ss:$24 sps:$4 sm:$0xff]   ;;  %v11537_v0 = vld [vmem:[%s12706_s25 + $0x254] ss:$24 sps:$4 sm:$0xff]  }
 0x100   : > { %1912 = vmatprep.subr.bf16.mxu0 %v11464_v1  ;;  %v11539_v1 = vld [vmem:[%s12706_s25 + $0x250] ss:$24 sps:$4 sm:$0xff]  }
 0x103   : > { %1913 = vmatpush1.bf16.msra.mxu0 %v11462_v2  ;;  %v11540_v2 = vld [vmem:[%s12706_s25 + $0x284] ss:$24 sps:$4 sm:$0xff]  }
 0x104   : > { %1914 = vmatprep.subr.bf16.mxu0 %v11470_v3  ;;  %v11542_v3 = vld [vmem:[%s12706_s25 + $0x280] ss:$24 sps:$4 sm:$0xff]  }
 0x106   : > { %1764 = vmatmul.mubr.bf16.gmra.mrb[20].mxu0 %v11428_v4  ;;  %v11543_v4 = vld [vmem:[%s12706_s25 + $0x2b4] ss:$24 sps:$4 sm:$0xff]  }
 0x107   : > { %1773 = vmatprep.mubr.bf16.mxu0 %v11429_v5  ;;  %1915 = vmatpush1.bf16.msra.mxu0 %v11468_v6  ;;  %v11545_v5 = vld [vmem:[%s12706_s25 + $0x2b0] ss:$24 sps:$4 sm:$0xff]   ;;  %v11546_v6 = vld [vmem:[%s12706_s25 + $0x2e4] ss:$24 sps:$4 sm:$0xff]  }
 0x108   : > { %1916 = vmatprep.subr.bf16.mxu0 %v11478_v7  ;;  %v11548_v7 = vld [vmem:[%s12706_s25 + $0x2e0] ss:$24 sps:$4 sm:$0xff]  }
 0x10b   : > { %1917 = vmatpush1.bf16.msra.mxu0 %v11476_v8  ;;  %v11549_v8 = vld [vmem:[%s12706_s25 + $0x314] ss:$24 sps:$4 sm:$0xff]  }
 0x10c   : > { %1918 = vmatprep.subr.bf16.mxu0 %v11485_v9  ;;  %v11551_v9 = vld [vmem:[%s12706_s25 + $0x310] ss:$24 sps:$4 sm:$0xff]  }
 0x10e   : > { %1774 = vmatmul.mubr.bf16.gmra.mrb[24].mxu0 %v11431_v10  ;;  %v11552_v10 = vld [vmem:[%s12706_s25 + $0x344] ss:$24 sps:$4 sm:$0xff]  }
 0x10f   : > { %1783 = vmatprep.mubr.bf16.mxu0 %v11435_v11  ;;  %1919 = vmatpush1.bf16.msra.mxu0 %v11483_v12  ;;  %v11554_v11 = vld [vmem:[%s12706_s25 + $0x340] ss:$24 sps:$4 sm:$0xff]   ;;  %v12211_v12 = vld [vmem:[%s12706_s25 + $0x4] ss:$24 sps:$4 sm:$0xff]  }
 0x110   : > { %1920 = vmatprep.subr.bf16.mxu0 %v11491_v13  ;;  %v438_v13 = vlaneseq }
 0x113   : > { %1921 = vmatpush1.bf16.msra.mxu0 %v11489_v14  ;;  %v439_v14 = vshrl.u32 %v438_v13, 7 }
 0x114   : > { %1922 = vmatprep.subr.bf16.mxu0 %v11497_v15 }
 0x115   : > { %v13069_v15 = vsub.s32 0, %v439_v14 }
 0x116   : > { %1784 = vmatmul.mubr.bf16.gmra.mrb[28].mxu0 %v11437_v16  ;;  %v436_v16 = vld [vmem:[%s15704_s3] sm:$0x3] }
 0x117   : > { %1793 = vmatprep.mubr.bf16.mxu0 %v11441_v17  ;;  %1923 = vmatpush1.bf16.msra.mxu0 %v11495_v18  ;;  %15720 = vst [vmem:[#allocation2_spill] sm:$0xff] %v13069_v15  ;;  %v13074_v17 = vsub.s32 1, %v439_v14  ;;  %v13077_v18 = vrot.slane %v436_v16, %v13069_v15 }
 0x118   : > { %1924 = vmatprep.subr.bf16.mxu0 %v11500_v19 }
 0x119   : > { %15721 = vst [vmem:[#allocation3_spill] sm:$0xff] %v13074_v17  ;;  %v13080_v19 = vrot.slane %v436_v16, %v13074_v17 }
 0x11b   : > { %1925 = vmatpush1.bf16.msra.mxu0 %v11498_v20 }
 0x11e   : > { %1794 = vmatmul.mubr.bf16.gmra.mrb[32].mxu0 %v11443_v21 }
 0x11f   : > { %1803 = vmatprep.mubr.bf16.mxu0 %v11447_v22 }
 0x126   : > { %1804 = vmatmul.mubr.bf16.gmra.mrb[36].mxu0 %v11449_v23 }
 0x127   : > { %1813 = vmatprep.mubr.bf16.mxu0 %v11453_v24 }
 0x12e   : > { %1814 = vmatmul.mubr.bf16.gmra.mrb[40].mxu0 %v11455_v25 }
 0x12f   : > { %1823 = vmatprep.mubr.bf16.mxu0 %v11459_v26 }
 0x136   : > { %1824 = vmatmul.mubr.bf16.gmra.mrb[44].mxu0 %v11461_v27 }
 0x137   : > { %1833 = vmatprep.mubr.bf16.mxu0 %v11465_v28 }
 0x13e   : > { %1834 = vmatmul.mubr.bf16.gmra.mrb[48].mxu0 %v11467_v29 }
 0x13f   : > { %1843 = vmatprep.mubr.bf16.mxu0 %v11471_v30 }
 0x146   : > { %1844 = vmatmul.mubr.bf16.gmra.mrb[52].mxu0 %v11473_v31 }
 0x147   : > { %1853 = vmatprep.mubr.bf16.mxu0 %v11474_v32 }
 0x14e   : > { %1854 = vmatmul.mubr.bf16.gmra.mrb[56].mxu0 %v11479_v33 }
 0x14f   : > { %1863 = vmatprep.mubr.bf16.mxu0 %v11480_v34 }
 0x156   : > { %1864 = vmatmul.mubr.bf16.gmra.mrb[60].mxu0 %v11482_v35 }
 0x157   : > { %1873 = vmatprep.mubr.bf16.mxu0 %v11486_v36 }
 0x15e   : > { %1874 = vmatmul.mubr.bf16.gmra.mrb[64].mxu0 %v11488_v37  ;;  %v338_v37 = vld [vmem:[%s15702_s1 + $0x8] sm:$0xff] }
 0x15f   : > { %1883 = vmatprep.mubr.bf16.mxu0 %v11492_v38  ;;  %2247 = vmatprep.mubr.f32.mxu1 %v338_v37 }
 0x166   : > { %1884 = vmatmul.mubr.bf16.gmra.mrb[68].mxu0 %v11494_v39 }
 0x167   : > { %1926 = vmatprep.mubr.bf16.mxu0 %v11501_v40 }
 0x16e   : > { %1927 = vmatmul.mubr.bf16.vlgmr.msra.gmra.mrb[0].mxu0 %v11503_v41 }
 0x16f   : > { %1936 = vmatprep.mubr.bf16.mxu0 %v11504_v42 }
 0x176   : > { %1937 = vmatmul.mubr.bf16.gmra.mrb[4].mxu0 %v11506_v43 }
 0x177   : > { %1946 = vmatprep.mubr.bf16.mxu0 %v11507_v44 }
 0x17e   : > { %1947 = vmatmul.mubr.bf16.gmra.mrb[8].mxu0 %v11509_v45 }
 0x17f   : > { %1956 = vmatprep.mubr.bf16.mxu0 %v11510_v46 }
 0x186   : > { %1957 = vmatmul.mubr.bf16.gmra.mrb[12].mxu0 %v11512_v47 }
 0x187   : > { %1966 = vmatprep.mubr.bf16.mxu0 %v11513_v48 }
 0x18e   : > { %1967 = vmatmul.mubr.bf16.gmra.mrb[16].mxu0 %v11515_v49 }
 0x18f   : > { %1976 = vmatprep.mubr.bf16.mxu0 %v11516_v50 }
 0x196   : > { %1977 = vmatmul.mubr.bf16.gmra.mrb[20].mxu0 %v11518_v51 }
 0x197   : > { %1986 = vmatprep.mubr.bf16.mxu0 %v11519_v52 }
 0x19e   : > { %1987 = vmatmul.mubr.bf16.gmra.mrb[24].mxu0 %v11521_v53 }
 0x19f   : > { %1996 = vmatprep.mubr.bf16.mxu0 %v11522_v54 }
 0x1a6   : > { %1997 = vmatmul.mubr.bf16.gmra.mrb[28].mxu0 %v11524_v55 }
 0x1a7   : > { %2006 = vmatprep.mubr.bf16.mxu0 %v11525_v56 }
 0x1ae   : > { %2007 = vmatmul.mubr.bf16.gmra.mrb[32].mxu0 %v11527_v57 }
 0x1af   : > { %2016 = vmatprep.mubr.bf16.mxu0 %v11528_v58 }
 0x1b6   : > { %2017 = vmatmul.mubr.bf16.gmra.mrb[36].mxu0 %v11530_v59 }
 0x1b7   : > { %2026 = vmatprep.mubr.bf16.mxu0 %v11531_v60 }
 0x1be   : > { %2027 = vmatmul.mubr.bf16.gmra.mrb[40].mxu0 %v11533_v61 }
 0x1bf   : > { %2036 = vmatprep.mubr.bf16.mxu0 %v11534_v62 }
 0x1c6   : > { %2037 = vmatmul.mubr.bf16.gmra.mrb[44].mxu0 %v11536_v63 }
 0x1c7   : > { %2046 = vmatprep.mubr.bf16.mxu0 %v11537_v0 }
 0x1ce   : > { %2047 = vmatmul.mubr.bf16.gmra.mrb[48].mxu0 %v11539_v1 }
 0x1cf   : > { %2056 = vmatprep.mubr.bf16.mxu0 %v11540_v2 }
 0x1d6   : > { %2057 = vmatmul.mubr.bf16.gmra.mrb[52].mxu0 %v11542_v3 }
 0x1d7   : > { %2066 = vmatprep.mubr.bf16.mxu0 %v11543_v4 }
 0x1de   : > { %2067 = vmatmul.mubr.bf16.gmra.mrb[56].mxu0 %v11545_v5 }
 0x1df   : > { %2076 = vmatprep.mubr.bf16.mxu0 %v11546_v6 }
 0x1e6   : > { %2077 = vmatmul.mubr.bf16.gmra.mrb[60].mxu0 %v11548_v7 }
 0x1e7   : > { %2086 = vmatprep.mubr.bf16.mxu0 %v11549_v8 }
 0x1ee   : > { %2087 = vmatmul.mubr.bf16.gmra.mrb[64].mxu0 %v11551_v9 }
 0x1ef   : > { %2096 = vmatprep.mubr.bf16.mxu0 %v11552_v10 }
 0x1f6   : > { %2097 = vmatmul.mubr.bf16.gmra.mrb[68].mxu0 %v11554_v11 }
 0x1f7   : > { %2979 = vmatprep.mubr.bf16.mxu0 %v12211_v12 }
 0x241   : > { %v1928_v20 = vpop.f32.mrb[0].mxu0 }
 0x242   : > { %v10149_v21 = vadd.f32 %v1928_v20, %v13077_v18  ;;  %v1930_v22 = vpop.f32.mrb[1].mxu0 }
 0x243   : > { %v10150_v23 = vadd.f32 %v1930_v22, %v13080_v19  ;;  %v1932_v24 = vpop.f32.mrb[2].mxu0 }
 0x244   : > { %v10151_v25 = vadd.f32 %v1932_v24, %v13077_v18  ;;  %v1934_v26 = vpop.f32.mrb[3].mxu0  ;;  %v2107_v28 = vmax.f32 %v10149_v21, 0.0 }
 0x245   : > { %v10152_v27 = vadd.f32 %v1934_v26, %v13080_v19  ;;  %v2108_v30 = vmax.f32 %v10150_v23, 0.0 }
 0x246   : > { %v2109_v29 = vmax.f32 %v10151_v25, 0.0 }
 0x247   : > { %v2110_v31 = vmax.f32 %v10152_v27, 0.0 }
 0x248   : > { %v9791_v32 = vpack.c.bf16 %v2109_v29, %v2107_v28 }
 0x249   : > { %v1938_v33 = vpop.f32.mrb[4].mxu0  ;;  %v9789_v34 = vpack.c.bf16 %v2110_v31, %v2108_v30 }
 0x24a   : > { %v10153_v35 = vadd.f32 %v1938_v33, %v13077_v18  ;;  %v1940_v36 = vpop.f32.mrb[5].mxu0 }
 0x24b   : > { %v10154_v38 = vadd.f32 %v1940_v36, %v13080_v19  ;;  %v1942_v39 = vpop.f32.mrb[6].mxu0  ;;  %9790 = vmatprep.subr.bf16.mxu1 %v9789_v34 }
 0x24c   : > { %v10155_v40 = vadd.f32 %v1942_v39, %v13077_v18  ;;  %v1944_v41 = vpop.f32.mrb[7].mxu0  ;;  %9792 = vmatpush1.bf16.msra.mxu1 %v9791_v32  ;;  %v2111_v43 = vmax.f32 %v10153_v35, 0.0 }
 0x24d   : > { %v10156_v42 = vadd.f32 %v1944_v41, %v13080_v19  ;;  %v2112_v45 = vmax.f32 %v10154_v38, 0.0 }
 0x24e   : > { %v2113_v44 = vmax.f32 %v10155_v40, 0.0 }
 0x24f   : > { %v2114_v46 = vmax.f32 %v10156_v42, 0.0 }
 0x250   : > { %v9795_v47 = vpack.c.bf16 %v2113_v44, %v2111_v43 }
 0x251   : > { %v9793_v48 = vpack.c.bf16 %v2114_v46, %v2112_v45  ;;  %v1948_v49 = vpop.f32.mrb[8].mxu0 }
 0x252   : > { %v10157_v50 = vadd.f32 %v1948_v49, %v13077_v18  ;;  %v1950_v51 = vpop.f32.mrb[9].mxu0 }
 0x253   : > { %v10158_v52 = vadd.f32 %v1950_v51, %v13080_v19  ;;  %v1952_v53 = vpop.f32.mrb[10].mxu0  ;;  %9794 = vmatprep.subr.bf16.mxu1 %v9793_v48 }
 0x254   : > { %v10159_v54 = vadd.f32 %v1952_v53, %v13077_v18  ;;  %v1954_v55 = vpop.f32.mrb[11].mxu0  ;;  %9796 = vmatpush1.bf16.msra.mxu1 %v9795_v47  ;;  %v2115_v57 = vmax.f32 %v10157_v50, 0.0 }
 0x255   : > { %v10160_v56 = vadd.f32 %v1954_v55, %v13080_v19  ;;  %v2116_v59 = vmax.f32 %v10158_v52, 0.0 }
 0x256   : > { %v2117_v58 = vmax.f32 %v10159_v54, 0.0 }
 0x257   : > { %v2118_v60 = vmax.f32 %v10160_v56, 0.0 }
 0x258   : > { %v9799_v61 = vpack.c.bf16 %v2117_v58, %v2115_v57 }
 0x259   : > { %v9797_v62 = vpack.c.bf16 %v2118_v60, %v2116_v59  ;;  %v1958_v63 = vpop.f32.mrb[12].mxu0 }
 0x25a   : > { %v10161_v0 = vadd.f32 %v1958_v63, %v13077_v18  ;;  %v1960_v1 = vpop.f32.mrb[13].mxu0 }
 0x25b   : > { %v10162_v2 = vadd.f32 %v1960_v1, %v13080_v19  ;;  %v1962_v3 = vpop.f32.mrb[14].mxu0  ;;  %9798 = vmatprep.subr.bf16.mxu1 %v9797_v62 }
 0x25c   : > { %v10163_v4 = vadd.f32 %v1962_v3, %v13077_v18  ;;  %v1964_v5 = vpop.f32.mrb[15].mxu0  ;;  %9800 = vmatpush1.bf16.msra.mxu1 %v9799_v61  ;;  %v2119_v7 = vmax.f32 %v10161_v0, 0.0 }
 0x25d   : > { %v10164_v6 = vadd.f32 %v1964_v5, %v13080_v19  ;;  %v2120_v9 = vmax.f32 %v10162_v2, 0.0 }
 0x25e   : > { %v2121_v8 = vmax.f32 %v10163_v4, 0.0 }
 0x25f   : > { %v2122_v10 = vmax.f32 %v10164_v6, 0.0 }
 0x260   : > { %v9803_v11 = vpack.c.bf16 %v2121_v8, %v2119_v7 }
 0x261   : > { %v9801_v12 = vpack.c.bf16 %v2122_v10, %v2120_v9  ;;  %v1968_v13 = vpop.f32.mrb[16].mxu0 }
 0x262   : > { %v10165_v14 = vadd.f32 %v1968_v13, %v13077_v18  ;;  %v1970_v16 = vpop.f32.mrb[17].mxu0 }
 0x263   : > { %v10166_v20 = vadd.f32 %v1970_v16, %v13080_v19  ;;  %v1972_v21 = vpop.f32.mrb[18].mxu0  ;;  %9802 = vmatprep.subr.bf16.mxu1 %v9801_v12 }
 0x264   : > { %v10167_v22 = vadd.f32 %v1972_v21, %v13077_v18  ;;  %v1974_v23 = vpop.f32.mrb[19].mxu0  ;;  %9804 = vmatpush1.bf16.msra.mxu1 %v9803_v11  ;;  %v2123_v25 = vmax.f32 %v10165_v14, 0.0 }
 0x265   : > { %v10168_v24 = vadd.f32 %v1974_v23, %v13080_v19  ;;  %v2124_v27 = vmax.f32 %v10166_v20, 0.0 }
 0x266   : > { %v2125_v26 = vmax.f32 %v10167_v22, 0.0 }
 0x267   : > { %v2126_v28 = vmax.f32 %v10168_v24, 0.0 }
 0x268   : > { %v9807_v29 = vpack.c.bf16 %v2125_v26, %v2123_v25 }
 0x269   : > { %v9805_v30 = vpack.c.bf16 %v2126_v28, %v2124_v27  ;;  %v1978_v31 = vpop.f32.mrb[20].mxu0 }
 0x26a   : > { %v10169_v32 = vadd.f32 %v1978_v31, %v13077_v18  ;;  %v1980_v33 = vpop.f32.mrb[21].mxu0 }
 0x26b   : > { %v10170_v34 = vadd.f32 %v1980_v33, %v13080_v19  ;;  %v1982_v35 = vpop.f32.mrb[22].mxu0  ;;  %9806 = vmatprep.subr.bf16.mxu1 %v9805_v30 }
 0x26c   : > { %v10171_v36 = vadd.f32 %v1982_v35, %v13077_v18  ;;  %v1984_v37 = vpop.f32.mrb[23].mxu0  ;;  %9808 = vmatpush1.bf16.msra.mxu1 %v9807_v29  ;;  %v2127_v39 = vmax.f32 %v10169_v32, 0.0 }
 0x26d   : > { %v10172_v38 = vadd.f32 %v1984_v37, %v13080_v19  ;;  %v2128_v41 = vmax.f32 %v10170_v34, 0.0 }
 0x26e   : > { %v2129_v40 = vmax.f32 %v10171_v36, 0.0 }
 0x26f   : > { %v2130_v42 = vmax.f32 %v10172_v38, 0.0 }
 0x270   : > { %v9811_v43 = vpack.c.bf16 %v2129_v40, %v2127_v39 }
 0x271   : > { %v9809_v44 = vpack.c.bf16 %v2130_v42, %v2128_v41  ;;  %v1988_v45 = vpop.f32.mrb[24].mxu0 }
 0x272   : > { %v10173_v46 = vadd.f32 %v1988_v45, %v13077_v18  ;;  %v1990_v47 = vpop.f32.mrb[25].mxu0 }
 0x273   : > { %v10174_v48 = vadd.f32 %v1990_v47, %v13080_v19  ;;  %v1992_v49 = vpop.f32.mrb[26].mxu0  ;;  %9810 = vmatprep.subr.bf16.mxu1 %v9809_v44 }
 0x274   : > { %v10175_v50 = vadd.f32 %v1992_v49, %v13077_v18  ;;  %v1994_v51 = vpop.f32.mrb[27].mxu0  ;;  %9812 = vmatpush1.bf16.msra.mxu1 %v9811_v43  ;;  %v2131_v53 = vmax.f32 %v10173_v46, 0.0 }
 0x275   : > { %v10176_v52 = vadd.f32 %v1994_v51, %v13080_v19  ;;  %v2132_v55 = vmax.f32 %v10174_v48, 0.0 }
 0x276   : > { %v2133_v54 = vmax.f32 %v10175_v50, 0.0 }
 0x277   : > { %v2134_v56 = vmax.f32 %v10176_v52, 0.0 }
 0x278   : > { %v9815_v57 = vpack.c.bf16 %v2133_v54, %v2131_v53 }
 0x279   : > { %v9813_v58 = vpack.c.bf16 %v2134_v56, %v2132_v55  ;;  %v1998_v59 = vpop.f32.mrb[28].mxu0 }
 0x27a   : > { %v10177_v60 = vadd.f32 %v1998_v59, %v13077_v18  ;;  %v2000_v61 = vpop.f32.mrb[29].mxu0 }
 0x27b   : > { %v10178_v62 = vadd.f32 %v2000_v61, %v13080_v19  ;;  %v2002_v63 = vpop.f32.mrb[30].mxu0  ;;  %9814 = vmatprep.subr.bf16.mxu1 %v9813_v58 }
 0x27c   : > { %v10179_v0 = vadd.f32 %v2002_v63, %v13077_v18  ;;  %v2004_v1 = vpop.f32.mrb[31].mxu0  ;;  %9816 = vmatpush1.bf16.msra.mxu1 %v9815_v57  ;;  %v2135_v3 = vmax.f32 %v10177_v60, 0.0 }
 0x27d   : > { %v10180_v2 = vadd.f32 %v2004_v1, %v13080_v19  ;;  %v2136_v5 = vmax.f32 %v10178_v62, 0.0 }
 0x27e   : > { %v2137_v4 = vmax.f32 %v10179_v0, 0.0 }
 0x27f   : > { %v2138_v6 = vmax.f32 %v10180_v2, 0.0 }
 0x280   : > { %v9819_v7 = vpack.c.bf16 %v2137_v4, %v2135_v3 }
 0x281   : > { %v9817_v8 = vpack.c.bf16 %v2138_v6, %v2136_v5  ;;  %v2008_v9 = vpop.f32.mrb[32].mxu0 }
 0x282   : > { %v10181_v10 = vadd.f32 %v2008_v9, %v13077_v18  ;;  %v2010_v11 = vpop.f32.mrb[33].mxu0 }
 0x283   : > { %v10182_v12 = vadd.f32 %v2010_v11, %v13080_v19  ;;  %v2012_v13 = vpop.f32.mrb[34].mxu0  ;;  %9818 = vmatprep.subr.bf16.mxu1 %v9817_v8 }
 0x284   : > { %v10183_v14 = vadd.f32 %v2012_v13, %v13077_v18  ;;  %v2014_v16 = vpop.f32.mrb[35].mxu0  ;;  %9820 = vmatpush1.bf16.msra.mxu1 %v9819_v7  ;;  %v2139_v21 = vmax.f32 %v10181_v10, 0.0 }
 0x285   : > { %v10184_v20 = vadd.f32 %v2014_v16, %v13080_v19  ;;  %v2140_v23 = vmax.f32 %v10182_v12, 0.0 }
 0x286   : > { %v2141_v22 = vmax.f32 %v10183_v14, 0.0 }
 0x287   : > { %v2142_v24 = vmax.f32 %v10184_v20, 0.0 }
 0x288   : > { %v9823_v25 = vpack.c.bf16 %v2141_v22, %v2139_v21 }
 0x289   : > { %v9821_v26 = vpack.c.bf16 %v2142_v24, %v2140_v23  ;;  %v2018_v27 = vpop.f32.mrb[36].mxu0 }
 0x28a   : > { %v10185_v28 = vadd.f32 %v2018_v27, %v13077_v18  ;;  %v2020_v29 = vpop.f32.mrb[37].mxu0 }
 0x28b   : > { %v10186_v30 = vadd.f32 %v2020_v29, %v13080_v19  ;;  %v2022_v31 = vpop.f32.mrb[38].mxu0  ;;  %9822 = vmatprep.subr.bf16.mxu1 %v9821_v26 }
 0x28c   : > { %v10187_v32 = vadd.f32 %v2022_v31, %v13077_v18  ;;  %v2024_v33 = vpop.f32.mrb[39].mxu0  ;;  %9824 = vmatpush1.bf16.msra.mxu1 %v9823_v25  ;;  %v2143_v35 = vmax.f32 %v10185_v28, 0.0 }
 0x28d   : > { %v10188_v34 = vadd.f32 %v2024_v33, %v13080_v19  ;;  %v2144_v37 = vmax.f32 %v10186_v30, 0.0 }
 0x28e   : > { %v2145_v36 = vmax.f32 %v10187_v32, 0.0 }
 0x28f   : > { %v2146_v38 = vmax.f32 %v10188_v34, 0.0 }
 0x290   : > { %v9827_v39 = vpack.c.bf16 %v2145_v36, %v2143_v35 }
 0x291   : > { %v9825_v40 = vpack.c.bf16 %v2146_v38, %v2144_v37  ;;  %v2028_v41 = vpop.f32.mrb[40].mxu0 }
 0x292   : > { %v10189_v42 = vadd.f32 %v2028_v41, %v13077_v18  ;;  %v2030_v43 = vpop.f32.mrb[41].mxu0 }
 0x293   : > { %v10190_v44 = vadd.f32 %v2030_v43, %v13080_v19  ;;  %v2032_v45 = vpop.f32.mrb[42].mxu0  ;;  %9826 = vmatprep.subr.bf16.mxu1 %v9825_v40 }
 0x294   : > { %v10191_v46 = vadd.f32 %v2032_v45, %v13077_v18  ;;  %v2034_v47 = vpop.f32.mrb[43].mxu0  ;;  %9828 = vmatpush1.bf16.msra.mxu1 %v9827_v39  ;;  %v2147_v49 = vmax.f32 %v10189_v42, 0.0 }
 0x295   : > { %v10192_v48 = vadd.f32 %v2034_v47, %v13080_v19  ;;  %v2148_v51 = vmax.f32 %v10190_v44, 0.0 }
 0x296   : > { %v2149_v50 = vmax.f32 %v10191_v46, 0.0 }
 0x297   : > { %v2150_v52 = vmax.f32 %v10192_v48, 0.0 }
 0x298   : > { %v9831_v53 = vpack.c.bf16 %v2149_v50, %v2147_v49 }
 0x299   : > { %v9829_v54 = vpack.c.bf16 %v2150_v52, %v2148_v51  ;;  %v2038_v55 = vpop.f32.mrb[44].mxu0 }
 0x29a   : > { %v10193_v56 = vadd.f32 %v2038_v55, %v13077_v18  ;;  %v2040_v57 = vpop.f32.mrb[45].mxu0 }
 0x29b   : > { %v10194_v58 = vadd.f32 %v2040_v57, %v13080_v19  ;;  %v2042_v59 = vpop.f32.mrb[46].mxu0  ;;  %9830 = vmatprep.subr.bf16.mxu1 %v9829_v54 }
 0x29c   : > { %v10195_v60 = vadd.f32 %v2042_v59, %v13077_v18  ;;  %v2044_v61 = vpop.f32.mrb[47].mxu0  ;;  %9832 = vmatpush1.bf16.msra.mxu1 %v9831_v53  ;;  %v2151_v63 = vmax.f32 %v10193_v56, 0.0 }
 0x29d   : > { %v10196_v62 = vadd.f32 %v2044_v61, %v13080_v19  ;;  %v2152_v1 = vmax.f32 %v10194_v58, 0.0 }
 0x29e   : > { %v2153_v0 = vmax.f32 %v10195_v60, 0.0 }
 0x29f   : > { %v2154_v2 = vmax.f32 %v10196_v62, 0.0 }
 0x2a0   : > { %v9835_v3 = vpack.c.bf16 %v2153_v0, %v2151_v63 }
 0x2a1   : > { %v9833_v4 = vpack.c.bf16 %v2154_v2, %v2152_v1  ;;  %v2048_v5 = vpop.f32.mrb[48].mxu0 }
 0x2a2   : > { %v10197_v6 = vadd.f32 %v2048_v5, %v13077_v18  ;;  %v2050_v7 = vpop.f32.mrb[49].mxu0 }
 0x2a3   : > { %v10198_v8 = vadd.f32 %v2050_v7, %v13080_v19  ;;  %v2052_v9 = vpop.f32.mrb[50].mxu0  ;;  %9834 = vmatprep.subr.bf16.mxu1 %v9833_v4 }
 0x2a4   : > { %v10199_v10 = vadd.f32 %v2052_v9, %v13077_v18  ;;  %v2054_v11 = vpop.f32.mrb[51].mxu0  ;;  %9836 = vmatpush1.bf16.msra.mxu1 %v9835_v3  ;;  %v2155_v13 = vmax.f32 %v10197_v6, 0.0 }
 0x2a5   : > { %v10200_v12 = vadd.f32 %v2054_v11, %v13080_v19  ;;  %v2156_v16 = vmax.f32 %v10198_v8, 0.0  ;;  %v337_v8 = vld [vmem:[%s15702_s1] sm:$0xff] }
 0x2a6   : > { %v2157_v14 = vmax.f32 %v10199_v10, 0.0 }
 0x2a7   : > { %v2158_v20 = vmax.f32 %v10200_v12, 0.0 }
 0x2a8   : > { %v9839_v21 = vpack.c.bf16 %v2157_v14, %v2155_v13 }
 0x2a9   : > { %v9837_v22 = vpack.c.bf16 %v2158_v20, %v2156_v16  ;;  %v2058_v23 = vpop.f32.mrb[52].mxu0  ;;  %v15707_v16 = vmov 0.0  }
 0x2aa   : > { %v10201_v24 = vadd.f32 %v2058_v23, %v13077_v18  ;;  %v2060_v25 = vpop.f32.mrb[53].mxu0 }
 0x2ab   : > { %v10202_v26 = vadd.f32 %v2060_v25, %v13080_v19  ;;  %v2062_v27 = vpop.f32.mrb[54].mxu0  ;;  %9838 = vmatprep.subr.bf16.mxu1 %v9837_v22 }
 0x2ac   : > { %v10203_v28 = vadd.f32 %v2062_v27, %v13077_v18  ;;  %v2064_v29 = vpop.f32.mrb[55].mxu0  ;;  %9840 = vmatpush1.bf16.msra.mxu1 %v9839_v21  ;;  %v2159_v31 = vmax.f32 %v10201_v24, 0.0 }
 0x2ad   : > { %v10204_v30 = vadd.f32 %v2064_v29, %v13080_v19  ;;  %v2160_v33 = vmax.f32 %v10202_v26, 0.0 }
 0x2ae   : > { %v2161_v32 = vmax.f32 %v10203_v28, 0.0 }
 0x2af   : > { %v2162_v34 = vmax.f32 %v10204_v30, 0.0 }
 0x2b0   : > { %v9843_v35 = vpack.c.bf16 %v2161_v32, %v2159_v31 }
 0x2b1   : > { %v9841_v36 = vpack.c.bf16 %v2162_v34, %v2160_v33  ;;  %v2068_v37 = vpop.f32.mrb[56].mxu0 }
 0x2b2   : > { %v10205_v38 = vadd.f32 %v2068_v37, %v13077_v18  ;;  %v2070_v39 = vpop.f32.mrb[57].mxu0  ;;  %v11558_v37 = vld [vmem:[%s15703_s2 + $0x558] ss:$40 sps:$4 sm:$0xff]  }
 0x2b3   : > { %v10206_v40 = vadd.f32 %v2070_v39, %v13080_v19  ;;  %v2072_v41 = vpop.f32.mrb[58].mxu0  ;;  %9842 = vmatprep.subr.bf16.mxu1 %v9841_v36  ;;  %v11560_v36 = vld [vmem:[%s15703_s2 + $0x55c] ss:$40 sps:$4 sm:$0xff]   ;;  %v11563_v39 = vld [vmem:[%s15703_s2 + $0x5ac] ss:$40 sps:$4 sm:$0xff]  }
 0x2b4   : > { %v10207_v42 = vadd.f32 %v2072_v41, %v13077_v18  ;;  %v2074_v43 = vpop.f32.mrb[59].mxu0  ;;  %9844 = vmatpush1.bf16.msra.mxu1 %v9843_v35  ;;  %v2163_v45 = vmax.f32 %v10205_v38, 0.0  ;;  %v11557_v35 = vld [vmem:[%s15703_s2 + $0x50c] ss:$40 sps:$4 sm:$0xff]   ;;  %v11566_v41 = vld [vmem:[%s15703_s2 + $0x5fc] ss:$40 sps:$4 sm:$0xff]  }
 0x2b5   : > { %v10208_v44 = vadd.f32 %v2074_v43, %v13080_v19  ;;  %v2164_v47 = vmax.f32 %v10206_v40, 0.0  ;;  %v12212_v38 = vld [vmem:[%s12706_s25 + $0xc] ss:$24 sps:$4 sm:$0xff]   ;;  %v11561_v40 = vld [vmem:[%s15703_s2 + $0x5a8] ss:$40 sps:$4 sm:$0xff]  }
 0x2b6   : > { %v2165_v46 = vmax.f32 %v10207_v42, 0.0  ;;  %v11627_v42 = vld [vmem:[%s15703_s2 + $0x8] ss:$40 sps:$4 sm:$0xff]   ;;  %v11564_v43 = vld [vmem:[%s15703_s2 + $0x5f8] ss:$40 sps:$4 sm:$0xff]  }
 0x2b7   : > { %v2166_v48 = vmax.f32 %v10208_v44, 0.0  ;;  %v11629_v44 = vld [vmem:[%s15703_s2 + $0xc] ss:$40 sps:$4 sm:$0xff]  }
 0x2b8   : > { %v9847_v49 = vpack.c.bf16 %v2165_v46, %v2163_v45  ;;  %v11569_v45 = vld [vmem:[%s15703_s2 + $0x64c] ss:$40 sps:$4 sm:$0xff]   ;;  %2947 = vmatprep.subr.bf16.mxu0 %v11629_v44  ;;  %v11567_v46 = vld [vmem:[%s15703_s2 + $0x648] ss:$40 sps:$4 sm:$0xff]   ;;  %v11614_v44 = vld [vmem:[%s15703_s2 + $0xafc] ss:$40 sps:$4 sm:$0xff]  }
 0x2b9   : > { %v9845_v50 = vpack.c.bf16 %v2166_v48, %v2164_v47  ;;  %v2078_v51 = vpop.f32.mrb[60].mxu0  ;;  %2948 = vmatpush1.bf16.msra.mxu0 %v11627_v42  ;;  %v11572_v47 = vld [vmem:[%s15703_s2 + $0x69c] ss:$40 sps:$4 sm:$0xff]   ;;  %v11630_v48 = vld [vmem:[%s15703_s2 + $0x58] ss:$40 sps:$4 sm:$0xff]  }
 0x2ba   : > { %v10209_v52 = vadd.f32 %v2078_v51, %v13077_v18  ;;  %v2080_v53 = vpop.f32.mrb[61].mxu0  ;;  %v11638_v51 = vld [vmem:[%s15703_s2 + $0xac] ss:$40 sps:$4 sm:$0xff]   ;;  %v11687_v42 = vld [vmem:[%s15703_s2 + $0x468] ss:$40 sps:$4 sm:$0xff]  }
 0x2bb   : > { %v10210_v54 = vadd.f32 %v2080_v53, %v13080_v19  ;;  %v2082_v55 = vpop.f32.mrb[62].mxu0  ;;  %9846 = vmatprep.subr.bf16.mxu1 %v9845_v50  ;;  %v11570_v50 = vld [vmem:[%s15703_s2 + $0x698] ss:$40 sps:$4 sm:$0xff]   ;;  %v11636_v53 = vld [vmem:[%s15703_s2 + $0xa8] ss:$40 sps:$4 sm:$0xff]  }
 0x2bc   : > { %v10211_v56 = vadd.f32 %v2082_v55, %v13077_v18  ;;  %v2084_v57 = vpop.f32.mrb[63].mxu0  ;;  %9848 = vmatpush1.bf16.msra.mxu1 %v9847_v49  ;;  %v2167_v59 = vmax.f32 %v10209_v52, 0.0  ;;  %v11632_v49 = vld [vmem:[%s15703_s2 + $0x5c] ss:$40 sps:$4 sm:$0xff]   ;;  %v11575_v52 = vld [vmem:[%s15703_s2 + $0x6ec] ss:$40 sps:$4 sm:$0xff]  }
 0x2bd   : > { %v10212_v58 = vadd.f32 %v2084_v57, %v13080_v19  ;;  %v2168_v61 = vmax.f32 %v10210_v54, 0.0  ;;  %2949 = vmatprep.subr.bf16.mxu0 %v11632_v49  ;;  %v11573_v54 = vld [vmem:[%s15703_s2 + $0x6e8] ss:$40 sps:$4 sm:$0xff]   ;;  %v11578_v55 = vld [vmem:[%s15703_s2 + $0x73c] ss:$40 sps:$4 sm:$0xff]  }
 0x2be   : > { %v2169_v60 = vmax.f32 %v10211_v56, 0.0  ;;  %2950 = vmatpush1.bf16.msra.mxu0 %v11630_v48  ;;  %v11639_v56 = vld [vmem:[%s15703_s2 + $0xf8] ss:$40 sps:$4 sm:$0xff]   ;;  %v11641_v57 = vld [vmem:[%s15703_s2 + $0xfc] ss:$40 sps:$4 sm:$0xff]  }
 0x2bf   : > { %v2170_v62 = vmax.f32 %v10212_v58, 0.0  ;;  %2951 = vmatprep.subr.bf16.mxu0 %v11638_v51  ;;  %v11576_v58 = vld [vmem:[%s15703_s2 + $0x738] ss:$40 sps:$4 sm:$0xff]   ;;  %v12216_v48 = vld [vmem:[%s12706_s25 + $0x6c] ss:$24 sps:$4 sm:$0xff]  }
 0x2c0   : > { %v9851_v63 = vpack.c.bf16 %v2169_v60, %v2167_v59  ;;  %v11647_v59 = vld [vmem:[%s15703_s2 + $0x14c] ss:$40 sps:$4 sm:$0xff]   ;;  %v11612_v49 = vld [vmem:[%s15703_s2 + $0xaf8] ss:$40 sps:$4 sm:$0xff]   ;;  %v11615_v51 = vld [vmem:[%s15703_s2 + $0xb48] ss:$40 sps:$4 sm:$0xff]  }
 0x2c1   : > { %v9849_v0 = vpack.c.bf16 %v2170_v62, %v2168_v61  ;;  %v2088_v1 = vpop.f32.mrb[64].mxu0  ;;  %v11581_v60 = vld [vmem:[%s15703_s2 + $0x78c] ss:$40 sps:$4 sm:$0xff]   ;;  %v11645_v61 = vld [vmem:[%s15703_s2 + $0x148] ss:$40 sps:$4 sm:$0xff]  }
 0x2c2   : > { %v10213_v2 = vadd.f32 %v2088_v1, %v13077_v18  ;;  %v2090_v3 = vpop.f32.mrb[65].mxu0  ;;  %2952 = vmatpush1.bf16.msra.mxu0 %v11636_v53  ;;  %v11579_v62 = vld [vmem:[%s15703_s2 + $0x788] ss:$40 sps:$4 sm:$0xff]   ;;  %v11650_v1 = vld [vmem:[%s15703_s2 + $0x19c] ss:$40 sps:$4 sm:$0xff]  }
 0x2c3   : > { %v10214_v4 = vadd.f32 %v2090_v3, %v13080_v19  ;;  %v2092_v5 = vpop.f32.mrb[66].mxu0  ;;  %9850 = vmatprep.subr.bf16.mxu1 %v9849_v0  ;;  %2953 = vmatprep.subr.bf16.mxu0 %v11641_v57  ;;  %v11648_v0 = vld [vmem:[%s15703_s2 + $0x198] ss:$40 sps:$4 sm:$0xff]   ;;  %v11653_v3 = vld [vmem:[%s15703_s2 + $0x1ec] ss:$40 sps:$4 sm:$0xff]  }
 0x2c4   : > { %v10215_v6 = vadd.f32 %v2092_v5, %v13077_v18  ;;  %v2094_v7 = vpop.f32.mrb[67].mxu0  ;;  %9852 = vmatpush1.bf16.msra.mxu1 %v9851_v63  ;;  %v2171_v10 = vmax.f32 %v10213_v2, 0.0  ;;  %v11584_v63 = vld [vmem:[%s15703_s2 + $0x7dc] ss:$40 sps:$4 sm:$0xff]   ;;  %v11582_v2 = vld [vmem:[%s15703_s2 + $0x7d8] ss:$40 sps:$4 sm:$0xff]  }
 0x2c5   : > { %v10216_v9 = vadd.f32 %v2094_v7, %v13080_v19  ;;  %v2172_v12 = vmax.f32 %v10214_v4, 0.0  ;;  %v11587_v4 = vld [vmem:[%s15703_s2 + $0x82c] ss:$40 sps:$4 sm:$0xff]   ;;  %v11651_v5 = vld [vmem:[%s15703_s2 + $0x1e8] ss:$40 sps:$4 sm:$0xff]  }
 0x2c6   : > { %v2173_v11 = vmax.f32 %v10215_v6, 0.0  ;;  %2954 = vmatpush1.bf16.msra.mxu0 %v11639_v56  ;;  %v11585_v6 = vld [vmem:[%s15703_s2 + $0x828] ss:$40 sps:$4 sm:$0xff]   ;;  %v11590_v7 = vld [vmem:[%s15703_s2 + $0x87c] ss:$40 sps:$4 sm:$0xff]  }
 0x2c7   : > { %v2174_v13 = vmax.f32 %v10216_v9, 0.0  ;;  %2248 = vmatmul.mubr.f32.vlgmr.msra.gmra.mrb[0].mxu1 %v337_v8  ;;  %2955 = vmatprep.subr.bf16.mxu0 %v11647_v59  ;;  %v11657_v8 = vld [vmem:[%s15703_s2 + $0x238] ss:$40 sps:$4 sm:$0xff]   ;;  %v11659_v9 = vld [vmem:[%s15703_s2 + $0x23c] ss:$40 sps:$4 sm:$0xff]  }
 0x2c8   : > { %v9855_v14 = vpack.c.bf16 %v2173_v11, %v2171_v10  ;;  %2318 = vmatprep.mubr.f32.mxu1 %v15707_v16  ;;  %v11588_v10 = vld [vmem:[%s15703_s2 + $0x878] ss:$40 sps:$4 sm:$0xff]   ;;  %v11662_v11 = vld [vmem:[%s15703_s2 + $0x28c] ss:$40 sps:$4 sm:$0xff]   ;;  %v11621_v59 = vld [vmem:[%s15703_s2 + $0xbe8] ss:$40 sps:$4 sm:$0xff]  }
 0x2c9   : > { %v9853_v20 = vpack.c.bf16 %v2174_v13, %v2172_v12  ;;  %v2098_v21 = vpop.f32.mrb[68].mxu0  ;;  %v11593_v12 = vld [vmem:[%s15703_s2 + $0x8cc] ss:$40 sps:$4 sm:$0xff]   ;;  %v11660_v13 = vld [vmem:[%s15703_s2 + $0x288] ss:$40 sps:$4 sm:$0xff]  }
 0x2ca   : > { %v10217_v22 = vadd.f32 %v2098_v21, %v13077_v18  ;;  %v2100_v23 = vpop.f32.mrb[69].mxu0  ;;  %2956 = vmatpush1.bf16.msra.mxu0 %v11645_v61  ;;  %v11666_v21 = vld [vmem:[%s15703_s2 + $0x2d8] ss:$40 sps:$4 sm:$0xff]   ;;  %v12220_v56 = vld [vmem:[%s12706_s25 + $0x9c] ss:$24 sps:$4 sm:$0xff]  }
 0x2cb   : > { %v10218_v24 = vadd.f32 %v2100_v23, %v13080_v19  ;;  %v2102_v25 = vpop.f32.mrb[70].mxu0  ;;  %9854 = vmatprep.subr.bf16.mxu1 %v9853_v20  ;;  %2957 = vmatprep.subr.bf16.mxu0 %v11650_v1  ;;  %v11596_v20 = vld [vmem:[%s15703_s2 + $0x91c] ss:$40 sps:$4 sm:$0xff]   ;;  %v11594_v23 = vld [vmem:[%s15703_s2 + $0x918] ss:$40 sps:$4 sm:$0xff]  }
 0x2cc   : > { %v10219_v26 = vadd.f32 %v2102_v25, %v13077_v18  ;;  %v2104_v27 = vpop.f32.mrb[71].mxu0  ;;  %9856 = vmatpush1.bf16.msra.mxu1 %v9855_v14  ;;  %v2175_v29 = vmax.f32 %v10217_v22, 0.0  ;;  %v339_v18 = vld [vmem:[%s15702_s1 + $0x10] sm:$0xff]  ;;  %v11668_v22 = vld [vmem:[%s15703_s2 + $0x2dc] ss:$40 sps:$4 sm:$0xff]  }
 0x2cd   : > { %v10220_v28 = vadd.f32 %v2104_v27, %v13080_v19  ;;  %v2176_v31 = vmax.f32 %v10218_v24, 0.0  ;;  %v11555_v19 = vld [vmem:[%s15703_s2 + $0x508] ss:$40 sps:$4 sm:$0xff]   ;;  %v11671_v24 = vld [vmem:[%s15703_s2 + $0x32c] ss:$40 sps:$4 sm:$0xff]  }
 0x2ce   : > { %v2177_v30 = vmax.f32 %v10219_v26, 0.0  ;;  %2958 = vmatpush1.bf16.msra.mxu0 %v11648_v0  ;;  %v11591_v14 = vld [vmem:[%s15703_s2 + $0x8c8] ss:$40 sps:$4 sm:$0xff]   ;;  %v11599_v25 = vld [vmem:[%s15703_s2 + $0x96c] ss:$40 sps:$4 sm:$0xff]  }
 0x2cf   : > { %v2178_v32 = vmax.f32 %v10220_v28, 0.0  ;;  %2959 = vmatprep.subr.bf16.mxu0 %v11653_v3  ;;  %v11669_v26 = vld [vmem:[%s15703_s2 + $0x328] ss:$40 sps:$4 sm:$0xff]   ;;  %v11602_v28 = vld [vmem:[%s15703_s2 + $0x9bc] ss:$40 sps:$4 sm:$0xff]  }
 0x2d0   : > { %v9859_v33 = vpack.c.bf16 %v2177_v30, %v2175_v29  ;;  %v11597_v27 = vld [vmem:[%s15703_s2 + $0x968] ss:$40 sps:$4 sm:$0xff]   ;;  %v11675_v29 = vld [vmem:[%s15703_s2 + $0x378] ss:$40 sps:$4 sm:$0xff]   ;;  %v12224_v0 = vld [vmem:[%s12706_s25 + $0xcc] ss:$24 sps:$4 sm:$0xff]  }
 0x2d1   : > { %v9857_v34 = vpack.c.bf16 %v2178_v32, %v2176_v31  ;;  %v11600_v30 = vld [vmem:[%s15703_s2 + $0x9b8] ss:$40 sps:$4 sm:$0xff]   ;;  %v11677_v31 = vld [vmem:[%s15703_s2 + $0x37c] ss:$40 sps:$4 sm:$0xff]   ;;  %v11680_v32 = vld [vmem:[%s15703_s2 + $0x3cc] ss:$40 sps:$4 sm:$0xff]  }
 0x2d2   : > { %2960 = vmatpush1.bf16.msra.mxu0 %v11651_v5  ;;  %v13396_v53 = vld [vmem:[%s12706_s25] ss:$24 sps:$4 sm:$0xff]   ;;  %v13418_v61 = vld [vmem:[%s12706_s25 + $0x30] ss:$24 sps:$4 sm:$0xff]  }
 0x2d3   : > { %9858 = vmatprep.subr.bf16.mxu1 %v9857_v34  ;;  %2961 = vmatprep.subr.bf16.mxu0 %v11659_v9  ;;  %v11678_v34 = vld [vmem:[%s15703_s2 + $0x3c8] ss:$40 sps:$4 sm:$0xff]   ;;  %v11618_v57 = vld [vmem:[%s15703_s2 + $0xb98] ss:$40 sps:$4 sm:$0xff]  }
 0x2d4   : > { %9860 = vmatpush1.bf16.msra.mxu1 %v9859_v33  ;;  %v11605_v33 = vld [vmem:[%s15703_s2 + $0xa0c] ss:$40 sps:$4 sm:$0xff]   ;;  %v11624_v1 = vld [vmem:[%s15703_s2 + $0xc38] ss:$40 sps:$4 sm:$0xff]   ;;  %v11633_v3 = vld [vmem:[%s15703_s2 + $0xc88] ss:$40 sps:$4 sm:$0xff]  }
 0x2d5   : > { %3160 = vmatprep.subr.bf16.mxu1 %v11557_v35  ;;  %v11603_v35 = vld [vmem:[%s15703_s2 + $0xa08] ss:$40 sps:$4 sm:$0xff]   ;;  %v13440_v5 = vld [vmem:[%s12706_s25 + $0x60] ss:$24 sps:$4 sm:$0xff]  }
 0x2d6   : > { %2962 = vmatpush1.bf16.msra.mxu0 %v11657_v8  ;;  %v12228_v8 = vld [vmem:[%s12706_s25 + $0xfc] ss:$24 sps:$4 sm:$0xff]   ;;  %v11642_v9 = vld [vmem:[%s15703_s2 + $0xcd8] ss:$40 sps:$4 sm:$0xff]  }
 0x2d7   : > { %9208 = vmatmul.mubr.msk.f32.vlgmr.msra.gmra.mrb[0].mxu1 %vm2179_vm0, %v339_v18  ;;  %2963 = vmatprep.subr.bf16.mxu0 %v11662_v11  ;;  %v11608_v18 = vld [vmem:[%s15703_s2 + $0xa5c] ss:$40 sps:$4 sm:$0xff]   ;;  %v11654_v11 = vld [vmem:[%s15703_s2 + $0xd28] ss:$40 sps:$4 sm:$0xff]  }
 0x2d8   : > { %3161 = vmatpush1.bf16.msra.mxu1 %v11555_v19  ;;  %3192 = vmatprep.mubr.bf16.mxu1 %v12212_v38  ;;  %v12213_v19 = vld [vmem:[%s12706_s25 + $0x8] ss:$24 sps:$4 sm:$0xff]  }
 0x2d9   : > { %3162 = vmatprep.subr.bf16.mxu1 %v11560_v36  ;;  %v11684_v36 = vld [vmem:[%s15703_s2 + $0x418] ss:$40 sps:$4 sm:$0xff]  }
 0x2da   : > { %2964 = vmatpush1.bf16.msra.mxu0 %v11660_v13  ;;  %v11606_v38 = vld [vmem:[%s15703_s2 + $0xa58] ss:$40 sps:$4 sm:$0xff]   ;;  %v13462_v13 = vld [vmem:[%s12706_s25 + $0x90] ss:$24 sps:$4 sm:$0xff]  }
 0x2db   : > { %2965 = vmatprep.subr.bf16.mxu0 %v11668_v22  ;;  %v11663_v22 = vld [vmem:[%s15703_s2 + $0xd78] ss:$40 sps:$4 sm:$0xff]  }
 0x2dc   : > { %3163 = vmatpush1.bf16.msra.mxu1 %v11558_v37  ;;  %v12214_v37 = vld [vmem:[%s12706_s25 + $0x3c] ss:$24 sps:$4 sm:$0xff]  }
 0x2dd   : > { %3164 = vmatprep.subr.bf16.mxu1 %v11563_v39  ;;  %v11686_v39 = vld [vmem:[%s15703_s2 + $0x41c] ss:$40 sps:$4 sm:$0xff]  }
 0x2de   : > { %2966 = vmatpush1.bf16.msra.mxu0 %v11666_v21  ;;  %v12232_v21 = vld [vmem:[%s12706_s25 + $0x12c] ss:$24 sps:$4 sm:$0xff]  }
 0x2df   : > { %2967 = vmatprep.subr.bf16.mxu0 %v11671_v24  ;;  %v11672_v24 = vld [vmem:[%s15703_s2 + $0xdc8] ss:$40 sps:$4 sm:$0xff]  }
 0x2e0   : > { %3165 = vmatpush1.bf16.msra.mxu1 %v11561_v40  ;;  %v11689_v40 = vld [vmem:[%s15703_s2 + $0x46c] ss:$40 sps:$4 sm:$0xff]  }
 0x2e1   : > { %3166 = vmatprep.subr.bf16.mxu1 %v11566_v41  ;;  %v11611_v41 = vld [vmem:[%s15703_s2 + $0xaac] ss:$40 sps:$4 sm:$0xff]  }
 0x2e2   : > { %2968 = vmatpush1.bf16.msra.mxu0 %v11669_v26  ;;  %v13484_v26 = vld [vmem:[%s12706_s25 + $0xc0] ss:$24 sps:$4 sm:$0xff]  }
 0x2e3   : > { %2969 = vmatprep.subr.bf16.mxu0 %v11677_v31  ;;  %v11692_v31 = vld [vmem:[%s15703_s2 + $0xe6c] ss:$40 sps:$4 sm:$0xff]  }
 0x2e4   : > { %3167 = vmatpush1.bf16.msra.mxu1 %v11564_v43  ;;  %v11609_v43 = vld [vmem:[%s15703_s2 + $0xaa8] ss:$40 sps:$4 sm:$0xff]  }
 0x2e5   : > { %3168 = vmatprep.subr.bf16.mxu1 %v11569_v45  ;;  %v12215_v45 = vld [vmem:[%s12706_s25 + $0x38] ss:$24 sps:$4 sm:$0xff]  }
 0x2e6   : > { %2970 = vmatpush1.bf16.msra.mxu0 %v11675_v29  ;;  %v12236_v29 = vld [vmem:[%s12706_s25 + $0x15c] ss:$24 sps:$4 sm:$0xff]  }
 0x2e7   : > { %2971 = vmatprep.subr.bf16.mxu0 %v11680_v32  ;;  %v11690_v32 = vld [vmem:[%s15703_s2 + $0xe68] ss:$40 sps:$4 sm:$0xff]  }
 0x2e8   : > { %3169 = vmatpush1.bf16.msra.mxu1 %v11567_v46  ;;  %v11693_v46 = vld [vmem:[%s15703_s2 + $0x4b8] ss:$40 sps:$4 sm:$0xff]  }
 0x2e9   : > { %3170 = vmatprep.subr.bf16.mxu1 %v11572_v47  ;;  %v11695_v47 = vld [vmem:[%s15703_s2 + $0x4bc] ss:$40 sps:$4 sm:$0xff]  }
 0x2ea   : > { %2972 = vmatpush1.bf16.msra.mxu0 %v11678_v34  ;;  %v13506_v34 = vld [vmem:[%s12706_s25 + $0xf0] ss:$24 sps:$4 sm:$0xff]  }
 0x2eb   : > { %2973 = vmatprep.subr.bf16.mxu0 %v11686_v39  ;;  %v12242_v39 = vld [vmem:[%s12706_s25 + $0x188] ss:$24 sps:$4 sm:$0xff]  }
 0x2ec   : > { %3171 = vmatpush1.bf16.msra.mxu1 %v11570_v50  ;;  %v11617_v50 = vld [vmem:[%s15703_s2 + $0xb4c] ss:$40 sps:$4 sm:$0xff]  }
 0x2ed   : > { %3172 = vmatprep.subr.bf16.mxu1 %v11575_v52  ;;  %v11620_v52 = vld [vmem:[%s15703_s2 + $0xb9c] ss:$40 sps:$4 sm:$0xff]  }
 0x2ee   : > { %2974 = vmatpush1.bf16.msra.mxu0 %v11684_v36  ;;  %v11696_v36 = vld [vmem:[%s15703_s2 + $0xeb8] ss:$40 sps:$4 sm:$0xff]  }
 0x2ef   : > { %2975 = vmatprep.subr.bf16.mxu0 %v11689_v40  ;;  %v13527_v40 = vld [vmem:[%s12706_s25 + $0x154] ss:$24 sps:$4 sm:$0xff]  }
 0x2f0   : > { %3173 = vmatpush1.bf16.msra.mxu1 %v11573_v54  ;;  %v12218_v54 = vld [vmem:[%s12706_s25 + $0x68] ss:$24 sps:$4 sm:$0xff]  }
 0x2f1   : > { %3174 = vmatprep.subr.bf16.mxu1 %v11578_v55  ;;  %v13401_v55 = vld [vmem:[%s12706_s25 + $0x34] ss:$24 sps:$4 sm:$0xff]  }
 0x2f2   : > { %2976 = vmatpush1.bf16.msra.mxu0 %v11687_v42  ;;  %v13532_v42 = vld [vmem:[%s12706_s25 + $0x150] ss:$24 sps:$4 sm:$0xff]  }
 0x2f3   : > { %2977 = vmatprep.subr.bf16.mxu0 %v11695_v47  ;;  %v12250_v47 = vld [vmem:[%s12706_s25 + $0x1e8] ss:$24 sps:$4 sm:$0xff]  }
 0x2f4   : > { %3175 = vmatpush1.bf16.msra.mxu1 %v11576_v58  ;;  %v11623_v58 = vld [vmem:[%s15703_s2 + $0xbec] ss:$40 sps:$4 sm:$0xff]  }
 0x2f5   : > { %3176 = vmatprep.subr.bf16.mxu1 %v11581_v60  ;;  %v11626_v60 = vld [vmem:[%s15703_s2 + $0xc3c] ss:$40 sps:$4 sm:$0xff]  }
 0x2f6   : > { %2978 = vmatpush1.bf16.msra.mxu0 %v11693_v46  ;;  %v13542_v46 = vld [vmem:[%s12706_s25 + $0x180] ss:$24 sps:$4 sm:$0xff]  }
 0x2f8   : > { %3177 = vmatpush1.bf16.msra.mxu1 %v11579_v62  ;;  %v12222_v62 = vld [vmem:[%s12706_s25 + $0x98] ss:$24 sps:$4 sm:$0xff]  }
 0x2f9   : > { %3178 = vmatprep.subr.bf16.mxu1 %v11584_v63  ;;  %2980 = vmatmul.mubr.bf16.vlgmr.msra.gmra.mrb[72].mxu0 %v13396_v53  ;;  %v13423_v63 = vld [vmem:[%s12706_s25 + $0x64] ss:$24 sps:$4 sm:$0xff]  }
 0x2fa   : > { %2989 = vmatprep.mubr.bf16.mxu0 %v13401_v55 }
 0x2fc   : > { %3179 = vmatpush1.bf16.msra.mxu1 %v11582_v2  ;;  %v11635_v2 = vld [vmem:[%s15703_s2 + $0xc8c] ss:$40 sps:$4 sm:$0xff]  }
 0x2fd   : > { %3180 = vmatprep.subr.bf16.mxu1 %v11587_v4  ;;  %v11644_v4 = vld [vmem:[%s15703_s2 + $0xcdc] ss:$40 sps:$4 sm:$0xff]  }
 0x300   : > { %3181 = vmatpush1.bf16.msra.mxu1 %v11585_v6  ;;  %v12226_v6 = vld [vmem:[%s12706_s25 + $0xc8] ss:$24 sps:$4 sm:$0xff]  }
 0x301   : > { %3182 = vmatprep.subr.bf16.mxu1 %v11590_v7  ;;  %2990 = vmatmul.mubr.bf16.gmra.mrb[76].mxu0 %v13418_v61  ;;  %v13445_v7 = vld [vmem:[%s12706_s25 + $0x94] ss:$24 sps:$4 sm:$0xff]  }
 0x302   : > { %2999 = vmatprep.mubr.bf16.mxu0 %v13423_v63 }
 0x304   : > { %3183 = vmatpush1.bf16.msra.mxu1 %v11588_v10  ;;  %v11656_v10 = vld [vmem:[%s15703_s2 + $0xd2c] ss:$40 sps:$4 sm:$0xff]  }
 0x305   : > { %3184 = vmatprep.subr.bf16.mxu1 %v11593_v12  ;;  %v11665_v12 = vld [vmem:[%s15703_s2 + $0xd7c] ss:$40 sps:$4 sm:$0xff]  }
 0x308   : > { %3185 = vmatpush1.bf16.msra.mxu1 %v11591_v14  ;;  %v12230_v14 = vld [vmem:[%s12706_s25 + $0xf8] ss:$24 sps:$4 sm:$0xff]  }
 0x309   : > { %3186 = vmatprep.subr.bf16.mxu1 %v11596_v20  ;;  %3000 = vmatmul.mubr.bf16.gmra.mrb[80].mxu0 %v13440_v5  ;;  %v13467_v20 = vld [vmem:[%s12706_s25 + $0xc4] ss:$24 sps:$4 sm:$0xff]  }
 0x30a   : > { %3009 = vmatprep.mubr.bf16.mxu0 %v13445_v7 }
 0x30c   : > { %3187 = vmatpush1.bf16.msra.mxu1 %v11594_v23  ;;  %v11674_v23 = vld [vmem:[%s15703_s2 + $0xdcc] ss:$40 sps:$4 sm:$0xff]  }
 0x30d   : > { %3188 = vmatprep.subr.bf16.mxu1 %v11599_v25  ;;  %v11683_v25 = vld [vmem:[%s15703_s2 + $0xe1c] ss:$40 sps:$4 sm:$0xff]  }
 0x310   : > { %3189 = vmatpush1.bf16.msra.mxu1 %v11597_v27  ;;  %v12234_v27 = vld [vmem:[%s12706_s25 + $0x128] ss:$24 sps:$4 sm:$0xff]  }
 0x311   : > { %3190 = vmatprep.subr.bf16.mxu1 %v11602_v28  ;;  %3010 = vmatmul.mubr.bf16.gmra.mrb[84].mxu0 %v13462_v13  ;;  %v13489_v28 = vld [vmem:[%s12706_s25 + $0xf4] ss:$24 sps:$4 sm:$0xff]  }
 0x312   : > { %3019 = vmatprep.mubr.bf16.mxu0 %v13467_v20 }
 0x314   : > { %3191 = vmatpush1.bf16.msra.mxu1 %v11600_v30  ;;  %v11681_v30 = vld [vmem:[%s15703_s2 + $0xe18] ss:$40 sps:$4 sm:$0xff]  }
 0x315   : > { %3373 = vmatprep.subr.bf16.mxu1 %v11605_v33  ;;  %v11698_v33 = vld [vmem:[%s15703_s2 + $0xebc] ss:$40 sps:$4 sm:$0xff]  }
 0x317   : > { %3193 = vmatmul.mubr.bf16.vlgmr.msra.gmra.mrb[4].mxu1 %v12213_v19  ;;  %v12240_v19 = vld [vmem:[%s12706_s25 + $0x18c] ss:$24 sps:$4 sm:$0xff]  }
 0x318   : > { %3202 = vmatprep.mubr.bf16.mxu1 %v12214_v37  ;;  %3374 = vmatpush1.bf16.msra.mxu1 %v11603_v35  ;;  %v12238_v35 = vld [vmem:[%s12706_s25 + $0x158] ss:$24 sps:$4 sm:$0xff]   ;;  %v11701_v37 = vld [vmem:[%s15703_s2 + $0x14] ss:$40 sps:$4 sm:$0xff]  }
 0x319   : > { %3375 = vmatprep.subr.bf16.mxu1 %v11608_v18  ;;  %3020 = vmatmul.mubr.bf16.gmra.mrb[88].mxu0 %v13484_v26  ;;  %v13511_v18 = vld [vmem:[%s12706_s25 + $0x124] ss:$24 sps:$4 sm:$0xff]  }
 0x31a   : > { %3029 = vmatprep.mubr.bf16.mxu0 %v13489_v28 }
 0x31c   : > { %3376 = vmatpush1.bf16.msra.mxu1 %v11606_v38  ;;  %v13522_v38 = vld [vmem:[%s12706_s25 + $0x120] ss:$24 sps:$4 sm:$0xff]  }
 0x31d   : > { %3377 = vmatprep.subr.bf16.mxu1 %v11611_v41  ;;  %v12244_v41 = vld [vmem:[%s12706_s25 + $0x1bc] ss:$24 sps:$4 sm:$0xff]  }
 0x31f   : > { %3203 = vmatmul.mubr.bf16.gmra.mrb[8].mxu1 %v12215_v45  ;;  %v12248_v45 = vld [vmem:[%s12706_s25 + $0x1ec] ss:$24 sps:$4 sm:$0xff]  }
 0x320   : > { %3212 = vmatprep.mubr.bf16.mxu1 %v12216_v48  ;;  %3378 = vmatpush1.bf16.msra.mxu1 %v11609_v43  ;;  %v12246_v43 = vld [vmem:[%s12706_s25 + $0x1b8] ss:$24 sps:$4 sm:$0xff]   ;;  %v13547_v48 = vld [vmem:[%s12706_s25 + $0x1b4] ss:$24 sps:$4 sm:$0xff]  }
 0x321   : > { %3379 = vmatprep.subr.bf16.mxu1 %v11614_v44  ;;  %3030 = vmatmul.mubr.bf16.gmra.mrb[92].mxu0 %v13506_v34  ;;  %v13537_v44 = vld [vmem:[%s12706_s25 + $0x184] ss:$24 sps:$4 sm:$0xff]  }
 0x322   : > { %3039 = vmatprep.mubr.bf16.mxu0 %v13511_v18 }
 0x324   : > { %3380 = vmatpush1.bf16.msra.mxu1 %v11612_v49  ;;  %v12252_v49 = vld [vmem:[%s12706_s25 + $0x21c] ss:$24 sps:$4 sm:$0xff]  }
 0x325   : > { %3381 = vmatprep.subr.bf16.mxu1 %v11617_v50  ;;  %v13552_v50 = vld [vmem:[%s12706_s25 + $0x1b0] ss:$24 sps:$4 sm:$0xff]  }
 0x327   : > { %3213 = vmatmul.mubr.bf16.gmra.mrb[12].mxu1 %v12218_v54  ;;  %v12256_v54 = vld [vmem:[%s12706_s25 + $0x24c] ss:$24 sps:$4 sm:$0xff]  }
 0x328   : > { %3222 = vmatprep.mubr.bf16.mxu1 %v12220_v56  ;;  %3382 = vmatpush1.bf16.msra.mxu1 %v11615_v51  ;;  %v12254_v51 = vld [vmem:[%s12706_s25 + $0x218] ss:$24 sps:$4 sm:$0xff]  }
 0x329   : > { %3383 = vmatprep.subr.bf16.mxu1 %v11620_v52  ;;  %3040 = vmatmul.mubr.bf16.gmra.mrb[96].mxu0 %v13522_v38  ;;  %v13557_v52 = vld [vmem:[%s12706_s25 + $0x1e4] ss:$24 sps:$4 sm:$0xff]   ;;  %v13562_v56 = vld [vmem:[%s12706_s25 + $0x1e0] ss:$24 sps:$4 sm:$0xff]  }
 0x32a   : > { %3049 = vmatprep.mubr.bf16.mxu0 %v13527_v40 }
 0x32c   : > { %3384 = vmatpush1.bf16.msra.mxu1 %v11618_v57  ;;  %v12258_v57 = vld [vmem:[%s12706_s25 + $0x248] ss:$24 sps:$4 sm:$0xff]  }
 0x32d   : > { %3385 = vmatprep.subr.bf16.mxu1 %v11623_v58  ;;  %v13567_v58 = vld [vmem:[%s12706_s25 + $0x214] ss:$24 sps:$4 sm:$0xff]  }
 0x32f   : > { %3223 = vmatmul.mubr.bf16.gmra.mrb[16].mxu1 %v12222_v62  ;;  %v12262_v62 = vld [vmem:[%s12706_s25 + $0x278] ss:$24 sps:$4 sm:$0xff]  }
 0x330   : > { %3232 = vmatprep.mubr.bf16.mxu1 %v12224_v0  ;;  %3386 = vmatpush1.bf16.msra.mxu1 %v11621_v59  ;;  %v12260_v59 = vld [vmem:[%s12706_s25 + $0x27c] ss:$24 sps:$4 sm:$0xff]  }
 0x331   : > { %3387 = vmatprep.subr.bf16.mxu1 %v11626_v60  ;;  %3050 = vmatmul.mubr.bf16.gmra.mrb[100].mxu0 %v13532_v42  ;;  %v13572_v60 = vld [vmem:[%s12706_s25 + $0x210] ss:$24 sps:$4 sm:$0xff]   ;;  %v13577_v0 = vld [vmem:[%s12706_s25 + $0x244] ss:$24 sps:$4 sm:$0xff]  }
 0x332   : > { %3059 = vmatprep.mubr.bf16.mxu0 %v13537_v44 }
 0x334   : > { %3388 = vmatpush1.bf16.msra.mxu1 %v11624_v1  ;;  %v12264_v1 = vld [vmem:[%s12706_s25 + $0x2ac] ss:$24 sps:$4 sm:$0xff]  }
 0x335   : > { %3389 = vmatprep.subr.bf16.mxu1 %v11635_v2  ;;  %v13582_v2 = vld [vmem:[%s12706_s25 + $0x240] ss:$24 sps:$4 sm:$0xff]  }
 0x337   : > { %3233 = vmatmul.mubr.bf16.gmra.mrb[20].mxu1 %v12226_v6  ;;  %v12268_v6 = vld [vmem:[%s12706_s25 + $0x2dc] ss:$24 sps:$4 sm:$0xff]  }
 0x338   : > { %3242 = vmatprep.mubr.bf16.mxu1 %v12228_v8  ;;  %3390 = vmatpush1.bf16.msra.mxu1 %v11633_v3  ;;  %v12266_v3 = vld [vmem:[%s12706_s25 + $0x2a8] ss:$24 sps:$4 sm:$0xff]  }
 0x339   : > { %3391 = vmatprep.subr.bf16.mxu1 %v11644_v4  ;;  %3060 = vmatmul.mubr.bf16.gmra.mrb[104].mxu0 %v13542_v46  ;;  %v13587_v4 = vld [vmem:[%s12706_s25 + $0x274] ss:$24 sps:$4 sm:$0xff]   ;;  %v13592_v8 = vld [vmem:[%s12706_s25 + $0x270] ss:$24 sps:$4 sm:$0xff]  }
 0x33a   : > { %3069 = vmatprep.mubr.bf16.mxu0 %v13547_v48 }
 0x33c   : > { %3392 = vmatpush1.bf16.msra.mxu1 %v11642_v9  ;;  %v12270_v9 = vld [vmem:[%s12706_s25 + $0x2d8] ss:$24 sps:$4 sm:$0xff]  }
 0x33d   : > { %3393 = vmatprep.subr.bf16.mxu1 %v11656_v10  ;;  %v13597_v10 = vld [vmem:[%s12706_s25 + $0x2a4] ss:$24 sps:$4 sm:$0xff]  }
 0x33f   : > { %3243 = vmatmul.mubr.bf16.gmra.mrb[24].mxu1 %v12230_v14  ;;  %v12274_v14 = vld [vmem:[%s12706_s25 + $0x308] ss:$24 sps:$4 sm:$0xff]  }
 0x340   : > { %3252 = vmatprep.mubr.bf16.mxu1 %v12232_v21  ;;  %3394 = vmatpush1.bf16.msra.mxu1 %v11654_v11  ;;  %v12272_v11 = vld [vmem:[%s12706_s25 + $0x30c] ss:$24 sps:$4 sm:$0xff]  }
 0x341   : > { %3395 = vmatprep.subr.bf16.mxu1 %v11665_v12  ;;  %3070 = vmatmul.mubr.bf16.gmra.mrb[108].mxu0 %v13552_v50  ;;  %v13602_v12 = vld [vmem:[%s12706_s25 + $0x2a0] ss:$24 sps:$4 sm:$0xff]   ;;  %v13607_v21 = vld [vmem:[%s12706_s25 + $0x2d4] ss:$24 sps:$4 sm:$0xff]  }
 0x342   : > { %3079 = vmatprep.mubr.bf16.mxu0 %v13557_v52  ;;  %15722 = vst [vmem:[#allocation4_spill] sm:$0xff] %v13602_v12  ;;  %15723 = vst [vmem:[#allocation5_spill] sm:$0xff] %v13607_v21 }
 0x344   : > { %3396 = vmatpush1.bf16.msra.mxu1 %v11663_v22  ;;  %v12276_v22 = vld [vmem:[%s12706_s25 + $0x33c] ss:$24 sps:$4 sm:$0xff]  }
 0x345   : > { %3397 = vmatprep.subr.bf16.mxu1 %v11674_v23  ;;  %v13612_v23 = vld [vmem:[%s12706_s25 + $0x2d0] ss:$24 sps:$4 sm:$0xff]  }
 0x346   : > { %15724 = vst [vmem:[#allocation6_spill] sm:$0xff] %v13612_v23 }
 0x347   : > { %3253 = vmatmul.mubr.bf16.gmra.mrb[28].mxu1 %v12234_v27  ;;  %v12280_v27 = vld [vmem:[%s12706_s25 + $0x14] ss:$24 sps:$4 sm:$0xff]  }
 0x348   : > { %3262 = vmatprep.mubr.bf16.mxu1 %v12236_v29  ;;  %3398 = vmatpush1.bf16.msra.mxu1 %v11672_v24  ;;  %v12278_v24 = vld [vmem:[%s12706_s25 + $0x338] ss:$24 sps:$4 sm:$0xff]  }
 0x349   : > { %3399 = vmatprep.subr.bf16.mxu1 %v11683_v25  ;;  %3080 = vmatmul.mubr.bf16.gmra.mrb[112].mxu0 %v13562_v56  ;;  %v13617_v25 = vld [vmem:[%s12706_s25 + $0x304] ss:$24 sps:$4 sm:$0xff]   ;;  %v11699_v29 = vld [vmem:[%s15703_s2 + $0x10] ss:$40 sps:$4 sm:$0xff]  }
 0x34a   : > { %3089 = vmatprep.mubr.bf16.mxu0 %v13567_v58  ;;  %15725 = vst [vmem:[#allocation7_spill] sm:$0xff] %v13617_v25 }
 0x34c   : > { %3400 = vmatpush1.bf16.msra.mxu1 %v11681_v30  ;;  %v11704_v30 = vld [vmem:[%s15703_s2 + $0x64] ss:$40 sps:$4 sm:$0xff]  }
 0x34d   : > { %3401 = vmatprep.subr.bf16.mxu1 %v11692_v31  ;;  %v13628_v31 = vld [vmem:[%s12706_s25 + $0x300] ss:$24 sps:$4 sm:$0xff]  }
 0x34e   : > { %15726 = vst [vmem:[#allocation8_spill] sm:$0xff] %v13628_v31 }
 0x34f   : > { %3263 = vmatmul.mubr.bf16.gmra.mrb[32].mxu1 %v12238_v35  ;;  %v12284_v35 = vld [vmem:[%s12706_s25 + $0x44] ss:$24 sps:$4 sm:$0xff]  }
 0x350   : > { %3272 = vmatprep.mubr.bf16.mxu1 %v12240_v19  ;;  %3402 = vmatpush1.bf16.msra.mxu1 %v11690_v32  ;;  %v12282_v32 = vld [vmem:[%s12706_s25 + $0x10] ss:$24 sps:$4 sm:$0xff]  }
 0x351   : > { %3403 = vmatprep.subr.bf16.mxu1 %v11698_v33  ;;  %3090 = vmatmul.mubr.bf16.gmra.mrb[116].mxu0 %v13572_v60  ;;  %v13633_v33 = vld [vmem:[%s12706_s25 + $0x334] ss:$24 sps:$4 sm:$0xff]   ;;  %v11702_v19 = vld [vmem:[%s15703_s2 + $0x60] ss:$40 sps:$4 sm:$0xff]  }
 0x352   : > { %3099 = vmatprep.mubr.bf16.mxu0 %v13577_v0  ;;  %15727 = vst [vmem:[#allocation9_spill] sm:$0xff] %v13633_v33 }
 0x354   : > { %3404 = vmatpush1.bf16.msra.mxu1 %v11696_v36  ;;  %v11707_v36 = vld [vmem:[%s15703_s2 + $0xb4] ss:$40 sps:$4 sm:$0xff]  }
 0x355   : > { %4694 = vmatprep.subr.bf16.mxu1 %v11701_v37 }
 0x357   : > { %3273 = vmatmul.mubr.bf16.gmra.mrb[36].mxu1 %v12242_v39 }
 0x358   : > { %3282 = vmatprep.mubr.bf16.mxu1 %v12244_v41  ;;  %v11705_v41 = vld [vmem:[%s15703_s2 + $0xb0] ss:$40 sps:$4 sm:$0xff]  }
 0x359   : > { %3100 = vmatmul.mubr.bf16.gmra.mrb[120].mxu0 %v13582_v2 }
 0x35a   : > { %3109 = vmatprep.mubr.bf16.mxu0 %v13587_v4 }
 0x35f   : > { %3283 = vmatmul.mubr.bf16.gmra.mrb[40].mxu1 %v12246_v43  ;;  %v11710_v43 = vld [vmem:[%s15703_s2 + $0x104] ss:$40 sps:$4 sm:$0xff]  }
 0x360   : > { %3292 = vmatprep.mubr.bf16.mxu1 %v12248_v45  ;;  %v13654_v45 = vld [vmem:[%s12706_s25 + $0x330] ss:$24 sps:$4 sm:$0xff]  }
 0x361   : > { %3110 = vmatmul.mubr.bf16.gmra.mrb[124].mxu0 %v13592_v8  ;;  %15730 = vst [vmem:[#allocation12_spill] sm:$0xff] %v13654_v45 }
 0x362   : > { %3119 = vmatprep.mubr.bf16.mxu0 %v13597_v10 }
 0x367   : > { %3293 = vmatmul.mubr.bf16.gmra.mrb[44].mxu1 %v12250_v47  ;;  %v12286_v47 = vld [vmem:[%s12706_s25 + $0x40] ss:$24 sps:$4 sm:$0xff]  }
 0x368   : > { %3302 = vmatprep.mubr.bf16.mxu1 %v12252_v49  ;;  %v12287_v49 = vld [vmem:[%s15702_s1 + $0x8] sm:$0xff] }
 0x369   : > { %3120 = vmatmul.mubr.bf16.gmra.mrb[128].mxu0 %v13602_v12 }
 0x36a   : > { %3129 = vmatprep.mubr.bf16.mxu0 %v13607_v21 }
 0x36f   : > { %3303 = vmatmul.mubr.bf16.gmra.mrb[48].mxu1 %v12254_v51  ;;  %v12288_v51 = vld [vmem:[%s12706_s25 + $0x74] ss:$24 sps:$4 sm:$0xff]  }
 0x370   : > { %3312 = vmatprep.mubr.bf16.mxu1 %v12256_v54  ;;  %v11708_v54 = vld [vmem:[%s15703_s2 + $0x100] ss:$40 sps:$4 sm:$0xff]  }
 0x371   : > { %3130 = vmatmul.mubr.bf16.gmra.mrb[132].mxu0 %v13612_v23  ;;  %v12320_v23 = vld [vmem:[%s12706_s25 + $0x4] ss:$24 sps:$4 sm:$0xff]  }
 0x372   : > { %3139 = vmatprep.mubr.bf16.mxu0 %v13617_v25 }
 0x377   : > { %3313 = vmatmul.mubr.bf16.gmra.mrb[52].mxu1 %v12258_v57  ;;  %v11713_v57 = vld [vmem:[%s15703_s2 + $0x154] ss:$40 sps:$4 sm:$0xff]  }
 0x378   : > { %3322 = vmatprep.mubr.bf16.mxu1 %v12260_v59  ;;  %v11711_v59 = vld [vmem:[%s15703_s2 + $0x150] ss:$40 sps:$4 sm:$0xff]  }
 0x379   : > { %3140 = vmatmul.mubr.bf16.gmra.mrb[136].mxu0 %v13628_v31 }
 0x37a   : > { %3149 = vmatprep.mubr.bf16.mxu0 %v13633_v33 }
 0x37f   : > { %3323 = vmatmul.mubr.bf16.gmra.mrb[56].mxu1 %v12262_v62  ;;  %v11716_v62 = vld [vmem:[%s15703_s2 + $0x1a4] ss:$40 sps:$4 sm:$0xff]  }
 0x380   : > { %3332 = vmatprep.mubr.bf16.mxu1 %v12264_v1  ;;  %v12289_v1 = vld [vmem:[%s12706_s25 + $0x70] ss:$24 sps:$4 sm:$0xff]  }
 0x381   : > { %3150 = vmatmul.mubr.bf16.gmra.mrb[140].mxu0 %v13654_v45  ;;  %v12318_v45 = vld [vmem:[%s12706_s25 + $0x344] ss:$24 sps:$4 sm:$0xff]  }
 0x382   : > { %3722 = vmatprep.mubr.f32.mxu0 %v12287_v49  ;;  %v12295_v49 = vld [vmem:[%s12706_s25 + $0x100] ss:$24 sps:$4 sm:$0xff]  }
 0x387   : > { %3333 = vmatmul.mubr.bf16.gmra.mrb[60].mxu1 %v12266_v3  ;;  %v12290_v3 = vld [vmem:[%s12706_s25 + $0xa4] ss:$24 sps:$4 sm:$0xff]  }
 0x388   : > { %3342 = vmatprep.mubr.bf16.mxu1 %v12268_v6  ;;  %v11714_v6 = vld [vmem:[%s15703_s2 + $0x1a0] ss:$40 sps:$4 sm:$0xff]  }
 0x38f   : > { %3343 = vmatmul.mubr.bf16.gmra.mrb[64].mxu1 %v12270_v9  ;;  %v11719_v9 = vld [vmem:[%s15703_s2 + $0x1f4] ss:$40 sps:$4 sm:$0xff]  }
 0x390   : > { %3352 = vmatprep.mubr.bf16.mxu1 %v12272_v11  ;;  %v11717_v11 = vld [vmem:[%s15703_s2 + $0x1f0] ss:$40 sps:$4 sm:$0xff]  }
 0x397   : > { %3353 = vmatmul.mubr.bf16.gmra.mrb[68].mxu1 %v12274_v14  ;;  %v11722_v14 = vld [vmem:[%s15703_s2 + $0x244] ss:$40 sps:$4 sm:$0xff]  }
 0x398   : > { %3362 = vmatprep.mubr.bf16.mxu1 %v12276_v22  ;;  %v12291_v22 = vld [vmem:[%s12706_s25 + $0xa0] ss:$24 sps:$4 sm:$0xff]  }
 0x39f   : > { %3363 = vmatmul.mubr.bf16.gmra.mrb[72].mxu1 %v12278_v24  ;;  %v12292_v24 = vld [vmem:[%s12706_s25 + $0xd4] ss:$24 sps:$4 sm:$0xff]  }
 0x3a0   : > { %3405 = vmatprep.mubr.bf16.mxu1 %v12280_v27  ;;  %v11720_v27 = vld [vmem:[%s15703_s2 + $0x240] ss:$40 sps:$4 sm:$0xff]  }
 0x3a7   : > { %3406 = vmatmul.mubr.bf16.vlgmr.msra.gmra.mrb[4].mxu1 %v12282_v32  ;;  %v11728_v32 = vld [vmem:[%s15703_s2 + $0x2e4] ss:$40 sps:$4 sm:$0xff]  }
 0x3a8   : > { %3415 = vmatprep.mubr.bf16.mxu1 %v12284_v35  ;;  %4695 = vmatpush1.bf16.msra.mxu1 %v11699_v29  ;;  %v11725_v29 = vld [vmem:[%s15703_s2 + $0x294] ss:$40 sps:$4 sm:$0xff]   ;;  %v12293_v35 = vld [vmem:[%s12706_s25 + $0xd0] ss:$24 sps:$4 sm:$0xff]  }
 0x3a9   : > { %4696 = vmatprep.subr.bf16.mxu1 %v11704_v30  ;;  %v11723_v30 = vld [vmem:[%s15703_s2 + $0x290] ss:$40 sps:$4 sm:$0xff]  }
 0x3aa   : > { %v13643_v37 = vpop.f32.mrb[0].mxu1 }
 0x3ab   : > { %15728 = vst [vmem:[#allocation10_spill] sm:$0xff] %v13643_v37  ;;  %v13645_v39 = vpop.f32.mrb[1].mxu1 }
 0x3ac   : > { %15729 = vst [vmem:[#allocation11_spill] sm:$0xff] %v13645_v39  ;;  %4697 = vmatpush1.bf16.msra.mxu1 %v11702_v19  ;;  %v12294_v19 = vld [vmem:[%s12706_s25 + $0x104] ss:$24 sps:$4 sm:$0xff]   ;;  %v12317_v39 = vld [vmem:[%s12706_s25 + $0x310] ss:$24 sps:$4 sm:$0xff]  }
 0x3ad   : > { %4698 = vmatprep.subr.bf16.mxu1 %v11707_v36  ;;  %v11726_v36 = vld [vmem:[%s15703_s2 + $0x2e0] ss:$40 sps:$4 sm:$0xff]  }
 0x3af   : > { %3416 = vmatmul.mubr.bf16.gmra.mrb[8].mxu1 %v12286_v47  ;;  %v11734_v47 = vld [vmem:[%s15703_s2 + $0x384] ss:$40 sps:$4 sm:$0xff]  }
 0x3b0   : > { %3425 = vmatprep.mubr.bf16.mxu1 %v12288_v51  ;;  %4699 = vmatpush1.bf16.msra.mxu1 %v11705_v41  ;;  %v11731_v41 = vld [vmem:[%s15703_s2 + $0x334] ss:$40 sps:$4 sm:$0xff]  }
 0x3b1   : > { %4700 = vmatprep.subr.bf16.mxu1 %v11710_v43  ;;  %v11729_v43 = vld [vmem:[%s15703_s2 + $0x330] ss:$40 sps:$4 sm:$0xff]   ;;  %v12296_v51 = vld [vmem:[%s12706_s25 + $0x134] ss:$24 sps:$4 sm:$0xff]  }
 0x3b4   : > { %4701 = vmatpush1.bf16.msra.mxu1 %v11708_v54  ;;  %v11732_v54 = vld [vmem:[%s15703_s2 + $0x380] ss:$40 sps:$4 sm:$0xff]  }
 0x3b5   : > { %4702 = vmatprep.subr.bf16.mxu1 %v11713_v57  ;;  %v11737_v57 = vld [vmem:[%s15703_s2 + $0x3d4] ss:$40 sps:$4 sm:$0xff]  }
 0x3b7   : > { %3426 = vmatmul.mubr.bf16.gmra.mrb[12].mxu1 %v12289_v1  ;;  %v12297_v1 = vld [vmem:[%s12706_s25 + $0x130] ss:$24 sps:$4 sm:$0xff]  }
 0x3b8   : > { %3435 = vmatprep.mubr.bf16.mxu1 %v12290_v3  ;;  %4703 = vmatpush1.bf16.msra.mxu1 %v11711_v59  ;;  %v11735_v59 = vld [vmem:[%s15703_s2 + $0x3d0] ss:$40 sps:$4 sm:$0xff]   ;;  %v12298_v3 = vld [vmem:[%s12706_s25 + $0x164] ss:$24 sps:$4 sm:$0xff]  }
 0x3b9   : > { %4704 = vmatprep.subr.bf16.mxu1 %v11716_v62  ;;  %v11740_v62 = vld [vmem:[%s15703_s2 + $0x424] ss:$40 sps:$4 sm:$0xff]  }
 0x3bc   : > { %4705 = vmatpush1.bf16.msra.mxu1 %v11714_v6  ;;  %v11738_v6 = vld [vmem:[%s15703_s2 + $0x420] ss:$40 sps:$4 sm:$0xff]  }
 0x3bd   : > { %4706 = vmatprep.subr.bf16.mxu1 %v11719_v9  ;;  %v11743_v9 = vld [vmem:[%s15703_s2 + $0x474] ss:$40 sps:$4 sm:$0xff]  }
 0x3bf   : > { %3436 = vmatmul.mubr.bf16.gmra.mrb[16].mxu1 %v12291_v22  ;;  %v12299_v22 = vld [vmem:[%s12706_s25 + $0x160] ss:$24 sps:$4 sm:$0xff]  }
 0x3c0   : > { %3445 = vmatprep.mubr.bf16.mxu1 %v12292_v24  ;;  %4707 = vmatpush1.bf16.msra.mxu1 %v11717_v11  ;;  %v11741_v11 = vld [vmem:[%s15703_s2 + $0x470] ss:$40 sps:$4 sm:$0xff]   ;;  %v12300_v24 = vld [vmem:[%s12706_s25 + $0x194] ss:$24 sps:$4 sm:$0xff]  }
 0x3c1   : > { %4708 = vmatprep.subr.bf16.mxu1 %v11722_v14  ;;  %v11746_v14 = vld [vmem:[%s15703_s2 + $0x4c4] ss:$40 sps:$4 sm:$0xff]  }
 0x3c4   : > { %4709 = vmatpush1.bf16.msra.mxu1 %v11720_v27  ;;  %v11744_v27 = vld [vmem:[%s15703_s2 + $0x4c0] ss:$40 sps:$4 sm:$0xff]  }
 0x3c5   : > { %4710 = vmatprep.subr.bf16.mxu1 %v11725_v29  ;;  %v11749_v29 = vld [vmem:[%s15703_s2 + $0x514] ss:$40 sps:$4 sm:$0xff]  }
 0x3c7   : > { %3446 = vmatmul.mubr.bf16.gmra.mrb[20].mxu1 %v12293_v35  ;;  %v12303_v35 = vld [vmem:[%s12706_s25 + $0x1c0] ss:$24 sps:$4 sm:$0xff]  }
 0x3c8   : > { %3455 = vmatprep.mubr.bf16.mxu1 %v12294_v19  ;;  %4711 = vmatpush1.bf16.msra.mxu1 %v11723_v30  ;;  %v12301_v30 = vld [vmem:[%s12706_s25 + $0x190] ss:$24 sps:$4 sm:$0xff]   ;;  %v12304_v19 = vld [vmem:[%s12706_s25 + $0x1f4] ss:$24 sps:$4 sm:$0xff]  }
 0x3c9   : > { %4712 = vmatprep.subr.bf16.mxu1 %v11728_v32  ;;  %v12302_v32 = vld [vmem:[%s12706_s25 + $0x1c4] ss:$24 sps:$4 sm:$0xff]  }
 0x3cc   : > { %4713 = vmatpush1.bf16.msra.mxu1 %v11726_v36  ;;  %v12305_v36 = vld [vmem:[%s12706_s25 + $0x1f0] ss:$24 sps:$4 sm:$0xff]  }
 0x3cd   : > { %4714 = vmatprep.subr.bf16.mxu1 %v11731_v41  ;;  %v12306_v41 = vld [vmem:[%s12706_s25 + $0x224] ss:$24 sps:$4 sm:$0xff]  }
 0x3cf   : > { %3456 = vmatmul.mubr.bf16.gmra.mrb[24].mxu1 %v12295_v49 }
 0x3d0   : > { %3465 = vmatprep.mubr.bf16.mxu1 %v12296_v51  ;;  %4715 = vmatpush1.bf16.msra.mxu1 %v11729_v43  ;;  %v13758_v43 = vpop.f32.mrb[72].mxu0 }
 0x3d1   : > { %4716 = vmatprep.subr.bf16.mxu1 %v11734_v47  ;;  %v13760_v47 = vpop.f32.mrb[73].mxu0 }
 0x3d2   : > { %v13762_v49 = vpop.f32.mrb[74].mxu0 }
 0x3d3   : > { %v13764_v51 = vpop.f32.mrb[75].mxu0 }
 0x3d4   : > { %4717 = vmatpush1.bf16.msra.mxu1 %v11732_v54  ;;  %v12307_v54 = vld [vmem:[%s12706_s25 + $0x220] ss:$24 sps:$4 sm:$0xff]  }
 0x3d5   : > { %4718 = vmatprep.subr.bf16.mxu1 %v11737_v57  ;;  %v12308_v57 = vld [vmem:[%s12706_s25 + $0x254] ss:$24 sps:$4 sm:$0xff]  }
 0x3d7   : > { %3466 = vmatmul.mubr.bf16.gmra.mrb[28].mxu1 %v12297_v1 }
 0x3d8   : > { %3475 = vmatprep.mubr.bf16.mxu1 %v12298_v3  ;;  %4719 = vmatpush1.bf16.msra.mxu1 %v11735_v59  ;;  %v13768_v59 = vpop.f32.mrb[76].mxu0 }
 0x3d9   : > { %4720 = vmatprep.subr.bf16.mxu1 %v11740_v62  ;;  %v13770_v62 = vpop.f32.mrb[77].mxu0 }
 0x3da   : > { %v13772_v1 = vpop.f32.mrb[78].mxu0 }
 0x3db   : > { %v13774_v3 = vpop.f32.mrb[79].mxu0 }
 0x3dc   : > { %4721 = vmatpush1.bf16.msra.mxu1 %v11738_v6  ;;  %v12309_v6 = vld [vmem:[%s12706_s25 + $0x250] ss:$24 sps:$4 sm:$0xff]  }
 0x3dd   : > { %4722 = vmatprep.subr.bf16.mxu1 %v11743_v9  ;;  %v12310_v9 = vld [vmem:[%s12706_s25 + $0x284] ss:$24 sps:$4 sm:$0xff]  }
 0x3df   : > { %3476 = vmatmul.mubr.bf16.gmra.mrb[32].mxu1 %v12299_v22 }
 0x3e0   : > { %3485 = vmatprep.mubr.bf16.mxu1 %v12300_v24  ;;  %4723 = vmatpush1.bf16.msra.mxu1 %v11741_v11  ;;  %v13778_v11 = vpop.f32.mrb[80].mxu0 }
 0x3e1   : > { %4724 = vmatprep.subr.bf16.mxu1 %v11746_v14  ;;  %v13780_v14 = vpop.f32.mrb[81].mxu0 }
 0x3e2   : > { %v13782_v22 = vpop.f32.mrb[82].mxu0 }
 0x3e3   : > { %v13784_v24 = vpop.f32.mrb[83].mxu0 }
 0x3e4   : > { %4725 = vmatpush1.bf16.msra.mxu1 %v11744_v27  ;;  %v12311_v27 = vld [vmem:[%s12706_s25 + $0x280] ss:$24 sps:$4 sm:$0xff]  }
 0x3e5   : > { %4907 = vmatprep.subr.bf16.mxu1 %v11749_v29  ;;  %v12312_v29 = vld [vmem:[%s12706_s25 + $0x2b4] ss:$24 sps:$4 sm:$0xff]  }
 0x3e7   : > { %3486 = vmatmul.mubr.bf16.gmra.mrb[36].mxu1 %v12301_v30  ;;  %v13788_v30 = vpop.f32.mrb[84].mxu0 }
 0x3e8   : > { %3495 = vmatprep.mubr.bf16.mxu1 %v12302_v32  ;;  %v13790_v32 = vpop.f32.mrb[85].mxu0 }
 0x3ef   : > { %3496 = vmatmul.mubr.bf16.gmra.mrb[40].mxu1 %v12303_v35  ;;  %v13792_v35 = vpop.f32.mrb[86].mxu0 }
 0x3f0   : > { %3505 = vmatprep.mubr.bf16.mxu1 %v12304_v19  ;;  %v13794_v19 = vpop.f32.mrb[87].mxu0 }
 0x3f7   : > { %3506 = vmatmul.mubr.bf16.gmra.mrb[44].mxu1 %v12305_v36  ;;  %v12313_v36 = vld [vmem:[%s12706_s25 + $0x2b0] ss:$24 sps:$4 sm:$0xff]  }
 0x3f8   : > { %3515 = vmatprep.mubr.bf16.mxu1 %v12306_v41  ;;  %v12314_v41 = vld [vmem:[%s12706_s25 + $0x2e4] ss:$24 sps:$4 sm:$0xff]  }
 0x3ff   : > { %3516 = vmatmul.mubr.bf16.gmra.mrb[48].mxu1 %v12307_v54  ;;  %v13798_v54 = vpop.f32.mrb[88].mxu0 }
 0x400   : > { %3525 = vmatprep.mubr.bf16.mxu1 %v12308_v57  ;;  %v13800_v57 = vpop.f32.mrb[89].mxu0 }
 0x407   : > { %3526 = vmatmul.mubr.bf16.gmra.mrb[52].mxu1 %v12309_v6  ;;  %v13802_v6 = vpop.f32.mrb[90].mxu0 }
 0x408   : > { %3535 = vmatprep.mubr.bf16.mxu1 %v12310_v9  ;;  %v13804_v9 = vpop.f32.mrb[91].mxu0 }
 0x409   : > { %v13808_v16 = vpop.f32.mrb[92].mxu0 }
 0x40f   : > { %3536 = vmatmul.mubr.bf16.gmra.mrb[56].mxu1 %v12311_v27  ;;  %v12315_v27 = vld [vmem:[%s12706_s25 + $0x2e0] ss:$24 sps:$4 sm:$0xff]  }
 0x410   : > { %3545 = vmatprep.mubr.bf16.mxu1 %v12312_v29  ;;  %v12316_v29 = vld [vmem:[%s12706_s25 + $0x314] ss:$24 sps:$4 sm:$0xff]  }
 0x417   : > { %3546 = vmatmul.mubr.bf16.gmra.mrb[60].mxu1 %v12313_v36  ;;  %v13810_v36 = vpop.f32.mrb[93].mxu0 }
 0x418   : > { %3555 = vmatprep.mubr.bf16.mxu1 %v12314_v41  ;;  %v13812_v37 = vpop.f32.mrb[94].mxu0 }
 0x419   : > { %v13814_v41 = vpop.f32.mrb[95].mxu0 }
 0x41a   : > { %15731 = vst [vmem:[#allocation13_spill] sm:$0xff] %v13814_v41  ;;  %v13818_v33 = vpop.f32.mrb[96].mxu0 }
 0x41b   : > { %v13820_v31 = vpop.f32.mrb[97].mxu0 }
 0x41f   : > { %3556 = vmatmul.mubr.bf16.gmra.mrb[64].mxu1 %v12315_v27  ;;  %v13822_v27 = vpop.f32.mrb[98].mxu0 }
 0x420   : > { %3565 = vmatprep.mubr.bf16.mxu1 %v12316_v29  ;;  %v13824_v25 = vpop.f32.mrb[99].mxu0  ;;  %v12319_v29 = vld [vmem:[%s12706_s25 + $0x340] ss:$24 sps:$4 sm:$0xff]  }
 0x421   : > { %15732 = vst [vmem:[#allocation14_spill] sm:$0xff] %v13824_v25  ;;  %v13828_v21 = vpop.f32.mrb[100].mxu0  ;;  %v11752_v25 = vld [vmem:[%s15703_s2 + $0x564] ss:$40 sps:$4 sm:$0xff]  }
 0x422   : > { %v13830_v12 = vpop.f32.mrb[101].mxu0 }
 0x423   : > { %15733 = vst [vmem:[#allocation15_spill] sm:$0xff] %v13830_v12  ;;  %v13832_v41 = vpop.f32.mrb[102].mxu0 }
 0x424   : > { %15734 = vst [vmem:[#allocation16_spill] sm:$0xff] %v13832_v41 }
 0x427   : > { %3566 = vmatmul.mubr.bf16.gmra.mrb[68].mxu1 %v12317_v39  ;;  %v11747_v39 = vld [vmem:[%s15703_s2 + $0x510] ss:$40 sps:$4 sm:$0xff]  }
 0x428   : > { %3575 = vmatprep.mubr.bf16.mxu1 %v12318_v45  ;;  %v13837_v45 = vpop.f32.mrb[103].mxu0 }
 0x429   : > { %15735 = vst [vmem:[#allocation17_spill] sm:$0xff] %v13837_v45  ;;  %v13850_v41 = vpop.f32.mrb[104].mxu0 }
 0x42a   : > { %v13852_v45 = vpop.f32.mrb[105].mxu0 }
 0x42b   : > { %v13854_v12 = vpop.f32.mrb[106].mxu0 }
 0x42c   : > { %15736 = vst [vmem:[#allocation18_spill] sm:$0xff] %v13854_v12 }
 0x42f   : > { %3576 = vmatmul.mubr.bf16.gmra.mrb[72].mxu1 %v12319_v29  ;;  %v11755_v29 = vld [vmem:[%s15703_s2 + $0x5b4] ss:$40 sps:$4 sm:$0xff]  }
 0x430   : > { %4726 = vmatprep.mubr.bf16.mxu1 %v12320_v23  ;;  %v11750_v23 = vld [vmem:[%s15703_s2 + $0x560] ss:$40 sps:$4 sm:$0xff]  }
 0x437   : > { %4727 = vmatmul.mubr.bf16.vlgmr.msra.gmra.mrb[76].mxu1 %v13396_v53  ;;  %v11753_v53 = vld [vmem:[%s15703_s2 + $0x5b0] ss:$40 sps:$4 sm:$0xff]  }
 0x438   : > { %4736 = vmatprep.mubr.bf16.mxu1 %v13401_v55  ;;  %4908 = vmatpush1.bf16.msra.mxu1 %v11747_v39  ;;  %v13859_v55 = vpop.f32.mrb[107].mxu0  ;;  %v11756_v39 = vld [vmem:[%s15703_s2 + $0x600] ss:$40 sps:$4 sm:$0xff]  }
 0x439   : > { %4909 = vmatprep.subr.bf16.mxu1 %v11752_v25  ;;  %15737 = vst [vmem:[#allocation19_spill] sm:$0xff] %v13859_v55  ;;  %v11758_v25 = vld [vmem:[%s15703_s2 + $0x604] ss:$40 sps:$4 sm:$0xff]   ;;  %v13872_v55 = vpop.f32.mrb[108].mxu0 }
 0x43c   : > { %4910 = vmatpush1.bf16.msra.mxu1 %v11750_v23  ;;  %v11761_v23 = vld [vmem:[%s15703_s2 + $0x654] ss:$40 sps:$4 sm:$0xff]  }
 0x43d   : > { %4911 = vmatprep.subr.bf16.mxu1 %v11755_v29  ;;  %v13874_v29 = vpop.f32.mrb[109].mxu0 }
 0x43e   : > { %v13876_v12 = vpop.f32.mrb[110].mxu0 }
 0x43f   : > { %4737 = vmatmul.mubr.bf16.gmra.mrb[80].mxu1 %v13418_v61  ;;  %15738 = vst [vmem:[#allocation20_spill] sm:$0xff] %v13876_v12  ;;  %v11759_v61 = vld [vmem:[%s15703_s2 + $0x650] ss:$40 sps:$4 sm:$0xff]  }
 0x440   : > { %4746 = vmatprep.mubr.bf16.mxu1 %v13423_v63  ;;  %4912 = vmatpush1.bf16.msra.mxu1 %v11753_v53  ;;  %v13881_v63 = vpop.f32.mrb[111].mxu0  ;;  %v11764_v53 = vld [vmem:[%s15703_s2 + $0x6a4] ss:$40 sps:$4 sm:$0xff]  }
 0x441   : > { %4913 = vmatprep.subr.bf16.mxu1 %v11758_v25  ;;  %15739 = vst [vmem:[#allocation21_spill] sm:$0xff] %v13881_v63  ;;  %v11762_v25 = vld [vmem:[%s15703_s2 + $0x6a0] ss:$40 sps:$4 sm:$0xff]   ;;  %v13894_v63 = vpop.f32.mrb[112].mxu0 }
 0x444   : > { %4914 = vmatpush1.bf16.msra.mxu1 %v11756_v39  ;;  %v11767_v39 = vld [vmem:[%s15703_s2 + $0x6f4] ss:$40 sps:$4 sm:$0xff]  }
 0x445   : > { %4915 = vmatprep.subr.bf16.mxu1 %v11761_v23  ;;  %v13896_v23 = vpop.f32.mrb[113].mxu0 }
 0x446   : > { %v13898_v12 = vpop.f32.mrb[114].mxu0 }
 0x447   : > { %4747 = vmatmul.mubr.bf16.gmra.mrb[84].mxu1 %v13440_v5  ;;  %15740 = vst [vmem:[#allocation22_spill] sm:$0xff] %v13898_v12  ;;  %v11765_v5 = vld [vmem:[%s15703_s2 + $0x6f0] ss:$40 sps:$4 sm:$0xff]  }
 0x448   : > { %4756 = vmatprep.mubr.bf16.mxu1 %v13445_v7  ;;  %4916 = vmatpush1.bf16.msra.mxu1 %v11759_v61  ;;  %v13903_v7 = vpop.f32.mrb[115].mxu0  ;;  %v11770_v61 = vld [vmem:[%s15703_s2 + $0x744] ss:$40 sps:$4 sm:$0xff]  }
 0x449   : > { %4917 = vmatprep.subr.bf16.mxu1 %v11764_v53  ;;  %15741 = vst [vmem:[#allocation23_spill] sm:$0xff] %v13903_v7  ;;  %v11768_v53 = vld [vmem:[%s15703_s2 + $0x740] ss:$40 sps:$4 sm:$0xff]   ;;  %v13916_v7 = vpop.f32.mrb[116].mxu0 }
 0x44c   : > { %4918 = vmatpush1.bf16.msra.mxu1 %v11762_v25  ;;  %v11773_v25 = vld [vmem:[%s15703_s2 + $0x794] ss:$40 sps:$4 sm:$0xff]  }
 0x44d   : > { %4919 = vmatprep.subr.bf16.mxu1 %v11767_v39  ;;  %v13918_v39 = vpop.f32.mrb[117].mxu0 }
 0x44e   : > { %v13920_v12 = vpop.f32.mrb[118].mxu0 }
 0x44f   : > { %4757 = vmatmul.mubr.bf16.gmra.mrb[88].mxu1 %v13462_v13  ;;  %15742 = vst [vmem:[#allocation24_spill] sm:$0xff] %v13920_v12  ;;  %v11771_v13 = vld [vmem:[%s15703_s2 + $0x790] ss:$40 sps:$4 sm:$0xff]  }
 0x450   : > { %4766 = vmatprep.mubr.bf16.mxu1 %v13467_v20  ;;  %4920 = vmatpush1.bf16.msra.mxu1 %v11765_v5  ;;  %v13925_v20 = vpop.f32.mrb[119].mxu0  ;;  %v11776_v5 = vld [vmem:[%s15703_s2 + $0x7e4] ss:$40 sps:$4 sm:$0xff]  }
 0x451   : > { %4921 = vmatprep.subr.bf16.mxu1 %v11770_v61  ;;  %15743 = vst [vmem:[#allocation25_spill] sm:$0xff] %v13925_v20  ;;  %v11774_v61 = vld [vmem:[%s15703_s2 + $0x7e0] ss:$40 sps:$4 sm:$0xff]   ;;  %v13938_v20 = vpop.f32.mrb[120].mxu0 }
 0x454   : > { %4922 = vmatpush1.bf16.msra.mxu1 %v11768_v53  ;;  %v11779_v53 = vld [vmem:[%s15703_s2 + $0x834] ss:$40 sps:$4 sm:$0xff]  }
 0x455   : > { %4923 = vmatprep.subr.bf16.mxu1 %v11773_v25  ;;  %v13940_v25 = vpop.f32.mrb[121].mxu0 }
 0x456   : > { %v13942_v12 = vpop.f32.mrb[122].mxu0 }
 0x457   : > { %4767 = vmatmul.mubr.bf16.gmra.mrb[92].mxu1 %v13484_v26  ;;  %15744 = vst [vmem:[#allocation26_spill] sm:$0xff] %v13942_v12  ;;  %v11777_v26 = vld [vmem:[%s15703_s2 + $0x830] ss:$40 sps:$4 sm:$0xff]  }
 0x458   : > { %4776 = vmatprep.mubr.bf16.mxu1 %v13489_v28  ;;  %4924 = vmatpush1.bf16.msra.mxu1 %v11771_v13  ;;  %v13947_v28 = vpop.f32.mrb[123].mxu0  ;;  %v11782_v13 = vld [vmem:[%s15703_s2 + $0x884] ss:$40 sps:$4 sm:$0xff]  }
 0x459   : > { %4925 = vmatprep.subr.bf16.mxu1 %v11776_v5  ;;  %15745 = vst [vmem:[#allocation27_spill] sm:$0xff] %v13947_v28  ;;  %v11780_v5 = vld [vmem:[%s15703_s2 + $0x880] ss:$40 sps:$4 sm:$0xff]   ;;  %v13960_v28 = vpop.f32.mrb[124].mxu0 }
 0x45a   : > { %15746 = vst [vmem:[#allocation28_spill] sm:$0xff] %v13960_v28 }
 0x45c   : > { %4926 = vmatpush1.bf16.msra.mxu1 %v11774_v61  ;;  %v11785_v61 = vld [vmem:[%s15703_s2 + $0x8d4] ss:$40 sps:$4 sm:$0xff]  }
 0x45d   : > { %4927 = vmatprep.subr.bf16.mxu1 %v11779_v53  ;;  %v13962_v53 = vpop.f32.mrb[125].mxu0 }
 0x45e   : > { %15747 = vst [vmem:[#allocation29_spill] sm:$0xff] %v13962_v53  ;;  %v13964_v12 = vpop.f32.mrb[126].mxu0 }
 0x45f   : > { %4777 = vmatmul.mubr.bf16.gmra.mrb[96].mxu1 %v13506_v34  ;;  %15748 = vst [vmem:[#allocation30_spill] sm:$0xff] %v13964_v12  ;;  %v11783_v34 = vld [vmem:[%s15703_s2 + $0x8d0] ss:$40 sps:$4 sm:$0xff]  }
 0x460   : > { %4786 = vmatprep.mubr.bf16.mxu1 %v13511_v18  ;;  %4928 = vmatpush1.bf16.msra.mxu1 %v11777_v26  ;;  %v13969_v18 = vpop.f32.mrb[127].mxu0  ;;  %v11788_v26 = vld [vmem:[%s15703_s2 + $0x924] ss:$40 sps:$4 sm:$0xff]  }
 0x461   : > { %4929 = vmatprep.subr.bf16.mxu1 %v11782_v13  ;;  %15749 = vst [vmem:[#allocation31_spill] sm:$0xff] %v13969_v18  ;;  %v11786_v13 = vld [vmem:[%s15703_s2 + $0x920] ss:$40 sps:$4 sm:$0xff]   ;;  %v13982_v18 = vpop.f32.mrb[128].mxu0 }
 0x462   : > { %15750 = vst [vmem:[#allocation32_spill] sm:$0xff] %v13982_v18 }
 0x464   : > { %4930 = vmatpush1.bf16.msra.mxu1 %v11780_v5  ;;  %v11791_v5 = vld [vmem:[%s15703_s2 + $0x974] ss:$40 sps:$4 sm:$0xff]  }
 0x465   : > { %4931 = vmatprep.subr.bf16.mxu1 %v11785_v61  ;;  %v13984_v61 = vpop.f32.mrb[129].mxu0 }
 0x466   : > { %15751 = vst [vmem:[#allocation33_spill] sm:$0xff] %v13984_v61  ;;  %v13986_v12 = vpop.f32.mrb[130].mxu0 }
 0x467   : > { %4787 = vmatmul.mubr.bf16.gmra.mrb[100].mxu1 %v13522_v38  ;;  %15752 = vst [vmem:[#allocation34_spill] sm:$0xff] %v13986_v12  ;;  %v11789_v38 = vld [vmem:[%s15703_s2 + $0x970] ss:$40 sps:$4 sm:$0xff]  }
 0x468   : > { %4796 = vmatprep.mubr.bf16.mxu1 %v13527_v40  ;;  %4932 = vmatpush1.bf16.msra.mxu1 %v11783_v34  ;;  %v13991_v40 = vpop.f32.mrb[131].mxu0  ;;  %v11794_v34 = vld [vmem:[%s15703_s2 + $0x9c4] ss:$40 sps:$4 sm:$0xff]  }
 0x469   : > { %4933 = vmatprep.subr.bf16.mxu1 %v11788_v26  ;;  %15753 = vst [vmem:[#allocation35_spill] sm:$0xff] %v13991_v40  ;;  %v2455_v26 = vld [vmem:[%s15704_s3 + $0x2] sm:$0x3]  ;;  %v14007_v40 = vpop.f32.mrb[132].mxu0 }
 0x46a   : > { %15754 = vst [vmem:[#allocation36_spill] sm:$0xff] %v14007_v40  ;;  %v14009_v12 = vpop.f32.mrb[133].mxu0 }
 0x46b   : > { %15755 = vst [vmem:[#allocation37_spill] sm:$0xff] %v14009_v12 }
 0x46c   : > { %4934 = vmatpush1.bf16.msra.mxu1 %v11786_v13  ;;  %v11792_v13 = vld [vmem:[%s15703_s2 + $0x9c0] ss:$40 sps:$4 sm:$0xff]  }
 0x46d   : > { %4935 = vmatprep.subr.bf16.mxu1 %v11791_v5  ;;  %v11797_v5 = vld [vmem:[%s15703_s2 + $0xa14] ss:$40 sps:$4 sm:$0xff]  }
 0x46f   : > { %4797 = vmatmul.mubr.bf16.gmra.mrb[104].mxu1 %v13532_v42  ;;  %v14012_v42 = vrot.slane %v2455_v26, %v13069_v15 }
 0x470   : > { %4806 = vmatprep.mubr.bf16.mxu1 %v13537_v44  ;;  %4936 = vmatpush1.bf16.msra.mxu1 %v11789_v38  ;;  %v14014_v44 = vpop.f32.mrb[134].mxu0  ;;  %v14017_v38 = vrot.slane %v2455_v26, %v13074_v17 }
 0x471   : > { %4937 = vmatprep.subr.bf16.mxu1 %v11794_v34  ;;  %15756 = vst [vmem:[#allocation38_spill] sm:$0xff] %v14014_v44  ;;  %v14019_v61 = vpop.f32.mrb[135].mxu0  ;;  %v2982_v34 = vadd.f32 %v13758_v43, %v14012_v42  ;;  %v2986_v15 = vadd.f32 %v13762_v49, %v14012_v42 }
 0x472   : > { %15757 = vst [vmem:[#allocation39_spill] sm:$0xff] %v14019_v61  ;;  %v2984_v12 = vadd.f32 %v13760_v47, %v14017_v38  ;;  %v14029_v44 = vpop.f32.mrb[136].mxu0 }
 0x473   : > { %15758 = vst [vmem:[#allocation40_spill] sm:$0xff] %v14029_v44 }
 0x474   : > { %4938 = vmatpush1.bf16.msra.mxu1 %v11792_v13  ;;  %v2988_v13 = vadd.f32 %v13764_v51, %v14017_v38  ;;  %v2992_v51 = vadd.f32 %v13768_v59, %v14012_v42 }
 0x475   : > { %5120 = vmatprep.subr.bf16.mxu1 %v11797_v5  ;;  %v14033_v5 = vpop.f32.mrb[137].mxu0 }
 0x476   : > { %15759 = vst [vmem:[#allocation41_spill] sm:$0xff] %v14033_v5  ;;  %v14035_v61 = vpop.f32.mrb[138].mxu0 }
 0x477   : > { %4807 = vmatmul.mubr.bf16.gmra.mrb[108].mxu1 %v13542_v46  ;;  %v14037_v47 = vpop.f32.mrb[139].mxu0 }
 0x478   : > { %4816 = vmatprep.mubr.bf16.mxu1 %v13547_v48 }
 0x47a   : > { %v3407_v26 = vpop.f32.mrb[4].mxu1 }
 0x47b   : > { %v10222_v46 = vadd.f32 %v3407_v26, %v2982_v34  ;;  %v3409_v17 = vpop.f32.mrb[5].mxu1  ;;  %v2994_v34 = vadd.f32 %v13770_v62, %v14017_v38 }
 0x47c   : > { %v10224_v43 = vadd.f32 %v3409_v17, %v2984_v12  ;;  %v3411_v40 = vpop.f32.mrb[6].mxu1  ;;  %v14047_v12 = vpop.f32.mrb[140].mxu0 }
 0x47d   : > { %v10226_v48 = vadd.f32 %v3411_v40, %v2986_v15  ;;  %v3413_v18 = vpop.f32.mrb[7].mxu1  ;;  %v3586_v49 = vmax.f32 %v10222_v46, 0.0  ;;  %v2996_v15 = vadd.f32 %v13772_v1, %v14012_v42  ;;  %v14051_v26 = vpop.f32.mrb[141].mxu0 }
 0x47e   : > { %v10228_v53 = vadd.f32 %v3413_v18, %v2988_v13  ;;  %v3587_v44 = vmax.f32 %v10224_v43, 0.0  ;;  %v14053_v13 = vpop.f32.mrb[142].mxu0 }
 0x47f   : > { %v3588_v28 = vmax.f32 %v10226_v48, 0.0  ;;  %4817 = vmatmul.mubr.bf16.gmra.mrb[112].mxu1 %v13552_v50  ;;  %v2998_v50 = vadd.f32 %v13774_v3, %v14017_v38  ;;  %v3002_v3 = vadd.f32 %v13778_v11, %v14012_v42 }
 0x480   : > { %v3589_v5 = vmax.f32 %v10228_v53, 0.0  ;;  %4826 = vmatprep.mubr.bf16.mxu1 %v13557_v52  ;;  %v14055_v52 = vpop.f32.mrb[143].mxu0 }
 0x481   : > { %v9863_v17 = vpack.c.bf16 %v3588_v28, %v3586_v49 }
 0x482   : > { %v9861_v18 = vpack.c.bf16 %v3589_v5, %v3587_v44  ;;  %v3417_v40 = vpop.f32.mrb[8].mxu1 }
 0x483   : > { %v10230_v59 = vadd.f32 %v3417_v40, %v2992_v51  ;;  %v3419_v53 = vpop.f32.mrb[9].mxu1  ;;  %v3004_v51 = vadd.f32 %v13780_v14, %v14017_v38  ;;  %v3008_v40 = vadd.f32 %v13784_v24, %v14017_v38  ;;  %v3014_v24 = vadd.f32 %v13790_v32, %v14017_v38 }
 0x484   : > { %v10232_v62 = vadd.f32 %v3419_v53, %v2994_v34  ;;  %v3421_v46 = vpop.f32.mrb[10].mxu1  ;;  %9862 = vmatprep.subr.bf16.mxu0 %v9861_v18 }
 0x485   : > { %v10234_v28 = vadd.f32 %v3421_v46, %v2996_v15  ;;  %v3423_v1 = vpop.f32.mrb[11].mxu1  ;;  %9864 = vmatpush1.bf16.msra.mxu0 %v9863_v17  ;;  %v3590_v44 = vmax.f32 %v10230_v59, 0.0  ;;  %v3006_v15 = vadd.f32 %v13782_v22, %v14012_v42  ;;  %v3012_v22 = vadd.f32 %v13788_v30, %v14012_v42 }
 0x486   : > { %v10236_v43 = vadd.f32 %v3423_v1, %v2998_v50  ;;  %v3591_v48 = vmax.f32 %v10232_v62, 0.0 }
 0x487   : > { %v3592_v5 = vmax.f32 %v10234_v28, 0.0  ;;  %4827 = vmatmul.mubr.bf16.gmra.mrb[116].mxu1 %v13562_v56 }
 0x488   : > { %v3593_v49 = vmax.f32 %v10236_v43, 0.0  ;;  %4836 = vmatprep.mubr.bf16.mxu1 %v13567_v58 }
 0x489   : > { %v9867_v34 = vpack.c.bf16 %v3592_v5, %v3590_v44  ;;  %v3016_v44 = vadd.f32 %v13792_v35, %v14012_v42  ;;  %v3022_v35 = vadd.f32 %v13798_v54, %v14012_v42 }
 0x48a   : > { %v9865_v17 = vpack.c.bf16 %v3593_v49, %v3591_v48  ;;  %v3427_v18 = vpop.f32.mrb[12].mxu1  ;;  %v3018_v48 = vadd.f32 %v13794_v19, %v14017_v38  ;;  %v3024_v19 = vadd.f32 %v13800_v57, %v14017_v38 }
 0x48b   : > { %v10238_v56 = vadd.f32 %v3427_v18, %v3002_v3  ;;  %v3429_v50 = vpop.f32.mrb[13].mxu1 }
 0x48c   : > { %v10240_v59 = vadd.f32 %v3429_v50, %v3004_v51  ;;  %v3431_v11 = vpop.f32.mrb[14].mxu1  ;;  %9866 = vmatprep.subr.bf16.mxu0 %v9865_v17  ;;  %v3026_v50 = vadd.f32 %v13802_v6, %v14012_v42  ;;  %v3032_v6 = vadd.f32 %v13808_v16, %v14012_v42 }
 0x48d   : > { %v10242_v53 = vadd.f32 %v3431_v11, %v3006_v15  ;;  %v3433_v62 = vpop.f32.mrb[15].mxu1  ;;  %9868 = vmatpush1.bf16.msra.mxu0 %v9867_v34  ;;  %v3594_v46 = vmax.f32 %v10238_v56, 0.0 }
 0x48e   : > { %v10244_v14 = vadd.f32 %v3433_v62, %v3008_v40  ;;  %v3595_v28 = vmax.f32 %v10240_v59, 0.0 }
 0x48f   : > { %v3596_v58 = vmax.f32 %v10242_v53, 0.0  ;;  %4837 = vmatmul.mubr.bf16.gmra.mrb[120].mxu1 %v13572_v60  ;;  %v3028_v53 = vadd.f32 %v13804_v9, %v14017_v38  ;;  %v3034_v9 = vadd.f32 %v13810_v36, %v14017_v38 }
 0x490   : > { %v3597_v1 = vmax.f32 %v10244_v14, 0.0  ;;  %4846 = vmatprep.mubr.bf16.mxu1 %v13577_v0 }
 0x491   : > { %v9871_v43 = vpack.c.bf16 %v3596_v58, %v3594_v46 }
 0x492   : > { %v9869_v5 = vpack.c.bf16 %v3597_v1, %v3595_v28  ;;  %v3437_v3 = vpop.f32.mrb[16].mxu1 }
 0x493   : > { %v10246_v60 = vadd.f32 %v3437_v3, %v3012_v22  ;;  %v3439_v49 = vpop.f32.mrb[17].mxu1  ;;  %v15760_v3 = vld [vmem:[#allocation13_spill] sm:$0xff] }
 0x494   : > { %v10248_v51 = vadd.f32 %v3439_v49, %v3014_v24  ;;  %v3441_v30 = vpop.f32.mrb[18].mxu1  ;;  %9870 = vmatprep.subr.bf16.mxu0 %v9869_v5 }
 0x495   : > { %v10250_v34 = vadd.f32 %v3441_v30, %v3016_v44  ;;  %v3443_v15 = vpop.f32.mrb[19].mxu1  ;;  %9872 = vmatpush1.bf16.msra.mxu0 %v9871_v43  ;;  %v3598_v17 = vmax.f32 %v10246_v60, 0.0  ;;  %v3036_v43 = vadd.f32 %v13812_v37, %v14012_v42  ;;  %v3042_v37 = vadd.f32 %v13818_v33, %v14012_v42 }
 0x496   : > { %v10252_v32 = vadd.f32 %v3443_v15, %v3018_v48  ;;  %v3599_v18 = vmax.f32 %v10248_v51, 0.0  ;;  %v3038_v48 = vadd.f32 %v15760_v3, %v14017_v38  ;;  %v15761_v15 = vld [vmem:[#allocation4_spill] sm:$0xff] }
 0x497   : > { %v3600_v0 = vmax.f32 %v10250_v34, 0.0  ;;  %4847 = vmatmul.mubr.bf16.gmra.mrb[124].mxu1 %v13582_v2 }
 0x498   : > { %v3601_v40 = vmax.f32 %v10252_v32, 0.0  ;;  %4856 = vmatprep.mubr.bf16.mxu1 %v13587_v4 }
 0x499   : > { %v9875_v56 = vpack.c.bf16 %v3600_v0, %v3598_v17  ;;  %v3044_v0 = vadd.f32 %v13820_v31, %v14017_v38 }
 0x49a   : > { %v9873_v59 = vpack.c.bf16 %v3601_v40, %v3599_v18  ;;  %v3447_v11 = vpop.f32.mrb[20].mxu1  ;;  %v3046_v40 = vadd.f32 %v13822_v27, %v14012_v42  ;;  %v3052_v27 = vadd.f32 %v13828_v21, %v14012_v42 }
 0x49b   : > { %v10254_v2 = vadd.f32 %v3447_v11, %v3022_v35  ;;  %v3449_v62 = vpop.f32.mrb[21].mxu1  ;;  %v15762_v35 = vld [vmem:[#allocation5_spill] sm:$0xff] }
 0x49c   : > { %v10256_v14 = vadd.f32 %v3449_v62, %v3024_v19  ;;  %v3451_v54 = vpop.f32.mrb[22].mxu1  ;;  %9874 = vmatprep.subr.bf16.mxu0 %v9873_v59 }
 0x49d   : > { %v10258_v46 = vadd.f32 %v3451_v54, %v3026_v50  ;;  %v3453_v58 = vpop.f32.mrb[23].mxu1  ;;  %9876 = vmatpush1.bf16.msra.mxu0 %v9875_v56  ;;  %v3602_v22 = vmax.f32 %v10254_v2, 0.0  ;;  %v15763_v50 = vld [vmem:[#allocation14_spill] sm:$0xff] }
 0x49e   : > { %v10260_v57 = vadd.f32 %v3453_v58, %v3028_v53  ;;  %v3603_v28 = vmax.f32 %v10256_v14, 0.0  ;;  %v3048_v59 = vadd.f32 %v15763_v50, %v14017_v38  ;;  %v15764_v58 = vld [vmem:[#allocation6_spill] sm:$0xff] }
 0x49f   : > { %v3604_v4 = vmax.f32 %v10258_v46, 0.0  ;;  %4857 = vmatmul.mubr.bf16.gmra.mrb[128].mxu1 %v13592_v8 }
 0x4a0   : > { %v3605_v1 = vmax.f32 %v10260_v57, 0.0  ;;  %4866 = vmatprep.mubr.bf16.mxu1 %v13597_v10 }
 0x4a1   : > { %v9879_v24 = vpack.c.bf16 %v3604_v4, %v3602_v22  ;;  %v15765_v4 = vld [vmem:[#allocation15_spill] sm:$0xff] }
 0x4a2   : > { %v9877_v44 = vpack.c.bf16 %v3605_v1, %v3603_v28  ;;  %v3457_v5 = vpop.f32.mrb[24].mxu1  ;;  %v15766_v28 = vld [vmem:[#allocation7_spill] sm:$0xff] }
 0x4a3   : > { %v10262_v8 = vadd.f32 %v3457_v5, %v3032_v6  ;;  %v3459_v60 = vpop.f32.mrb[25].mxu1  ;;  %v3054_v6 = vadd.f32 %v15765_v4, %v14017_v38  ;;  %v15768_v5 = vld [vmem:[#allocation17_spill] sm:$0xff]  ;;  %v15774_v4 = vld [vmem:[#allocation20_spill] sm:$0xff] }
 0x4a4   : > { %v10264_v49 = vadd.f32 %v3459_v60, %v3034_v9  ;;  %v3461_v16 = vpop.f32.mrb[26].mxu1  ;;  %9878 = vmatprep.subr.bf16.mxu0 %v9877_v44  ;;  %v15767_v9 = vld [vmem:[#allocation16_spill] sm:$0xff]  ;;  %v3058_v3 = vadd.f32 %v15768_v5, %v14017_v38 }
 0x4a5   : > { %v10266_v51 = vadd.f32 %v3461_v16, %v3036_v43  ;;  %v3463_v30 = vpop.f32.mrb[27].mxu1  ;;  %9880 = vmatpush1.bf16.msra.mxu0 %v9879_v24  ;;  %v3606_v34 = vmax.f32 %v10262_v8, 0.0  ;;  %v3056_v24 = vadd.f32 %v15767_v9, %v14012_v42  ;;  %v15775_v9 = vld [vmem:[#allocation21_spill] sm:$0xff] }
 0x4a6   : > { %v10268_v36 = vadd.f32 %v3463_v30, %v3038_v48  ;;  %v3607_v32 = vmax.f32 %v10264_v49, 0.0 }
 0x4a7   : > { %v3608_v10 = vmax.f32 %v10266_v51, 0.0  ;;  %4867 = vmatmul.mubr.bf16.gmra.mrb[132].mxu1 %v15761_v15 }
 0x4a8   : > { %v3609_v17 = vmax.f32 %v10268_v36, 0.0  ;;  %4876 = vmatprep.mubr.bf16.mxu1 %v15762_v35  ;;  %v15771_v35 = vld [vmem:[#allocation18_spill] sm:$0xff] }
 0x4a9   : > { %v9883_v18 = vpack.c.bf16 %v3608_v10, %v3606_v34  ;;  %v15769_v34 = vld [vmem:[#allocation8_spill] sm:$0xff]  ;;  %v3062_v10 = vadd.f32 %v13850_v41, %v14012_v42 }
 0x4aa   : > { %v9881_v19 = vpack.c.bf16 %v3609_v17, %v3607_v32  ;;  %v3467_v56 = vpop.f32.mrb[28].mxu1  ;;  %v3064_v32 = vadd.f32 %v13852_v45, %v14017_v38  ;;  %v15770_v17 = vld [vmem:[#allocation9_spill] sm:$0xff] }
 0x4ab   : > { %v10270_v11 = vadd.f32 %v3467_v56, %v3042_v37  ;;  %v3469_v53 = vpop.f32.mrb[29].mxu1  ;;  %v15772_v56 = vld [vmem:[#allocation19_spill] sm:$0xff] }
 0x4ac   : > { %v10272_v2 = vadd.f32 %v3469_v53, %v3044_v0  ;;  %v3471_v33 = vpop.f32.mrb[30].mxu1  ;;  %9882 = vmatprep.subr.bf16.mxu0 %v9881_v19  ;;  %v3068_v50 = vadd.f32 %v15772_v56, %v14017_v38 }
 0x4ad   : > { %v10274_v62 = vadd.f32 %v3471_v33, %v3046_v40  ;;  %v3473_v14 = vpop.f32.mrb[31].mxu1  ;;  %9884 = vmatpush1.bf16.msra.mxu0 %v9883_v18  ;;  %v3610_v54 = vmax.f32 %v10270_v11, 0.0  ;;  %v3066_v18 = vadd.f32 %v15771_v35, %v14012_v42 }
 0x4ae   : > { %v10276_v31 = vadd.f32 %v3473_v14, %v3048_v59  ;;  %v3611_v57 = vmax.f32 %v10272_v2, 0.0 }
 0x4af   : > { %v3612_v46 = vmax.f32 %v10274_v62, 0.0  ;;  %4877 = vmatmul.mubr.bf16.gmra.mrb[136].mxu1 %v15764_v58 }
 0x4b0   : > { %v3613_v22 = vmax.f32 %v10276_v31, 0.0  ;;  %4886 = vmatprep.mubr.bf16.mxu1 %v15766_v28  ;;  %v15773_v31 = vld [vmem:[#allocation12_spill] sm:$0xff] }
 0x4b1   : > { %v9887_v1 = vpack.c.bf16 %v3612_v46, %v3610_v54  ;;  %v3072_v54 = vadd.f32 %v13872_v55, %v14012_v42 }
 0x4b2   : > { %v9885_v43 = vpack.c.bf16 %v3613_v22, %v3611_v57  ;;  %v3477_v44 = vpop.f32.mrb[32].mxu1  ;;  %v12321_v57 = vld [vmem:[%s12706_s25 + $0xc] ss:$24 sps:$4 sm:$0xff]  }
 0x4b3   : > { %v10278_v48 = vadd.f32 %v3477_v44, %v3052_v27  ;;  %v3479_v8 = vpop.f32.mrb[33].mxu1  ;;  %v3074_v27 = vadd.f32 %v13874_v29, %v14017_v38  ;;  %v11795_v29 = vld [vmem:[%s15703_s2 + $0xa10] ss:$40 sps:$4 sm:$0xff]  }
 0x4b4   : > { %v10280_v60 = vadd.f32 %v3479_v8, %v3054_v6  ;;  %v3481_v21 = vpop.f32.mrb[34].mxu1  ;;  %9886 = vmatprep.subr.bf16.mxu0 %v9885_v43  ;;  %v3076_v6 = vadd.f32 %v15774_v4, %v14012_v42  ;;  %v11800_v8 = vld [vmem:[%s15703_s2 + $0xa64] ss:$40 sps:$4 sm:$0xff]  }
 0x4b5   : > { %v10282_v49 = vadd.f32 %v3481_v21, %v3056_v24  ;;  %v3483_v16 = vpop.f32.mrb[35].mxu1  ;;  %9888 = vmatpush1.bf16.msra.mxu0 %v9887_v1  ;;  %v3614_v30 = vmax.f32 %v10278_v48, 0.0  ;;  %v3078_v24 = vadd.f32 %v15775_v9, %v14017_v38 }
 0x4b6   : > { %v10284_v51 = vadd.f32 %v3483_v16, %v3058_v3  ;;  %v3615_v15 = vmax.f32 %v10280_v60, 0.0  ;;  %v12322_v16 = vld [vmem:[%s12706_s25 + $0x8] ss:$24 sps:$4 sm:$0xff]  }
 0x4b7   : > { %v3616_v36 = vmax.f32 %v10282_v49, 0.0  ;;  %4887 = vmatmul.mubr.bf16.gmra.mrb[140].mxu1 %v15769_v34  ;;  %v3084_v34 = vadd.f32 %v13896_v23, %v14017_v38  ;;  %v15777_v23 = vld [vmem:[#allocation23_spill] sm:$0xff] }
 0x4b8   : > { %v3617_v37 = vmax.f32 %v10284_v51, 0.0  ;;  %4896 = vmatprep.mubr.bf16.mxu1 %v15770_v17  ;;  %v3082_v51 = vadd.f32 %v13894_v63, %v14012_v42  ;;  %v11803_v63 = vld [vmem:[%s15703_s2 + $0xab4] ss:$40 sps:$4 sm:$0xff]  }
 0x4b9   : > { %v9891_v0 = vpack.c.bf16 %v3616_v36, %v3614_v30 }
 0x4ba   : > { %v9889_v40 = vpack.c.bf16 %v3617_v37, %v3615_v15  ;;  %v3487_v19 = vpop.f32.mrb[36].mxu1  ;;  %v11798_v15 = vld [vmem:[%s15703_s2 + $0xa60] ss:$40 sps:$4 sm:$0xff]  }
 0x4bb   : > { %v10286_v59 = vadd.f32 %v3487_v19, %v3062_v10  ;;  %v3489_v11 = vpop.f32.mrb[37].mxu1  ;;  %v12323_v10 = vld [vmem:[%s12706_s25 + $0x3c] ss:$24 sps:$4 sm:$0xff]  }
 0x4bc   : > { %v10288_v41 = vadd.f32 %v3489_v11, %v3064_v32  ;;  %v3491_v53 = vpop.f32.mrb[38].mxu1  ;;  %9890 = vmatprep.subr.bf16.mxu0 %v9889_v40  ;;  %v15776_v32 = vld [vmem:[#allocation22_spill] sm:$0xff] }
 0x4bd   : > { %v10290_v2 = vadd.f32 %v3491_v53, %v3066_v18  ;;  %v3493_v33 = vpop.f32.mrb[39].mxu1  ;;  %9892 = vmatpush1.bf16.msra.mxu0 %v9891_v0  ;;  %v3618_v62 = vmax.f32 %v10286_v59, 0.0  ;;  %v3086_v17 = vadd.f32 %v15776_v32, %v14012_v42  ;;  %v3088_v18 = vadd.f32 %v15777_v23, %v14017_v38  ;;  %v11801_v59 = vld [vmem:[%s15703_s2 + $0xab0] ss:$40 sps:$4 sm:$0xff]   ;;  %v11806_v53 = vld [vmem:[%s15703_s2 + $0xb04] ss:$40 sps:$4 sm:$0xff]  }
 0x4be   : > { %v10292_v45 = vadd.f32 %v3493_v33, %v3068_v50  ;;  %v3619_v46 = vmax.f32 %v10288_v41, 0.0 }
 0x4bf   : > { %v3620_v14 = vmax.f32 %v10290_v2, 0.0  ;;  %4897 = vmatmul.mubr.bf16.gmra.mrb[144].mxu1 %v15773_v31 }
 0x4c0   : > { %v3621_v58 = vmax.f32 %v10292_v45, 0.0  ;;  %4939 = vmatprep.mubr.bf16.mxu1 %v12321_v57 }
 0x4c1   : > { %v9895_v22 = vpack.c.bf16 %v3620_v14, %v3618_v62  ;;  %v12324_v62 = vld [vmem:[%s12706_s25 + $0x38] ss:$24 sps:$4 sm:$0xff]   ;;  %v3092_v14 = vadd.f32 %v13916_v7, %v14012_v42  ;;  %v11809_v7 = vld [vmem:[%s15703_s2 + $0xb54] ss:$40 sps:$4 sm:$0xff]  }
 0x4c2   : > { %v9893_v28 = vpack.c.bf16 %v3621_v58, %v3619_v46  ;;  %v3497_v1 = vpop.f32.mrb[40].mxu1  ;;  %v3094_v46 = vadd.f32 %v13918_v39, %v14017_v38  ;;  %v12325_v58 = vld [vmem:[%s12706_s25 + $0x6c] ss:$24 sps:$4 sm:$0xff]   ;;  %v15779_v39 = vld [vmem:[#allocation25_spill] sm:$0xff] }
 0x4c3   : > { %v10294_v43 = vadd.f32 %v3497_v1, %v3072_v54  ;;  %v3499_v44 = vpop.f32.mrb[41].mxu1  ;;  %v3098_v1 = vadd.f32 %v15779_v39, %v14017_v38 }
 0x4c4   : > { %v10296_v55 = vadd.f32 %v3499_v44, %v3074_v27  ;;  %v3501_v5 = vpop.f32.mrb[42].mxu1  ;;  %9894 = vmatprep.subr.bf16.mxu0 %v9893_v28  ;;  %v11804_v27 = vld [vmem:[%s15703_s2 + $0xb00] ss:$40 sps:$4 sm:$0xff]  }
 0x4c5   : > { %v10298_v3 = vadd.f32 %v3501_v5, %v3076_v6  ;;  %v3503_v48 = vpop.f32.mrb[43].mxu1  ;;  %9896 = vmatpush1.bf16.msra.mxu0 %v9895_v22  ;;  %v3622_v21 = vmax.f32 %v10294_v43, 0.0  ;;  %v15778_v22 = vld [vmem:[#allocation24_spill] sm:$0xff] }
 0x4c6   : > { %v10300_v60 = vadd.f32 %v3503_v48, %v3078_v24  ;;  %v3623_v30 = vmax.f32 %v10296_v55, 0.0  ;;  %v3096_v4 = vadd.f32 %v15778_v22, %v14012_v42  ;;  %v11807_v55 = vld [vmem:[%s15703_s2 + $0xb50] ss:$40 sps:$4 sm:$0xff]   ;;  %v11821_v22 = vld [vmem:[%s15703_s2 + $0xc94] ss:$40 sps:$4 sm:$0xff]  }
 0x4c7   : > { %v3624_v49 = vmax.f32 %v10298_v3, 0.0  ;;  %4940 = vmatmul.mubr.bf16.vlgmr.msra.gmra.mrb[76].mxu1 %v12322_v16  ;;  %v11812_v3 = vld [vmem:[%s15703_s2 + $0xba4] ss:$40 sps:$4 sm:$0xff]  }
 0x4c8   : > { %v3625_v36 = vmax.f32 %v10300_v60, 0.0  ;;  %4949 = vmatprep.mubr.bf16.mxu1 %v12323_v10  ;;  %5121 = vmatpush1.bf16.msra.mxu1 %v11795_v29 }
 0x4c9   : > { %v9899_v37 = vpack.c.bf16 %v3624_v49, %v3622_v21  ;;  %5122 = vmatprep.subr.bf16.mxu1 %v11800_v8  ;;  %v12326_v21 = vld [vmem:[%s12706_s25 + $0x68] ss:$24 sps:$4 sm:$0xff]   ;;  %v3102_v49 = vadd.f32 %v13938_v20, %v14012_v42  ;;  %v11815_v20 = vld [vmem:[%s15703_s2 + $0xbf4] ss:$40 sps:$4 sm:$0xff]  }
 0x4ca   : > { %v9897_v0 = vpack.c.bf16 %v3625_v36, %v3623_v30  ;;  %v3507_v35 = vpop.f32.mrb[44].mxu1  ;;  %v3104_v30 = vadd.f32 %v13940_v25, %v14017_v38  ;;  %v12327_v36 = vld [vmem:[%s12706_s25 + $0x9c] ss:$24 sps:$4 sm:$0xff]   ;;  %v15781_v25 = vld [vmem:[#allocation27_spill] sm:$0xff] }
 0x4cb   : > { %v10302_v40 = vadd.f32 %v3507_v35, %v3082_v51  ;;  %v3509_v19 = vpop.f32.mrb[45].mxu1 }
 0x4cc   : > { %v10304_v56 = vadd.f32 %v3509_v19, %v3084_v34  ;;  %v3511_v50 = vpop.f32.mrb[46].mxu1  ;;  %9898 = vmatprep.subr.bf16.mxu0 %v9897_v0  ;;  %5123 = vmatpush1.bf16.msra.mxu1 %v11798_v15  ;;  %v11810_v34 = vld [vmem:[%s15703_s2 + $0xba0] ss:$40 sps:$4 sm:$0xff]  }
 0x4cd   : > { %v10306_v11 = vadd.f32 %v3511_v50, %v3086_v17  ;;  %v3513_v41 = vpop.f32.mrb[47].mxu1  ;;  %9900 = vmatpush1.bf16.msra.mxu0 %v9899_v37  ;;  %5124 = vmatprep.subr.bf16.mxu1 %v11803_v63  ;;  %v3626_v33 = vmax.f32 %v10302_v40, 0.0  ;;  %v15780_v15 = vld [vmem:[#allocation26_spill] sm:$0xff]  ;;  %v3108_v63 = vadd.f32 %v15781_v25, %v14017_v38  ;;  %v11813_v40 = vld [vmem:[%s15703_s2 + $0xbf0] ss:$40 sps:$4 sm:$0xff]   ;;  %v15789_v25 = vld [vmem:[#allocation35_spill] sm:$0xff] }
 0x4ce   : > { %v10308_v2 = vadd.f32 %v3513_v41, %v3088_v18  ;;  %v3627_v31 = vmax.f32 %v10304_v56, 0.0  ;;  %v3106_v37 = vadd.f32 %v15780_v15, %v14012_v42  ;;  %v11818_v50 = vld [vmem:[%s15703_s2 + $0xc44] ss:$40 sps:$4 sm:$0xff]  }
 0x4cf   : > { %v3628_v45 = vmax.f32 %v10306_v11, 0.0  ;;  %4950 = vmatmul.mubr.bf16.gmra.mrb[80].mxu1 %v12324_v62  ;;  %v15788_v15 = vld [vmem:[#allocation34_spill] sm:$0xff] }
 0x4d0   : > { %v3629_v54 = vmax.f32 %v10308_v2, 0.0  ;;  %4959 = vmatprep.mubr.bf16.mxu1 %v12325_v58  ;;  %5125 = vmatpush1.bf16.msra.mxu1 %v11801_v59  ;;  %v15782_v2 = vld [vmem:[#allocation28_spill] sm:$0xff] }
 0x4d1   : > { %v9903_v57 = vpack.c.bf16 %v3628_v45, %v3626_v33  ;;  %5126 = vmatprep.subr.bf16.mxu1 %v11806_v53  ;;  %v12328_v53 = vld [vmem:[%s12706_s25 + $0x98] ss:$24 sps:$4 sm:$0xff]   ;;  %v3112_v33 = vadd.f32 %v15782_v2, %v14012_v42 }
 0x4d2   : > { %v9901_v6 = vpack.c.bf16 %v3629_v54, %v3627_v31  ;;  %v3517_v28 = vpop.f32.mrb[48].mxu1  ;;  %v12329_v54 = vld [vmem:[%s12706_s25 + $0xcc] ss:$24 sps:$4 sm:$0xff]   ;;  %v15790_v2 = vld [vmem:[#allocation36_spill] sm:$0xff] }
 0x4d3   : > { %v10310_v9 = vadd.f32 %v3517_v28, %v3092_v14  ;;  %v3519_v24 = vpop.f32.mrb[49].mxu1  ;;  %v15783_v14 = vld [vmem:[#allocation29_spill] sm:$0xff] }
 0x4d4   : > { %v10312_v43 = vadd.f32 %v3519_v24, %v3094_v46  ;;  %v3521_v44 = vpop.f32.mrb[50].mxu1  ;;  %9902 = vmatprep.subr.bf16.mxu0 %v9901_v6  ;;  %5127 = vmatpush1.bf16.msra.mxu1 %v11804_v27  ;;  %v3114_v31 = vadd.f32 %v15783_v14, %v14017_v38  ;;  %v11816_v46 = vld [vmem:[%s15703_s2 + $0xc40] ss:$40 sps:$4 sm:$0xff]   ;;  %v15791_v14 = vld [vmem:[#allocation37_spill] sm:$0xff] }
 0x4d5   : > { %v10314_v5 = vadd.f32 %v3521_v44, %v3096_v4  ;;  %v3523_v29 = vpop.f32.mrb[51].mxu1  ;;  %9904 = vmatpush1.bf16.msra.mxu0 %v9903_v57  ;;  %5128 = vmatprep.subr.bf16.mxu1 %v11809_v7  ;;  %v3630_v8 = vmax.f32 %v10310_v9, 0.0  ;;  %v15784_v27 = vld [vmem:[#allocation30_spill] sm:$0xff]  ;;  %v15785_v6 = vld [vmem:[#allocation31_spill] sm:$0xff] }
 0x4d6   : > { %v10316_v48 = vadd.f32 %v3523_v29, %v3098_v1  ;;  %v3631_v16 = vmax.f32 %v10312_v43, 0.0  ;;  %v3116_v57 = vadd.f32 %v15784_v27, %v14012_v42  ;;  %v3118_v28 = vadd.f32 %v15785_v6, %v14017_v38  ;;  %v11819_v43 = vld [vmem:[%s15703_s2 + $0xc90] ss:$40 sps:$4 sm:$0xff]   ;;  %v15792_v27 = vld [vmem:[#allocation38_spill] sm:$0xff]  ;;  %v15793_v6 = vld [vmem:[#allocation39_spill] sm:$0xff] }
 0x4d7   : > { %v3632_v60 = vmax.f32 %v10314_v5, 0.0  ;;  %4960 = vmatmul.mubr.bf16.gmra.mrb[84].mxu1 %v12326_v21  ;;  %v11824_v5 = vld [vmem:[%s15703_s2 + $0xce4] ss:$40 sps:$4 sm:$0xff]  }
 0x4d8   : > { %v3633_v51 = vmax.f32 %v10316_v48, 0.0  ;;  %4969 = vmatprep.mubr.bf16.mxu1 %v12327_v36  ;;  %5129 = vmatpush1.bf16.msra.mxu1 %v11807_v55  ;;  %v12331_v36 = vld [vmem:[%s12706_s25 + $0xfc] ss:$24 sps:$4 sm:$0xff]  }
 0x4d9   : > { %v9907_v10 = vpack.c.bf16 %v3632_v60, %v3630_v8  ;;  %5130 = vmatprep.subr.bf16.mxu1 %v11812_v3  ;;  %v12330_v8 = vld [vmem:[%s12706_s25 + $0xc8] ss:$24 sps:$4 sm:$0xff]   ;;  %v15786_v60 = vld [vmem:[#allocation32_spill] sm:$0xff] }
 0x4da   : > { %v9905_v32 = vpack.c.bf16 %v3633_v51, %v3631_v16  ;;  %v3527_v17 = vpop.f32.mrb[52].mxu1  ;;  %v3122_v21 = vadd.f32 %v15786_v60, %v14012_v42  ;;  %v15787_v51 = vld [vmem:[#allocation33_spill] sm:$0xff]  ;;  %v15794_v60 = vld [vmem:[#allocation40_spill] sm:$0xff] }
 0x4db   : > { %v10318_v0 = vadd.f32 %v3527_v17, %v3102_v49  ;;  %v3529_v35 = vpop.f32.mrb[53].mxu1 }
 0x4dc   : > { %v10320_v23 = vadd.f32 %v3529_v35, %v3104_v30  ;;  %v3531_v18 = vpop.f32.mrb[54].mxu1  ;;  %9906 = vmatprep.subr.bf16.mxu0 %v9905_v32  ;;  %5131 = vmatpush1.bf16.msra.mxu1 %v11810_v34  ;;  %v3124_v30 = vadd.f32 %v15787_v51, %v14017_v38  ;;  %v11822_v34 = vld [vmem:[%s15703_s2 + $0xce0] ss:$40 sps:$4 sm:$0xff]   ;;  %v15795_v51 = vld [vmem:[#allocation41_spill] sm:$0xff] }
 0x4dd   : > { %v10322_v19 = vadd.f32 %v3531_v18, %v3106_v37  ;;  %v3533_v56 = vpop.f32.mrb[55].mxu1  ;;  %9908 = vmatpush1.bf16.msra.mxu0 %v9907_v10  ;;  %5132 = vmatprep.subr.bf16.mxu1 %v11815_v20  ;;  %v3634_v11 = vmax.f32 %v10318_v0, 0.0  ;;  %v3126_v37 = vadd.f32 %v15788_v15, %v14012_v42  ;;  %v11827_v20 = vld [vmem:[%s15703_s2 + $0xd34] ss:$40 sps:$4 sm:$0xff]   ;;  %v3146_v15 = vadd.f32 %v14035_v61, %v14012_v42  ;;  %v11837_v61 = vld [vmem:[%s15703_s2 + $0xe70] ss:$40 sps:$4 sm:$0xff]  }
 0x4de   : > { %v10324_v59 = vadd.f32 %v3533_v56, %v3108_v63  ;;  %v3635_v45 = vmax.f32 %v10320_v23, 0.0  ;;  %v3128_v63 = vadd.f32 %v15789_v25, %v14017_v38 }
 0x4df   : > { %v3636_v41 = vmax.f32 %v10322_v19, 0.0  ;;  %4970 = vmatmul.mubr.bf16.gmra.mrb[88].mxu1 %v12328_v53  ;;  %v12332_v53 = vld [vmem:[%s12706_s25 + $0xf8] ss:$24 sps:$4 sm:$0xff]  }
 0x4e0   : > { %v3637_v62 = vmax.f32 %v10324_v59, 0.0  ;;  %4979 = vmatprep.mubr.bf16.mxu1 %v12329_v54  ;;  %5133 = vmatpush1.bf16.msra.mxu1 %v11813_v40  ;;  %v11825_v40 = vld [vmem:[%s15703_s2 + $0xd30] ss:$40 sps:$4 sm:$0xff]   ;;  %v12333_v54 = vld [vmem:[%s12706_s25 + $0x12c] ss:$24 sps:$4 sm:$0xff]  }
 0x4e1   : > { %v9911_v58 = vpack.c.bf16 %v3636_v41, %v3634_v11  ;;  %5134 = vmatprep.subr.bf16.mxu1 %v11818_v50  ;;  %v11830_v50 = vld [vmem:[%s15703_s2 + $0xd84] ss:$40 sps:$4 sm:$0xff]  }
 0x4e2   : > { %v9909_v4 = vpack.c.bf16 %v3637_v62, %v3635_v45  ;;  %v3537_v7 = vpop.f32.mrb[56].mxu1 }
 0x4e3   : > { %v10326_v39 = vadd.f32 %v3537_v7, %v3112_v33  ;;  %v3539_v1 = vpop.f32.mrb[57].mxu1  ;;  %v3132_v33 = vadd.f32 %v15790_v2, %v14012_v42  ;;  %v14305_v2 = vld [vmem:[%s15702_s1] sm:$0xff] }
 0x4e4   : > { %v10328_v9 = vadd.f32 %v3539_v1, %v3114_v31  ;;  %v3541_v24 = vpop.f32.mrb[58].mxu1  ;;  %9910 = vmatprep.subr.bf16.mxu0 %v9909_v4  ;;  %5135 = vmatpush1.bf16.msra.mxu1 %v11816_v46  ;;  %v3134_v31 = vadd.f32 %v15791_v14, %v14017_v38  ;;  %v11828_v46 = vld [vmem:[%s15703_s2 + $0xd80] ss:$40 sps:$4 sm:$0xff]   ;;  %v15796_v14 = vmov 0.0  }
 0x4e5   : > { %v10330_v44 = vadd.f32 %v3541_v24, %v3116_v57  ;;  %v3543_v55 = vpop.f32.mrb[59].mxu1  ;;  %9912 = vmatpush1.bf16.msra.mxu0 %v9911_v58  ;;  %5136 = vmatprep.subr.bf16.mxu1 %v11821_v22  ;;  %v3638_v3 = vmax.f32 %v10326_v39, 0.0  ;;  %v3136_v57 = vadd.f32 %v15792_v27, %v14012_v42  ;;  %v11833_v22 = vld [vmem:[%s15703_s2 + $0xdd4] ss:$40 sps:$4 sm:$0xff]  }
 0x4e6   : > { %v10332_v29 = vadd.f32 %v3543_v55, %v3118_v28  ;;  %v3639_v49 = vmax.f32 %v10328_v9, 0.0  ;;  %v3138_v28 = vadd.f32 %v15793_v6, %v14017_v38  ;;  %v12339_v6 = vld [vmem:[%s12706_s25 + $0x188] ss:$24 sps:$4 sm:$0xff]  }
 0x4e7   : > { %v3640_v48 = vmax.f32 %v10330_v44, 0.0  ;;  %4980 = vmatmul.mubr.bf16.gmra.mrb[92].mxu1 %v12330_v8  ;;  %v12334_v8 = vld [vmem:[%s12706_s25 + $0x128] ss:$24 sps:$4 sm:$0xff]  }
 0x4e8   : > { %v3641_v16 = vmax.f32 %v10332_v29, 0.0  ;;  %4989 = vmatprep.mubr.bf16.mxu1 %v12331_v36  ;;  %5137 = vmatpush1.bf16.msra.mxu1 %v11819_v43  ;;  %v11831_v43 = vld [vmem:[%s15703_s2 + $0xdd0] ss:$40 sps:$4 sm:$0xff]   ;;  %v12335_v36 = vld [vmem:[%s12706_s25 + $0x15c] ss:$24 sps:$4 sm:$0xff]  }
 0x4e9   : > { %v9915_v10 = vpack.c.bf16 %v3640_v48, %v3638_v3  ;;  %5138 = vmatprep.subr.bf16.mxu1 %v11824_v5  ;;  %v11836_v5 = vld [vmem:[%s15703_s2 + $0xe24] ss:$40 sps:$4 sm:$0xff]  }
 0x4ea   : > { %v9913_v32 = vpack.c.bf16 %v3641_v16, %v3639_v49  ;;  %v3547_v17 = vpop.f32.mrb[60].mxu1 }
 0x4eb   : > { %v10334_v0 = vadd.f32 %v3547_v17, %v3122_v21  ;;  %v3549_v35 = vpop.f32.mrb[61].mxu1  ;;  %v3142_v21 = vadd.f32 %v15794_v60, %v14012_v42  ;;  %v3148_v17 = vadd.f32 %v14037_v47, %v14017_v38  ;;  %v11842_v47 = vld [vmem:[%s15703_s2 + $0xec4] ss:$40 sps:$4 sm:$0xff]  }
 0x4ec   : > { %v10336_v23 = vadd.f32 %v3549_v35, %v3124_v30  ;;  %v3551_v18 = vpop.f32.mrb[62].mxu1  ;;  %9914 = vmatprep.subr.bf16.mxu0 %v9913_v32  ;;  %5139 = vmatpush1.bf16.msra.mxu1 %v11822_v34  ;;  %v3144_v30 = vadd.f32 %v15795_v51, %v14017_v38  ;;  %v11834_v34 = vld [vmem:[%s15703_s2 + $0xe20] ss:$40 sps:$4 sm:$0xff]   ;;  %v12351_v60 = vld [vmem:[%s12706_s25 + $0x2ac] ss:$24 sps:$4 sm:$0xff]  }
 0x4ed   : > { %v10338_v19 = vadd.f32 %v3551_v18, %v3126_v37  ;;  %v3553_v56 = vpop.f32.mrb[63].mxu1  ;;  %9916 = vmatpush1.bf16.msra.mxu0 %v9915_v10  ;;  %5140 = vmatprep.subr.bf16.mxu1 %v11827_v20  ;;  %v3642_v11 = vmax.f32 %v10334_v0, 0.0  ;;  %v11839_v37 = vld [vmem:[%s15703_s2 + $0xe74] ss:$40 sps:$4 sm:$0xff]   ;;  %v12355_v51 = vld [vmem:[%s12706_s25 + $0x30c] ss:$24 sps:$4 sm:$0xff]  }
 0x4ee   : > { %v10340_v59 = vadd.f32 %v3553_v56, %v3128_v63  ;;  %v3643_v45 = vmax.f32 %v10336_v23, 0.0 }
 0x4ef   : > { %v3644_v41 = vmax.f32 %v10338_v19, 0.0  ;;  %4990 = vmatmul.mubr.bf16.gmra.mrb[96].mxu1 %v12332_v53  ;;  %v3154_v53 = vadd.f32 %v14051_v26, %v14017_v38 }
 0x4f0   : > { %v3645_v62 = vmax.f32 %v10340_v59, 0.0  ;;  %4999 = vmatprep.mubr.bf16.mxu1 %v12333_v54  ;;  %5141 = vmatpush1.bf16.msra.mxu1 %v11825_v40  ;;  %v3152_v59 = vadd.f32 %v14047_v12, %v14012_v42  ;;  %v11840_v12 = vld [vmem:[%s15703_s2 + $0xec0] ss:$40 sps:$4 sm:$0xff]   ;;  %v3158_v54 = vadd.f32 %v14055_v52, %v14017_v38 }
 0x4f1   : > { %v9919_v58 = vpack.c.bf16 %v3644_v41, %v3642_v11  ;;  %5142 = vmatprep.subr.bf16.mxu1 %v11830_v50  ;;  %v12336_v50 = vld [vmem:[%s12706_s25 + $0x158] ss:$24 sps:$4 sm:$0xff]  }
 0x4f2   : > { %v9917_v4 = vpack.c.bf16 %v3645_v62, %v3643_v45  ;;  %v3557_v7 = vpop.f32.mrb[64].mxu1  ;;  %v3156_v62 = vadd.f32 %v14053_v13, %v14012_v42 }
 0x4f3   : > { %v10342_v39 = vadd.f32 %v3557_v7, %v3132_v33  ;;  %v3559_v1 = vpop.f32.mrb[65].mxu1  ;;  %v12338_v33 = vld [vmem:[%s12706_s25 + $0x18c] ss:$24 sps:$4 sm:$0xff]  }
 0x4f4   : > { %v10344_v9 = vadd.f32 %v3559_v1, %v3134_v31  ;;  %v3561_v24 = vpop.f32.mrb[66].mxu1  ;;  %9918 = vmatprep.subr.bf16.mxu0 %v9917_v4  ;;  %5143 = vmatpush1.bf16.msra.mxu1 %v11828_v46 }
 0x4f5   : > { %v10346_v44 = vadd.f32 %v3561_v24, %v3136_v57  ;;  %v3563_v55 = vpop.f32.mrb[67].mxu1  ;;  %9920 = vmatpush1.bf16.msra.mxu0 %v9919_v58  ;;  %5144 = vmatprep.subr.bf16.mxu1 %v11833_v22  ;;  %v3646_v3 = vmax.f32 %v10342_v39, 0.0  ;;  %v14323_v24 = vld [vmem:[%s15702_s1 + $0x10] sm:$0xff] }
 0x4f6   : > { %v10348_v29 = vadd.f32 %v3563_v55, %v3138_v28  ;;  %v3647_v49 = vmax.f32 %v10344_v9, 0.0  ;;  %v12340_v28 = vld [vmem:[%s12706_s25 + $0x1bc] ss:$24 sps:$4 sm:$0xff]   ;;  %v12341_v9 = vld [vmem:[%s12706_s25 + $0x1b8] ss:$24 sps:$4 sm:$0xff]  }
 0x4f7   : > { %v3648_v48 = vmax.f32 %v10346_v44, 0.0  ;;  %5000 = vmatmul.mubr.bf16.gmra.mrb[100].mxu1 %v12334_v8  ;;  %v12344_v44 = vld [vmem:[%s12706_s25 + $0x1e8] ss:$24 sps:$4 sm:$0xff]   ;;  %v12345_v55 = vld [vmem:[%s12706_s25 + $0x21c] ss:$24 sps:$4 sm:$0xff]  }
 0x4f8   : > { %v3649_v16 = vmax.f32 %v10348_v29, 0.0  ;;  %5009 = vmatprep.mubr.bf16.mxu1 %v12335_v36  ;;  %5145 = vmatpush1.bf16.msra.mxu1 %v11831_v43  ;;  %v12343_v43 = vld [vmem:[%s12706_s25 + $0x1ec] ss:$24 sps:$4 sm:$0xff]   ;;  %v12350_v8 = vld [vmem:[%s12706_s25 + $0x278] ss:$24 sps:$4 sm:$0xff]  }
 0x4f9   : > { %v9923_v10 = vpack.c.bf16 %v3648_v48, %v3646_v3  ;;  %5146 = vmatprep.subr.bf16.mxu1 %v11836_v5  ;;  %v12346_v5 = vld [vmem:[%s12706_s25 + $0x218] ss:$24 sps:$4 sm:$0xff]   ;;  %v12347_v29 = vld [vmem:[%s12706_s25 + $0x24c] ss:$24 sps:$4 sm:$0xff]   ;;  %v12348_v3 = vld [vmem:[%s12706_s25 + $0x248] ss:$24 sps:$4 sm:$0xff]  }
 0x4fa   : > { %v9921_v20 = vpack.c.bf16 %v3649_v16, %v3647_v49  ;;  %v3567_v32 = vpop.f32.mrb[68].mxu1  ;;  %v12349_v48 = vld [vmem:[%s12706_s25 + $0x27c] ss:$24 sps:$4 sm:$0xff]   ;;  %v12354_v16 = vld [vmem:[%s12706_s25 + $0x2d8] ss:$24 sps:$4 sm:$0xff]   ;;  %v11844_v36 = vld [vmem:[%s15705_s4 + $0x80] sm:$0xff]  }
 0x4fb   : > { %v10350_v25 = vadd.f32 %v3567_v32, %v3142_v21  ;;  %v3569_v63 = vpop.f32.mrb[69].mxu1  ;;  %v12352_v21 = vld [vmem:[%s12706_s25 + $0x2a8] ss:$24 sps:$4 sm:$0xff]   ;;  %v12353_v49 = vld [vmem:[%s12706_s25 + $0x2dc] ss:$24 sps:$4 sm:$0xff]  }
 0x4fc   : > { %v10352_v0 = vadd.f32 %v3569_v63, %v3144_v30  ;;  %v3571_v35 = vpop.f32.mrb[70].mxu1  ;;  %9922 = vmatprep.subr.bf16.mxu0 %v9921_v20  ;;  %5147 = vmatpush1.bf16.msra.mxu1 %v11834_v34  ;;  %v11843_v30 = vld [vmem:[%s15705_s4 + $0xc0] sm:$0xff]   ;;  %v11847_v20 = vld [vmem:[%s15705_s4 + $0xd0] sm:$0xff]  }
 0x4fd   : > { %v10354_v23 = vadd.f32 %v3571_v35, %v3146_v15  ;;  %v3573_v18 = vpop.f32.mrb[71].mxu1  ;;  %9924 = vmatpush1.bf16.msra.mxu0 %v9923_v10  ;;  %5148 = vmatprep.subr.bf16.mxu1 %v11839_v37  ;;  %v3650_v19 = vmax.f32 %v10350_v25, 0.0  ;;  %v12356_v34 = vld [vmem:[%s12706_s25 + $0x308] ss:$24 sps:$4 sm:$0xff]   ;;  %v12357_v15 = vld [vmem:[%s12706_s25 + $0x33c] ss:$24 sps:$4 sm:$0xff]  }
 0x4fe   : > { %v10356_v40 = vadd.f32 %v3573_v18, %v3148_v17  ;;  %v3651_v11 = vmax.f32 %v10352_v0, 0.0  ;;  %v11845_v10 = vld [vmem:[%s15705_s4 + $0xc8] sm:$0xff]   ;;  %v11848_v32 = vld [vmem:[%s15705_s4 + $0x90] sm:$0xff]   ;;  %v11849_v25 = vld [vmem:[%s15705_s4 + $0xd8] sm:$0xff]  }
 0x4ff   : > { %v3652_v56 = vmax.f32 %v10354_v23, 0.0  ;;  %5010 = vmatmul.mubr.bf16.gmra.mrb[104].mxu1 %v12336_v50  ;;  %v11846_v37 = vld [vmem:[%s15705_s4 + $0x88] sm:$0xff]   ;;  %v12358_v17 = vld [vmem:[%s12706_s25 + $0x338] ss:$24 sps:$4 sm:$0xff]   ;;  %v11851_v35 = vld [vmem:[%s15705_s4 + $0xe0] sm:$0xff]  }
 0x500   : > { %v3653_v41 = vmax.f32 %v10356_v40, 0.0  ;;  %3723 = vmatmul.mubr.f32.vlgmr.msra.gmra.mrb[144].mxu0 %v14305_v2  ;;  %5019 = vmatprep.mubr.bf16.mxu1 %v12338_v33  ;;  %v12359_v63 = vld [vmem:[%s12706_s25 + $0x14] ss:$24 sps:$4 sm:$0xff]   ;;  %v11850_v0 = vld [vmem:[%s15705_s4 + $0x98] sm:$0xff]   ;;  %v11852_v23 = vld [vmem:[%s15705_s4 + $0xa0] sm:$0xff]  }
 0x501   : > { %v9927_v45 = vpack.c.bf16 %v3652_v56, %v3650_v19  ;;  %3793 = vmatprep.mubr.f32.mxu0 %v15796_v14  ;;  %5149 = vmatpush1.bf16.msra.mxu1 %v11837_v61  ;;  %v12360_v18 = vld [vmem:[%s12706_s25 + $0x10] ss:$24 sps:$4 sm:$0xff]   ;;  %v12361_v40 = vld [vmem:[%s12706_s25 + $0x44] ss:$24 sps:$4 sm:$0xff]   ;;  %v12362_v50 = vld [vmem:[%s12706_s25 + $0x40] ss:$24 sps:$4 sm:$0xff]  }
 0x502   : > { %v9925_v26 = vpack.c.bf16 %v3653_v41, %v3651_v11  ;;  %v3577_v31 = vpop.f32.mrb[72].mxu1  ;;  %5150 = vmatprep.subr.bf16.mxu1 %v11842_v47  ;;  %v11853_v61 = vld [vmem:[%s15705_s4 + $0xe8] sm:$0xff]   ;;  %v11855_v19 = vld [vmem:[%s15705_s4 + $0xf0] sm:$0xff]   ;;  %v11857_v11 = vld [vmem:[%s15705_s4 + $0xf8] sm:$0xff]  }
 0x503   : > { %v10358_v46 = vadd.f32 %v3577_v31, %v3152_v59  ;;  %v3579_v58 = vpop.f32.mrb[73].mxu1  ;;  %v11854_v47 = vld [vmem:[%s15705_s4 + $0xa8] sm:$0xff]   ;;  %v11856_v56 = vld [vmem:[%s15705_s4 + $0xb0] sm:$0xff]   ;;  %v11858_v41 = vld [vmem:[%s15705_s4 + $0xb8] sm:$0xff]  }
 0x504   : > { %v10360_v27 = vadd.f32 %v3579_v58, %v3154_v53  ;;  %v3581_v57 = vpop.f32.mrb[74].mxu1  ;;  %9926 = vmatprep.subr.bf16.mxu0 %v9925_v26  ;;  %v12363_v59 = vld [vmem:[%s12706_s25 + $0x74] ss:$24 sps:$4 sm:$0xff]   ;;  %v11859_v53 = vld [vmem:[%s15705_s4 + $0x40] sm:$0xff]   ;;  %v12364_v33 = vld [vmem:[%s12706_s25 + $0x70] ss:$24 sps:$4 sm:$0xff]  }
 0x505   : > { %v10362_v42 = vadd.f32 %v3581_v57, %v3156_v62  ;;  %v3583_v13 = vpop.f32.mrb[75].mxu1  ;;  %9928 = vmatpush1.bf16.msra.mxu0 %v9927_v45  ;;  %5151 = vmatpush1.bf16.msra.mxu1 %v11840_v12  ;;  %v3654_v4 = vmax.f32 %v10358_v46, 0.0  ;;  %v12365_v45 = vld [vmem:[%s12706_s25 + $0xa4] ss:$24 sps:$4 sm:$0xff]   ;;  %v12366_v62 = vld [vmem:[%s12706_s25 + $0xa0] ss:$24 sps:$4 sm:$0xff]  }
 0x506   : > { %v10364_v22 = vadd.f32 %v3583_v13, %v3158_v54  ;;  %v3655_v38 = vmax.f32 %v10360_v27, 0.0  ;;  %v12367_v12 = vld [vmem:[%s12706_s25 + $0xd4] ss:$24 sps:$4 sm:$0xff]   ;;  %v12368_v26 = vld [vmem:[%s12706_s25 + $0xd0] ss:$24 sps:$4 sm:$0xff]  }
 0x507   : > { %v3656_v7 = vmax.f32 %v10362_v42, 0.0  ;;  %5020 = vmatmul.mubr.bf16.gmra.mrb[108].mxu1 %v12339_v6  ;;  %v12369_v31 = vld [vmem:[%s12706_s25 + $0x104] ss:$24 sps:$4 sm:$0xff]   ;;  %v12370_v54 = vld [vmem:[%s12706_s25 + $0x100] ss:$24 sps:$4 sm:$0xff]  }
 0x508   : > { %v3657_v52 = vmax.f32 %v10364_v22, 0.0  ;;  %5029 = vmatprep.mubr.bf16.mxu1 %v12340_v28  ;;  %v12371_v46 = vld [vmem:[%s12706_s25 + $0x134] ss:$24 sps:$4 sm:$0xff]   ;;  %v12372_v58 = vld [vmem:[%s12706_s25 + $0x130] ss:$24 sps:$4 sm:$0xff]  }
 0x509   : > { %v9931_v39 = vpack.c.bf16 %v3656_v7, %v3654_v4  ;;  %v12373_v27 = vld [vmem:[%s12706_s25 + $0x164] ss:$24 sps:$4 sm:$0xff]   ;;  %v12374_v57 = vld [vmem:[%s12706_s25 + $0x160] ss:$24 sps:$4 sm:$0xff]   ;;  %v12375_v42 = vld [vmem:[%s12706_s25 + $0x194] ss:$24 sps:$4 sm:$0xff]  }
 0x50a   : > { %v9929_v1 = vpack.c.bf16 %v3657_v52, %v3655_v38  ;;  %v12376_v13 = vld [vmem:[%s12706_s25 + $0x190] ss:$24 sps:$4 sm:$0xff]   ;;  %v12377_v22 = vld [vmem:[%s12706_s25 + $0x1c4] ss:$24 sps:$4 sm:$0xff]   ;;  %v12378_v4 = vld [vmem:[%s12706_s25 + $0x1c0] ss:$24 sps:$4 sm:$0xff]  }
 0x50b   : > { %v12379_v7 = vld [vmem:[%s12706_s25 + $0x1f4] ss:$24 sps:$4 sm:$0xff]   ;;  %v12380_v6 = vld [vmem:[%s12706_s25 + $0x1f0] ss:$24 sps:$4 sm:$0xff]   ;;  %v12381_v38 = vld [vmem:[%s12706_s25 + $0x224] ss:$24 sps:$4 sm:$0xff]  }
 0x50c   : > { %9930 = vmatprep.subr.bf16.mxu0 %v9929_v1  ;;  %v12382_v52 = vld [vmem:[%s12706_s25 + $0x220] ss:$24 sps:$4 sm:$0xff]   ;;  %v12383_v28 = vld [vmem:[%s12706_s25 + $0x254] ss:$24 sps:$4 sm:$0xff]   ;;  %v12385_v1 = vld [vmem:[%s12706_s25 + $0x284] ss:$24 sps:$4 sm:$0xff]  }
 0x50d   : > { %9932 = vmatpush1.bf16.msra.mxu0 %v9931_v39  ;;  %v12384_v39 = vld [vmem:[%s12706_s25 + $0x250] ss:$24 sps:$4 sm:$0xff]  }
 0x50e   : > { %9679 = vmatprep.subr.bf16.mxu0 %v11843_v30  ;;  %v11860_v30 = vld [vmem:[%s15705_s4] sm:$0xff]  }
 0x50f   : > { %5030 = vmatmul.mubr.bf16.gmra.mrb[112].mxu1 %v12341_v9  ;;  %v12386_v9 = vld [vmem:[%s12706_s25 + $0x280] ss:$24 sps:$4 sm:$0xff]  }
 0x510   : > { %9305 = vmatmul.mubr.msk.f32.vlgmr.msra.gmra.mrb[144].mxu0 %vm2179_vm0, %v14323_v24  ;;  %5039 = vmatprep.mubr.bf16.mxu1 %v12343_v43  ;;  %v12387_v43 = vld [vmem:[%s12706_s25 + $0x2b4] ss:$24 sps:$4 sm:$0xff]  }
 0x511   : > { %9680 = vmatpush3.bf16.msra.mxu0 %v11844_v36  ;;  %v11861_v36 = vld [vmem:[%s15705_s4 + $0x48] sm:$0xff]  }
 0x512   : > { %9681 = vmatprep.subr.bf16.mxu0 %v11845_v10 }
 0x515   : > { %9682 = vmatpush3.bf16.msra.mxu0 %v11846_v37  ;;  %v11863_v37 = vld [vmem:[%s15705_s4 + $0x50] sm:$0xff]  }
 0x516   : > { %9683 = vmatprep.subr.bf16.mxu0 %v11847_v20  ;;  %v11864_v20 = vld [vmem:[%s15705_s4 + $0x10] sm:$0xff]  }
 0x517   : > { %5040 = vmatmul.mubr.bf16.gmra.mrb[116].mxu1 %v12344_v44  ;;  %v12388_v44 = vld [vmem:[%s12706_s25 + $0x2b0] ss:$24 sps:$4 sm:$0xff]  }
 0x518   : > { %5049 = vmatprep.mubr.bf16.mxu1 %v12345_v55  ;;  %v12389_v55 = vld [vmem:[%s12706_s25 + $0x2e4] ss:$24 sps:$4 sm:$0xff]  }
 0x519   : > { %9684 = vmatpush3.bf16.msra.mxu0 %v11848_v32  ;;  %v11865_v32 = vld [vmem:[%s15705_s4 + $0x58] sm:$0xff]  }
 0x51a   : > { %9685 = vmatprep.subr.bf16.mxu0 %v11849_v25  ;;  %v11867_v25 = vld [vmem:[%s15705_s4 + $0x60] sm:$0xff]  }
 0x51d   : > { %9686 = vmatpush3.bf16.msra.mxu0 %v11850_v0  ;;  %v11869_v0 = vld [vmem:[%s15705_s4 + $0x68] sm:$0xff]  }
 0x51e   : > { %9687 = vmatprep.subr.bf16.mxu0 %v11851_v35  ;;  %v11870_v35 = vld [vmem:[%s15705_s4 + $0x28] sm:$0xff]  }
 0x51f   : > { %5050 = vmatmul.mubr.bf16.gmra.mrb[120].mxu1 %v12346_v5  ;;  %v12390_v5 = vld [vmem:[%s12706_s25 + $0x2e0] ss:$24 sps:$4 sm:$0xff]  }
 0x520   : > { %5059 = vmatprep.mubr.bf16.mxu1 %v12347_v29  ;;  %v12391_v29 = vld [vmem:[%s12706_s25 + $0x314] ss:$24 sps:$4 sm:$0xff]  }
 0x521   : > { %9688 = vmatpush3.bf16.msra.mxu0 %v11852_v23  ;;  %v11871_v23 = vld [vmem:[%s15705_s4 + $0x70] sm:$0xff]  }
 0x522   : > { %9689 = vmatprep.subr.bf16.mxu0 %v11853_v61  ;;  %v11873_v61 = vld [vmem:[%s15705_s4 + $0x78] sm:$0xff]  }
 0x525   : > { %9690 = vmatpush3.bf16.msra.mxu0 %v11854_v47  ;;  %v15798_v47 = vld [vmem:[#allocation10_spill] sm:$0xff] }
 0x526   : > { %9691 = vmatprep.subr.bf16.mxu0 %v11855_v19  ;;  %v2325_v19 = vpack.c.bf16 %v15798_v47, %v15798_v47 }
 0x527   : > { %5060 = vmatmul.mubr.bf16.gmra.mrb[124].mxu1 %v12348_v3  ;;  %v12392_v3 = vld [vmem:[%s12706_s25 + $0x310] ss:$24 sps:$4 sm:$0xff]  }
 0x528   : > { %5069 = vmatprep.mubr.bf16.mxu1 %v12349_v48  ;;  %v12393_v48 = vld [vmem:[%s12706_s25 + $0x344] ss:$24 sps:$4 sm:$0xff]  }
 0x529   : > { %9692 = vmatpush3.bf16.msra.mxu0 %v11856_v56  ;;  %v4202_v56 = vld [vmem:[%s15704_s3 + $0x4] sm:$0x3] }
 0x52a   : > { %9693 = vmatprep.subr.bf16.mxu0 %v11857_v11  ;;  %v15800_v11 = vld [vmem:[#allocation3_spill] sm:$0xff] }
 0x52d   : > { %9694 = vmatpush3.bf16.msra.mxu0 %v11858_v41  ;;  %v14489_v41 = vrot.slane %v4202_v56, %v15800_v11 }
 0x52e   : > { %9701 = vmatprep.subr.bf16.mxu0 %v11859_v53 }
 0x52f   : > { %5070 = vmatmul.mubr.bf16.gmra.mrb[128].mxu1 %v12350_v8  ;;  %v12394_v8 = vld [vmem:[%s12706_s25 + $0x340] ss:$24 sps:$4 sm:$0xff]  }
 0x530   : > { %5079 = vmatprep.mubr.bf16.mxu1 %v12351_v60  ;;  %v12395_v60 = vld [vmem:[%s15702_s1 + $0x8] sm:$0xff] }
 0x537   : > { %5080 = vmatmul.mubr.bf16.gmra.mrb[132].mxu1 %v12352_v21 }
 0x538   : > { %5089 = vmatprep.mubr.bf16.mxu1 %v12353_v49 }
 0x53f   : > { %5090 = vmatmul.mubr.bf16.gmra.mrb[136].mxu1 %v12354_v16 }
 0x540   : > { %5099 = vmatprep.mubr.bf16.mxu1 %v12355_v51 }
 0x547   : > { %5100 = vmatmul.mubr.bf16.gmra.mrb[140].mxu1 %v12356_v34  ;;  %v15797_v34 = vld [vmem:[#allocation11_spill] sm:$0xff] }
 0x548   : > { %5109 = vmatprep.mubr.bf16.mxu1 %v12357_v15  ;;  %v2326_v10 = vpack.c.bf16 %v15797_v34, %v15797_v34  ;;  %v11862_v15 = vld [vmem:[%s15705_s4 + $0x8] sm:$0xff]  }
 0x54f   : > { %5110 = vmatmul.mubr.bf16.gmra.mrb[144].mxu1 %v12358_v17  ;;  %v11866_v17 = vld [vmem:[%s15705_s4 + $0x18] sm:$0xff]  }
 0x550   : > { %5152 = vmatprep.mubr.bf16.mxu1 %v12359_v63  ;;  %v11868_v63 = vld [vmem:[%s15705_s4 + $0x20] sm:$0xff]  }
 0x557   : > { %5153 = vmatmul.mubr.bf16.vlgmr.msra.gmra.mrb[76].mxu1 %v12360_v18  ;;  %v11872_v18 = vld [vmem:[%s15705_s4 + $0x30] sm:$0xff]  }
 0x558   : > { %5162 = vmatprep.mubr.bf16.mxu1 %v12361_v40  ;;  %v11874_v40 = vld [vmem:[%s15705_s4 + $0x38] sm:$0xff]  }
 0x55f   : > { %5163 = vmatmul.mubr.bf16.gmra.mrb[80].mxu1 %v12362_v50  ;;  %v15799_v50 = vld [vmem:[#allocation2_spill] sm:$0xff] }
 0x560   : > { %5172 = vmatprep.mubr.bf16.mxu1 %v12363_v59  ;;  %v14486_v59 = vrot.slane %v4202_v56, %v15799_v50 }
 0x567   : > { %5173 = vmatmul.mubr.bf16.gmra.mrb[84].mxu1 %v12364_v33 }
 0x568   : > { %5182 = vmatprep.mubr.bf16.mxu1 %v12365_v45 }
 0x56f   : > { %5183 = vmatmul.mubr.bf16.gmra.mrb[88].mxu1 %v12366_v62 }
 0x570   : > { %5192 = vmatprep.mubr.bf16.mxu1 %v12367_v12 }
 0x577   : > { %5193 = vmatmul.mubr.bf16.gmra.mrb[92].mxu1 %v12368_v26 }
 0x578   : > { %5202 = vmatprep.mubr.bf16.mxu1 %v12369_v31 }
 0x57f   : > { %5203 = vmatmul.mubr.bf16.gmra.mrb[96].mxu1 %v12370_v54 }
 0x580   : > { %5212 = vmatprep.mubr.bf16.mxu1 %v12371_v46 }
 0x587   : > { %5213 = vmatmul.mubr.bf16.gmra.mrb[100].mxu1 %v12372_v58 }
 0x588   : > { %5222 = vmatprep.mubr.bf16.mxu1 %v12373_v27 }
 0x58f   : > { %5223 = vmatmul.mubr.bf16.gmra.mrb[104].mxu1 %v12374_v57 }
 0x590   : > { %5232 = vmatprep.mubr.bf16.mxu1 %v12375_v42 }
 0x597   : > { %5233 = vmatmul.mubr.bf16.gmra.mrb[108].mxu1 %v12376_v13 }
 0x598   : > { %5242 = vmatprep.mubr.bf16.mxu1 %v12377_v22 }
 0x59f   : > { %5243 = vmatmul.mubr.bf16.gmra.mrb[112].mxu1 %v12378_v4 }
 0x5a0   : > { %5252 = vmatprep.mubr.bf16.mxu1 %v12379_v7 }
 0x5a7   : > { %5253 = vmatmul.mubr.bf16.gmra.mrb[116].mxu1 %v12380_v6 }
 0x5a8   : > { %5262 = vmatprep.mubr.bf16.mxu1 %v12381_v38 }
 0x5af   : > { %5263 = vmatmul.mubr.bf16.gmra.mrb[120].mxu1 %v12382_v52 }
 0x5b0   : > { %5272 = vmatprep.mubr.bf16.mxu1 %v12383_v28 }
 0x5b7   : > { %5273 = vmatmul.mubr.bf16.gmra.mrb[124].mxu1 %v12384_v39 }
 0x5b8   : > { %5282 = vmatprep.mubr.bf16.mxu1 %v12385_v1 }
 0x5bf   : > { %5283 = vmatmul.mubr.bf16.gmra.mrb[128].mxu1 %v12386_v9 }
 0x5c0   : > { %5292 = vmatprep.mubr.bf16.mxu1 %v12387_v43 }
 0x5c7   : > { %5293 = vmatmul.mubr.bf16.gmra.mrb[132].mxu1 %v12388_v44 }
 0x5c8   : > { %5302 = vmatprep.mubr.bf16.mxu1 %v12389_v55 }
 0x5cf   : > { %5303 = vmatmul.mubr.bf16.gmra.mrb[136].mxu1 %v12390_v5 }
 0x5d0   : > { %5312 = vmatprep.mubr.bf16.mxu1 %v12391_v29 }
 0x5d7   : > { %5313 = vmatmul.mubr.bf16.gmra.mrb[140].mxu1 %v12392_v3 }
 0x5d8   : > { %5322 = vmatprep.mubr.bf16.mxu1 %v12393_v48 }
 0x5df   : > { %5323 = vmatmul.mubr.bf16.gmra.mrb[144].mxu1 %v12394_v8 }
 0x5e0   : > { %7081 = vmatprep.mubr.f32.mxu1 %v12395_v60 }
 0x5e3   : > { %v3795_v21 = vpop.f32.mrb[144].mxu0 }
 0x5e4   : > { %v3800_v49 = vpack.c.bf16 %v3795_v21, %v3795_v21  ;;  %v3797_v16 = vpop.f32.mrb[145].mxu0 }
 0x5e5   : > { %v3801_v51 = vpack.c.bf16 %v3797_v16, %v3797_v16 }
 0x5e7   : > { %3962 = vmatprep.mubr.bf16.mxu0 %v3801_v51 }
 0x5e8   : > { %3963 = vmatmul.mubr.bf16.vlgmr.msra.gmra.mrb[148].mxu0 %v3800_v49 }
 0x5e9   : > { %9702 = vmatpush3.bf16.msra.mxu0 %v11860_v30  ;;  %4098 = vmatprep.mubr.bf16.mxu0 %v2326_v10 }
 0x5ea   : > { %9703 = vmatprep.subr.bf16.mxu0 %v11861_v36 }
 0x5ed   : > { %9704 = vmatpush3.bf16.msra.mxu0 %v11862_v15 }
 0x5ee   : > { %9705 = vmatprep.subr.bf16.mxu0 %v11863_v37 }
 0x5f1   : > { %9706 = vmatpush3.bf16.msra.mxu0 %v11864_v20 }
 0x5f2   : > { %9707 = vmatprep.subr.bf16.mxu0 %v11865_v32 }
 0x5f5   : > { %9708 = vmatpush3.bf16.msra.mxu0 %v11866_v17 }
 0x5f6   : > { %9709 = vmatprep.subr.bf16.mxu0 %v11867_v25 }
 0x5f9   : > { %9710 = vmatpush3.bf16.msra.mxu0 %v11868_v63 }
 0x5fa   : > { %9711 = vmatprep.subr.bf16.mxu0 %v11869_v0 }
 0x5fd   : > { %9712 = vmatpush3.bf16.msra.mxu0 %v11870_v35 }
 0x5fe   : > { %9713 = vmatprep.subr.bf16.mxu0 %v11871_v23 }
 0x601   : > { %9714 = vmatpush3.bf16.msra.mxu0 %v11872_v18 }
 0x602   : > { %9715 = vmatprep.subr.bf16.mxu0 %v11873_v61 }
 0x605   : > { %9716 = vmatpush3.bf16.msra.mxu0 %v11874_v40 }
 0x608   : > { %4099 = vmatmul.mubr.bf16.vlgmr.msra.gmra.mrb[152].mxu0 %v2325_v19 }
 0x609   : > { %5469 = vmatprep.mubr.f32.mxu0 %v12395_v60 }
 0x62a   : > { %v5154_v53 = vpop.f32.mrb[76].mxu1 }
 0x62b   : > { %v10365_v33 = vadd.f32 %v5154_v53, %v14486_v59  ;;  %v5156_v45 = vpop.f32.mrb[77].mxu1 }
 0x62c   : > { %v10366_v62 = vadd.f32 %v5156_v45, %v14489_v41  ;;  %v5158_v12 = vpop.f32.mrb[78].mxu1 }
 0x62d   : > { %v10367_v26 = vadd.f32 %v5158_v12, %v14486_v59  ;;  %v5160_v31 = vpop.f32.mrb[79].mxu1  ;;  %v5333_v46 = vmax.f32 %v10365_v33, 0.0 }
 0x62e   : > { %v10368_v54 = vadd.f32 %v5160_v31, %v14489_v41  ;;  %v5334_v27 = vmax.f32 %v10366_v62, 0.0 }
 0x62f   : > { %v5335_v58 = vmax.f32 %v10367_v26, 0.0 }
 0x630   : > { %v5336_v57 = vmax.f32 %v10368_v54, 0.0 }
 0x631   : > { %v9935_v42 = vpack.c.bf16 %v5335_v58, %v5333_v46 }
 0x632   : > { %v9933_v13 = vpack.c.bf16 %v5336_v57, %v5334_v27  ;;  %v5164_v22 = vpop.f32.mrb[80].mxu1 }
 0x633   : > { %v10369_v4 = vadd.f32 %v5164_v22, %v14486_v59  ;;  %v5166_v7 = vpop.f32.mrb[81].mxu1 }
 0x634   : > { %v10370_v6 = vadd.f32 %v5166_v7, %v14489_v41  ;;  %v5168_v38 = vpop.f32.mrb[82].mxu1  ;;  %9934 = vmatprep.subr.bf16.mxu0 %v9933_v13 }
 0x635   : > { %v10371_v52 = vadd.f32 %v5168_v38, %v14486_v59  ;;  %v5170_v28 = vpop.f32.mrb[83].mxu1  ;;  %9936 = vmatpush1.bf16.msra.mxu0 %v9935_v42  ;;  %v5337_v1 = vmax.f32 %v10369_v4, 0.0 }
 0x636   : > { %v10372_v39 = vadd.f32 %v5170_v28, %v14489_v41  ;;  %v5338_v43 = vmax.f32 %v10370_v6, 0.0 }
 0x637   : > { %v5339_v9 = vmax.f32 %v10371_v52, 0.0 }
 0x638   : > { %v5340_v44 = vmax.f32 %v10372_v39, 0.0 }
 0x639   : > { %v9939_v55 = vpack.c.bf16 %v5339_v9, %v5337_v1 }
 0x63a   : > { %v9937_v5 = vpack.c.bf16 %v5340_v44, %v5338_v43  ;;  %v5174_v29 = vpop.f32.mrb[84].mxu1 }
 0x63b   : > { %v10373_v3 = vadd.f32 %v5174_v29, %v14486_v59  ;;  %v5176_v48 = vpop.f32.mrb[85].mxu1 }
 0x63c   : > { %v10374_v8 = vadd.f32 %v5176_v48, %v14489_v41  ;;  %v5178_v60 = vpop.f32.mrb[86].mxu1  ;;  %9938 = vmatprep.subr.bf16.mxu0 %v9937_v5 }
 0x63d   : > { %v10375_v21 = vadd.f32 %v5178_v60, %v14486_v59  ;;  %v5180_v49 = vpop.f32.mrb[87].mxu1  ;;  %9940 = vmatpush1.bf16.msra.mxu0 %v9939_v55  ;;  %v5341_v51 = vmax.f32 %v10373_v3, 0.0 }
 0x63e   : > { %v10376_v16 = vadd.f32 %v5180_v49, %v14489_v41  ;;  %v5342_v36 = vmax.f32 %v10374_v8, 0.0 }
 0x63f   : > { %v5343_v30 = vmax.f32 %v10375_v21, 0.0 }
 0x640   : > { %v5344_v34 = vmax.f32 %v10376_v16, 0.0 }
 0x641   : > { %v9943_v10 = vpack.c.bf16 %v5343_v30, %v5341_v51 }
 0x642   : > { %v9941_v15 = vpack.c.bf16 %v5344_v34, %v5342_v36  ;;  %v5184_v37 = vpop.f32.mrb[88].mxu1 }
 0x643   : > { %v10377_v20 = vadd.f32 %v5184_v37, %v14486_v59  ;;  %v5186_v32 = vpop.f32.mrb[89].mxu1 }
 0x644   : > { %v10378_v17 = vadd.f32 %v5186_v32, %v14489_v41  ;;  %v5188_v25 = vpop.f32.mrb[90].mxu1  ;;  %9942 = vmatprep.subr.bf16.mxu0 %v9941_v15 }
 0x645   : > { %v10379_v63 = vadd.f32 %v5188_v25, %v14486_v59  ;;  %v5190_v0 = vpop.f32.mrb[91].mxu1  ;;  %9944 = vmatpush1.bf16.msra.mxu0 %v9943_v10  ;;  %v5345_v23 = vmax.f32 %v10377_v20, 0.0 }
 0x646   : > { %v10380_v35 = vadd.f32 %v5190_v0, %v14489_v41  ;;  %v5346_v61 = vmax.f32 %v10378_v17, 0.0 }
 0x647   : > { %v5347_v18 = vmax.f32 %v10379_v63, 0.0 }
 0x648   : > { %v5348_v40 = vmax.f32 %v10380_v35, 0.0 }
 0x649   : > { %v9947_v47 = vpack.c.bf16 %v5347_v18, %v5345_v23 }
 0x64a   : > { %v9945_v19 = vpack.c.bf16 %v5348_v40, %v5346_v61  ;;  %v5194_v56 = vpop.f32.mrb[92].mxu1 }
 0x64b   : > { %v10381_v53 = vadd.f32 %v5194_v56, %v14486_v59  ;;  %v5196_v33 = vpop.f32.mrb[93].mxu1 }
 0x64c   : > { %v10382_v45 = vadd.f32 %v5196_v33, %v14489_v41  ;;  %v5198_v62 = vpop.f32.mrb[94].mxu1  ;;  %9946 = vmatprep.subr.bf16.mxu0 %v9945_v19 }
 0x64d   : > { %v10383_v12 = vadd.f32 %v5198_v62, %v14486_v59  ;;  %v5200_v26 = vpop.f32.mrb[95].mxu1  ;;  %9948 = vmatpush1.bf16.msra.mxu0 %v9947_v47  ;;  %v5349_v54 = vmax.f32 %v10381_v53, 0.0 }
 0x64e   : > { %v10384_v31 = vadd.f32 %v5200_v26, %v14489_v41  ;;  %v5350_v58 = vmax.f32 %v10382_v45, 0.0 }
 0x64f   : > { %v5351_v46 = vmax.f32 %v10383_v12, 0.0 }
 0x650   : > { %v5352_v27 = vmax.f32 %v10384_v31, 0.0 }
 0x651   : > { %v9951_v57 = vpack.c.bf16 %v5351_v46, %v5349_v54 }
 0x652   : > { %v9949_v42 = vpack.c.bf16 %v5352_v27, %v5350_v58  ;;  %v5204_v13 = vpop.f32.mrb[96].mxu1 }
 0x653   : > { %v10385_v22 = vadd.f32 %v5204_v13, %v14486_v59  ;;  %v5206_v4 = vpop.f32.mrb[97].mxu1 }
 0x654   : > { %v10386_v7 = vadd.f32 %v5206_v4, %v14489_v41  ;;  %v5208_v6 = vpop.f32.mrb[98].mxu1  ;;  %9950 = vmatprep.subr.bf16.mxu0 %v9949_v42 }
 0x655   : > { %v10387_v38 = vadd.f32 %v5208_v6, %v14486_v59  ;;  %v5210_v52 = vpop.f32.mrb[99].mxu1  ;;  %9952 = vmatpush1.bf16.msra.mxu0 %v9951_v57  ;;  %v5353_v39 = vmax.f32 %v10385_v22, 0.0 }
 0x656   : > { %v10388_v28 = vadd.f32 %v5210_v52, %v14489_v41  ;;  %v5354_v9 = vmax.f32 %v10386_v7, 0.0 }
 0x657   : > { %v5355_v1 = vmax.f32 %v10387_v38, 0.0 }
 0x658   : > { %v5356_v43 = vmax.f32 %v10388_v28, 0.0 }
 0x659   : > { %v9955_v44 = vpack.c.bf16 %v5355_v1, %v5353_v39 }
 0x65a   : > { %v9953_v55 = vpack.c.bf16 %v5356_v43, %v5354_v9  ;;  %v5214_v5 = vpop.f32.mrb[100].mxu1 }
 0x65b   : > { %v10389_v29 = vadd.f32 %v5214_v5, %v14486_v59  ;;  %v5216_v3 = vpop.f32.mrb[101].mxu1 }
 0x65c   : > { %v10390_v48 = vadd.f32 %v5216_v3, %v14489_v41  ;;  %v5218_v8 = vpop.f32.mrb[102].mxu1  ;;  %9954 = vmatprep.subr.bf16.mxu0 %v9953_v55 }
 0x65d   : > { %v10391_v60 = vadd.f32 %v5218_v8, %v14486_v59  ;;  %v5220_v21 = vpop.f32.mrb[103].mxu1  ;;  %9956 = vmatpush1.bf16.msra.mxu0 %v9955_v44  ;;  %v5357_v16 = vmax.f32 %v10389_v29, 0.0 }
 0x65e   : > { %v10392_v49 = vadd.f32 %v5220_v21, %v14489_v41  ;;  %v5358_v30 = vmax.f32 %v10390_v48, 0.0 }
 0x65f   : > { %v5359_v51 = vmax.f32 %v10391_v60, 0.0 }
 0x660   : > { %v5360_v36 = vmax.f32 %v10392_v49, 0.0 }
 0x661   : > { %v9959_v34 = vpack.c.bf16 %v5359_v51, %v5357_v16 }
 0x662   : > { %v9957_v10 = vpack.c.bf16 %v5360_v36, %v5358_v30  ;;  %v5224_v15 = vpop.f32.mrb[104].mxu1 }
 0x663   : > { %v10393_v37 = vadd.f32 %v5224_v15, %v14486_v59  ;;  %v5226_v20 = vpop.f32.mrb[105].mxu1 }
 0x664   : > { %v10394_v32 = vadd.f32 %v5226_v20, %v14489_v41  ;;  %v5228_v17 = vpop.f32.mrb[106].mxu1  ;;  %9958 = vmatprep.subr.bf16.mxu0 %v9957_v10 }
 0x665   : > { %v10395_v25 = vadd.f32 %v5228_v17, %v14486_v59  ;;  %v5230_v63 = vpop.f32.mrb[107].mxu1  ;;  %9960 = vmatpush1.bf16.msra.mxu0 %v9959_v34  ;;  %v5361_v35 = vmax.f32 %v10393_v37, 0.0 }
 0x666   : > { %v10396_v0 = vadd.f32 %v5230_v63, %v14489_v41  ;;  %v5362_v18 = vmax.f32 %v10394_v32, 0.0 }
 0x667   : > { %v5363_v23 = vmax.f32 %v10395_v25, 0.0 }
 0x668   : > { %v5364_v61 = vmax.f32 %v10396_v0, 0.0 }
 0x669   : > { %v9963_v40 = vpack.c.bf16 %v5363_v23, %v5361_v35 }
 0x66a   : > { %v9961_v47 = vpack.c.bf16 %v5364_v61, %v5362_v18  ;;  %v5234_v19 = vpop.f32.mrb[108].mxu1 }
 0x66b   : > { %v10397_v56 = vadd.f32 %v5234_v19, %v14486_v59  ;;  %v5236_v53 = vpop.f32.mrb[109].mxu1 }
 0x66c   : > { %v10398_v33 = vadd.f32 %v5236_v53, %v14489_v41  ;;  %v5238_v45 = vpop.f32.mrb[110].mxu1  ;;  %9962 = vmatprep.subr.bf16.mxu0 %v9961_v47 }
 0x66d   : > { %v10399_v62 = vadd.f32 %v5238_v45, %v14486_v59  ;;  %v5240_v12 = vpop.f32.mrb[111].mxu1  ;;  %9964 = vmatpush1.bf16.msra.mxu0 %v9963_v40  ;;  %v5365_v31 = vmax.f32 %v10397_v56, 0.0 }
 0x66e   : > { %v10400_v26 = vadd.f32 %v5240_v12, %v14489_v41  ;;  %v5366_v46 = vmax.f32 %v10398_v33, 0.0 }
 0x66f   : > { %v5367_v54 = vmax.f32 %v10399_v62, 0.0 }
 0x670   : > { %v5368_v58 = vmax.f32 %v10400_v26, 0.0 }
 0x671   : > { %v9967_v27 = vpack.c.bf16 %v5367_v54, %v5365_v31 }
 0x672   : > { %v9965_v57 = vpack.c.bf16 %v5368_v58, %v5366_v46  ;;  %v5244_v42 = vpop.f32.mrb[112].mxu1 }
 0x673   : > { %v10401_v13 = vadd.f32 %v5244_v42, %v14486_v59  ;;  %v5246_v22 = vpop.f32.mrb[113].mxu1 }
 0x674   : > { %v10402_v4 = vadd.f32 %v5246_v22, %v14489_v41  ;;  %v5248_v7 = vpop.f32.mrb[114].mxu1  ;;  %9966 = vmatprep.subr.bf16.mxu0 %v9965_v57 }
 0x675   : > { %v10403_v6 = vadd.f32 %v5248_v7, %v14486_v59  ;;  %v5250_v38 = vpop.f32.mrb[115].mxu1  ;;  %9968 = vmatpush1.bf16.msra.mxu0 %v9967_v27  ;;  %v5369_v28 = vmax.f32 %v10401_v13, 0.0 }
 0x676   : > { %v10404_v52 = vadd.f32 %v5250_v38, %v14489_v41  ;;  %v5370_v1 = vmax.f32 %v10402_v4, 0.0 }
 0x677   : > { %v5371_v39 = vmax.f32 %v10403_v6, 0.0 }
 0x678   : > { %v5372_v9 = vmax.f32 %v10404_v52, 0.0 }
 0x679   : > { %v9971_v43 = vpack.c.bf16 %v5371_v39, %v5369_v28 }
 0x67a   : > { %v9969_v44 = vpack.c.bf16 %v5372_v9, %v5370_v1  ;;  %v5254_v55 = vpop.f32.mrb[116].mxu1 }
 0x67b   : > { %v10405_v5 = vadd.f32 %v5254_v55, %v14486_v59  ;;  %v5256_v29 = vpop.f32.mrb[117].mxu1 }
 0x67c   : > { %v10406_v3 = vadd.f32 %v5256_v29, %v14489_v41  ;;  %v5258_v48 = vpop.f32.mrb[118].mxu1  ;;  %9970 = vmatprep.subr.bf16.mxu0 %v9969_v44 }
 0x67d   : > { %v10407_v8 = vadd.f32 %v5258_v48, %v14486_v59  ;;  %v5260_v60 = vpop.f32.mrb[119].mxu1  ;;  %9972 = vmatpush1.bf16.msra.mxu0 %v9971_v43  ;;  %v5373_v49 = vmax.f32 %v10405_v5, 0.0 }
 0x67e   : > { %v10408_v21 = vadd.f32 %v5260_v60, %v14489_v41  ;;  %v5374_v51 = vmax.f32 %v10406_v3, 0.0 }
 0x67f   : > { %v5375_v16 = vmax.f32 %v10407_v8, 0.0 }
 0x680   : > { %v5376_v30 = vmax.f32 %v10408_v21, 0.0 }
 0x681   : > { %v9975_v36 = vpack.c.bf16 %v5375_v16, %v5373_v49 }
 0x682   : > { %v9973_v34 = vpack.c.bf16 %v5376_v30, %v5374_v51  ;;  %v5264_v10 = vpop.f32.mrb[120].mxu1 }
 0x683   : > { %v10409_v15 = vadd.f32 %v5264_v10, %v14486_v59  ;;  %v5266_v37 = vpop.f32.mrb[121].mxu1 }
 0x684   : > { %v10410_v20 = vadd.f32 %v5266_v37, %v14489_v41  ;;  %v5268_v32 = vpop.f32.mrb[122].mxu1  ;;  %9974 = vmatprep.subr.bf16.mxu0 %v9973_v34 }
 0x685   : > { %v10411_v17 = vadd.f32 %v5268_v32, %v14486_v59  ;;  %v5270_v25 = vpop.f32.mrb[123].mxu1  ;;  %9976 = vmatpush1.bf16.msra.mxu0 %v9975_v36  ;;  %v5377_v0 = vmax.f32 %v10409_v15, 0.0 }
 0x686   : > { %v10412_v63 = vadd.f32 %v5270_v25, %v14489_v41  ;;  %v5378_v23 = vmax.f32 %v10410_v20, 0.0 }
 0x687   : > { %v5379_v35 = vmax.f32 %v10411_v17, 0.0 }
 0x688   : > { %v5380_v18 = vmax.f32 %v10412_v63, 0.0 }
 0x689   : > { %v9979_v61 = vpack.c.bf16 %v5379_v35, %v5377_v0 }
 0x68a   : > { %v9977_v40 = vpack.c.bf16 %v5380_v18, %v5378_v23  ;;  %v5274_v47 = vpop.f32.mrb[124].mxu1 }
 0x68b   : > { %v10413_v19 = vadd.f32 %v5274_v47, %v14486_v59  ;;  %v5276_v56 = vpop.f32.mrb[125].mxu1 }
 0x68c   : > { %v10414_v53 = vadd.f32 %v5276_v56, %v14489_v41  ;;  %v5278_v33 = vpop.f32.mrb[126].mxu1  ;;  %9978 = vmatprep.subr.bf16.mxu0 %v9977_v40 }
 0x68d   : > { %v10415_v45 = vadd.f32 %v5278_v33, %v14486_v59  ;;  %v5280_v62 = vpop.f32.mrb[127].mxu1  ;;  %9980 = vmatpush1.bf16.msra.mxu0 %v9979_v61  ;;  %v5381_v26 = vmax.f32 %v10413_v19, 0.0 }
 0x68e   : > { %v10416_v12 = vadd.f32 %v5280_v62, %v14489_v41  ;;  %v5382_v54 = vmax.f32 %v10414_v53, 0.0 }
 0x68f   : > { %v5383_v31 = vmax.f32 %v10415_v45, 0.0 }
 0x690   : > { %v5384_v46 = vmax.f32 %v10416_v12, 0.0 }
 0x691   : > { %v9983_v58 = vpack.c.bf16 %v5383_v31, %v5381_v26 }
 0x692   : > { %v9981_v27 = vpack.c.bf16 %v5384_v46, %v5382_v54  ;;  %v5284_v57 = vpop.f32.mrb[128].mxu1 }
 0x693   : > { %v10417_v42 = vadd.f32 %v5284_v57, %v14486_v59  ;;  %v5286_v13 = vpop.f32.mrb[129].mxu1 }
 0x694   : > { %v10418_v22 = vadd.f32 %v5286_v13, %v14489_v41  ;;  %v5288_v4 = vpop.f32.mrb[130].mxu1  ;;  %9982 = vmatprep.subr.bf16.mxu0 %v9981_v27 }
 0x695   : > { %v10419_v7 = vadd.f32 %v5288_v4, %v14486_v59  ;;  %v5290_v6 = vpop.f32.mrb[131].mxu1  ;;  %9984 = vmatpush1.bf16.msra.mxu0 %v9983_v58  ;;  %v5385_v52 = vmax.f32 %v10417_v42, 0.0 }
 0x696   : > { %v10420_v38 = vadd.f32 %v5290_v6, %v14489_v41  ;;  %v5386_v39 = vmax.f32 %v10418_v22, 0.0 }
 0x697   : > { %v5387_v28 = vmax.f32 %v10419_v7, 0.0 }
 0x698   : > { %v5388_v1 = vmax.f32 %v10420_v38, 0.0 }
 0x699   : > { %v9987_v9 = vpack.c.bf16 %v5387_v28, %v5385_v52 }
 0x69a   : > { %v9985_v43 = vpack.c.bf16 %v5388_v1, %v5386_v39  ;;  %v5294_v44 = vpop.f32.mrb[132].mxu1 }
 0x69b   : > { %v10421_v55 = vadd.f32 %v5294_v44, %v14486_v59  ;;  %v5296_v5 = vpop.f32.mrb[133].mxu1 }
 0x69c   : > { %v10422_v29 = vadd.f32 %v5296_v5, %v14489_v41  ;;  %v5298_v3 = vpop.f32.mrb[134].mxu1  ;;  %9986 = vmatprep.subr.bf16.mxu0 %v9985_v43 }
 0x69d   : > { %v10423_v48 = vadd.f32 %v5298_v3, %v14486_v59  ;;  %v5300_v8 = vpop.f32.mrb[135].mxu1  ;;  %9988 = vmatpush1.bf16.msra.mxu0 %v9987_v9  ;;  %v5389_v21 = vmax.f32 %v10421_v55, 0.0  ;;  %v11875_v9 = vld [vmem:[%s15705_s4 + $0x140] sm:$0xff]   ;;  %v11878_v3 = vld [vmem:[%s15705_s4 + $0x108] sm:$0xff]  }
 0x69e   : > { %v10424_v60 = vadd.f32 %v5300_v8, %v14489_v41  ;;  %v5390_v16 = vmax.f32 %v10422_v29, 0.0  ;;  %v11877_v29 = vld [vmem:[%s15705_s4 + $0x148] sm:$0xff]   ;;  %v11880_v8 = vld [vmem:[%s15705_s4 + $0x110] sm:$0xff]  }
 0x69f   : > { %v5391_v49 = vmax.f32 %v10423_v48, 0.0  ;;  %v11879_v48 = vld [vmem:[%s15705_s4 + $0x150] sm:$0xff]  }
 0x6a0   : > { %v5392_v51 = vmax.f32 %v10424_v60, 0.0  ;;  %v11882_v60 = vld [vmem:[%s15705_s4 + $0x118] sm:$0xff]  }
 0x6a1   : > { %v9991_v30 = vpack.c.bf16 %v5391_v49, %v5389_v21  ;;  %v11883_v21 = vld [vmem:[%s15705_s4 + $0x160] sm:$0xff]  }
 0x6a2   : > { %v9989_v36 = vpack.c.bf16 %v5392_v51, %v5390_v16  ;;  %v5304_v34 = vpop.f32.mrb[136].mxu1  ;;  %v11884_v49 = vld [vmem:[%s15705_s4 + $0x120] sm:$0xff]   ;;  %v11885_v16 = vld [vmem:[%s15705_s4 + $0x168] sm:$0xff]  }
 0x6a3   : > { %v10425_v10 = vadd.f32 %v5304_v34, %v14486_v59  ;;  %v5306_v15 = vpop.f32.mrb[137].mxu1  ;;  %v11886_v51 = vld [vmem:[%s15705_s4 + $0x128] sm:$0xff]  }
 0x6a4   : > { %v10426_v37 = vadd.f32 %v5306_v15, %v14489_v41  ;;  %v5308_v20 = vpop.f32.mrb[138].mxu1  ;;  %9990 = vmatprep.subr.bf16.mxu0 %v9989_v36  ;;  %v11888_v36 = vld [vmem:[%s15705_s4 + $0x130] sm:$0xff]  }
 0x6a5   : > { %v10427_v32 = vadd.f32 %v5308_v20, %v14486_v59  ;;  %v5310_v17 = vpop.f32.mrb[139].mxu1  ;;  %9992 = vmatpush1.bf16.msra.mxu0 %v9991_v30  ;;  %v5393_v63 = vmax.f32 %v10425_v10, 0.0  ;;  %v11887_v30 = vld [vmem:[%s15705_s4 + $0x170] sm:$0xff]  }
 0x6a6   : > { %v10428_v25 = vadd.f32 %v5310_v17, %v14489_v41  ;;  %v5394_v35 = vmax.f32 %v10426_v37, 0.0  ;;  %v11889_v17 = vld [vmem:[%s15705_s4 + $0x178] sm:$0xff]  }
 0x6a7   : > { %v5395_v0 = vmax.f32 %v10427_v32, 0.0 }
 0x6a8   : > { %v5396_v23 = vmax.f32 %v10428_v25, 0.0  ;;  %v11890_v25 = vld [vmem:[%s15705_s4 + $0x138] sm:$0xff]  }
 0x6a9   : > { %v9995_v18 = vpack.c.bf16 %v5395_v0, %v5393_v63  ;;  %v11893_v63 = vld [vmem:[%s15703_s2 + $0x1c] ss:$40 sps:$4 sm:$0xff]  }
 0x6aa   : > { %v9993_v61 = vpack.c.bf16 %v5396_v23, %v5394_v35  ;;  %v5314_v40 = vpop.f32.mrb[140].mxu1 }
 0x6ab   : > { %v10429_v47 = vadd.f32 %v5314_v40, %v14486_v59  ;;  %v5316_v19 = vpop.f32.mrb[141].mxu1  ;;  %v11896_v40 = vld [vmem:[%s15703_s2 + $0x6c] ss:$40 sps:$4 sm:$0xff]  }
 0x6ac   : > { %v10430_v56 = vadd.f32 %v5316_v19, %v14489_v41  ;;  %v5318_v53 = vpop.f32.mrb[142].mxu1  ;;  %9994 = vmatprep.subr.bf16.mxu0 %v9993_v61  ;;  %v12396_v19 = vld [vmem:[%s12706_s25 + $0x4] ss:$24 sps:$4 sm:$0xff]  }
 0x6ad   : > { %v10431_v33 = vadd.f32 %v5318_v53, %v14486_v59  ;;  %v5320_v45 = vpop.f32.mrb[143].mxu1  ;;  %9996 = vmatpush1.bf16.msra.mxu0 %v9995_v18  ;;  %v5397_v12 = vmax.f32 %v10429_v47, 0.0  ;;  %v11891_v18 = vld [vmem:[%s15703_s2 + $0x18] ss:$40 sps:$4 sm:$0xff]   ;;  %v11894_v47 = vld [vmem:[%s15703_s2 + $0x68] ss:$40 sps:$4 sm:$0xff]  }
 0x6ae   : > { %v10432_v62 = vadd.f32 %v5320_v45, %v14489_v41  ;;  %v5398_v31 = vmax.f32 %v10430_v56, 0.0  ;;  %v11899_v56 = vld [vmem:[%s15703_s2 + $0xbc] ss:$40 sps:$4 sm:$0xff]   ;;  %v11897_v53 = vld [vmem:[%s15703_s2 + $0xb8] ss:$40 sps:$4 sm:$0xff]  }
 0x6af   : > { %v5399_v26 = vmax.f32 %v10431_v33, 0.0  ;;  %v11902_v33 = vld [vmem:[%s15703_s2 + $0x10c] ss:$40 sps:$4 sm:$0xff]   ;;  %v11900_v45 = vld [vmem:[%s15703_s2 + $0x108] ss:$40 sps:$4 sm:$0xff]  }
 0x6b0   : > { %v5400_v54 = vmax.f32 %v10432_v62, 0.0  ;;  %5470 = vmatmul.mubr.f32.vlgmr.msra.gmra.mrb[146].mxu0 %v14305_v2  ;;  %v11905_v62 = vld [vmem:[%s15703_s2 + $0x15c] ss:$40 sps:$4 sm:$0xff]  }
 0x6b1   : > { %v9999_v46 = vpack.c.bf16 %v5399_v26, %v5397_v12  ;;  %5540 = vmatprep.mubr.f32.mxu0 %v15796_v14  ;;  %v11903_v12 = vld [vmem:[%s15703_s2 + $0x158] ss:$40 sps:$4 sm:$0xff]   ;;  %v11908_v26 = vld [vmem:[%s15703_s2 + $0x1ac] ss:$40 sps:$4 sm:$0xff]  }
 0x6b2   : > { %v9997_v58 = vpack.c.bf16 %v5400_v54, %v5398_v31  ;;  %v5324_v27 = vpop.f32.mrb[144].mxu1  ;;  %v11906_v31 = vld [vmem:[%s15703_s2 + $0x1a8] ss:$40 sps:$4 sm:$0xff]   ;;  %v11911_v54 = vld [vmem:[%s15703_s2 + $0x1fc] ss:$40 sps:$4 sm:$0xff]  }
 0x6b3   : > { %v10433_v57 = vadd.f32 %v5324_v27, %v14486_v59  ;;  %v5326_v42 = vpop.f32.mrb[145].mxu1  ;;  %v11912_v27 = vld [vmem:[%s15703_s2 + $0x248] ss:$40 sps:$4 sm:$0xff]  }
 0x6b4   : > { %v10434_v13 = vadd.f32 %v5326_v42, %v14489_v41  ;;  %v5328_v22 = vpop.f32.mrb[146].mxu1  ;;  %9998 = vmatprep.subr.bf16.mxu0 %v9997_v58  ;;  %v11914_v58 = vld [vmem:[%s15703_s2 + $0x24c] ss:$40 sps:$4 sm:$0xff]   ;;  %v11915_v42 = vld [vmem:[%s15703_s2 + $0x298] ss:$40 sps:$4 sm:$0xff]  }
 0x6b5   : > { %v10435_v4 = vadd.f32 %v5328_v22, %v14486_v59  ;;  %v5330_v7 = vpop.f32.mrb[147].mxu1  ;;  %10000 = vmatpush1.bf16.msra.mxu0 %v9999_v46  ;;  %v5401_v38 = vmax.f32 %v10433_v57, 0.0  ;;  %v11909_v46 = vld [vmem:[%s15703_s2 + $0x1f8] ss:$40 sps:$4 sm:$0xff]   ;;  %v11917_v57 = vld [vmem:[%s15703_s2 + $0x29c] ss:$40 sps:$4 sm:$0xff]  }
 0x6b6   : > { %v10436_v6 = vadd.f32 %v5330_v7, %v14489_v41  ;;  %v5402_v52 = vmax.f32 %v10434_v13, 0.0  ;;  %v11876_v41 = vld [vmem:[%s15705_s4 + $0x100] sm:$0xff]   ;;  %v11920_v13 = vld [vmem:[%s15703_s2 + $0x2ec] ss:$40 sps:$4 sm:$0xff]   ;;  %v11918_v22 = vld [vmem:[%s15703_s2 + $0x2e8] ss:$40 sps:$4 sm:$0xff]  }
 0x6b7   : > { %v5403_v2 = vmax.f32 %v10435_v4, 0.0  ;;  %v11923_v4 = vld [vmem:[%s15703_s2 + $0x33c] ss:$40 sps:$4 sm:$0xff]   ;;  %v11921_v7 = vld [vmem:[%s15703_s2 + $0x338] ss:$40 sps:$4 sm:$0xff]  }
 0x6b8   : > { %v5404_v28 = vmax.f32 %v10436_v6, 0.0  ;;  %v11926_v6 = vld [vmem:[%s15703_s2 + $0x38c] ss:$40 sps:$4 sm:$0xff]  }
 0x6b9   : > { %v10003_v39 = vpack.c.bf16 %v5403_v2, %v5401_v38  ;;  %v11924_v38 = vld [vmem:[%s15703_s2 + $0x388] ss:$40 sps:$4 sm:$0xff]   ;;  %v11929_v2 = vld [vmem:[%s15703_s2 + $0x3dc] ss:$40 sps:$4 sm:$0xff]  }
 0x6ba   : > { %v10001_v1 = vpack.c.bf16 %v5404_v28, %v5402_v52  ;;  %v11927_v52 = vld [vmem:[%s15703_s2 + $0x3d8] ss:$40 sps:$4 sm:$0xff]   ;;  %v11932_v28 = vld [vmem:[%s15703_s2 + $0x42c] ss:$40 sps:$4 sm:$0xff]  }
 0x6bb   : > { %v9695_v43 = vpop.f32.mrb[148].mxu0 }
 0x6bc   : > { %10002 = vmatprep.subr.bf16.mxu0 %v10001_v1  ;;  %v9696_v44 = vpop.f32.mrb[149].mxu0  ;;  %v11935_v1 = vld [vmem:[%s15703_s2 + $0x47c] ss:$40 sps:$4 sm:$0xff]  }
 0x6bd   : > { %10004 = vmatpush1.bf16.msra.mxu0 %v10003_v39  ;;  %v9697_v55 = vadd.f32 %v9696_v44, %v9695_v43  ;;  %v9698_v59 = vpop.f32.mrb[150].mxu0  ;;  %v11930_v39 = vld [vmem:[%s15703_s2 + $0x428] ss:$40 sps:$4 sm:$0xff]   ;;  %v11938_v43 = vld [vmem:[%s15703_s2 + $0x4cc] ss:$40 sps:$4 sm:$0xff]  }
 0x6be   : > { %v9699_v5 = vpop.f32.mrb[151].mxu0  ;;  %9723 = vmatprep.subr.bf16.mxu0 %v11875_v9  ;;  %v11933_v9 = vld [vmem:[%s15703_s2 + $0x478] ss:$40 sps:$4 sm:$0xff]   ;;  %v11936_v44 = vld [vmem:[%s15703_s2 + $0x4c8] ss:$40 sps:$4 sm:$0xff]  }
 0x6bf   : > { %v11939_v59 = vld [vmem:[%s15703_s2 + $0x518] ss:$40 sps:$4 sm:$0xff]  }
 0x6c0   : > { %9434 = vmatmul.mubr.msk.f32.vlgmr.msra.gmra.mrb[146].mxu0 %vm2179_vm0, %v14323_v24  ;;  %v11881_v24 = vld [vmem:[%s15705_s4 + $0x158] sm:$0xff]  }
 0x6c1   : > { %9724 = vmatpush3.bf16.msra.mxu0 %v11876_v41  ;;  %v11944_v41 = vld [vmem:[%s15703_s2 + $0x56c] ss:$40 sps:$4 sm:$0xff]   ;;  %v12397_v5 = vld [vmem:[%s12706_s25] ss:$24 sps:$4 sm:$0xff]  }
 0x6c2   : > { %9725 = vmatprep.subr.bf16.mxu0 %v11877_v29  ;;  %v12398_v29 = vld [vmem:[%s12706_s25 + $0x34] ss:$24 sps:$4 sm:$0xff]  }
 0x6c5   : > { %9726 = vmatpush3.bf16.msra.mxu0 %v11878_v3  ;;  %v11942_v3 = vld [vmem:[%s15703_s2 + $0x568] ss:$40 sps:$4 sm:$0xff]  }
 0x6c6   : > { %9727 = vmatprep.subr.bf16.mxu0 %v11879_v48  ;;  %v11947_v48 = vld [vmem:[%s15703_s2 + $0x5bc] ss:$40 sps:$4 sm:$0xff]  }
 0x6c9   : > { %9728 = vmatpush3.bf16.msra.mxu0 %v11880_v8  ;;  %v11945_v8 = vld [vmem:[%s15703_s2 + $0x5b8] ss:$40 sps:$4 sm:$0xff]  }
 0x6ca   : > { %9729 = vmatprep.subr.bf16.mxu0 %v11881_v24  ;;  %v11950_v24 = vld [vmem:[%s15703_s2 + $0x60c] ss:$40 sps:$4 sm:$0xff]  }
 0x6cd   : > { %9730 = vmatpush3.bf16.msra.mxu0 %v11882_v60  ;;  %v12399_v60 = vld [vmem:[%s12706_s25 + $0x30] ss:$24 sps:$4 sm:$0xff]  }
 0x6ce   : > { %9731 = vmatprep.subr.bf16.mxu0 %v11883_v21  ;;  %v12400_v21 = vld [vmem:[%s12706_s25 + $0x64] ss:$24 sps:$4 sm:$0xff]  }
 0x6d1   : > { %9732 = vmatpush3.bf16.msra.mxu0 %v11884_v49  ;;  %v11948_v49 = vld [vmem:[%s15703_s2 + $0x608] ss:$40 sps:$4 sm:$0xff]  }
 0x6d2   : > { %9733 = vmatprep.subr.bf16.mxu0 %v11885_v16  ;;  %v11953_v16 = vld [vmem:[%s15703_s2 + $0x65c] ss:$40 sps:$4 sm:$0xff]  }
 0x6d5   : > { %9734 = vmatpush3.bf16.msra.mxu0 %v11886_v51  ;;  %v11951_v51 = vld [vmem:[%s15703_s2 + $0x658] ss:$40 sps:$4 sm:$0xff]  }
 0x6d6   : > { %9735 = vmatprep.subr.bf16.mxu0 %v11887_v30  ;;  %v11956_v30 = vld [vmem:[%s15703_s2 + $0x6ac] ss:$40 sps:$4 sm:$0xff]  }
 0x6d9   : > { %9736 = vmatpush3.bf16.msra.mxu0 %v11888_v36  ;;  %v12401_v36 = vld [vmem:[%s12706_s25 + $0x60] ss:$24 sps:$4 sm:$0xff]  }
 0x6da   : > { %9737 = vmatprep.subr.bf16.mxu0 %v11889_v17  ;;  %v12403_v17 = vld [vmem:[%s12706_s25 + $0x90] ss:$24 sps:$4 sm:$0xff]  }
 0x6db   : > { %v9717_v34 = vpop.f32.mrb[152].mxu0 }
 0x6dc   : > { %v9718_v10 = vpop.f32.mrb[153].mxu0 }
 0x6dd   : > { %v9719_v15 = vadd.f32 %v9718_v10, %v9717_v34  ;;  %v9720_v37 = vpop.f32.mrb[154].mxu0  ;;  %9738 = vmatpush3.bf16.msra.mxu0 %v11890_v25  ;;  %v12402_v34 = vld [vmem:[%s12706_s25 + $0x94] ss:$24 sps:$4 sm:$0xff]   ;;  %v11954_v10 = vld [vmem:[%s15703_s2 + $0x6a8] ss:$40 sps:$4 sm:$0xff]  }
 0x6de   : > { %v9721_v20 = vpop.f32.mrb[155].mxu0  ;;  %6306 = vmatprep.subr.bf16.mxu0 %v11893_v63  ;;  %v11957_v37 = vld [vmem:[%s15703_s2 + $0x6f8] ss:$40 sps:$4 sm:$0xff]   ;;  %v12404_v25 = vld [vmem:[%s12706_s25 + $0xc4] ss:$24 sps:$4 sm:$0xff]  }
 0x6df   : > { %v14609_v32 = vadd.f32 %v9719_v15, %v9697_v55  ;;  %v11941_v55 = vld [vmem:[%s15703_s2 + $0x51c] ss:$40 sps:$4 sm:$0xff]   ;;  %v11962_v20 = vld [vmem:[%s15703_s2 + $0x74c] ss:$40 sps:$4 sm:$0xff]   ;;  %v11960_v63 = vld [vmem:[%s15703_s2 + $0x748] ss:$40 sps:$4 sm:$0xff]  }
 0x6e0   : > { %v11959_v15 = vld [vmem:[%s15703_s2 + $0x6fc] ss:$40 sps:$4 sm:$0xff]  }
 0x793   : > { %v5542_v0 = vpop.f32.mrb[146].mxu0 }
 0x794   : > { %v5544_v35 = vpop.f32.mrb[147].mxu0  ;;  %v5547_v61 = vpack.c.bf16 %v5542_v0, %v5542_v0  ;;  %v11965_v0 = vld [vmem:[%s15703_s2 + $0x79c] ss:$40 sps:$4 sm:$0xff]  }
 0x795   : > { %v5548_v23 = vpack.c.bf16 %v5544_v35, %v5544_v35  ;;  %v11963_v35 = vld [vmem:[%s15703_s2 + $0x798] ss:$40 sps:$4 sm:$0xff]  }
 0x797   : > { %5709 = vmatprep.mubr.bf16.mxu0 %v5548_v23  ;;  %v11968_v23 = vld [vmem:[%s15703_s2 + $0x7ec] ss:$40 sps:$4 sm:$0xff]  }
 0x798   : > { %5710 = vmatmul.mubr.bf16.vlgmr.msra.gmra.mrb[156].mxu0 %v5547_v61  ;;  %v12406_v61 = vld [vmem:[%s12706_s25 + $0xf4] ss:$24 sps:$4 sm:$0xff]  }
 0x799   : > { %6307 = vmatpush1.bf16.msra.mxu0 %v11891_v18  ;;  %6338 = vmatprep.mubr.bf16.mxu0 %v12396_v19  ;;  %v12405_v18 = vld [vmem:[%s12706_s25 + $0xc0] ss:$24 sps:$4 sm:$0xff]  }
 0x79a   : > { %6308 = vmatprep.subr.bf16.mxu0 %v11896_v40  ;;  %v11966_v40 = vld [vmem:[%s15703_s2 + $0x7e8] ss:$40 sps:$4 sm:$0xff]   ;;  %v11969_v19 = vld [vmem:[%s15703_s2 + $0x838] ss:$40 sps:$4 sm:$0xff]  }
 0x79d   : > { %6309 = vmatpush1.bf16.msra.mxu0 %v11894_v47  ;;  %v11971_v47 = vld [vmem:[%s15703_s2 + $0x83c] ss:$40 sps:$4 sm:$0xff]  }
 0x79e   : > { %6310 = vmatprep.subr.bf16.mxu0 %v11899_v56  ;;  %v11974_v56 = vld [vmem:[%s15703_s2 + $0x88c] ss:$40 sps:$4 sm:$0xff]  }
 0x7a1   : > { %6311 = vmatpush1.bf16.msra.mxu0 %v11897_v53  ;;  %v12407_v53 = vld [vmem:[%s12706_s25 + $0xf0] ss:$24 sps:$4 sm:$0xff]  }
 0x7a2   : > { %6312 = vmatprep.subr.bf16.mxu0 %v11902_v33  ;;  %v12408_v33 = vld [vmem:[%s12706_s25 + $0x124] ss:$24 sps:$4 sm:$0xff]  }
 0x7a5   : > { %6313 = vmatpush1.bf16.msra.mxu0 %v11900_v45  ;;  %v11972_v45 = vld [vmem:[%s15703_s2 + $0x888] ss:$40 sps:$4 sm:$0xff]  }
 0x7a6   : > { %6314 = vmatprep.subr.bf16.mxu0 %v11905_v62  ;;  %v11977_v62 = vld [vmem:[%s15703_s2 + $0x8dc] ss:$40 sps:$4 sm:$0xff]  }
 0x7a9   : > { %6315 = vmatpush1.bf16.msra.mxu0 %v11903_v12  ;;  %v11975_v12 = vld [vmem:[%s15703_s2 + $0x8d8] ss:$40 sps:$4 sm:$0xff]  }
 0x7aa   : > { %6316 = vmatprep.subr.bf16.mxu0 %v11908_v26  ;;  %v11980_v26 = vld [vmem:[%s15703_s2 + $0x92c] ss:$40 sps:$4 sm:$0xff]  }
 0x7ad   : > { %6317 = vmatpush1.bf16.msra.mxu0 %v11906_v31  ;;  %v12409_v31 = vld [vmem:[%s12706_s25 + $0x120] ss:$24 sps:$4 sm:$0xff]  }
 0x7ae   : > { %6318 = vmatprep.subr.bf16.mxu0 %v11911_v54  ;;  %v12410_v54 = vld [vmem:[%s12706_s25 + $0x154] ss:$24 sps:$4 sm:$0xff]  }
 0x7b1   : > { %6319 = vmatpush1.bf16.msra.mxu0 %v11909_v46  ;;  %v11978_v46 = vld [vmem:[%s15703_s2 + $0x928] ss:$40 sps:$4 sm:$0xff]  }
 0x7b2   : > { %6320 = vmatprep.subr.bf16.mxu0 %v11914_v58  ;;  %v11983_v58 = vld [vmem:[%s15703_s2 + $0x97c] ss:$40 sps:$4 sm:$0xff]  }
 0x7b5   : > { %6321 = vmatpush1.bf16.msra.mxu0 %v11912_v27  ;;  %v11981_v27 = vld [vmem:[%s15703_s2 + $0x978] ss:$40 sps:$4 sm:$0xff]  }
 0x7b6   : > { %6322 = vmatprep.subr.bf16.mxu0 %v11917_v57  ;;  %v11986_v57 = vld [vmem:[%s15703_s2 + $0x9cc] ss:$40 sps:$4 sm:$0xff]  }
 0x7b9   : > { %6323 = vmatpush1.bf16.msra.mxu0 %v11915_v42  ;;  %v12411_v42 = vld [vmem:[%s12706_s25 + $0x150] ss:$24 sps:$4 sm:$0xff]  }
 0x7ba   : > { %6324 = vmatprep.subr.bf16.mxu0 %v11920_v13  ;;  %v12412_v13 = vld [vmem:[%s12706_s25 + $0x184] ss:$24 sps:$4 sm:$0xff]  }
 0x7bd   : > { %6325 = vmatpush1.bf16.msra.mxu0 %v11918_v22  ;;  %v11984_v22 = vld [vmem:[%s15703_s2 + $0x9c8] ss:$40 sps:$4 sm:$0xff]  }
 0x7be   : > { %6326 = vmatprep.subr.bf16.mxu0 %v11923_v4  ;;  %v11989_v4 = vld [vmem:[%s15703_s2 + $0xa1c] ss:$40 sps:$4 sm:$0xff]  }
 0x7c1   : > { %6327 = vmatpush1.bf16.msra.mxu0 %v11921_v7  ;;  %v12413_v7 = vld [vmem:[%s12706_s25 + $0x180] ss:$24 sps:$4 sm:$0xff]  }
 0x7c2   : > { %6328 = vmatprep.subr.bf16.mxu0 %v11926_v6  ;;  %v12414_v6 = vld [vmem:[%s12706_s25 + $0x1b4] ss:$24 sps:$4 sm:$0xff]  }
 0x7c5   : > { %6329 = vmatpush1.bf16.msra.mxu0 %v11924_v38  ;;  %v12415_v38 = vld [vmem:[%s12706_s25 + $0x1b0] ss:$24 sps:$4 sm:$0xff]  }
 0x7c6   : > { %6330 = vmatprep.subr.bf16.mxu0 %v11929_v2  ;;  %v12416_v2 = vld [vmem:[%s12706_s25 + $0x1e4] ss:$24 sps:$4 sm:$0xff]  }
 0x7c9   : > { %6331 = vmatpush1.bf16.msra.mxu0 %v11927_v52  ;;  %v12417_v52 = vld [vmem:[%s12706_s25 + $0x1e0] ss:$24 sps:$4 sm:$0xff]  }
 0x7ca   : > { %6332 = vmatprep.subr.bf16.mxu0 %v11932_v28  ;;  %v12418_v28 = vld [vmem:[%s12706_s25 + $0x214] ss:$24 sps:$4 sm:$0xff]  }
 0x7cd   : > { %6333 = vmatpush1.bf16.msra.mxu0 %v11930_v39  ;;  %v12419_v39 = vld [vmem:[%s12706_s25 + $0x210] ss:$24 sps:$4 sm:$0xff]  }
 0x7ce   : > { %6334 = vmatprep.subr.bf16.mxu0 %v11935_v1  ;;  %v12420_v1 = vld [vmem:[%s12706_s25 + $0x244] ss:$24 sps:$4 sm:$0xff]  }
 0x7d1   : > { %6335 = vmatpush1.bf16.msra.mxu0 %v11933_v9  ;;  %v12421_v9 = vld [vmem:[%s12706_s25 + $0x240] ss:$24 sps:$4 sm:$0xff]  }
 0x7d2   : > { %6336 = vmatprep.subr.bf16.mxu0 %v11938_v43  ;;  %v12422_v43 = vld [vmem:[%s12706_s25 + $0x274] ss:$24 sps:$4 sm:$0xff]  }
 0x7d5   : > { %6337 = vmatpush1.bf16.msra.mxu0 %v11936_v44  ;;  %v12423_v44 = vld [vmem:[%s12706_s25 + $0x270] ss:$24 sps:$4 sm:$0xff]  }
 0x7d6   : > { %6519 = vmatprep.subr.bf16.mxu0 %v11941_v55  ;;  %v12424_v55 = vld [vmem:[%s12706_s25 + $0x2a4] ss:$24 sps:$4 sm:$0xff]  }
 0x7d8   : > { %6339 = vmatmul.mubr.bf16.vlgmr.msra.gmra.mrb[160].mxu0 %v12397_v5  ;;  %v12427_v5 = vld [vmem:[%s12706_s25 + $0x2d0] ss:$24 sps:$4 sm:$0xff]  }
 0x7d9   : > { %6348 = vmatprep.mubr.bf16.mxu0 %v12398_v29  ;;  %6520 = vmatpush1.bf16.msra.mxu0 %v11939_v59  ;;  %v12425_v59 = vld [vmem:[%s12706_s25 + $0x2a0] ss:$24 sps:$4 sm:$0xff]   ;;  %v12428_v29 = vld [vmem:[%s12706_s25 + $0x304] ss:$24 sps:$4 sm:$0xff]  }
 0x7da   : > { %6521 = vmatprep.subr.bf16.mxu0 %v11944_v41  ;;  %v12426_v41 = vld [vmem:[%s12706_s25 + $0x2d4] ss:$24 sps:$4 sm:$0xff]  }
 0x7dd   : > { %6522 = vmatpush1.bf16.msra.mxu0 %v11942_v3  ;;  %v12429_v3 = vld [vmem:[%s12706_s25 + $0x300] ss:$24 sps:$4 sm:$0xff]  }
 0x7de   : > { %6523 = vmatprep.subr.bf16.mxu0 %v11947_v48  ;;  %v12430_v48 = vld [vmem:[%s12706_s25 + $0x334] ss:$24 sps:$4 sm:$0xff]  }
 0x7e0   : > { %6349 = vmatmul.mubr.bf16.gmra.mrb[164].mxu0 %v12399_v60  ;;  %v11987_v60 = vld [vmem:[%s15703_s2 + $0xa18] ss:$40 sps:$4 sm:$0xff]  }
 0x7e1   : > { %6358 = vmatprep.mubr.bf16.mxu0 %v12400_v21  ;;  %6524 = vmatpush1.bf16.msra.mxu0 %v11945_v8  ;;  %v12431_v8 = vld [vmem:[%s12706_s25 + $0x330] ss:$24 sps:$4 sm:$0xff]   ;;  %v11992_v21 = vld [vmem:[%s15703_s2 + $0xa6c] ss:$40 sps:$4 sm:$0xff]  }
 0x7e2   : > { %6525 = vmatprep.subr.bf16.mxu0 %v11950_v24  ;;  %v12432_v24 = vld [vmem:[%s12706_s25 + $0xc] ss:$24 sps:$4 sm:$0xff]  }
 0x7e5   : > { %6526 = vmatpush1.bf16.msra.mxu0 %v11948_v49  ;;  %v12433_v49 = vld [vmem:[%s12706_s25 + $0x8] ss:$24 sps:$4 sm:$0xff]  }
 0x7e6   : > { %6527 = vmatprep.subr.bf16.mxu0 %v11953_v16  ;;  %v12434_v16 = vld [vmem:[%s12706_s25 + $0x3c] ss:$24 sps:$4 sm:$0xff]  }
 0x7e8   : > { %6359 = vmatmul.mubr.bf16.gmra.mrb[168].mxu0 %v12401_v36 }
 0x7e9   : > { %6368 = vmatprep.mubr.bf16.mxu0 %v12402_v34  ;;  %6528 = vmatpush1.bf16.msra.mxu0 %v11951_v51  ;;  %v11990_v51 = vld [vmem:[%s15703_s2 + $0xa68] ss:$40 sps:$4 sm:$0xff]  }
 0x7ea   : > { %6529 = vmatprep.subr.bf16.mxu0 %v11956_v30  ;;  %v11995_v30 = vld [vmem:[%s15703_s2 + $0xabc] ss:$40 sps:$4 sm:$0xff]  }
 0x7ed   : > { %6530 = vmatpush1.bf16.msra.mxu0 %v11954_v10 }
 0x7ee   : > { %6531 = vmatprep.subr.bf16.mxu0 %v11959_v15 }
 0x7f0   : > { %6369 = vmatmul.mubr.bf16.gmra.mrb[172].mxu0 %v12403_v17  ;;  %v11998_v17 = vld [vmem:[%s15703_s2 + $0xb0c] ss:$40 sps:$4 sm:$0xff]  }
 0x7f1   : > { %6378 = vmatprep.mubr.bf16.mxu0 %v12404_v25  ;;  %6532 = vmatpush1.bf16.msra.mxu0 %v11957_v37  ;;  %v11993_v37 = vld [vmem:[%s15703_s2 + $0xab8] ss:$40 sps:$4 sm:$0xff]  }
 0x7f2   : > { %6533 = vmatprep.subr.bf16.mxu0 %v11962_v20 }
 0x7f5   : > { %6534 = vmatpush1.bf16.msra.mxu0 %v11960_v63  ;;  %v12435_v63 = vld [vmem:[%s12706_s25 + $0x38] ss:$24 sps:$4 sm:$0xff]  }
 0x7f6   : > { %6535 = vmatprep.subr.bf16.mxu0 %v11965_v0  ;;  %v12436_v0 = vld [vmem:[%s12706_s25 + $0x6c] ss:$24 sps:$4 sm:$0xff]  }
 0x7f8   : > { %6379 = vmatmul.mubr.bf16.gmra.mrb[176].mxu0 %v12405_v18  ;;  %v12004_v18 = vld [vmem:[%s15703_s2 + $0xbac] ss:$40 sps:$4 sm:$0xff]  }
 0x7f9   : > { %6388 = vmatprep.mubr.bf16.mxu0 %v12406_v61  ;;  %6536 = vmatpush1.bf16.msra.mxu0 %v11963_v35  ;;  %v11996_v35 = vld [vmem:[%s15703_s2 + $0xb08] ss:$40 sps:$4 sm:$0xff]  }
 0x7fa   : > { %6537 = vmatprep.subr.bf16.mxu0 %v11968_v23  ;;  %v12001_v23 = vld [vmem:[%s15703_s2 + $0xb5c] ss:$40 sps:$4 sm:$0xff]   ;;  %v12437_v61 = vld [vmem:[%s12706_s25 + $0x68] ss:$24 sps:$4 sm:$0xff]  }
 0x7fd   : > { %6538 = vmatpush1.bf16.msra.mxu0 %v11966_v40  ;;  %v12438_v40 = vld [vmem:[%s12706_s25 + $0x9c] ss:$24 sps:$4 sm:$0xff]  }
 0x7fe   : > { %6539 = vmatprep.subr.bf16.mxu0 %v11971_v47  ;;  %v12002_v47 = vld [vmem:[%s15703_s2 + $0xba8] ss:$40 sps:$4 sm:$0xff]  }
 0x800   : > { %6389 = vmatmul.mubr.bf16.gmra.mrb[180].mxu0 %v12407_v53  ;;  %v12010_v53 = vld [vmem:[%s15703_s2 + $0xc4c] ss:$40 sps:$4 sm:$0xff]  }
 0x801   : > { %6398 = vmatprep.mubr.bf16.mxu0 %v12408_v33  ;;  %6540 = vmatpush1.bf16.msra.mxu0 %v11969_v19  ;;  %v12007_v19 = vld [vmem:[%s15703_s2 + $0xbfc] ss:$40 sps:$4 sm:$0xff]   ;;  %v12439_v33 = vld [vmem:[%s12706_s25 + $0x98] ss:$24 sps:$4 sm:$0xff]  }
 0x802   : > { %6541 = vmatprep.subr.bf16.mxu0 %v11974_v56  ;;  %v12005_v56 = vld [vmem:[%s15703_s2 + $0xbf8] ss:$40 sps:$4 sm:$0xff]  }
 0x805   : > { %6542 = vmatpush1.bf16.msra.mxu0 %v11972_v45  ;;  %v12440_v45 = vld [vmem:[%s12706_s25 + $0xcc] ss:$24 sps:$4 sm:$0xff]  }
 0x806   : > { %6543 = vmatprep.subr.bf16.mxu0 %v11977_v62  ;;  %v12008_v62 = vld [vmem:[%s15703_s2 + $0xc48] ss:$40 sps:$4 sm:$0xff]  }
 0x808   : > { %6399 = vmatmul.mubr.bf16.gmra.mrb[184].mxu0 %v12409_v31  ;;  %v12016_v31 = vld [vmem:[%s15703_s2 + $0xcec] ss:$40 sps:$4 sm:$0xff]  }
 0x809   : > { %6408 = vmatprep.mubr.bf16.mxu0 %v12410_v54  ;;  %6544 = vmatpush1.bf16.msra.mxu0 %v11975_v12  ;;  %v12013_v12 = vld [vmem:[%s15703_s2 + $0xc9c] ss:$40 sps:$4 sm:$0xff]   ;;  %v12441_v54 = vld [vmem:[%s12706_s25 + $0xc8] ss:$24 sps:$4 sm:$0xff]  }
 0x80a   : > { %6545 = vmatprep.subr.bf16.mxu0 %v11980_v26  ;;  %v12011_v26 = vld [vmem:[%s15703_s2 + $0xc98] ss:$40 sps:$4 sm:$0xff]  }
 0x80d   : > { %6546 = vmatpush1.bf16.msra.mxu0 %v11978_v46  ;;  %v12442_v46 = vld [vmem:[%s12706_s25 + $0xfc] ss:$24 sps:$4 sm:$0xff]  }
 0x80e   : > { %6547 = vmatprep.subr.bf16.mxu0 %v11983_v58  ;;  %v12014_v58 = vld [vmem:[%s15703_s2 + $0xce8] ss:$40 sps:$4 sm:$0xff]  }
 0x810   : > { %6409 = vmatmul.mubr.bf16.gmra.mrb[188].mxu0 %v12411_v42  ;;  %v12022_v42 = vld [vmem:[%s15703_s2 + $0xd8c] ss:$40 sps:$4 sm:$0xff]  }
 0x811   : > { %6418 = vmatprep.mubr.bf16.mxu0 %v12412_v13  ;;  %6548 = vmatpush1.bf16.msra.mxu0 %v11981_v27  ;;  %v12019_v27 = vld [vmem:[%s15703_s2 + $0xd3c] ss:$40 sps:$4 sm:$0xff]   ;;  %v12443_v13 = vld [vmem:[%s12706_s25 + $0xf8] ss:$24 sps:$4 sm:$0xff]  }
 0x812   : > { %6549 = vmatprep.subr.bf16.mxu0 %v11986_v57  ;;  %v12017_v57 = vld [vmem:[%s15703_s2 + $0xd38] ss:$40 sps:$4 sm:$0xff]  }
 0x815   : > { %6550 = vmatpush1.bf16.msra.mxu0 %v11984_v22  ;;  %v12444_v22 = vld [vmem:[%s12706_s25 + $0x12c] ss:$24 sps:$4 sm:$0xff]  }
 0x816   : > { %6732 = vmatprep.subr.bf16.mxu0 %v11989_v4  ;;  %v12020_v4 = vld [vmem:[%s15703_s2 + $0xd88] ss:$40 sps:$4 sm:$0xff]  }
 0x818   : > { %6419 = vmatmul.mubr.bf16.gmra.mrb[192].mxu0 %v12413_v7  ;;  %v12025_v7 = vld [vmem:[%s15703_s2 + $0xddc] ss:$40 sps:$4 sm:$0xff]  }
 0x819   : > { %6428 = vmatprep.mubr.bf16.mxu0 %v12414_v6  ;;  %v12023_v6 = vld [vmem:[%s15703_s2 + $0xdd8] ss:$40 sps:$4 sm:$0xff]  }
 0x820   : > { %6429 = vmatmul.mubr.bf16.gmra.mrb[196].mxu0 %v12415_v38  ;;  %v12028_v38 = vld [vmem:[%s15703_s2 + $0xe2c] ss:$40 sps:$4 sm:$0xff]  }
 0x821   : > { %6438 = vmatprep.mubr.bf16.mxu0 %v12416_v2  ;;  %v12445_v2 = vld [vmem:[%s12706_s25 + $0x128] ss:$24 sps:$4 sm:$0xff]  }
 0x828   : > { %6439 = vmatmul.mubr.bf16.gmra.mrb[200].mxu0 %v12417_v52  ;;  %v12446_v52 = vld [vmem:[%s12706_s25 + $0x15c] ss:$24 sps:$4 sm:$0xff]  }
 0x829   : > { %6448 = vmatprep.mubr.bf16.mxu0 %v12418_v28  ;;  %v12026_v28 = vld [vmem:[%s15703_s2 + $0xe28] ss:$40 sps:$4 sm:$0xff]  }
 0x830   : > { %6449 = vmatmul.mubr.bf16.gmra.mrb[204].mxu0 %v12419_v39  ;;  %v12031_v39 = vld [vmem:[%s15703_s2 + $0xe7c] ss:$40 sps:$4 sm:$0xff]  }
 0x831   : > { %6458 = vmatprep.mubr.bf16.mxu0 %v12420_v1  ;;  %v12029_v1 = vld [vmem:[%s15703_s2 + $0xe78] ss:$40 sps:$4 sm:$0xff]  }
 0x838   : > { %6459 = vmatmul.mubr.bf16.gmra.mrb[208].mxu0 %v12421_v9  ;;  %v12034_v9 = vld [vmem:[%s15703_s2 + $0xecc] ss:$40 sps:$4 sm:$0xff]  }
 0x839   : > { %6468 = vmatprep.mubr.bf16.mxu0 %v12422_v43  ;;  %v12447_v43 = vld [vmem:[%s12706_s25 + $0x158] ss:$24 sps:$4 sm:$0xff]  }
 0x840   : > { %6469 = vmatmul.mubr.bf16.gmra.mrb[212].mxu0 %v12423_v44  ;;  %v12448_v44 = vld [vmem:[%s12706_s25 + $0x18c] ss:$24 sps:$4 sm:$0xff]  }
 0x841   : > { %6478 = vmatprep.mubr.bf16.mxu0 %v12424_v55  ;;  %v12032_v55 = vld [vmem:[%s15703_s2 + $0xec8] ss:$40 sps:$4 sm:$0xff]  }
 0x848   : > { %6479 = vmatmul.mubr.bf16.gmra.mrb[216].mxu0 %v12425_v59  ;;  %v12449_v59 = vld [vmem:[%s12706_s25 + $0x188] ss:$24 sps:$4 sm:$0xff]  }
 0x849   : > { %6488 = vmatprep.mubr.bf16.mxu0 %v12426_v41  ;;  %v12450_v41 = vld [vmem:[%s12706_s25 + $0x1bc] ss:$24 sps:$4 sm:$0xff]  }
 0x850   : > { %6489 = vmatmul.mubr.bf16.gmra.mrb[220].mxu0 %v12427_v5  ;;  %v12451_v5 = vld [vmem:[%s12706_s25 + $0x1b8] ss:$24 sps:$4 sm:$0xff]  }
 0x851   : > { %6498 = vmatprep.mubr.bf16.mxu0 %v12428_v29  ;;  %v12452_v29 = vld [vmem:[%s12706_s25 + $0x1ec] ss:$24 sps:$4 sm:$0xff]  }
 0x858   : > { %6499 = vmatmul.mubr.bf16.gmra.mrb[224].mxu0 %v12429_v3  ;;  %v12453_v3 = vld [vmem:[%s12706_s25 + $0x1e8] ss:$24 sps:$4 sm:$0xff]  }
 0x859   : > { %6508 = vmatprep.mubr.bf16.mxu0 %v12430_v48  ;;  %v12454_v48 = vld [vmem:[%s12706_s25 + $0x21c] ss:$24 sps:$4 sm:$0xff]  }
 0x860   : > { %6509 = vmatmul.mubr.bf16.gmra.mrb[228].mxu0 %v12431_v8  ;;  %v12455_v8 = vld [vmem:[%s12706_s25 + $0x218] ss:$24 sps:$4 sm:$0xff]  }
 0x861   : > { %6551 = vmatprep.mubr.bf16.mxu0 %v12432_v24  ;;  %v12456_v24 = vld [vmem:[%s12706_s25 + $0x24c] ss:$24 sps:$4 sm:$0xff]  }
 0x868   : > { %6552 = vmatmul.mubr.bf16.vlgmr.msra.gmra.mrb[160].mxu0 %v12433_v49  ;;  %v12459_v49 = vld [vmem:[%s12706_s25 + $0x278] ss:$24 sps:$4 sm:$0xff]  }
 0x869   : > { %6561 = vmatprep.mubr.bf16.mxu0 %v12434_v16  ;;  %6733 = vmatpush1.bf16.msra.mxu0 %v11987_v60  ;;  %v12457_v60 = vld [vmem:[%s12706_s25 + $0x248] ss:$24 sps:$4 sm:$0xff]   ;;  %v12460_v16 = vld [vmem:[%s12706_s25 + $0x2ac] ss:$24 sps:$4 sm:$0xff]  }
 0x86a   : > { %6734 = vmatprep.subr.bf16.mxu0 %v11992_v21  ;;  %v12458_v21 = vld [vmem:[%s12706_s25 + $0x27c] ss:$24 sps:$4 sm:$0xff]  }
 0x86b   : > { %v9739_v36 = vpop.f32.mrb[156].mxu0 }
 0x86c   : > { %v9740_v34 = vpop.f32.mrb[157].mxu0 }
 0x86d   : > { %v9741_v10 = vadd.f32 %v9740_v34, %v9739_v36  ;;  %v9742_v15 = vpop.f32.mrb[158].mxu0  ;;  %6735 = vmatpush1.bf16.msra.mxu0 %v11990_v51  ;;  %v12461_v51 = vld [vmem:[%s12706_s25 + $0x2a8] ss:$24 sps:$4 sm:$0xff]   ;;  %v12463_v36 = vld [vmem:[%s12706_s25 + $0x2d8] ss:$24 sps:$4 sm:$0xff]  }
 0x86e   : > { %v9743_v20 = vpop.f32.mrb[159].mxu0  ;;  %6736 = vmatprep.subr.bf16.mxu0 %v11995_v30  ;;  %v12462_v30 = vld [vmem:[%s12706_s25 + $0x2dc] ss:$24 sps:$4 sm:$0xff]   ;;  %v12464_v34 = vld [vmem:[%s12706_s25 + $0x30c] ss:$24 sps:$4 sm:$0xff]  }
 0x86f   : > { %v14870_v25 = vadd.f32 %v9741_v10, %v14609_v32  ;;  %v11999_v32 = vld [vmem:[%s15703_s2 + $0xb58] ss:$40 sps:$4 sm:$0xff]   ;;  %v12466_v15 = vld [vmem:[%s12706_s25 + $0x33c] ss:$24 sps:$4 sm:$0xff]  }
 0x870   : > { %6562 = vmatmul.mubr.bf16.gmra.mrb[164].mxu0 %v12435_v63  ;;  %v12465_v10 = vld [vmem:[%s12706_s25 + $0x308] ss:$24 sps:$4 sm:$0xff]   ;;  %v12468_v20 = vld [vmem:[%s12706_s25 + $0x14] ss:$24 sps:$4 sm:$0xff]   ;;  %v12470_v63 = vld [vmem:[%s12706_s25 + $0x44] ss:$24 sps:$4 sm:$0xff]  }
 0x871   : > { %6571 = vmatprep.mubr.bf16.mxu0 %v12436_v0  ;;  %6737 = vmatpush1.bf16.msra.mxu0 %v11993_v37  ;;  %v12467_v37 = vld [vmem:[%s12706_s25 + $0x338] ss:$24 sps:$4 sm:$0xff]  }
 0x872   : > { %6738 = vmatprep.subr.bf16.mxu0 %v11998_v17  ;;  %v12469_v17 = vld [vmem:[%s12706_s25 + $0x10] ss:$24 sps:$4 sm:$0xff]   ;;  %v12471_v0 = vld [vmem:[%s12706_s25 + $0x40] ss:$24 sps:$4 sm:$0xff]  }
 0x875   : > { %6739 = vmatpush1.bf16.msra.mxu0 %v11996_v35  ;;  %v12472_v35 = vld [vmem:[%s12706_s25 + $0x74] ss:$24 sps:$4 sm:$0xff]  }
 0x876   : > { %6740 = vmatprep.subr.bf16.mxu0 %v12001_v23  ;;  %v12473_v23 = vld [vmem:[%s12706_s25 + $0x70] ss:$24 sps:$4 sm:$0xff]  }
 0x878   : > { %6572 = vmatmul.mubr.bf16.gmra.mrb[168].mxu0 %v12437_v61  ;;  %v12476_v61 = vld [vmem:[%s12706_s25 + $0xd4] ss:$24 sps:$4 sm:$0xff]  }
 0x879   : > { %6581 = vmatprep.mubr.bf16.mxu0 %v12438_v40  ;;  %6741 = vmatpush1.bf16.msra.mxu0 %v11999_v32  ;;  %v12474_v32 = vld [vmem:[%s12706_s25 + $0xa4] ss:$24 sps:$4 sm:$0xff]   ;;  %v12477_v40 = vld [vmem:[%s12706_s25 + $0xd0] ss:$24 sps:$4 sm:$0xff]  }
 0x87a   : > { %6742 = vmatprep.subr.bf16.mxu0 %v12004_v18  ;;  %v12475_v18 = vld [vmem:[%s12706_s25 + $0xa0] ss:$24 sps:$4 sm:$0xff]  }
 0x87d   : > { %6743 = vmatpush1.bf16.msra.mxu0 %v12002_v47  ;;  %v12478_v47 = vld [vmem:[%s12706_s25 + $0x104] ss:$24 sps:$4 sm:$0xff]  }
 0x87e   : > { %6744 = vmatprep.subr.bf16.mxu0 %v12007_v19  ;;  %v12479_v19 = vld [vmem:[%s12706_s25 + $0x100] ss:$24 sps:$4 sm:$0xff]  }
 0x880   : > { %6582 = vmatmul.mubr.bf16.gmra.mrb[172].mxu0 %v12439_v33  ;;  %v12482_v33 = vld [vmem:[%s12706_s25 + $0x164] ss:$24 sps:$4 sm:$0xff]  }
 0x881   : > { %6591 = vmatprep.mubr.bf16.mxu0 %v12440_v45  ;;  %6745 = vmatpush1.bf16.msra.mxu0 %v12005_v56  ;;  %v12480_v56 = vld [vmem:[%s12706_s25 + $0x134] ss:$24 sps:$4 sm:$0xff]   ;;  %v12483_v45 = vld [vmem:[%s12706_s25 + $0x160] ss:$24 sps:$4 sm:$0xff]  }
 0x882   : > { %6746 = vmatprep.subr.bf16.mxu0 %v12010_v53  ;;  %v12481_v53 = vld [vmem:[%s12706_s25 + $0x130] ss:$24 sps:$4 sm:$0xff]  }
 0x885   : > { %6747 = vmatpush1.bf16.msra.mxu0 %v12008_v62  ;;  %v12484_v62 = vld [vmem:[%s12706_s25 + $0x194] ss:$24 sps:$4 sm:$0xff]  }
 0x886   : > { %6748 = vmatprep.subr.bf16.mxu0 %v12013_v12  ;;  %v12485_v12 = vld [vmem:[%s12706_s25 + $0x190] ss:$24 sps:$4 sm:$0xff]  }
 0x888   : > { %6592 = vmatmul.mubr.bf16.gmra.mrb[176].mxu0 %v12441_v54  ;;  %v12488_v54 = vld [vmem:[%s12706_s25 + $0x1f4] ss:$24 sps:$4 sm:$0xff]  }
 0x889   : > { %6601 = vmatprep.mubr.bf16.mxu0 %v12442_v46  ;;  %6749 = vmatpush1.bf16.msra.mxu0 %v12011_v26  ;;  %v12486_v26 = vld [vmem:[%s12706_s25 + $0x1c4] ss:$24 sps:$4 sm:$0xff]   ;;  %v12489_v46 = vld [vmem:[%s12706_s25 + $0x1f0] ss:$24 sps:$4 sm:$0xff]  }
 0x88a   : > { %6750 = vmatprep.subr.bf16.mxu0 %v12016_v31  ;;  %v12487_v31 = vld [vmem:[%s12706_s25 + $0x1c0] ss:$24 sps:$4 sm:$0xff]  }
 0x88d   : > { %6751 = vmatpush1.bf16.msra.mxu0 %v12014_v58  ;;  %v12490_v58 = vld [vmem:[%s12706_s25 + $0x224] ss:$24 sps:$4 sm:$0xff]  }
 0x88e   : > { %6752 = vmatprep.subr.bf16.mxu0 %v12019_v27  ;;  %v12491_v27 = vld [vmem:[%s12706_s25 + $0x220] ss:$24 sps:$4 sm:$0xff]  }
 0x890   : > { %6602 = vmatmul.mubr.bf16.gmra.mrb[180].mxu0 %v12443_v13  ;;  %v12494_v13 = vld [vmem:[%s12706_s25 + $0x284] ss:$24 sps:$4 sm:$0xff]  }
 0x891   : > { %6611 = vmatprep.mubr.bf16.mxu0 %v12444_v22  ;;  %6753 = vmatpush1.bf16.msra.mxu0 %v12017_v57  ;;  %v12492_v57 = vld [vmem:[%s12706_s25 + $0x254] ss:$24 sps:$4 sm:$0xff]   ;;  %v12495_v22 = vld [vmem:[%s12706_s25 + $0x280] ss:$24 sps:$4 sm:$0xff]  }
 0x892   : > { %6754 = vmatprep.subr.bf16.mxu0 %v12022_v42  ;;  %v12493_v42 = vld [vmem:[%s12706_s25 + $0x250] ss:$24 sps:$4 sm:$0xff]  }
 0x895   : > { %6755 = vmatpush1.bf16.msra.mxu0 %v12020_v4  ;;  %v12496_v4 = vld [vmem:[%s12706_s25 + $0x2b4] ss:$24 sps:$4 sm:$0xff]  }
 0x896   : > { %6756 = vmatprep.subr.bf16.mxu0 %v12025_v7  ;;  %v12497_v7 = vld [vmem:[%s12706_s25 + $0x2b0] ss:$24 sps:$4 sm:$0xff]  }
 0x898   : > { %6612 = vmatmul.mubr.bf16.gmra.mrb[184].mxu0 %v12445_v2  ;;  %v12500_v2 = vld [vmem:[%s12706_s25 + $0x314] ss:$24 sps:$4 sm:$0xff]  }
 0x899   : > { %6621 = vmatprep.mubr.bf16.mxu0 %v12446_v52  ;;  %6757 = vmatpush1.bf16.msra.mxu0 %v12023_v6  ;;  %v12498_v6 = vld [vmem:[%s12706_s25 + $0x2e4] ss:$24 sps:$4 sm:$0xff]   ;;  %v12501_v52 = vld [vmem:[%s12706_s25 + $0x310] ss:$24 sps:$4 sm:$0xff]  }
 0x89a   : > { %6758 = vmatprep.subr.bf16.mxu0 %v12028_v38  ;;  %v12499_v38 = vld [vmem:[%s12706_s25 + $0x2e0] ss:$24 sps:$4 sm:$0xff]  }
 0x89d   : > { %6759 = vmatpush1.bf16.msra.mxu0 %v12026_v28  ;;  %v12502_v28 = vld [vmem:[%s12706_s25 + $0x344] ss:$24 sps:$4 sm:$0xff]  }
 0x89e   : > { %6760 = vmatprep.subr.bf16.mxu0 %v12031_v39  ;;  %v12503_v39 = vld [vmem:[%s12706_s25 + $0x340] ss:$24 sps:$4 sm:$0xff]  }
 0x8a0   : > { %6622 = vmatmul.mubr.bf16.gmra.mrb[188].mxu0 %v12447_v43 }
 0x8a1   : > { %6631 = vmatprep.mubr.bf16.mxu0 %v12448_v44  ;;  %6761 = vmatpush1.bf16.msra.mxu0 %v12029_v1  ;;  %v12504_v1 = vld [vmem:[%s15702_s1 + $0x8] sm:$0xff] }
 0x8a2   : > { %6762 = vmatprep.subr.bf16.mxu0 %v12034_v9  ;;  %v5814_v9 = vld [vmem:[%s15704_s3 + $0x6] sm:$0x3] }
 0x8a3   : > { %v15023_v43 = vrot.slane %v5814_v9, %v15799_v50  ;;  %v15026_v44 = vrot.slane %v5814_v9, %v15800_v11 }
 0x8a5   : > { %6763 = vmatpush1.bf16.msra.mxu0 %v12032_v55 }
 0x8a8   : > { %6632 = vmatmul.mubr.bf16.gmra.mrb[192].mxu0 %v12449_v59 }
 0x8a9   : > { %6641 = vmatprep.mubr.bf16.mxu0 %v12450_v41 }
 0x8b0   : > { %6642 = vmatmul.mubr.bf16.gmra.mrb[196].mxu0 %v12451_v5 }
 0x8b1   : > { %6651 = vmatprep.mubr.bf16.mxu0 %v12452_v29 }
 0x8b8   : > { %6652 = vmatmul.mubr.bf16.gmra.mrb[200].mxu0 %v12453_v3 }
 0x8b9   : > { %6661 = vmatprep.mubr.bf16.mxu0 %v12454_v48 }
 0x8c0   : > { %6662 = vmatmul.mubr.bf16.gmra.mrb[204].mxu0 %v12455_v8 }
 0x8c1   : > { %6671 = vmatprep.mubr.bf16.mxu0 %v12456_v24 }
 0x8c8   : > { %6672 = vmatmul.mubr.bf16.gmra.mrb[208].mxu0 %v12457_v60 }
 0x8c9   : > { %6681 = vmatprep.mubr.bf16.mxu0 %v12458_v21 }
 0x8d0   : > { %6682 = vmatmul.mubr.bf16.gmra.mrb[212].mxu0 %v12459_v49 }
 0x8d1   : > { %6691 = vmatprep.mubr.bf16.mxu0 %v12460_v16 }
 0x8d8   : > { %6692 = vmatmul.mubr.bf16.gmra.mrb[216].mxu0 %v12461_v51 }
 0x8d9   : > { %6701 = vmatprep.mubr.bf16.mxu0 %v12462_v30 }
 0x8e0   : > { %6702 = vmatmul.mubr.bf16.gmra.mrb[220].mxu0 %v12463_v36 }
 0x8e1   : > { %6711 = vmatprep.mubr.bf16.mxu0 %v12464_v34 }
 0x8e8   : > { %6712 = vmatmul.mubr.bf16.gmra.mrb[224].mxu0 %v12465_v10 }
 0x8e9   : > { %6721 = vmatprep.mubr.bf16.mxu0 %v12466_v15 }
 0x8f0   : > { %6722 = vmatmul.mubr.bf16.gmra.mrb[228].mxu0 %v12467_v37 }
 0x8f1   : > { %6764 = vmatprep.mubr.bf16.mxu0 %v12468_v20 }
 0x8f8   : > { %6765 = vmatmul.mubr.bf16.vlgmr.msra.gmra.mrb[160].mxu0 %v12469_v17 }
 0x8f9   : > { %6774 = vmatprep.mubr.bf16.mxu0 %v12470_v63 }
 0x900   : > { %6775 = vmatmul.mubr.bf16.gmra.mrb[164].mxu0 %v12471_v0 }
 0x901   : > { %6784 = vmatprep.mubr.bf16.mxu0 %v12472_v35 }
 0x908   : > { %6785 = vmatmul.mubr.bf16.gmra.mrb[168].mxu0 %v12473_v23 }
 0x909   : > { %6794 = vmatprep.mubr.bf16.mxu0 %v12474_v32 }
 0x910   : > { %6795 = vmatmul.mubr.bf16.gmra.mrb[172].mxu0 %v12475_v18 }
 0x911   : > { %6804 = vmatprep.mubr.bf16.mxu0 %v12476_v61 }
 0x918   : > { %6805 = vmatmul.mubr.bf16.gmra.mrb[176].mxu0 %v12477_v40 }
 0x919   : > { %6814 = vmatprep.mubr.bf16.mxu0 %v12478_v47 }
 0x920   : > { %6815 = vmatmul.mubr.bf16.gmra.mrb[180].mxu0 %v12479_v19 }
 0x921   : > { %6824 = vmatprep.mubr.bf16.mxu0 %v12480_v56 }
 0x928   : > { %6825 = vmatmul.mubr.bf16.gmra.mrb[184].mxu0 %v12481_v53 }
 0x929   : > { %6834 = vmatprep.mubr.bf16.mxu0 %v12482_v33 }
 0x930   : > { %6835 = vmatmul.mubr.bf16.gmra.mrb[188].mxu0 %v12483_v45 }
 0x931   : > { %6844 = vmatprep.mubr.bf16.mxu0 %v12484_v62 }
 0x938   : > { %6845 = vmatmul.mubr.bf16.gmra.mrb[192].mxu0 %v12485_v12 }
 0x939   : > { %6854 = vmatprep.mubr.bf16.mxu0 %v12486_v26 }
 0x940   : > { %6855 = vmatmul.mubr.bf16.gmra.mrb[196].mxu0 %v12487_v31 }
 0x941   : > { %6864 = vmatprep.mubr.bf16.mxu0 %v12488_v54 }
 0x948   : > { %6865 = vmatmul.mubr.bf16.gmra.mrb[200].mxu0 %v12489_v46 }
 0x949   : > { %6874 = vmatprep.mubr.bf16.mxu0 %v12490_v58 }
 0x950   : > { %6875 = vmatmul.mubr.bf16.gmra.mrb[204].mxu0 %v12491_v27 }
 0x951   : > { %6884 = vmatprep.mubr.bf16.mxu0 %v12492_v57 }
 0x958   : > { %6885 = vmatmul.mubr.bf16.gmra.mrb[208].mxu0 %v12493_v42 }
 0x959   : > { %6894 = vmatprep.mubr.bf16.mxu0 %v12494_v13 }
 0x960   : > { %6895 = vmatmul.mubr.bf16.gmra.mrb[212].mxu0 %v12495_v22 }
 0x961   : > { %6904 = vmatprep.mubr.bf16.mxu0 %v12496_v4 }
 0x968   : > { %6905 = vmatmul.mubr.bf16.gmra.mrb[216].mxu0 %v12497_v7 }
 0x969   : > { %6914 = vmatprep.mubr.bf16.mxu0 %v12498_v6 }
 0x970   : > { %6915 = vmatmul.mubr.bf16.gmra.mrb[220].mxu0 %v12499_v38 }
 0x971   : > { %6924 = vmatprep.mubr.bf16.mxu0 %v12500_v2 }
 0x978   : > { %6925 = vmatmul.mubr.bf16.gmra.mrb[224].mxu0 %v12501_v52 }
 0x979   : > { %6934 = vmatprep.mubr.bf16.mxu0 %v12502_v28 }
 0x980   : > { %6935 = vmatmul.mubr.bf16.gmra.mrb[228].mxu0 %v12503_v39 }
 0x981   : > { %8693 = vmatprep.mubr.f32.mxu0 %v12504_v1 }
 0x9cb   : > { %v6766_v55 = vpop.f32.mrb[160].mxu0 }
 0x9cc   : > { %v10437_v59 = vadd.f32 %v6766_v55, %v15023_v43  ;;  %v6768_v41 = vpop.f32.mrb[161].mxu0 }
 0x9cd   : > { %v10438_v5 = vadd.f32 %v6768_v41, %v15026_v44  ;;  %v6770_v29 = vpop.f32.mrb[162].mxu0 }
 0x9ce   : > { %v10439_v3 = vadd.f32 %v6770_v29, %v15023_v43  ;;  %v6772_v48 = vpop.f32.mrb[163].mxu0  ;;  %v6945_v24 = vmax.f32 %v10437_v59, 0.0 }
 0x9cf   : > { %v10440_v8 = vadd.f32 %v6772_v48, %v15026_v44  ;;  %v6946_v21 = vmax.f32 %v10438_v5, 0.0 }
 0x9d0   : > { %v6947_v60 = vmax.f32 %v10439_v3, 0.0 }
 0x9d1   : > { %v6948_v49 = vmax.f32 %v10440_v8, 0.0 }
 0x9d2   : > { %v10007_v16 = vpack.c.bf16 %v6947_v60, %v6945_v24 }
 0x9d3   : > { %v10005_v51 = vpack.c.bf16 %v6948_v49, %v6946_v21  ;;  %v6776_v30 = vpop.f32.mrb[164].mxu0 }
 0x9d4   : > { %v10441_v36 = vadd.f32 %v6776_v30, %v15023_v43  ;;  %v6778_v34 = vpop.f32.mrb[165].mxu0 }
 0x9d5   : > { %v10442_v10 = vadd.f32 %v6778_v34, %v15026_v44  ;;  %v6780_v15 = vpop.f32.mrb[166].mxu0  ;;  %10006 = vmatprep.subr.bf16.mxu1 %v10005_v51 }
 0x9d6   : > { %v10443_v37 = vadd.f32 %v6780_v15, %v15023_v43  ;;  %v6782_v20 = vpop.f32.mrb[167].mxu0  ;;  %10008 = vmatpush1.bf16.msra.mxu1 %v10007_v16  ;;  %v6949_v63 = vmax.f32 %v10441_v36, 0.0 }
 0x9d7   : > { %v10444_v17 = vadd.f32 %v6782_v20, %v15026_v44  ;;  %v6950_v35 = vmax.f32 %v10442_v10, 0.0 }
 0x9d8   : > { %v6951_v0 = vmax.f32 %v10443_v37, 0.0 }
 0x9d9   : > { %v6952_v23 = vmax.f32 %v10444_v17, 0.0 }
 0x9da   : > { %v10011_v32 = vpack.c.bf16 %v6951_v0, %v6949_v63 }
 0x9db   : > { %v10009_v18 = vpack.c.bf16 %v6952_v23, %v6950_v35  ;;  %v6786_v61 = vpop.f32.mrb[168].mxu0 }
 0x9dc   : > { %v10445_v40 = vadd.f32 %v6786_v61, %v15023_v43  ;;  %v6788_v47 = vpop.f32.mrb[169].mxu0 }
 0x9dd   : > { %v10446_v19 = vadd.f32 %v6788_v47, %v15026_v44  ;;  %v6790_v56 = vpop.f32.mrb[170].mxu0  ;;  %10010 = vmatprep.subr.bf16.mxu1 %v10009_v18 }
 0x9de   : > { %v10447_v53 = vadd.f32 %v6790_v56, %v15023_v43  ;;  %v6792_v33 = vpop.f32.mrb[171].mxu0  ;;  %10012 = vmatpush1.bf16.msra.mxu1 %v10011_v32  ;;  %v6953_v62 = vmax.f32 %v10445_v40, 0.0 }
 0x9df   : > { %v10448_v45 = vadd.f32 %v6792_v33, %v15026_v44  ;;  %v6954_v26 = vmax.f32 %v10446_v19, 0.0 }
 0x9e0   : > { %v6955_v12 = vmax.f32 %v10447_v53, 0.0 }
 0x9e1   : > { %v6956_v31 = vmax.f32 %v10448_v45, 0.0 }
 0x9e2   : > { %v10015_v54 = vpack.c.bf16 %v6955_v12, %v6953_v62 }
 0x9e3   : > { %v10013_v46 = vpack.c.bf16 %v6956_v31, %v6954_v26  ;;  %v6796_v58 = vpop.f32.mrb[172].mxu0 }
 0x9e4   : > { %v10449_v27 = vadd.f32 %v6796_v58, %v15023_v43  ;;  %v6798_v57 = vpop.f32.mrb[173].mxu0 }
 0x9e5   : > { %v10450_v42 = vadd.f32 %v6798_v57, %v15026_v44  ;;  %v6800_v13 = vpop.f32.mrb[174].mxu0  ;;  %10014 = vmatprep.subr.bf16.mxu1 %v10013_v46 }
 0x9e6   : > { %v10451_v22 = vadd.f32 %v6800_v13, %v15023_v43  ;;  %v6802_v4 = vpop.f32.mrb[175].mxu0  ;;  %10016 = vmatpush1.bf16.msra.mxu1 %v10015_v54  ;;  %v6957_v6 = vmax.f32 %v10449_v27, 0.0 }
 0x9e7   : > { %v10452_v7 = vadd.f32 %v6802_v4, %v15026_v44  ;;  %v6958_v2 = vmax.f32 %v10450_v42, 0.0 }
 0x9e8   : > { %v6959_v38 = vmax.f32 %v10451_v22, 0.0 }
 0x9e9   : > { %v6960_v52 = vmax.f32 %v10452_v7, 0.0 }
 0x9ea   : > { %v10019_v28 = vpack.c.bf16 %v6959_v38, %v6957_v6 }
 0x9eb   : > { %v10017_v39 = vpack.c.bf16 %v6960_v52, %v6958_v2  ;;  %v6806_v1 = vpop.f32.mrb[176].mxu0 }
 0x9ec   : > { %v10453_v9 = vadd.f32 %v6806_v1, %v15023_v43  ;;  %v6808_v55 = vpop.f32.mrb[177].mxu0 }
 0x9ed   : > { %v10454_v59 = vadd.f32 %v6808_v55, %v15026_v44  ;;  %v6810_v41 = vpop.f32.mrb[178].mxu0  ;;  %10018 = vmatprep.subr.bf16.mxu1 %v10017_v39 }
 0x9ee   : > { %v10455_v5 = vadd.f32 %v6810_v41, %v15023_v43  ;;  %v6812_v29 = vpop.f32.mrb[179].mxu0  ;;  %10020 = vmatpush1.bf16.msra.mxu1 %v10019_v28  ;;  %v6961_v48 = vmax.f32 %v10453_v9, 0.0 }
 0x9ef   : > { %v10456_v3 = vadd.f32 %v6812_v29, %v15026_v44  ;;  %v6962_v24 = vmax.f32 %v10454_v59, 0.0 }
 0x9f0   : > { %v6963_v8 = vmax.f32 %v10455_v5, 0.0 }
 0x9f1   : > { %v6964_v60 = vmax.f32 %v10456_v3, 0.0 }
 0x9f2   : > { %v10023_v21 = vpack.c.bf16 %v6963_v8, %v6961_v48 }
 0x9f3   : > { %v10021_v49 = vpack.c.bf16 %v6964_v60, %v6962_v24  ;;  %v6816_v16 = vpop.f32.mrb[180].mxu0 }
 0x9f4   : > { %v10457_v51 = vadd.f32 %v6816_v16, %v15023_v43  ;;  %v6818_v30 = vpop.f32.mrb[181].mxu0 }
 0x9f5   : > { %v10458_v36 = vadd.f32 %v6818_v30, %v15026_v44  ;;  %v6820_v34 = vpop.f32.mrb[182].mxu0  ;;  %10022 = vmatprep.subr.bf16.mxu1 %v10021_v49 }
 0x9f6   : > { %v10459_v10 = vadd.f32 %v6820_v34, %v15023_v43  ;;  %v6822_v15 = vpop.f32.mrb[183].mxu0  ;;  %10024 = vmatpush1.bf16.msra.mxu1 %v10023_v21  ;;  %v6965_v20 = vmax.f32 %v10457_v51, 0.0 }
 0x9f7   : > { %v10460_v37 = vadd.f32 %v6822_v15, %v15026_v44  ;;  %v6966_v63 = vmax.f32 %v10458_v36, 0.0 }
 0x9f8   : > { %v6967_v17 = vmax.f32 %v10459_v10, 0.0 }
 0x9f9   : > { %v6968_v0 = vmax.f32 %v10460_v37, 0.0 }
 0x9fa   : > { %v10027_v35 = vpack.c.bf16 %v6967_v17, %v6965_v20 }
 0x9fb   : > { %v10025_v23 = vpack.c.bf16 %v6968_v0, %v6966_v63  ;;  %v6826_v32 = vpop.f32.mrb[184].mxu0 }
 0x9fc   : > { %v10461_v18 = vadd.f32 %v6826_v32, %v15023_v43  ;;  %v6828_v61 = vpop.f32.mrb[185].mxu0 }
 0x9fd   : > { %v10462_v40 = vadd.f32 %v6828_v61, %v15026_v44  ;;  %v6830_v47 = vpop.f32.mrb[186].mxu0  ;;  %10026 = vmatprep.subr.bf16.mxu1 %v10025_v23 }
 0x9fe   : > { %v10463_v19 = vadd.f32 %v6830_v47, %v15023_v43  ;;  %v6832_v56 = vpop.f32.mrb[187].mxu0  ;;  %10028 = vmatpush1.bf16.msra.mxu1 %v10027_v35  ;;  %v6969_v33 = vmax.f32 %v10461_v18, 0.0 }
 0x9ff   : > { %v10464_v53 = vadd.f32 %v6832_v56, %v15026_v44  ;;  %v6970_v62 = vmax.f32 %v10462_v40, 0.0 }
 0xa00   : > { %v6971_v45 = vmax.f32 %v10463_v19, 0.0 }
 0xa01   : > { %v6972_v12 = vmax.f32 %v10464_v53, 0.0 }
 0xa02   : > { %v10031_v26 = vpack.c.bf16 %v6971_v45, %v6969_v33 }
 0xa03   : > { %v10029_v31 = vpack.c.bf16 %v6972_v12, %v6970_v62  ;;  %v6836_v54 = vpop.f32.mrb[188].mxu0 }
 0xa04   : > { %v10465_v46 = vadd.f32 %v6836_v54, %v15023_v43  ;;  %v6838_v58 = vpop.f32.mrb[189].mxu0 }
 0xa05   : > { %v10466_v27 = vadd.f32 %v6838_v58, %v15026_v44  ;;  %v6840_v57 = vpop.f32.mrb[190].mxu0  ;;  %10030 = vmatprep.subr.bf16.mxu1 %v10029_v31 }
 0xa06   : > { %v10467_v42 = vadd.f32 %v6840_v57, %v15023_v43  ;;  %v6842_v13 = vpop.f32.mrb[191].mxu0  ;;  %10032 = vmatpush1.bf16.msra.mxu1 %v10031_v26  ;;  %v6973_v4 = vmax.f32 %v10465_v46, 0.0 }
 0xa07   : > { %v10468_v22 = vadd.f32 %v6842_v13, %v15026_v44  ;;  %v6974_v6 = vmax.f32 %v10466_v27, 0.0 }
 0xa08   : > { %v6975_v7 = vmax.f32 %v10467_v42, 0.0 }
 0xa09   : > { %v6976_v38 = vmax.f32 %v10468_v22, 0.0 }
 0xa0a   : > { %v10035_v2 = vpack.c.bf16 %v6975_v7, %v6973_v4 }
 0xa0b   : > { %v10033_v52 = vpack.c.bf16 %v6976_v38, %v6974_v6  ;;  %v6846_v28 = vpop.f32.mrb[192].mxu0 }
 0xa0c   : > { %v10469_v39 = vadd.f32 %v6846_v28, %v15023_v43  ;;  %v6848_v1 = vpop.f32.mrb[193].mxu0 }
 0xa0d   : > { %v10470_v9 = vadd.f32 %v6848_v1, %v15026_v44  ;;  %v6850_v55 = vpop.f32.mrb[194].mxu0  ;;  %10034 = vmatprep.subr.bf16.mxu1 %v10033_v52 }
 0xa0e   : > { %v10471_v59 = vadd.f32 %v6850_v55, %v15023_v43  ;;  %v6852_v41 = vpop.f32.mrb[195].mxu0  ;;  %10036 = vmatpush1.bf16.msra.mxu1 %v10035_v2  ;;  %v6977_v29 = vmax.f32 %v10469_v39, 0.0 }
 0xa0f   : > { %v10472_v5 = vadd.f32 %v6852_v41, %v15026_v44  ;;  %v6978_v48 = vmax.f32 %v10470_v9, 0.0 }
 0xa10   : > { %v6979_v3 = vmax.f32 %v10471_v59, 0.0 }
 0xa11   : > { %v6980_v8 = vmax.f32 %v10472_v5, 0.0 }
 0xa12   : > { %v10039_v24 = vpack.c.bf16 %v6979_v3, %v6977_v29 }
 0xa13   : > { %v10037_v60 = vpack.c.bf16 %v6980_v8, %v6978_v48  ;;  %v6856_v21 = vpop.f32.mrb[196].mxu0 }
 0xa14   : > { %v10473_v49 = vadd.f32 %v6856_v21, %v15023_v43  ;;  %v6858_v16 = vpop.f32.mrb[197].mxu0 }
 0xa15   : > { %v10474_v51 = vadd.f32 %v6858_v16, %v15026_v44  ;;  %v6860_v30 = vpop.f32.mrb[198].mxu0  ;;  %10038 = vmatprep.subr.bf16.mxu1 %v10037_v60 }
 0xa16   : > { %v10475_v36 = vadd.f32 %v6860_v30, %v15023_v43  ;;  %v6862_v34 = vpop.f32.mrb[199].mxu0  ;;  %10040 = vmatpush1.bf16.msra.mxu1 %v10039_v24  ;;  %v6981_v15 = vmax.f32 %v10473_v49, 0.0 }
 0xa17   : > { %v10476_v10 = vadd.f32 %v6862_v34, %v15026_v44  ;;  %v6982_v20 = vmax.f32 %v10474_v51, 0.0 }
 0xa18   : > { %v6983_v37 = vmax.f32 %v10475_v36, 0.0 }
 0xa19   : > { %v6984_v17 = vmax.f32 %v10476_v10, 0.0 }
 0xa1a   : > { %v10043_v63 = vpack.c.bf16 %v6983_v37, %v6981_v15 }
 0xa1b   : > { %v10041_v0 = vpack.c.bf16 %v6984_v17, %v6982_v20  ;;  %v6866_v35 = vpop.f32.mrb[200].mxu0 }
 0xa1c   : > { %v10477_v23 = vadd.f32 %v6866_v35, %v15023_v43  ;;  %v6868_v32 = vpop.f32.mrb[201].mxu0 }
 0xa1d   : > { %v10478_v18 = vadd.f32 %v6868_v32, %v15026_v44  ;;  %v6870_v61 = vpop.f32.mrb[202].mxu0  ;;  %10042 = vmatprep.subr.bf16.mxu1 %v10041_v0 }
 0xa1e   : > { %v10479_v40 = vadd.f32 %v6870_v61, %v15023_v43  ;;  %v6872_v47 = vpop.f32.mrb[203].mxu0  ;;  %10044 = vmatpush1.bf16.msra.mxu1 %v10043_v63  ;;  %v6985_v56 = vmax.f32 %v10477_v23, 0.0 }
 0xa1f   : > { %v10480_v19 = vadd.f32 %v6872_v47, %v15026_v44  ;;  %v6986_v33 = vmax.f32 %v10478_v18, 0.0 }
 0xa20   : > { %v6987_v53 = vmax.f32 %v10479_v40, 0.0 }
 0xa21   : > { %v6988_v45 = vmax.f32 %v10480_v19, 0.0 }
 0xa22   : > { %v10047_v62 = vpack.c.bf16 %v6987_v53, %v6985_v56 }
 0xa23   : > { %v10045_v12 = vpack.c.bf16 %v6988_v45, %v6986_v33  ;;  %v6876_v26 = vpop.f32.mrb[204].mxu0 }
 0xa24   : > { %v10481_v31 = vadd.f32 %v6876_v26, %v15023_v43  ;;  %v6878_v54 = vpop.f32.mrb[205].mxu0 }
 0xa25   : > { %v10482_v46 = vadd.f32 %v6878_v54, %v15026_v44  ;;  %v6880_v58 = vpop.f32.mrb[206].mxu0  ;;  %10046 = vmatprep.subr.bf16.mxu1 %v10045_v12 }
 0xa26   : > { %v10483_v27 = vadd.f32 %v6880_v58, %v15023_v43  ;;  %v6882_v57 = vpop.f32.mrb[207].mxu0  ;;  %10048 = vmatpush1.bf16.msra.mxu1 %v10047_v62  ;;  %v6989_v13 = vmax.f32 %v10481_v31, 0.0 }
 0xa27   : > { %v10484_v42 = vadd.f32 %v6882_v57, %v15026_v44  ;;  %v6990_v4 = vmax.f32 %v10482_v46, 0.0 }
 0xa28   : > { %v6991_v22 = vmax.f32 %v10483_v27, 0.0 }
 0xa29   : > { %v6992_v7 = vmax.f32 %v10484_v42, 0.0 }
 0xa2a   : > { %v10051_v6 = vpack.c.bf16 %v6991_v22, %v6989_v13 }
 0xa2b   : > { %v10049_v38 = vpack.c.bf16 %v6992_v7, %v6990_v4  ;;  %v6886_v2 = vpop.f32.mrb[208].mxu0 }
 0xa2c   : > { %v10485_v52 = vadd.f32 %v6886_v2, %v15023_v43  ;;  %v6888_v28 = vpop.f32.mrb[209].mxu0 }
 0xa2d   : > { %v10486_v39 = vadd.f32 %v6888_v28, %v15026_v44  ;;  %v6890_v1 = vpop.f32.mrb[210].mxu0  ;;  %10050 = vmatprep.subr.bf16.mxu1 %v10049_v38 }
 0xa2e   : > { %v10487_v9 = vadd.f32 %v6890_v1, %v15023_v43  ;;  %v6892_v55 = vpop.f32.mrb[211].mxu0  ;;  %10052 = vmatpush1.bf16.msra.mxu1 %v10051_v6  ;;  %v6993_v41 = vmax.f32 %v10485_v52, 0.0 }
 0xa2f   : > { %v10488_v59 = vadd.f32 %v6892_v55, %v15026_v44  ;;  %v6994_v29 = vmax.f32 %v10486_v39, 0.0 }
 0xa30   : > { %v6995_v5 = vmax.f32 %v10487_v9, 0.0 }
 0xa31   : > { %v6996_v3 = vmax.f32 %v10488_v59, 0.0 }
 0xa32   : > { %v10055_v48 = vpack.c.bf16 %v6995_v5, %v6993_v41 }
 0xa33   : > { %v10053_v8 = vpack.c.bf16 %v6996_v3, %v6994_v29  ;;  %v6896_v24 = vpop.f32.mrb[212].mxu0  ;;  %v12505_v29 = vld [vmem:[%s15702_s1] sm:$0xff] }
 0xa34   : > { %v10489_v60 = vadd.f32 %v6896_v24, %v15023_v43  ;;  %v6898_v21 = vpop.f32.mrb[213].mxu0 }
 0xa35   : > { %v10490_v49 = vadd.f32 %v6898_v21, %v15026_v44  ;;  %v6900_v16 = vpop.f32.mrb[214].mxu0  ;;  %10054 = vmatprep.subr.bf16.mxu1 %v10053_v8 }
 0xa36   : > { %v10491_v51 = vadd.f32 %v6900_v16, %v15023_v43  ;;  %v6902_v30 = vpop.f32.mrb[215].mxu0  ;;  %10056 = vmatpush1.bf16.msra.mxu1 %v10055_v48  ;;  %v6997_v34 = vmax.f32 %v10489_v60, 0.0 }
 0xa37   : > { %v10492_v36 = vadd.f32 %v6902_v30, %v15026_v44  ;;  %v6998_v15 = vmax.f32 %v10490_v49, 0.0 }
 0xa38   : > { %v6999_v10 = vmax.f32 %v10491_v51, 0.0 }
 0xa39   : > { %v7000_v37 = vmax.f32 %v10492_v36, 0.0 }
 0xa3a   : > { %v10059_v20 = vpack.c.bf16 %v6999_v10, %v6997_v34 }
 0xa3b   : > { %v10057_v17 = vpack.c.bf16 %v7000_v37, %v6998_v15  ;;  %v6906_v63 = vpop.f32.mrb[216].mxu0 }
 0xa3c   : > { %v10493_v0 = vadd.f32 %v6906_v63, %v15023_v43  ;;  %v6908_v35 = vpop.f32.mrb[217].mxu0  ;;  %v12506_v63 = vld [vmem:[%s15702_s1 + $0x10] sm:$0xff] }
 0xa3d   : > { %v10494_v23 = vadd.f32 %v6908_v35, %v15026_v44  ;;  %v6910_v32 = vpop.f32.mrb[218].mxu0  ;;  %10058 = vmatprep.subr.bf16.mxu1 %v10057_v17  ;;  %v12035_v17 = vld [vmem:[%s15705_s4 + $0x1c0] sm:$0xff]   ;;  %v12039_v35 = vld [vmem:[%s15705_s4 + $0x1d0] sm:$0xff]  }
 0xa3e   : > { %v10495_v18 = vadd.f32 %v6910_v32, %v15023_v43  ;;  %v6912_v61 = vpop.f32.mrb[219].mxu0  ;;  %10060 = vmatpush1.bf16.msra.mxu1 %v10059_v20  ;;  %v7001_v47 = vmax.f32 %v10493_v0, 0.0  ;;  %v12038_v0 = vld [vmem:[%s15705_s4 + $0x188] sm:$0xff]   ;;  %v12041_v32 = vld [vmem:[%s15705_s4 + $0x1d8] sm:$0xff]  }
 0xa3f   : > { %v10496_v40 = vadd.f32 %v6912_v61, %v15026_v44  ;;  %v7002_v56 = vmax.f32 %v10494_v23, 0.0  ;;  %v12040_v23 = vld [vmem:[%s15705_s4 + $0x190] sm:$0xff]   ;;  %v12043_v61 = vld [vmem:[%s15705_s4 + $0x1e0] sm:$0xff]  }
 0xa40   : > { %v7003_v19 = vmax.f32 %v10495_v18, 0.0  ;;  %v12042_v18 = vld [vmem:[%s15705_s4 + $0x198] sm:$0xff]  }
 0xa41   : > { %v7004_v53 = vmax.f32 %v10496_v40, 0.0  ;;  %v12044_v40 = vld [vmem:[%s15705_s4 + $0x1a0] sm:$0xff]  }
 0xa42   : > { %v10063_v33 = vpack.c.bf16 %v7003_v19, %v7001_v47  ;;  %v12045_v47 = vld [vmem:[%s15705_s4 + $0x1e8] sm:$0xff]  }
 0xa43   : > { %v10061_v45 = vpack.c.bf16 %v7004_v53, %v7002_v56  ;;  %v6916_v62 = vpop.f32.mrb[220].mxu0  ;;  %v12046_v19 = vld [vmem:[%s15705_s4 + $0x1a8] sm:$0xff]   ;;  %v12047_v56 = vld [vmem:[%s15705_s4 + $0x1f0] sm:$0xff]  }
 0xa44   : > { %v10497_v12 = vadd.f32 %v6916_v62, %v15023_v43  ;;  %v6918_v26 = vpop.f32.mrb[221].mxu0  ;;  %v12048_v53 = vld [vmem:[%s15705_s4 + $0x1b0] sm:$0xff]   ;;  %v12053_v62 = vld [vmem:[%s15703_s2 + $0x24] ss:$40 sps:$4 sm:$0xff]  }
 0xa45   : > { %v10498_v31 = vadd.f32 %v6918_v26, %v15026_v44  ;;  %v6920_v54 = vpop.f32.mrb[222].mxu0  ;;  %10062 = vmatprep.subr.bf16.mxu1 %v10061_v45  ;;  %v12050_v45 = vld [vmem:[%s15705_s4 + $0x1b8] sm:$0xff]  }
 0xa46   : > { %v10499_v46 = vadd.f32 %v6920_v54, %v15023_v43  ;;  %v6922_v58 = vpop.f32.mrb[223].mxu0  ;;  %10064 = vmatpush1.bf16.msra.mxu1 %v10063_v33  ;;  %v7005_v57 = vmax.f32 %v10497_v12, 0.0  ;;  %v12049_v33 = vld [vmem:[%s15705_s4 + $0x1f8] sm:$0xff]   ;;  %v12051_v54 = vld [vmem:[%s15703_s2 + $0x20] ss:$40 sps:$4 sm:$0xff]  }
 0xa47   : > { %v10500_v27 = vadd.f32 %v6922_v58, %v15026_v44  ;;  %v7006_v13 = vmax.f32 %v10498_v31, 0.0  ;;  %v12056_v58 = vld [vmem:[%s15703_s2 + $0x74] ss:$40 sps:$4 sm:$0xff]  }
 0xa48   : > { %v7007_v42 = vmax.f32 %v10499_v46, 0.0 }
 0xa49   : > { %v7008_v22 = vmax.f32 %v10500_v27, 0.0  ;;  %v12054_v27 = vld [vmem:[%s15703_s2 + $0x70] ss:$40 sps:$4 sm:$0xff]  }
 0xa4a   : > { %v10067_v4 = vpack.c.bf16 %v7007_v42, %v7005_v57  ;;  %v12507_v57 = vld [vmem:[%s12706_s25 + $0x4] ss:$24 sps:$4 sm:$0xff]  }
 0xa4b   : > { %v10065_v7 = vpack.c.bf16 %v7008_v22, %v7006_v13  ;;  %v6926_v6 = vpop.f32.mrb[224].mxu0  ;;  %v12059_v42 = vld [vmem:[%s15703_s2 + $0xc4] ss:$40 sps:$4 sm:$0xff]   ;;  %v12057_v13 = vld [vmem:[%s15703_s2 + $0xc0] ss:$40 sps:$4 sm:$0xff]  }
 0xa4c   : > { %v10501_v38 = vadd.f32 %v6926_v6, %v15023_v43  ;;  %v6928_v2 = vpop.f32.mrb[225].mxu0  ;;  %v12062_v22 = vld [vmem:[%s15703_s2 + $0x114] ss:$40 sps:$4 sm:$0xff]   ;;  %v12063_v6 = vld [vmem:[%s15703_s2 + $0x160] ss:$40 sps:$4 sm:$0xff]  }
 0xa4d   : > { %v10502_v52 = vadd.f32 %v6928_v2, %v15026_v44  ;;  %v6930_v28 = vpop.f32.mrb[226].mxu0  ;;  %10066 = vmatprep.subr.bf16.mxu1 %v10065_v7  ;;  %v12065_v7 = vld [vmem:[%s15703_s2 + $0x164] ss:$40 sps:$4 sm:$0xff]   ;;  %v12066_v2 = vld [vmem:[%s15703_s2 + $0x1b0] ss:$40 sps:$4 sm:$0xff]  }
 0xa4e   : > { %v10503_v39 = vadd.f32 %v6930_v28, %v15023_v43  ;;  %v6932_v1 = vpop.f32.mrb[227].mxu0  ;;  %10068 = vmatpush1.bf16.msra.mxu1 %v10067_v4  ;;  %v7009_v55 = vmax.f32 %v10501_v38, 0.0  ;;  %v12060_v4 = vld [vmem:[%s15703_s2 + $0x110] ss:$40 sps:$4 sm:$0xff]   ;;  %v12068_v38 = vld [vmem:[%s15703_s2 + $0x1b4] ss:$40 sps:$4 sm:$0xff]  }
 0xa4f   : > { %v10504_v9 = vadd.f32 %v6932_v1, %v15026_v44  ;;  %v7010_v41 = vmax.f32 %v10502_v52, 0.0  ;;  %v12071_v52 = vld [vmem:[%s15703_s2 + $0x204] ss:$40 sps:$4 sm:$0xff]   ;;  %v12069_v28 = vld [vmem:[%s15703_s2 + $0x200] ss:$40 sps:$4 sm:$0xff]  }
 0xa50   : > { %v7011_v59 = vmax.f32 %v10503_v39, 0.0  ;;  %v12074_v39 = vld [vmem:[%s15703_s2 + $0x254] ss:$40 sps:$4 sm:$0xff]   ;;  %v12072_v1 = vld [vmem:[%s15703_s2 + $0x250] ss:$40 sps:$4 sm:$0xff]  }
 0xa51   : > { %v7012_v5 = vmax.f32 %v10504_v9, 0.0  ;;  %7082 = vmatmul.mubr.f32.vlgmr.msra.gmra.mrb[2].mxu1 %v12505_v29  ;;  %v12077_v9 = vld [vmem:[%s15703_s2 + $0x2a4] ss:$40 sps:$4 sm:$0xff]   ;;  %v12081_v29 = vld [vmem:[%s15703_s2 + $0x340] ss:$40 sps:$4 sm:$0xff]  }
 0xa52   : > { %v10071_v3 = vpack.c.bf16 %v7011_v59, %v7009_v55  ;;  %7152 = vmatprep.mubr.f32.mxu1 %v15796_v14  ;;  %v12075_v55 = vld [vmem:[%s15703_s2 + $0x2a0] ss:$40 sps:$4 sm:$0xff]   ;;  %v12080_v59 = vld [vmem:[%s15703_s2 + $0x2f4] ss:$40 sps:$4 sm:$0xff]  }
 0xa53   : > { %v10069_v48 = vpack.c.bf16 %v7012_v5, %v7010_v41  ;;  %v6936_v8 = vpop.f32.mrb[228].mxu0  ;;  %v12078_v41 = vld [vmem:[%s15703_s2 + $0x2f0] ss:$40 sps:$4 sm:$0xff]   ;;  %v12083_v5 = vld [vmem:[%s15703_s2 + $0x344] ss:$40 sps:$4 sm:$0xff]  }
 0xa54   : > { %v10505_v24 = vadd.f32 %v6936_v8, %v15023_v43  ;;  %v6938_v60 = vpop.f32.mrb[229].mxu0  ;;  %v12089_v8 = vld [vmem:[%s15703_s2 + $0x3e4] ss:$40 sps:$4 sm:$0xff]  }
 0xa55   : > { %v10506_v21 = vadd.f32 %v6938_v60, %v15026_v44  ;;  %v6940_v49 = vpop.f32.mrb[230].mxu0  ;;  %10070 = vmatprep.subr.bf16.mxu1 %v10069_v48  ;;  %v12084_v48 = vld [vmem:[%s15703_s2 + $0x390] ss:$40 sps:$4 sm:$0xff]   ;;  %v12092_v60 = vld [vmem:[%s15703_s2 + $0x434] ss:$40 sps:$4 sm:$0xff]  }
 0xa56   : > { %v10507_v16 = vadd.f32 %v6940_v49, %v15023_v43  ;;  %v6942_v51 = vpop.f32.mrb[231].mxu0  ;;  %10072 = vmatpush1.bf16.msra.mxu1 %v10071_v3  ;;  %v7013_v36 = vmax.f32 %v10505_v24, 0.0  ;;  %v12036_v43 = vld [vmem:[%s15705_s4 + $0x180] sm:$0xff]   ;;  %v12086_v3 = vld [vmem:[%s15703_s2 + $0x394] ss:$40 sps:$4 sm:$0xff]  }
 0xa57   : > { %v10508_v30 = vadd.f32 %v6942_v51, %v15026_v44  ;;  %v7014_v10 = vmax.f32 %v10506_v21, 0.0  ;;  %v12037_v44 = vld [vmem:[%s15705_s4 + $0x1c8] sm:$0xff]   ;;  %v12090_v21 = vld [vmem:[%s15703_s2 + $0x430] ss:$40 sps:$4 sm:$0xff]   ;;  %v12098_v51 = vld [vmem:[%s15703_s2 + $0x4d4] ss:$40 sps:$4 sm:$0xff]  }
 0xa58   : > { %v7015_v34 = vmax.f32 %v10507_v16, 0.0  ;;  %v12087_v24 = vld [vmem:[%s15703_s2 + $0x3e0] ss:$40 sps:$4 sm:$0xff]   ;;  %v12095_v49 = vld [vmem:[%s15703_s2 + $0x484] ss:$40 sps:$4 sm:$0xff]  }
 0xa59   : > { %v7016_v15 = vmax.f32 %v10508_v30, 0.0  ;;  %v12093_v16 = vld [vmem:[%s15703_s2 + $0x480] ss:$40 sps:$4 sm:$0xff]   ;;  %v12096_v30 = vld [vmem:[%s15703_s2 + $0x4d0] ss:$40 sps:$4 sm:$0xff]  }
 0xa5a   : > { %v10075_v37 = vpack.c.bf16 %v7015_v34, %v7013_v36  ;;  %v12101_v36 = vld [vmem:[%s15703_s2 + $0x524] ss:$40 sps:$4 sm:$0xff]   ;;  %v12099_v34 = vld [vmem:[%s15703_s2 + $0x520] ss:$40 sps:$4 sm:$0xff]  }
 0xa5b   : > { %v10073_v20 = vpack.c.bf16 %v7016_v15, %v7014_v10  ;;  %v12104_v10 = vld [vmem:[%s15703_s2 + $0x574] ss:$40 sps:$4 sm:$0xff]   ;;  %v12508_v15 = vld [vmem:[%s12706_s25] ss:$24 sps:$4 sm:$0xff]  }
 0xa5d   : > { %10074 = vmatprep.subr.bf16.mxu1 %v10073_v20  ;;  %v12102_v20 = vld [vmem:[%s15703_s2 + $0x570] ss:$40 sps:$4 sm:$0xff]  }
 0xa5e   : > { %10076 = vmatpush1.bf16.msra.mxu1 %v10075_v37  ;;  %v12509_v37 = vld [vmem:[%s12706_s25 + $0x34] ss:$24 sps:$4 sm:$0xff]  }
 0xa5f   : > { %9745 = vmatprep.subr.bf16.mxu1 %v12035_v17  ;;  %v12107_v17 = vld [vmem:[%s15703_s2 + $0x5c4] ss:$40 sps:$4 sm:$0xff]  }
 0xa61   : > { %9547 = vmatmul.mubr.msk.f32.vlgmr.msra.gmra.mrb[2].mxu1 %vm2179_vm0, %v12506_v63  ;;  %v12510_v63 = vld [vmem:[%s12706_s25 + $0x30] ss:$24 sps:$4 sm:$0xff]  }
 0xa62   : > { %9746 = vmatpush3.bf16.msra.mxu1 %v12036_v43  ;;  %v12105_v43 = vld [vmem:[%s15703_s2 + $0x5c0] ss:$40 sps:$4 sm:$0xff]  }
 0xa63   : > { %9747 = vmatprep.subr.bf16.mxu1 %v12037_v44  ;;  %v12110_v44 = vld [vmem:[%s15703_s2 + $0x614] ss:$40 sps:$4 sm:$0xff]  }
 0xa66   : > { %9748 = vmatpush3.bf16.msra.mxu1 %v12038_v0  ;;  %v12511_v0 = vld [vmem:[%s12706_s25 + $0x64] ss:$24 sps:$4 sm:$0xff]  }
 0xa67   : > { %9749 = vmatprep.subr.bf16.mxu1 %v12039_v35  ;;  %v12108_v35 = vld [vmem:[%s15703_s2 + $0x610] ss:$40 sps:$4 sm:$0xff]  }
 0xa6a   : > { %9750 = vmatpush3.bf16.msra.mxu1 %v12040_v23  ;;  %v12113_v23 = vld [vmem:[%s15703_s2 + $0x664] ss:$40 sps:$4 sm:$0xff]  }
 0xa6b   : > { %9751 = vmatprep.subr.bf16.mxu1 %v12041_v32  ;;  %v12111_v32 = vld [vmem:[%s15703_s2 + $0x660] ss:$40 sps:$4 sm:$0xff]  }
 0xa6e   : > { %9752 = vmatpush3.bf16.msra.mxu1 %v12042_v18  ;;  %v12116_v18 = vld [vmem:[%s15703_s2 + $0x6b4] ss:$40 sps:$4 sm:$0xff]  }
 0xa6f   : > { %9753 = vmatprep.subr.bf16.mxu1 %v12043_v61  ;;  %v12512_v61 = vld [vmem:[%s12706_s25 + $0x60] ss:$24 sps:$4 sm:$0xff]  }
 0xa72   : > { %9754 = vmatpush3.bf16.msra.mxu1 %v12044_v40  ;;  %v12513_v40 = vld [vmem:[%s12706_s25 + $0x94] ss:$24 sps:$4 sm:$0xff]  }
 0xa73   : > { %9755 = vmatprep.subr.bf16.mxu1 %v12045_v47  ;;  %v12114_v47 = vld [vmem:[%s15703_s2 + $0x6b0] ss:$40 sps:$4 sm:$0xff]  }
 0xa76   : > { %9756 = vmatpush3.bf16.msra.mxu1 %v12046_v19  ;;  %v12119_v19 = vld [vmem:[%s15703_s2 + $0x704] ss:$40 sps:$4 sm:$0xff]  }
 0xa77   : > { %9757 = vmatprep.subr.bf16.mxu1 %v12047_v56  ;;  %v12117_v56 = vld [vmem:[%s15703_s2 + $0x700] ss:$40 sps:$4 sm:$0xff]  }
 0xa7a   : > { %9758 = vmatpush3.bf16.msra.mxu1 %v12048_v53  ;;  %v12122_v53 = vld [vmem:[%s15703_s2 + $0x754] ss:$40 sps:$4 sm:$0xff]  }
 0xa7b   : > { %9759 = vmatprep.subr.bf16.mxu1 %v12049_v33  ;;  %v12514_v33 = vld [vmem:[%s12706_s25 + $0x90] ss:$24 sps:$4 sm:$0xff]  }
 0xa7e   : > { %9760 = vmatpush3.bf16.msra.mxu1 %v12050_v45  ;;  %v12515_v45 = vld [vmem:[%s12706_s25 + $0xc4] ss:$24 sps:$4 sm:$0xff]  }
 0xa7f   : > { %7918 = vmatprep.subr.bf16.mxu1 %v12053_v62  ;;  %v12120_v62 = vld [vmem:[%s15703_s2 + $0x750] ss:$40 sps:$4 sm:$0xff]  }
 0xb34   : > { %v7154_v12 = vpop.f32.mrb[2].mxu1 }
 0xb35   : > { %v7156_v26 = vpop.f32.mrb[3].mxu1  ;;  %v7159_v46 = vpack.c.bf16 %v7154_v12, %v7154_v12  ;;  %v12125_v12 = vld [vmem:[%s15703_s2 + $0x7a4] ss:$40 sps:$4 sm:$0xff]  }
 0xb36   : > { %v7160_v31 = vpack.c.bf16 %v7156_v26, %v7156_v26  ;;  %v12123_v26 = vld [vmem:[%s15703_s2 + $0x7a0] ss:$40 sps:$4 sm:$0xff]  }
 0xb38   : > { %7321 = vmatprep.mubr.bf16.mxu1 %v7160_v31  ;;  %v12128_v31 = vld [vmem:[%s15703_s2 + $0x7f4] ss:$40 sps:$4 sm:$0xff]  }
 0xb39   : > { %7322 = vmatmul.mubr.bf16.vlgmr.msra.gmra.mrb[148].mxu1 %v7159_v46  ;;  %v12517_v46 = vld [vmem:[%s12706_s25 + $0xf4] ss:$24 sps:$4 sm:$0xff]  }
 0xb3a   : > { %7919 = vmatpush1.bf16.msra.mxu1 %v12051_v54  ;;  %7950 = vmatprep.mubr.bf16.mxu1 %v12507_v57  ;;  %v12516_v54 = vld [vmem:[%s12706_s25 + $0xc0] ss:$24 sps:$4 sm:$0xff]  }
 0xb3b   : > { %7920 = vmatprep.subr.bf16.mxu1 %v12056_v58  ;;  %v12126_v58 = vld [vmem:[%s15703_s2 + $0x7f0] ss:$40 sps:$4 sm:$0xff]   ;;  %v12129_v57 = vld [vmem:[%s15703_s2 + $0x840] ss:$40 sps:$4 sm:$0xff]  }
 0xb3e   : > { %7921 = vmatpush1.bf16.msra.mxu1 %v12054_v27  ;;  %v12131_v27 = vld [vmem:[%s15703_s2 + $0x844] ss:$40 sps:$4 sm:$0xff]  }
 0xb3f   : > { %7922 = vmatprep.subr.bf16.mxu1 %v12059_v42  ;;  %v12134_v42 = vld [vmem:[%s15703_s2 + $0x894] ss:$40 sps:$4 sm:$0xff]  }
 0xb42   : > { %7923 = vmatpush1.bf16.msra.mxu1 %v12057_v13  ;;  %v12518_v13 = vld [vmem:[%s12706_s25 + $0xf0] ss:$24 sps:$4 sm:$0xff]  }
 0xb43   : > { %7924 = vmatprep.subr.bf16.mxu1 %v12062_v22  ;;  %v12519_v22 = vld [vmem:[%s12706_s25 + $0x124] ss:$24 sps:$4 sm:$0xff]  }
 0xb46   : > { %7925 = vmatpush1.bf16.msra.mxu1 %v12060_v4  ;;  %v12132_v4 = vld [vmem:[%s15703_s2 + $0x890] ss:$40 sps:$4 sm:$0xff]  }
 0xb47   : > { %7926 = vmatprep.subr.bf16.mxu1 %v12065_v7  ;;  %v12137_v7 = vld [vmem:[%s15703_s2 + $0x8e4] ss:$40 sps:$4 sm:$0xff]  }
 0xb4a   : > { %7927 = vmatpush1.bf16.msra.mxu1 %v12063_v6  ;;  %v12135_v6 = vld [vmem:[%s15703_s2 + $0x8e0] ss:$40 sps:$4 sm:$0xff]  }
 0xb4b   : > { %7928 = vmatprep.subr.bf16.mxu1 %v12068_v38  ;;  %v12140_v38 = vld [vmem:[%s15703_s2 + $0x934] ss:$40 sps:$4 sm:$0xff]  }
 0xb4e   : > { %7929 = vmatpush1.bf16.msra.mxu1 %v12066_v2  ;;  %v12520_v2 = vld [vmem:[%s12706_s25 + $0x120] ss:$24 sps:$4 sm:$0xff]  }
 0xb4f   : > { %7930 = vmatprep.subr.bf16.mxu1 %v12071_v52  ;;  %v12521_v52 = vld [vmem:[%s12706_s25 + $0x154] ss:$24 sps:$4 sm:$0xff]  }
 0xb52   : > { %7931 = vmatpush1.bf16.msra.mxu1 %v12069_v28  ;;  %v12138_v28 = vld [vmem:[%s15703_s2 + $0x930] ss:$40 sps:$4 sm:$0xff]  }
 0xb53   : > { %7932 = vmatprep.subr.bf16.mxu1 %v12074_v39  ;;  %v12143_v39 = vld [vmem:[%s15703_s2 + $0x984] ss:$40 sps:$4 sm:$0xff]  }
 0xb56   : > { %7933 = vmatpush1.bf16.msra.mxu1 %v12072_v1  ;;  %v12141_v1 = vld [vmem:[%s15703_s2 + $0x980] ss:$40 sps:$4 sm:$0xff]  }
 0xb57   : > { %7934 = vmatprep.subr.bf16.mxu1 %v12077_v9  ;;  %v12146_v9 = vld [vmem:[%s15703_s2 + $0x9d4] ss:$40 sps:$4 sm:$0xff]  }
 0xb5a   : > { %7935 = vmatpush1.bf16.msra.mxu1 %v12075_v55  ;;  %v12522_v55 = vld [vmem:[%s12706_s25 + $0x150] ss:$24 sps:$4 sm:$0xff]  }
 0xb5b   : > { %7936 = vmatprep.subr.bf16.mxu1 %v12080_v59  ;;  %v12523_v59 = vld [vmem:[%s12706_s25 + $0x184] ss:$24 sps:$4 sm:$0xff]  }
 0xb5e   : > { %7937 = vmatpush1.bf16.msra.mxu1 %v12078_v41  ;;  %v12144_v41 = vld [vmem:[%s15703_s2 + $0x9d0] ss:$40 sps:$4 sm:$0xff]  }
 0xb5f   : > { %7938 = vmatprep.subr.bf16.mxu1 %v12083_v5  ;;  %v12149_v5 = vld [vmem:[%s15703_s2 + $0xa24] ss:$40 sps:$4 sm:$0xff]  }
 0xb62   : > { %7939 = vmatpush1.bf16.msra.mxu1 %v12081_v29  ;;  %v12524_v29 = vld [vmem:[%s12706_s25 + $0x180] ss:$24 sps:$4 sm:$0xff]  }
 0xb63   : > { %7940 = vmatprep.subr.bf16.mxu1 %v12086_v3  ;;  %v12525_v3 = vld [vmem:[%s12706_s25 + $0x1b4] ss:$24 sps:$4 sm:$0xff]  }
 0xb66   : > { %7941 = vmatpush1.bf16.msra.mxu1 %v12084_v48  ;;  %v12526_v48 = vld [vmem:[%s12706_s25 + $0x1b0] ss:$24 sps:$4 sm:$0xff]  }
 0xb67   : > { %7942 = vmatprep.subr.bf16.mxu1 %v12089_v8  ;;  %v12527_v8 = vld [vmem:[%s12706_s25 + $0x1e4] ss:$24 sps:$4 sm:$0xff]  }
 0xb6a   : > { %7943 = vmatpush1.bf16.msra.mxu1 %v12087_v24  ;;  %v12528_v24 = vld [vmem:[%s12706_s25 + $0x1e0] ss:$24 sps:$4 sm:$0xff]  }
 0xb6b   : > { %7944 = vmatprep.subr.bf16.mxu1 %v12092_v60  ;;  %v12529_v60 = vld [vmem:[%s12706_s25 + $0x214] ss:$24 sps:$4 sm:$0xff]  }
 0xb6e   : > { %7945 = vmatpush1.bf16.msra.mxu1 %v12090_v21  ;;  %v12530_v21 = vld [vmem:[%s12706_s25 + $0x210] ss:$24 sps:$4 sm:$0xff]  }
 0xb6f   : > { %7946 = vmatprep.subr.bf16.mxu1 %v12095_v49  ;;  %v12531_v49 = vld [vmem:[%s12706_s25 + $0x244] ss:$24 sps:$4 sm:$0xff]  }
 0xb72   : > { %7947 = vmatpush1.bf16.msra.mxu1 %v12093_v16  ;;  %v12532_v16 = vld [vmem:[%s12706_s25 + $0x240] ss:$24 sps:$4 sm:$0xff]  }
 0xb73   : > { %7948 = vmatprep.subr.bf16.mxu1 %v12098_v51  ;;  %v12533_v51 = vld [vmem:[%s12706_s25 + $0x274] ss:$24 sps:$4 sm:$0xff]  }
 0xb76   : > { %7949 = vmatpush1.bf16.msra.mxu1 %v12096_v30  ;;  %v12534_v30 = vld [vmem:[%s12706_s25 + $0x270] ss:$24 sps:$4 sm:$0xff]  }
 0xb77   : > { %8131 = vmatprep.subr.bf16.mxu1 %v12101_v36  ;;  %v12535_v36 = vld [vmem:[%s12706_s25 + $0x2a4] ss:$24 sps:$4 sm:$0xff]  }
 0xb79   : > { %7951 = vmatmul.mubr.bf16.vlgmr.msra.gmra.mrb[152].mxu1 %v12508_v15  ;;  %v12538_v15 = vld [vmem:[%s12706_s25 + $0x2d0] ss:$24 sps:$4 sm:$0xff]  }
 0xb7a   : > { %7960 = vmatprep.mubr.bf16.mxu1 %v12509_v37  ;;  %8132 = vmatpush1.bf16.msra.mxu1 %v12099_v34  ;;  %v12536_v34 = vld [vmem:[%s12706_s25 + $0x2a0] ss:$24 sps:$4 sm:$0xff]   ;;  %v12539_v37 = vld [vmem:[%s12706_s25 + $0x304] ss:$24 sps:$4 sm:$0xff]  }
 0xb7b   : > { %8133 = vmatprep.subr.bf16.mxu1 %v12104_v10  ;;  %v12537_v10 = vld [vmem:[%s12706_s25 + $0x2d4] ss:$24 sps:$4 sm:$0xff]  }
 0xb7e   : > { %8134 = vmatpush1.bf16.msra.mxu1 %v12102_v20  ;;  %v12540_v20 = vld [vmem:[%s12706_s25 + $0x300] ss:$24 sps:$4 sm:$0xff]  }
 0xb7f   : > { %8135 = vmatprep.subr.bf16.mxu1 %v12107_v17  ;;  %v12541_v17 = vld [vmem:[%s12706_s25 + $0x334] ss:$24 sps:$4 sm:$0xff]  }
 0xb81   : > { %7961 = vmatmul.mubr.bf16.gmra.mrb[156].mxu1 %v12510_v63  ;;  %v12147_v63 = vld [vmem:[%s15703_s2 + $0xa20] ss:$40 sps:$4 sm:$0xff]  }
 0xb82   : > { %7970 = vmatprep.mubr.bf16.mxu1 %v12511_v0  ;;  %8136 = vmatpush1.bf16.msra.mxu1 %v12105_v43  ;;  %v12542_v43 = vld [vmem:[%s12706_s25 + $0x330] ss:$24 sps:$4 sm:$0xff]   ;;  %v12152_v0 = vld [vmem:[%s15703_s2 + $0xa74] ss:$40 sps:$4 sm:$0xff]  }
 0xb83   : > { %8137 = vmatprep.subr.bf16.mxu1 %v12110_v44  ;;  %v12543_v44 = vld [vmem:[%s12706_s25 + $0xc] ss:$24 sps:$4 sm:$0xff]  }
 0xb86   : > { %8138 = vmatpush1.bf16.msra.mxu1 %v12108_v35  ;;  %v12544_v35 = vld [vmem:[%s12706_s25 + $0x8] ss:$24 sps:$4 sm:$0xff]  }
 0xb87   : > { %8139 = vmatprep.subr.bf16.mxu1 %v12113_v23  ;;  %v12545_v23 = vld [vmem:[%s12706_s25 + $0x3c] ss:$24 sps:$4 sm:$0xff]  }
 0xb89   : > { %7971 = vmatmul.mubr.bf16.gmra.mrb[160].mxu1 %v12512_v61 }
 0xb8a   : > { %7980 = vmatprep.mubr.bf16.mxu1 %v12513_v40  ;;  %8140 = vmatpush1.bf16.msra.mxu1 %v12111_v32  ;;  %v12150_v32 = vld [vmem:[%s15703_s2 + $0xa70] ss:$40 sps:$4 sm:$0xff]  }
 0xb8b   : > { %8141 = vmatprep.subr.bf16.mxu1 %v12116_v18  ;;  %v12155_v18 = vld [vmem:[%s15703_s2 + $0xac4] ss:$40 sps:$4 sm:$0xff]  }
 0xb8e   : > { %8142 = vmatpush1.bf16.msra.mxu1 %v12114_v47 }
 0xb8f   : > { %8143 = vmatprep.subr.bf16.mxu1 %v12119_v19 }
 0xb91   : > { %7981 = vmatmul.mubr.bf16.gmra.mrb[164].mxu1 %v12514_v33  ;;  %v12158_v33 = vld [vmem:[%s15703_s2 + $0xb14] ss:$40 sps:$4 sm:$0xff]  }
 0xb92   : > { %7990 = vmatprep.mubr.bf16.mxu1 %v12515_v45  ;;  %8144 = vmatpush1.bf16.msra.mxu1 %v12117_v56  ;;  %v12153_v56 = vld [vmem:[%s15703_s2 + $0xac0] ss:$40 sps:$4 sm:$0xff]  }
 0xb93   : > { %8145 = vmatprep.subr.bf16.mxu1 %v12122_v53 }
 0xb96   : > { %8146 = vmatpush1.bf16.msra.mxu1 %v12120_v62  ;;  %v12546_v62 = vld [vmem:[%s12706_s25 + $0x38] ss:$24 sps:$4 sm:$0xff]  }
 0xb97   : > { %8147 = vmatprep.subr.bf16.mxu1 %v12125_v12  ;;  %v12547_v12 = vld [vmem:[%s12706_s25 + $0x6c] ss:$24 sps:$4 sm:$0xff]  }
 0xb99   : > { %7991 = vmatmul.mubr.bf16.gmra.mrb[168].mxu1 %v12516_v54  ;;  %v12164_v54 = vld [vmem:[%s15703_s2 + $0xbb4] ss:$40 sps:$4 sm:$0xff]  }
 0xb9a   : > { %8000 = vmatprep.mubr.bf16.mxu1 %v12517_v46  ;;  %8148 = vmatpush1.bf16.msra.mxu1 %v12123_v26  ;;  %v12156_v26 = vld [vmem:[%s15703_s2 + $0xb10] ss:$40 sps:$4 sm:$0xff]   ;;  %v12548_v46 = vld [vmem:[%s12706_s25 + $0x68] ss:$24 sps:$4 sm:$0xff]  }
 0xb9b   : > { %8149 = vmatprep.subr.bf16.mxu1 %v12128_v31  ;;  %v12161_v31 = vld [vmem:[%s15703_s2 + $0xb64] ss:$40 sps:$4 sm:$0xff]  }
 0xb9e   : > { %8150 = vmatpush1.bf16.msra.mxu1 %v12126_v58  ;;  %v12549_v58 = vld [vmem:[%s12706_s25 + $0x9c] ss:$24 sps:$4 sm:$0xff]  }
 0xb9f   : > { %8151 = vmatprep.subr.bf16.mxu1 %v12131_v27  ;;  %v12162_v27 = vld [vmem:[%s15703_s2 + $0xbb0] ss:$40 sps:$4 sm:$0xff]  }
 0xba1   : > { %8001 = vmatmul.mubr.bf16.gmra.mrb[172].mxu1 %v12518_v13  ;;  %v12170_v13 = vld [vmem:[%s15703_s2 + $0xc54] ss:$40 sps:$4 sm:$0xff]  }
 0xba2   : > { %8010 = vmatprep.mubr.bf16.mxu1 %v12519_v22  ;;  %8152 = vmatpush1.bf16.msra.mxu1 %v12129_v57  ;;  %v12167_v57 = vld [vmem:[%s15703_s2 + $0xc04] ss:$40 sps:$4 sm:$0xff]   ;;  %v12550_v22 = vld [vmem:[%s12706_s25 + $0x98] ss:$24 sps:$4 sm:$0xff]  }
 0xba3   : > { %8153 = vmatprep.subr.bf16.mxu1 %v12134_v42  ;;  %v12165_v42 = vld [vmem:[%s15703_s2 + $0xc00] ss:$40 sps:$4 sm:$0xff]  }
 0xba6   : > { %8154 = vmatpush1.bf16.msra.mxu1 %v12132_v4  ;;  %v12551_v4 = vld [vmem:[%s12706_s25 + $0xcc] ss:$24 sps:$4 sm:$0xff]  }
 0xba7   : > { %8155 = vmatprep.subr.bf16.mxu1 %v12137_v7  ;;  %v12168_v7 = vld [vmem:[%s15703_s2 + $0xc50] ss:$40 sps:$4 sm:$0xff]  }
 0xba9   : > { %8011 = vmatmul.mubr.bf16.gmra.mrb[176].mxu1 %v12520_v2  ;;  %v12176_v2 = vld [vmem:[%s15703_s2 + $0xcf4] ss:$40 sps:$4 sm:$0xff]  }
 0xbaa   : > { %8020 = vmatprep.mubr.bf16.mxu1 %v12521_v52  ;;  %8156 = vmatpush1.bf16.msra.mxu1 %v12135_v6  ;;  %v12173_v6 = vld [vmem:[%s15703_s2 + $0xca4] ss:$40 sps:$4 sm:$0xff]   ;;  %v12552_v52 = vld [vmem:[%s12706_s25 + $0xc8] ss:$24 sps:$4 sm:$0xff]  }
 0xbab   : > { %8157 = vmatprep.subr.bf16.mxu1 %v12140_v38  ;;  %v12171_v38 = vld [vmem:[%s15703_s2 + $0xca0] ss:$40 sps:$4 sm:$0xff]  }
 0xbae   : > { %8158 = vmatpush1.bf16.msra.mxu1 %v12138_v28  ;;  %v12553_v28 = vld [vmem:[%s12706_s25 + $0xfc] ss:$24 sps:$4 sm:$0xff]  }
 0xbaf   : > { %8159 = vmatprep.subr.bf16.mxu1 %v12143_v39  ;;  %v12174_v39 = vld [vmem:[%s15703_s2 + $0xcf0] ss:$40 sps:$4 sm:$0xff]  }
 0xbb1   : > { %8021 = vmatmul.mubr.bf16.gmra.mrb[180].mxu1 %v12522_v55  ;;  %v12182_v55 = vld [vmem:[%s15703_s2 + $0xd94] ss:$40 sps:$4 sm:$0xff]  }
 0xbb2   : > { %8030 = vmatprep.mubr.bf16.mxu1 %v12523_v59  ;;  %8160 = vmatpush1.bf16.msra.mxu1 %v12141_v1  ;;  %v12179_v1 = vld [vmem:[%s15703_s2 + $0xd44] ss:$40 sps:$4 sm:$0xff]   ;;  %v12554_v59 = vld [vmem:[%s12706_s25 + $0xf8] ss:$24 sps:$4 sm:$0xff]  }
 0xbb3   : > { %8161 = vmatprep.subr.bf16.mxu1 %v12146_v9  ;;  %v12177_v9 = vld [vmem:[%s15703_s2 + $0xd40] ss:$40 sps:$4 sm:$0xff]  }
 0xbb6   : > { %8162 = vmatpush1.bf16.msra.mxu1 %v12144_v41  ;;  %v12555_v41 = vld [vmem:[%s12706_s25 + $0x12c] ss:$24 sps:$4 sm:$0xff]  }
 0xbb7   : > { %8344 = vmatprep.subr.bf16.mxu1 %v12149_v5  ;;  %v12180_v5 = vld [vmem:[%s15703_s2 + $0xd90] ss:$40 sps:$4 sm:$0xff]  }
 0xbb9   : > { %8031 = vmatmul.mubr.bf16.gmra.mrb[184].mxu1 %v12524_v29  ;;  %v12185_v29 = vld [vmem:[%s15703_s2 + $0xde4] ss:$40 sps:$4 sm:$0xff]  }
 0xbba   : > { %8040 = vmatprep.mubr.bf16.mxu1 %v12525_v3  ;;  %v12183_v3 = vld [vmem:[%s15703_s2 + $0xde0] ss:$40 sps:$4 sm:$0xff]  }
 0xbc1   : > { %8041 = vmatmul.mubr.bf16.gmra.mrb[188].mxu1 %v12526_v48  ;;  %v12188_v48 = vld [vmem:[%s15703_s2 + $0xe34] ss:$40 sps:$4 sm:$0xff]  }
 0xbc2   : > { %8050 = vmatprep.mubr.bf16.mxu1 %v12527_v8  ;;  %v12556_v8 = vld [vmem:[%s12706_s25 + $0x128] ss:$24 sps:$4 sm:$0xff]  }
 0xbc9   : > { %8051 = vmatmul.mubr.bf16.gmra.mrb[192].mxu1 %v12528_v24  ;;  %v12557_v24 = vld [vmem:[%s12706_s25 + $0x15c] ss:$24 sps:$4 sm:$0xff]  }
 0xbca   : > { %8060 = vmatprep.mubr.bf16.mxu1 %v12529_v60  ;;  %v12186_v60 = vld [vmem:[%s15703_s2 + $0xe30] ss:$40 sps:$4 sm:$0xff]  }
 0xbd1   : > { %8061 = vmatmul.mubr.bf16.gmra.mrb[196].mxu1 %v12530_v21  ;;  %v12191_v21 = vld [vmem:[%s15703_s2 + $0xe84] ss:$40 sps:$4 sm:$0xff]  }
 0xbd2   : > { %8070 = vmatprep.mubr.bf16.mxu1 %v12531_v49  ;;  %v12189_v49 = vld [vmem:[%s15703_s2 + $0xe80] ss:$40 sps:$4 sm:$0xff]  }
 0xbd9   : > { %8071 = vmatmul.mubr.bf16.gmra.mrb[200].mxu1 %v12532_v16  ;;  %v12194_v16 = vld [vmem:[%s15703_s2 + $0xed4] ss:$40 sps:$4 sm:$0xff]  }
 0xbda   : > { %8080 = vmatprep.mubr.bf16.mxu1 %v12533_v51  ;;  %v12558_v51 = vld [vmem:[%s12706_s25 + $0x158] ss:$24 sps:$4 sm:$0xff]  }
 0xbe1   : > { %8081 = vmatmul.mubr.bf16.gmra.mrb[204].mxu1 %v12534_v30  ;;  %v12559_v30 = vld [vmem:[%s12706_s25 + $0x18c] ss:$24 sps:$4 sm:$0xff]  }
 0xbe2   : > { %8090 = vmatprep.mubr.bf16.mxu1 %v12535_v36  ;;  %v12192_v36 = vld [vmem:[%s15703_s2 + $0xed0] ss:$40 sps:$4 sm:$0xff]  }
 0xbe9   : > { %8091 = vmatmul.mubr.bf16.gmra.mrb[208].mxu1 %v12536_v34  ;;  %v12560_v34 = vld [vmem:[%s12706_s25 + $0x188] ss:$24 sps:$4 sm:$0xff]  }
 0xbea   : > { %8100 = vmatprep.mubr.bf16.mxu1 %v12537_v10  ;;  %v12561_v10 = vld [vmem:[%s12706_s25 + $0x1bc] ss:$24 sps:$4 sm:$0xff]  }
 0xbf1   : > { %8101 = vmatmul.mubr.bf16.gmra.mrb[212].mxu1 %v12538_v15  ;;  %v12562_v15 = vld [vmem:[%s12706_s25 + $0x1b8] ss:$24 sps:$4 sm:$0xff]  }
 0xbf2   : > { %8110 = vmatprep.mubr.bf16.mxu1 %v12539_v37  ;;  %v12563_v37 = vld [vmem:[%s12706_s25 + $0x1ec] ss:$24 sps:$4 sm:$0xff]  }
 0xbf9   : > { %8111 = vmatmul.mubr.bf16.gmra.mrb[216].mxu1 %v12540_v20  ;;  %v12564_v20 = vld [vmem:[%s12706_s25 + $0x1e8] ss:$24 sps:$4 sm:$0xff]  }
 0xbfa   : > { %8120 = vmatprep.mubr.bf16.mxu1 %v12541_v17  ;;  %v12565_v17 = vld [vmem:[%s12706_s25 + $0x21c] ss:$24 sps:$4 sm:$0xff]  }
 0xc01   : > { %8121 = vmatmul.mubr.bf16.gmra.mrb[220].mxu1 %v12542_v43  ;;  %v12566_v43 = vld [vmem:[%s12706_s25 + $0x218] ss:$24 sps:$4 sm:$0xff]  }
 0xc02   : > { %8163 = vmatprep.mubr.bf16.mxu1 %v12543_v44  ;;  %v12567_v44 = vld [vmem:[%s12706_s25 + $0x24c] ss:$24 sps:$4 sm:$0xff]  }
 0xc09   : > { %8164 = vmatmul.mubr.bf16.vlgmr.msra.gmra.mrb[152].mxu1 %v12544_v35  ;;  %v12570_v35 = vld [vmem:[%s12706_s25 + $0x278] ss:$24 sps:$4 sm:$0xff]  }
 0xc0a   : > { %8173 = vmatprep.mubr.bf16.mxu1 %v12545_v23  ;;  %8345 = vmatpush1.bf16.msra.mxu1 %v12147_v63  ;;  %v12568_v63 = vld [vmem:[%s12706_s25 + $0x248] ss:$24 sps:$4 sm:$0xff]   ;;  %v12571_v23 = vld [vmem:[%s12706_s25 + $0x2ac] ss:$24 sps:$4 sm:$0xff]  }
 0xc0b   : > { %8346 = vmatprep.subr.bf16.mxu1 %v12152_v0  ;;  %v12569_v0 = vld [vmem:[%s12706_s25 + $0x27c] ss:$24 sps:$4 sm:$0xff]  }
 0xc0c   : > { %v9761_v61 = vpop.f32.mrb[148].mxu1 }
 0xc0d   : > { %v9762_v40 = vpop.f32.mrb[149].mxu1 }
 0xc0e   : > { %v9763_v47 = vadd.f32 %v9762_v40, %v9761_v61  ;;  %v9764_v19 = vpop.f32.mrb[150].mxu1  ;;  %8347 = vmatpush1.bf16.msra.mxu1 %v12150_v32  ;;  %v12572_v32 = vld [vmem:[%s12706_s25 + $0x2a8] ss:$24 sps:$4 sm:$0xff]   ;;  %v12574_v61 = vld [vmem:[%s12706_s25 + $0x2d8] ss:$24 sps:$4 sm:$0xff]  }
 0xc0f   : > { %v9765_v53 = vpop.f32.mrb[151].mxu1  ;;  %8348 = vmatprep.subr.bf16.mxu1 %v12155_v18  ;;  %v12573_v18 = vld [vmem:[%s12706_s25 + $0x2dc] ss:$24 sps:$4 sm:$0xff]   ;;  %v12575_v40 = vld [vmem:[%s12706_s25 + $0x30c] ss:$24 sps:$4 sm:$0xff]  }
 0xc10   : > { %v15409_v45 = vadd.f32 %v9763_v47, %v14870_v25  ;;  %v12159_v25 = vld [vmem:[%s15703_s2 + $0xb60] ss:$40 sps:$4 sm:$0xff]   ;;  %v12577_v19 = vld [vmem:[%s12706_s25 + $0x33c] ss:$24 sps:$4 sm:$0xff]  }
 0xc11   : > { %8174 = vmatmul.mubr.bf16.gmra.mrb[156].mxu1 %v12546_v62  ;;  %v12576_v47 = vld [vmem:[%s12706_s25 + $0x308] ss:$24 sps:$4 sm:$0xff]   ;;  %v12579_v53 = vld [vmem:[%s12706_s25 + $0x14] ss:$24 sps:$4 sm:$0xff]   ;;  %v12581_v62 = vld [vmem:[%s12706_s25 + $0x44] ss:$24 sps:$4 sm:$0xff]  }
 0xc12   : > { %8183 = vmatprep.mubr.bf16.mxu1 %v12547_v12  ;;  %8349 = vmatpush1.bf16.msra.mxu1 %v12153_v56  ;;  %v12578_v56 = vld [vmem:[%s12706_s25 + $0x338] ss:$24 sps:$4 sm:$0xff]  }
 0xc13   : > { %8350 = vmatprep.subr.bf16.mxu1 %v12158_v33  ;;  %v12580_v33 = vld [vmem:[%s12706_s25 + $0x10] ss:$24 sps:$4 sm:$0xff]   ;;  %v12582_v12 = vld [vmem:[%s12706_s25 + $0x40] ss:$24 sps:$4 sm:$0xff]  }
 0xc16   : > { %8351 = vmatpush1.bf16.msra.mxu1 %v12156_v26  ;;  %v12583_v26 = vld [vmem:[%s12706_s25 + $0x74] ss:$24 sps:$4 sm:$0xff]  }
 0xc17   : > { %8352 = vmatprep.subr.bf16.mxu1 %v12161_v31  ;;  %v12584_v31 = vld [vmem:[%s12706_s25 + $0x70] ss:$24 sps:$4 sm:$0xff]  }
 0xc19   : > { %8184 = vmatmul.mubr.bf16.gmra.mrb[160].mxu1 %v12548_v46  ;;  %v12587_v46 = vld [vmem:[%s12706_s25 + $0xd4] ss:$24 sps:$4 sm:$0xff]  }
 0xc1a   : > { %8193 = vmatprep.mubr.bf16.mxu1 %v12549_v58  ;;  %8353 = vmatpush1.bf16.msra.mxu1 %v12159_v25  ;;  %v12585_v25 = vld [vmem:[%s12706_s25 + $0xa4] ss:$24 sps:$4 sm:$0xff]   ;;  %v12588_v58 = vld [vmem:[%s12706_s25 + $0xd0] ss:$24 sps:$4 sm:$0xff]  }
 0xc1b   : > { %8354 = vmatprep.subr.bf16.mxu1 %v12164_v54  ;;  %v12586_v54 = vld [vmem:[%s12706_s25 + $0xa0] ss:$24 sps:$4 sm:$0xff]  }
 0xc1e   : > { %8355 = vmatpush1.bf16.msra.mxu1 %v12162_v27  ;;  %v12589_v27 = vld [vmem:[%s12706_s25 + $0x104] ss:$24 sps:$4 sm:$0xff]  }
 0xc1f   : > { %8356 = vmatprep.subr.bf16.mxu1 %v12167_v57  ;;  %v12590_v57 = vld [vmem:[%s12706_s25 + $0x100] ss:$24 sps:$4 sm:$0xff]  }
 0xc21   : > { %8194 = vmatmul.mubr.bf16.gmra.mrb[164].mxu1 %v12550_v22  ;;  %v12593_v22 = vld [vmem:[%s12706_s25 + $0x164] ss:$24 sps:$4 sm:$0xff]  }
 0xc22   : > { %8203 = vmatprep.mubr.bf16.mxu1 %v12551_v4  ;;  %8357 = vmatpush1.bf16.msra.mxu1 %v12165_v42  ;;  %v12591_v42 = vld [vmem:[%s12706_s25 + $0x134] ss:$24 sps:$4 sm:$0xff]   ;;  %v12594_v4 = vld [vmem:[%s12706_s25 + $0x160] ss:$24 sps:$4 sm:$0xff]  }
 0xc23   : > { %8358 = vmatprep.subr.bf16.mxu1 %v12170_v13  ;;  %v12592_v13 = vld [vmem:[%s12706_s25 + $0x130] ss:$24 sps:$4 sm:$0xff]  }
 0xc26   : > { %8359 = vmatpush1.bf16.msra.mxu1 %v12168_v7  ;;  %v12595_v7 = vld [vmem:[%s12706_s25 + $0x194] ss:$24 sps:$4 sm:$0xff]  }
 0xc27   : > { %8360 = vmatprep.subr.bf16.mxu1 %v12173_v6  ;;  %v12596_v6 = vld [vmem:[%s12706_s25 + $0x190] ss:$24 sps:$4 sm:$0xff]  }
 0xc29   : > { %8204 = vmatmul.mubr.bf16.gmra.mrb[168].mxu1 %v12552_v52  ;;  %v12599_v52 = vld [vmem:[%s12706_s25 + $0x1f4] ss:$24 sps:$4 sm:$0xff]  }
 0xc2a   : > { %8213 = vmatprep.mubr.bf16.mxu1 %v12553_v28  ;;  %8361 = vmatpush1.bf16.msra.mxu1 %v12171_v38  ;;  %v12597_v38 = vld [vmem:[%s12706_s25 + $0x1c4] ss:$24 sps:$4 sm:$0xff]   ;;  %v12600_v28 = vld [vmem:[%s12706_s25 + $0x1f0] ss:$24 sps:$4 sm:$0xff]  }
 0xc2b   : > { %8362 = vmatprep.subr.bf16.mxu1 %v12176_v2  ;;  %v12598_v2 = vld [vmem:[%s12706_s25 + $0x1c0] ss:$24 sps:$4 sm:$0xff]  }
 0xc2e   : > { %8363 = vmatpush1.bf16.msra.mxu1 %v12174_v39  ;;  %v12601_v39 = vld [vmem:[%s12706_s25 + $0x224] ss:$24 sps:$4 sm:$0xff]  }
 0xc2f   : > { %8364 = vmatprep.subr.bf16.mxu1 %v12179_v1  ;;  %v12602_v1 = vld [vmem:[%s12706_s25 + $0x220] ss:$24 sps:$4 sm:$0xff]  }
 0xc31   : > { %8214 = vmatmul.mubr.bf16.gmra.mrb[172].mxu1 %v12554_v59  ;;  %v12605_v59 = vld [vmem:[%s12706_s25 + $0x284] ss:$24 sps:$4 sm:$0xff]  }
 0xc32   : > { %8223 = vmatprep.mubr.bf16.mxu1 %v12555_v41  ;;  %8365 = vmatpush1.bf16.msra.mxu1 %v12177_v9  ;;  %v12603_v9 = vld [vmem:[%s12706_s25 + $0x254] ss:$24 sps:$4 sm:$0xff]   ;;  %v12606_v41 = vld [vmem:[%s12706_s25 + $0x280] ss:$24 sps:$4 sm:$0xff]  }
 0xc33   : > { %8366 = vmatprep.subr.bf16.mxu1 %v12182_v55  ;;  %v12604_v55 = vld [vmem:[%s12706_s25 + $0x250] ss:$24 sps:$4 sm:$0xff]  }
 0xc36   : > { %8367 = vmatpush1.bf16.msra.mxu1 %v12180_v5  ;;  %v12607_v5 = vld [vmem:[%s12706_s25 + $0x2b4] ss:$24 sps:$4 sm:$0xff]  }
 0xc37   : > { %8368 = vmatprep.subr.bf16.mxu1 %v12185_v29  ;;  %v12608_v29 = vld [vmem:[%s12706_s25 + $0x2b0] ss:$24 sps:$4 sm:$0xff]  }
 0xc39   : > { %8224 = vmatmul.mubr.bf16.gmra.mrb[176].mxu1 %v12556_v8  ;;  %v12611_v8 = vld [vmem:[%s12706_s25 + $0x314] ss:$24 sps:$4 sm:$0xff]  }
 0xc3a   : > { %8233 = vmatprep.mubr.bf16.mxu1 %v12557_v24  ;;  %8369 = vmatpush1.bf16.msra.mxu1 %v12183_v3  ;;  %v12609_v3 = vld [vmem:[%s12706_s25 + $0x2e4] ss:$24 sps:$4 sm:$0xff]   ;;  %v12612_v24 = vld [vmem:[%s12706_s25 + $0x310] ss:$24 sps:$4 sm:$0xff]  }
 0xc3b   : > { %8370 = vmatprep.subr.bf16.mxu1 %v12188_v48  ;;  %v12610_v48 = vld [vmem:[%s12706_s25 + $0x2e0] ss:$24 sps:$4 sm:$0xff]  }
 0xc3e   : > { %8371 = vmatpush1.bf16.msra.mxu1 %v12186_v60  ;;  %v12613_v60 = vld [vmem:[%s12706_s25 + $0x344] ss:$24 sps:$4 sm:$0xff]  }
 0xc3f   : > { %8372 = vmatprep.subr.bf16.mxu1 %v12191_v21  ;;  %v12614_v21 = vld [vmem:[%s12706_s25 + $0x340] ss:$24 sps:$4 sm:$0xff]  }
 0xc41   : > { %8234 = vmatmul.mubr.bf16.gmra.mrb[180].mxu1 %v12558_v51 }
 0xc42   : > { %8243 = vmatprep.mubr.bf16.mxu1 %v12559_v30  ;;  %8373 = vmatpush1.bf16.msra.mxu1 %v12189_v49  ;;  %v7426_v49 = vld [vmem:[%s15704_s3 + $0x8] sm:$0x3] }
 0xc43   : > { %8374 = vmatprep.subr.bf16.mxu1 %v12194_v16  ;;  %v15559_v16 = vrot.slane %v7426_v49, %v15799_v50  ;;  %v15562_v51 = vrot.slane %v7426_v49, %v15800_v11 }
 0xc46   : > { %8375 = vmatpush1.bf16.msra.mxu1 %v12192_v36 }
 0xc49   : > { %8244 = vmatmul.mubr.bf16.gmra.mrb[184].mxu1 %v12560_v34 }
 0xc4a   : > { %8253 = vmatprep.mubr.bf16.mxu1 %v12561_v10 }
 0xc51   : > { %8254 = vmatmul.mubr.bf16.gmra.mrb[188].mxu1 %v12562_v15 }
 0xc52   : > { %8263 = vmatprep.mubr.bf16.mxu1 %v12563_v37 }
 0xc59   : > { %8264 = vmatmul.mubr.bf16.gmra.mrb[192].mxu1 %v12564_v20 }
 0xc5a   : > { %8273 = vmatprep.mubr.bf16.mxu1 %v12565_v17 }
 0xc61   : > { %8274 = vmatmul.mubr.bf16.gmra.mrb[196].mxu1 %v12566_v43 }
 0xc62   : > { %8283 = vmatprep.mubr.bf16.mxu1 %v12567_v44 }
 0xc69   : > { %8284 = vmatmul.mubr.bf16.gmra.mrb[200].mxu1 %v12568_v63 }
 0xc6a   : > { %8293 = vmatprep.mubr.bf16.mxu1 %v12569_v0 }
 0xc71   : > { %8294 = vmatmul.mubr.bf16.gmra.mrb[204].mxu1 %v12570_v35 }
 0xc72   : > { %8303 = vmatprep.mubr.bf16.mxu1 %v12571_v23 }
 0xc79   : > { %8304 = vmatmul.mubr.bf16.gmra.mrb[208].mxu1 %v12572_v32 }
 0xc7a   : > { %8313 = vmatprep.mubr.bf16.mxu1 %v12573_v18 }
 0xc81   : > { %8314 = vmatmul.mubr.bf16.gmra.mrb[212].mxu1 %v12574_v61 }
 0xc82   : > { %8323 = vmatprep.mubr.bf16.mxu1 %v12575_v40 }
 0xc89   : > { %8324 = vmatmul.mubr.bf16.gmra.mrb[216].mxu1 %v12576_v47 }
 0xc8a   : > { %8333 = vmatprep.mubr.bf16.mxu1 %v12577_v19 }
 0xc91   : > { %8334 = vmatmul.mubr.bf16.gmra.mrb[220].mxu1 %v12578_v56 }
 0xc92   : > { %8376 = vmatprep.mubr.bf16.mxu1 %v12579_v53 }
 0xc99   : > { %8377 = vmatmul.mubr.bf16.vlgmr.msra.gmra.mrb[152].mxu1 %v12580_v33 }
 0xc9a   : > { %8386 = vmatprep.mubr.bf16.mxu1 %v12581_v62 }
 0xca1   : > { %8387 = vmatmul.mubr.bf16.gmra.mrb[156].mxu1 %v12582_v12 }
 0xca2   : > { %8396 = vmatprep.mubr.bf16.mxu1 %v12583_v26 }
 0xca9   : > { %8397 = vmatmul.mubr.bf16.gmra.mrb[160].mxu1 %v12584_v31 }
 0xcaa   : > { %8406 = vmatprep.mubr.bf16.mxu1 %v12585_v25 }
 0xcb1   : > { %8407 = vmatmul.mubr.bf16.gmra.mrb[164].mxu1 %v12586_v54 }
 0xcb2   : > { %8416 = vmatprep.mubr.bf16.mxu1 %v12587_v46 }
 0xcb9   : > { %8417 = vmatmul.mubr.bf16.gmra.mrb[168].mxu1 %v12588_v58 }
 0xcba   : > { %8426 = vmatprep.mubr.bf16.mxu1 %v12589_v27 }
 0xcc1   : > { %8427 = vmatmul.mubr.bf16.gmra.mrb[172].mxu1 %v12590_v57 }
 0xcc2   : > { %8436 = vmatprep.mubr.bf16.mxu1 %v12591_v42 }
 0xcc9   : > { %8437 = vmatmul.mubr.bf16.gmra.mrb[176].mxu1 %v12592_v13 }
 0xcca   : > { %8446 = vmatprep.mubr.bf16.mxu1 %v12593_v22 }
 0xcd1   : > { %8447 = vmatmul.mubr.bf16.gmra.mrb[180].mxu1 %v12594_v4 }
 0xcd2   : > { %8456 = vmatprep.mubr.bf16.mxu1 %v12595_v7 }
 0xcd9   : > { %8457 = vmatmul.mubr.bf16.gmra.mrb[184].mxu1 %v12596_v6 }
 0xcda   : > { %8466 = vmatprep.mubr.bf16.mxu1 %v12597_v38 }
 0xce1   : > { %8467 = vmatmul.mubr.bf16.gmra.mrb[188].mxu1 %v12598_v2 }
 0xce2   : > { %8476 = vmatprep.mubr.bf16.mxu1 %v12599_v52 }
 0xce9   : > { %8477 = vmatmul.mubr.bf16.gmra.mrb[192].mxu1 %v12600_v28 }
 0xcea   : > { %8486 = vmatprep.mubr.bf16.mxu1 %v12601_v39 }
 0xcf1   : > { %8487 = vmatmul.mubr.bf16.gmra.mrb[196].mxu1 %v12602_v1 }
 0xcf2   : > { %8496 = vmatprep.mubr.bf16.mxu1 %v12603_v9 }
 0xcf9   : > { %8497 = vmatmul.mubr.bf16.gmra.mrb[200].mxu1 %v12604_v55 }
 0xcfa   : > { %8506 = vmatprep.mubr.bf16.mxu1 %v12605_v59 }
 0xd01   : > { %8507 = vmatmul.mubr.bf16.gmra.mrb[204].mxu1 %v12606_v41 }
 0xd02   : > { %8516 = vmatprep.mubr.bf16.mxu1 %v12607_v5 }
 0xd09   : > { %8517 = vmatmul.mubr.bf16.gmra.mrb[208].mxu1 %v12608_v29 }
 0xd0a   : > { %8526 = vmatprep.mubr.bf16.mxu1 %v12609_v3 }
 0xd11   : > { %8527 = vmatmul.mubr.bf16.gmra.mrb[212].mxu1 %v12610_v48 }
 0xd12   : > { %8536 = vmatprep.mubr.bf16.mxu1 %v12611_v8 }
 0xd19   : > { %8537 = vmatmul.mubr.bf16.gmra.mrb[216].mxu1 %v12612_v24 }
 0xd1a   : > { %8546 = vmatprep.mubr.bf16.mxu1 %v12613_v60 }
 0xd21   : > { %8547 = vmatmul.mubr.bf16.gmra.mrb[220].mxu1 %v12614_v21 }
 0xd6c   : > { %v8378_v30 = vpop.f32.mrb[152].mxu1 }
 0xd6d   : > { %v10509_v36 = vadd.f32 %v8378_v30, %v15559_v16  ;;  %v8380_v34 = vpop.f32.mrb[153].mxu1 }
 0xd6e   : > { %v10510_v10 = vadd.f32 %v8380_v34, %v15562_v51  ;;  %v8382_v15 = vpop.f32.mrb[154].mxu1 }
 0xd6f   : > { %v10511_v37 = vadd.f32 %v8382_v15, %v15559_v16  ;;  %v8384_v20 = vpop.f32.mrb[155].mxu1  ;;  %v8557_v43 = vmax.f32 %v10509_v36, 0.0 }
 0xd70   : > { %v10512_v17 = vadd.f32 %v8384_v20, %v15562_v51  ;;  %v8558_v63 = vmax.f32 %v10510_v10, 0.0 }
 0xd71   : > { %v8559_v44 = vmax.f32 %v10511_v37, 0.0 }
 0xd72   : > { %v8560_v50 = vmax.f32 %v10512_v17, 0.0 }
 0xd73   : > { %v10079_v0 = vpack.c.bf16 %v8559_v44, %v8557_v43 }
 0xd74   : > { %v10077_v35 = vpack.c.bf16 %v8560_v50, %v8558_v63  ;;  %v8388_v11 = vpop.f32.mrb[156].mxu1 }
 0xd75   : > { %v10513_v23 = vadd.f32 %v8388_v11, %v15559_v16  ;;  %v8390_v32 = vpop.f32.mrb[157].mxu1 }
 0xd76   : > { %v10514_v18 = vadd.f32 %v8390_v32, %v15562_v51  ;;  %v8392_v61 = vpop.f32.mrb[158].mxu1  ;;  %10078 = vmatprep.subr.bf16.mxu0 %v10077_v35 }
 0xd77   : > { %v10515_v40 = vadd.f32 %v8392_v61, %v15559_v16  ;;  %v8394_v47 = vpop.f32.mrb[159].mxu1  ;;  %10080 = vmatpush1.bf16.msra.mxu0 %v10079_v0  ;;  %v8561_v56 = vmax.f32 %v10513_v23, 0.0 }
 0xd78   : > { %v10516_v19 = vadd.f32 %v8394_v47, %v15562_v51  ;;  %v8562_v33 = vmax.f32 %v10514_v18, 0.0 }
 0xd79   : > { %v8563_v53 = vmax.f32 %v10515_v40, 0.0 }
 0xd7a   : > { %v8564_v62 = vmax.f32 %v10516_v19, 0.0 }
 0xd7b   : > { %v10083_v12 = vpack.c.bf16 %v8563_v53, %v8561_v56 }
 0xd7c   : > { %v10081_v26 = vpack.c.bf16 %v8564_v62, %v8562_v33  ;;  %v8398_v31 = vpop.f32.mrb[160].mxu1 }
 0xd7d   : > { %v10517_v25 = vadd.f32 %v8398_v31, %v15559_v16  ;;  %v8400_v54 = vpop.f32.mrb[161].mxu1 }
 0xd7e   : > { %v10518_v46 = vadd.f32 %v8400_v54, %v15562_v51  ;;  %v8402_v58 = vpop.f32.mrb[162].mxu1  ;;  %10082 = vmatprep.subr.bf16.mxu0 %v10081_v26 }
 0xd7f   : > { %v10519_v27 = vadd.f32 %v8402_v58, %v15559_v16  ;;  %v8404_v57 = vpop.f32.mrb[163].mxu1  ;;  %10084 = vmatpush1.bf16.msra.mxu0 %v10083_v12  ;;  %v8565_v13 = vmax.f32 %v10517_v25, 0.0 }
 0xd80   : > { %v10520_v42 = vadd.f32 %v8404_v57, %v15562_v51  ;;  %v8566_v4 = vmax.f32 %v10518_v46, 0.0 }
 0xd81   : > { %v8567_v22 = vmax.f32 %v10519_v27, 0.0 }
 0xd82   : > { %v8568_v7 = vmax.f32 %v10520_v42, 0.0 }
 0xd83   : > { %v10087_v6 = vpack.c.bf16 %v8567_v22, %v8565_v13 }
 0xd84   : > { %v10085_v38 = vpack.c.bf16 %v8568_v7, %v8566_v4  ;;  %v8408_v2 = vpop.f32.mrb[164].mxu1 }
 0xd85   : > { %v10521_v52 = vadd.f32 %v8408_v2, %v15559_v16  ;;  %v8410_v28 = vpop.f32.mrb[165].mxu1 }
 0xd86   : > { %v10522_v39 = vadd.f32 %v8410_v28, %v15562_v51  ;;  %v8412_v1 = vpop.f32.mrb[166].mxu1  ;;  %10086 = vmatprep.subr.bf16.mxu0 %v10085_v38 }
 0xd87   : > { %v10523_v9 = vadd.f32 %v8412_v1, %v15559_v16  ;;  %v8414_v55 = vpop.f32.mrb[167].mxu1  ;;  %10088 = vmatpush1.bf16.msra.mxu0 %v10087_v6  ;;  %v8569_v41 = vmax.f32 %v10521_v52, 0.0 }
 0xd88   : > { %v10524_v59 = vadd.f32 %v8414_v55, %v15562_v51  ;;  %v8570_v29 = vmax.f32 %v10522_v39, 0.0 }
 0xd89   : > { %v8571_v5 = vmax.f32 %v10523_v9, 0.0 }
 0xd8a   : > { %v8572_v3 = vmax.f32 %v10524_v59, 0.0 }
 0xd8b   : > { %v10091_v48 = vpack.c.bf16 %v8571_v5, %v8569_v41 }
 0xd8c   : > { %v10089_v8 = vpack.c.bf16 %v8572_v3, %v8570_v29  ;;  %v8418_v24 = vpop.f32.mrb[168].mxu1 }
 0xd8d   : > { %v10525_v60 = vadd.f32 %v8418_v24, %v15559_v16  ;;  %v8420_v21 = vpop.f32.mrb[169].mxu1 }
 0xd8e   : > { %v10526_v49 = vadd.f32 %v8420_v21, %v15562_v51  ;;  %v8422_v30 = vpop.f32.mrb[170].mxu1  ;;  %10090 = vmatprep.subr.bf16.mxu0 %v10089_v8 }
 0xd8f   : > { %v10527_v36 = vadd.f32 %v8422_v30, %v15559_v16  ;;  %v8424_v34 = vpop.f32.mrb[171].mxu1  ;;  %10092 = vmatpush1.bf16.msra.mxu0 %v10091_v48  ;;  %v8573_v15 = vmax.f32 %v10525_v60, 0.0 }
 0xd90   : > { %v10528_v10 = vadd.f32 %v8424_v34, %v15562_v51  ;;  %v8574_v20 = vmax.f32 %v10526_v49, 0.0 }
 0xd91   : > { %v8575_v37 = vmax.f32 %v10527_v36, 0.0 }
 0xd92   : > { %v8576_v17 = vmax.f32 %v10528_v10, 0.0 }
 0xd93   : > { %v10095_v43 = vpack.c.bf16 %v8575_v37, %v8573_v15 }
 0xd94   : > { %v10093_v44 = vpack.c.bf16 %v8576_v17, %v8574_v20  ;;  %v8428_v63 = vpop.f32.mrb[172].mxu1 }
 0xd95   : > { %v10529_v50 = vadd.f32 %v8428_v63, %v15559_v16  ;;  %v8430_v0 = vpop.f32.mrb[173].mxu1 }
 0xd96   : > { %v10530_v35 = vadd.f32 %v8430_v0, %v15562_v51  ;;  %v8432_v11 = vpop.f32.mrb[174].mxu1  ;;  %10094 = vmatprep.subr.bf16.mxu0 %v10093_v44 }
 0xd97   : > { %v10531_v23 = vadd.f32 %v8432_v11, %v15559_v16  ;;  %v8434_v32 = vpop.f32.mrb[175].mxu1  ;;  %10096 = vmatpush1.bf16.msra.mxu0 %v10095_v43  ;;  %v8577_v61 = vmax.f32 %v10529_v50, 0.0 }
 0xd98   : > { %v10532_v18 = vadd.f32 %v8434_v32, %v15562_v51  ;;  %v8578_v47 = vmax.f32 %v10530_v35, 0.0 }
 0xd99   : > { %v8579_v40 = vmax.f32 %v10531_v23, 0.0 }
 0xd9a   : > { %v8580_v19 = vmax.f32 %v10532_v18, 0.0 }
 0xd9b   : > { %v10099_v56 = vpack.c.bf16 %v8579_v40, %v8577_v61 }
 0xd9c   : > { %v10097_v53 = vpack.c.bf16 %v8580_v19, %v8578_v47  ;;  %v8438_v33 = vpop.f32.mrb[176].mxu1 }
 0xd9d   : > { %v10533_v62 = vadd.f32 %v8438_v33, %v15559_v16  ;;  %v8440_v12 = vpop.f32.mrb[177].mxu1 }
 0xd9e   : > { %v10534_v26 = vadd.f32 %v8440_v12, %v15562_v51  ;;  %v8442_v31 = vpop.f32.mrb[178].mxu1  ;;  %10098 = vmatprep.subr.bf16.mxu0 %v10097_v53 }
 0xd9f   : > { %v10535_v25 = vadd.f32 %v8442_v31, %v15559_v16  ;;  %v8444_v54 = vpop.f32.mrb[179].mxu1  ;;  %10100 = vmatpush1.bf16.msra.mxu0 %v10099_v56  ;;  %v8581_v58 = vmax.f32 %v10533_v62, 0.0 }
 0xda0   : > { %v10536_v46 = vadd.f32 %v8444_v54, %v15562_v51  ;;  %v8582_v57 = vmax.f32 %v10534_v26, 0.0 }
 0xda1   : > { %v8583_v27 = vmax.f32 %v10535_v25, 0.0 }
 0xda2   : > { %v8584_v42 = vmax.f32 %v10536_v46, 0.0 }
 0xda3   : > { %v10103_v13 = vpack.c.bf16 %v8583_v27, %v8581_v58 }
 0xda4   : > { %v10101_v22 = vpack.c.bf16 %v8584_v42, %v8582_v57  ;;  %v8448_v4 = vpop.f32.mrb[180].mxu1 }
 0xda5   : > { %v10537_v7 = vadd.f32 %v8448_v4, %v15559_v16  ;;  %v8450_v6 = vpop.f32.mrb[181].mxu1 }
 0xda6   : > { %v10538_v38 = vadd.f32 %v8450_v6, %v15562_v51  ;;  %v8452_v2 = vpop.f32.mrb[182].mxu1  ;;  %10102 = vmatprep.subr.bf16.mxu0 %v10101_v22 }
 0xda7   : > { %v10539_v52 = vadd.f32 %v8452_v2, %v15559_v16  ;;  %v8454_v28 = vpop.f32.mrb[183].mxu1  ;;  %10104 = vmatpush1.bf16.msra.mxu0 %v10103_v13  ;;  %v8585_v1 = vmax.f32 %v10537_v7, 0.0 }
 0xda8   : > { %v10540_v39 = vadd.f32 %v8454_v28, %v15562_v51  ;;  %v8586_v55 = vmax.f32 %v10538_v38, 0.0 }
 0xda9   : > { %v8587_v9 = vmax.f32 %v10539_v52, 0.0 }
 0xdaa   : > { %v8588_v59 = vmax.f32 %v10540_v39, 0.0 }
 0xdab   : > { %v10107_v41 = vpack.c.bf16 %v8587_v9, %v8585_v1 }
 0xdac   : > { %v10105_v5 = vpack.c.bf16 %v8588_v59, %v8586_v55  ;;  %v8458_v29 = vpop.f32.mrb[184].mxu1 }
 0xdad   : > { %v10541_v3 = vadd.f32 %v8458_v29, %v15559_v16  ;;  %v8460_v48 = vpop.f32.mrb[185].mxu1 }
 0xdae   : > { %v10542_v8 = vadd.f32 %v8460_v48, %v15562_v51  ;;  %v8462_v24 = vpop.f32.mrb[186].mxu1  ;;  %10106 = vmatprep.subr.bf16.mxu0 %v10105_v5 }
 0xdaf   : > { %v10543_v60 = vadd.f32 %v8462_v24, %v15559_v16  ;;  %v8464_v21 = vpop.f32.mrb[187].mxu1  ;;  %10108 = vmatpush1.bf16.msra.mxu0 %v10107_v41  ;;  %v8589_v30 = vmax.f32 %v10541_v3, 0.0 }
 0xdb0   : > { %v10544_v49 = vadd.f32 %v8464_v21, %v15562_v51  ;;  %v8590_v34 = vmax.f32 %v10542_v8, 0.0 }
 0xdb1   : > { %v8591_v36 = vmax.f32 %v10543_v60, 0.0 }
 0xdb2   : > { %v8592_v10 = vmax.f32 %v10544_v49, 0.0 }
 0xdb3   : > { %v10111_v15 = vpack.c.bf16 %v8591_v36, %v8589_v30 }
 0xdb4   : > { %v10109_v37 = vpack.c.bf16 %v8592_v10, %v8590_v34  ;;  %v8468_v20 = vpop.f32.mrb[188].mxu1 }
 0xdb5   : > { %v10545_v17 = vadd.f32 %v8468_v20, %v15559_v16  ;;  %v8470_v43 = vpop.f32.mrb[189].mxu1 }
 0xdb6   : > { %v10546_v44 = vadd.f32 %v8470_v43, %v15562_v51  ;;  %v8472_v63 = vpop.f32.mrb[190].mxu1  ;;  %10110 = vmatprep.subr.bf16.mxu0 %v10109_v37 }
 0xdb7   : > { %v10547_v50 = vadd.f32 %v8472_v63, %v15559_v16  ;;  %v8474_v0 = vpop.f32.mrb[191].mxu1  ;;  %10112 = vmatpush1.bf16.msra.mxu0 %v10111_v15  ;;  %v8593_v11 = vmax.f32 %v10545_v17, 0.0 }
 0xdb8   : > { %v10548_v35 = vadd.f32 %v8474_v0, %v15562_v51  ;;  %v8594_v32 = vmax.f32 %v10546_v44, 0.0 }
 0xdb9   : > { %v8595_v23 = vmax.f32 %v10547_v50, 0.0 }
 0xdba   : > { %v8596_v18 = vmax.f32 %v10548_v35, 0.0 }
 0xdbb   : > { %v10115_v61 = vpack.c.bf16 %v8595_v23, %v8593_v11 }
 0xdbc   : > { %v10113_v40 = vpack.c.bf16 %v8596_v18, %v8594_v32  ;;  %v8478_v47 = vpop.f32.mrb[192].mxu1 }
 0xdbd   : > { %v10549_v19 = vadd.f32 %v8478_v47, %v15559_v16  ;;  %v8480_v56 = vpop.f32.mrb[193].mxu1 }
 0xdbe   : > { %v10550_v53 = vadd.f32 %v8480_v56, %v15562_v51  ;;  %v8482_v33 = vpop.f32.mrb[194].mxu1  ;;  %10114 = vmatprep.subr.bf16.mxu0 %v10113_v40 }
 0xdbf   : > { %v10551_v62 = vadd.f32 %v8482_v33, %v15559_v16  ;;  %v8484_v12 = vpop.f32.mrb[195].mxu1  ;;  %10116 = vmatpush1.bf16.msra.mxu0 %v10115_v61  ;;  %v8597_v31 = vmax.f32 %v10549_v19, 0.0 }
 0xdc0   : > { %v10552_v26 = vadd.f32 %v8484_v12, %v15562_v51  ;;  %v8598_v54 = vmax.f32 %v10550_v53, 0.0 }
 0xdc1   : > { %v8599_v25 = vmax.f32 %v10551_v62, 0.0 }
 0xdc2   : > { %v8600_v46 = vmax.f32 %v10552_v26, 0.0 }
 0xdc3   : > { %v10119_v58 = vpack.c.bf16 %v8599_v25, %v8597_v31 }
 0xdc4   : > { %v10117_v27 = vpack.c.bf16 %v8600_v46, %v8598_v54  ;;  %v8488_v57 = vpop.f32.mrb[196].mxu1 }
 0xdc5   : > { %v10553_v42 = vadd.f32 %v8488_v57, %v15559_v16  ;;  %v8490_v13 = vpop.f32.mrb[197].mxu1 }
 0xdc6   : > { %v10554_v22 = vadd.f32 %v8490_v13, %v15562_v51  ;;  %v8492_v4 = vpop.f32.mrb[198].mxu1  ;;  %10118 = vmatprep.subr.bf16.mxu0 %v10117_v27 }
 0xdc7   : > { %v10555_v7 = vadd.f32 %v8492_v4, %v15559_v16  ;;  %v8494_v6 = vpop.f32.mrb[199].mxu1  ;;  %10120 = vmatpush1.bf16.msra.mxu0 %v10119_v58  ;;  %v8601_v2 = vmax.f32 %v10553_v42, 0.0 }
 0xdc8   : > { %v10556_v38 = vadd.f32 %v8494_v6, %v15562_v51  ;;  %v8602_v28 = vmax.f32 %v10554_v22, 0.0 }
 0xdc9   : > { %v8603_v52 = vmax.f32 %v10555_v7, 0.0 }
 0xdca   : > { %v8604_v39 = vmax.f32 %v10556_v38, 0.0 }
 0xdcb   : > { %v10123_v1 = vpack.c.bf16 %v8603_v52, %v8601_v2 }
 0xdcc   : > { %v10121_v9 = vpack.c.bf16 %v8604_v39, %v8602_v28  ;;  %v8498_v55 = vpop.f32.mrb[200].mxu1 }
 0xdcd   : > { %v10557_v59 = vadd.f32 %v8498_v55, %v15559_v16  ;;  %v8500_v41 = vpop.f32.mrb[201].mxu1 }
 0xdce   : > { %v10558_v5 = vadd.f32 %v8500_v41, %v15562_v51  ;;  %v8502_v29 = vpop.f32.mrb[202].mxu1  ;;  %10122 = vmatprep.subr.bf16.mxu0 %v10121_v9 }
 0xdcf   : > { %v10559_v3 = vadd.f32 %v8502_v29, %v15559_v16  ;;  %v8504_v48 = vpop.f32.mrb[203].mxu1  ;;  %10124 = vmatpush1.bf16.msra.mxu0 %v10123_v1  ;;  %v8605_v24 = vmax.f32 %v10557_v59, 0.0 }
 0xdd0   : > { %v10560_v8 = vadd.f32 %v8504_v48, %v15562_v51  ;;  %v8606_v21 = vmax.f32 %v10558_v5, 0.0 }
 0xdd1   : > { %v8607_v60 = vmax.f32 %v10559_v3, 0.0 }
 0xdd2   : > { %v8608_v49 = vmax.f32 %v10560_v8, 0.0 }
 0xdd3   : > { %v10127_v30 = vpack.c.bf16 %v8607_v60, %v8605_v24  ;;  %v12615_v24 = vld [vmem:[%s15702_s1] sm:$0xff] }
 0xdd4   : > { %v10125_v36 = vpack.c.bf16 %v8608_v49, %v8606_v21  ;;  %v8508_v34 = vpop.f32.mrb[204].mxu1 }
 0xdd5   : > { %v10561_v10 = vadd.f32 %v8508_v34, %v15559_v16  ;;  %v8510_v15 = vpop.f32.mrb[205].mxu1 }
 0xdd6   : > { %v10562_v37 = vadd.f32 %v8510_v15, %v15562_v51  ;;  %v8512_v20 = vpop.f32.mrb[206].mxu1  ;;  %10126 = vmatprep.subr.bf16.mxu0 %v10125_v36 }
 0xdd7   : > { %v10563_v17 = vadd.f32 %v8512_v20, %v15559_v16  ;;  %v8514_v43 = vpop.f32.mrb[207].mxu1  ;;  %10128 = vmatpush1.bf16.msra.mxu0 %v10127_v30  ;;  %v8609_v63 = vmax.f32 %v10561_v10, 0.0 }
 0xdd8   : > { %v10564_v44 = vadd.f32 %v8514_v43, %v15562_v51  ;;  %v8610_v0 = vmax.f32 %v10562_v37, 0.0 }
 0xdd9   : > { %v8611_v50 = vmax.f32 %v10563_v17, 0.0 }
 0xdda   : > { %v8612_v35 = vmax.f32 %v10564_v44, 0.0 }
 0xddb   : > { %v10131_v11 = vpack.c.bf16 %v8611_v50, %v8609_v63 }
 0xddc   : > { %v10129_v23 = vpack.c.bf16 %v8612_v35, %v8610_v0  ;;  %v8518_v32 = vpop.f32.mrb[208].mxu1  ;;  %v12195_v0 = vld [vmem:[%s15705_s4 + $0x240] sm:$0xff]   ;;  %v12616_v35 = vld [vmem:[%s15702_s1 + $0x10] sm:$0xff] }
 0xddd   : > { %v10565_v18 = vadd.f32 %v8518_v32, %v15559_v16  ;;  %v8520_v61 = vpop.f32.mrb[209].mxu1  ;;  %v12200_v32 = vld [vmem:[%s15705_s4 + $0x210] sm:$0xff]  }
 0xdde   : > { %v10566_v40 = vadd.f32 %v8520_v61, %v15562_v51  ;;  %v8522_v47 = vpop.f32.mrb[210].mxu1  ;;  %10130 = vmatprep.subr.bf16.mxu0 %v10129_v23  ;;  %v12199_v23 = vld [vmem:[%s15705_s4 + $0x250] sm:$0xff]   ;;  %v12202_v61 = vld [vmem:[%s15705_s4 + $0x218] sm:$0xff]  }
 0xddf   : > { %v10567_v19 = vadd.f32 %v8522_v47, %v15559_v16  ;;  %v8524_v56 = vpop.f32.mrb[211].mxu1  ;;  %10132 = vmatpush1.bf16.msra.mxu0 %v10131_v11  ;;  %v8613_v33 = vmax.f32 %v10565_v18, 0.0  ;;  %v12198_v11 = vld [vmem:[%s15705_s4 + $0x208] sm:$0xff]   ;;  %v12201_v18 = vld [vmem:[%s15705_s4 + $0x258] sm:$0xff]   ;;  %v12204_v47 = vld [vmem:[%s15705_s4 + $0x220] sm:$0xff]  }
 0xde0   : > { %v10568_v53 = vadd.f32 %v8524_v56, %v15562_v51  ;;  %v8614_v12 = vmax.f32 %v10566_v40, 0.0  ;;  %v12203_v40 = vld [vmem:[%s15705_s4 + $0x260] sm:$0xff]   ;;  %v12206_v56 = vld [vmem:[%s15705_s4 + $0x228] sm:$0xff]  }
 0xde1   : > { %v8615_v62 = vmax.f32 %v10567_v19, 0.0  ;;  %v12205_v19 = vld [vmem:[%s15705_s4 + $0x268] sm:$0xff]  }
 0xde2   : > { %v8616_v26 = vmax.f32 %v10568_v53, 0.0  ;;  %v12207_v53 = vld [vmem:[%s15705_s4 + $0x270] sm:$0xff]  }
 0xde3   : > { %v10135_v31 = vpack.c.bf16 %v8615_v62, %v8613_v33  ;;  %v12208_v33 = vld [vmem:[%s15705_s4 + $0x230] sm:$0xff]   ;;  %v12209_v62 = vld [vmem:[%s15705_s4 + $0x278] sm:$0xff]  }
 0xde4   : > { %v10133_v25 = vpack.c.bf16 %v8616_v26, %v8614_v12  ;;  %v8528_v54 = vpop.f32.mrb[212].mxu1  ;;  %v12210_v12 = vld [vmem:[%s15705_s4 + $0x238] sm:$0xff]  }
 0xde5   : > { %v10569_v46 = vadd.f32 %v8528_v54, %v15559_v16  ;;  %v8530_v58 = vpop.f32.mrb[213].mxu1 }
 0xde6   : > { %v10570_v27 = vadd.f32 %v8530_v58, %v15562_v51  ;;  %v8532_v57 = vpop.f32.mrb[214].mxu1  ;;  %10134 = vmatprep.subr.bf16.mxu0 %v10133_v25 }
 0xde7   : > { %v10571_v42 = vadd.f32 %v8532_v57, %v15559_v16  ;;  %v8534_v13 = vpop.f32.mrb[215].mxu1  ;;  %10136 = vmatpush1.bf16.msra.mxu0 %v10135_v31  ;;  %v8617_v4 = vmax.f32 %v10569_v46, 0.0 }
 0xde8   : > { %v10572_v22 = vadd.f32 %v8534_v13, %v15562_v51  ;;  %v8618_v6 = vmax.f32 %v10570_v27, 0.0 }
 0xde9   : > { %v8619_v7 = vmax.f32 %v10571_v42, 0.0 }
 0xdea   : > { %v8620_v38 = vmax.f32 %v10572_v22, 0.0 }
 0xdeb   : > { %v10139_v2 = vpack.c.bf16 %v8619_v7, %v8617_v4 }
 0xdec   : > { %v10137_v52 = vpack.c.bf16 %v8620_v38, %v8618_v6  ;;  %v8538_v28 = vpop.f32.mrb[216].mxu1 }
 0xded   : > { %v10573_v39 = vadd.f32 %v8538_v28, %v15559_v16  ;;  %v8540_v1 = vpop.f32.mrb[217].mxu1 }
 0xdee   : > { %v10574_v9 = vadd.f32 %v8540_v1, %v15562_v51  ;;  %v8542_v55 = vpop.f32.mrb[218].mxu1  ;;  %10138 = vmatprep.subr.bf16.mxu0 %v10137_v52 }
 0xdef   : > { %v10575_v59 = vadd.f32 %v8542_v55, %v15559_v16  ;;  %v8544_v41 = vpop.f32.mrb[219].mxu1  ;;  %10140 = vmatpush1.bf16.msra.mxu0 %v10139_v2  ;;  %v8621_v29 = vmax.f32 %v10573_v39, 0.0 }
 0xdf0   : > { %v10576_v5 = vadd.f32 %v8544_v41, %v15562_v51  ;;  %v8622_v48 = vmax.f32 %v10574_v9, 0.0 }
 0xdf1   : > { %v8623_v3 = vmax.f32 %v10575_v59, 0.0 }
 0xdf2   : > { %v8624_v8 = vmax.f32 %v10576_v5, 0.0  ;;  %8694 = vmatmul.mubr.f32.vlgmr.msra.gmra.mrb[232].mxu0 %v12615_v24 }
 0xdf3   : > { %v10143_v60 = vpack.c.bf16 %v8623_v3, %v8621_v29  ;;  %8764 = vmatprep.mubr.f32.mxu0 %v15796_v14 }
 0xdf4   : > { %v10141_v21 = vpack.c.bf16 %v8624_v8, %v8622_v48  ;;  %v8548_v49 = vpop.f32.mrb[220].mxu1 }
 0xdf5   : > { %v10577_v30 = vadd.f32 %v8548_v49, %v15559_v16  ;;  %v8550_v36 = vpop.f32.mrb[221].mxu1 }
 0xdf6   : > { %v10578_v34 = vadd.f32 %v8550_v36, %v15562_v51  ;;  %v8552_v10 = vpop.f32.mrb[222].mxu1  ;;  %10142 = vmatprep.subr.bf16.mxu0 %v10141_v21 }
 0xdf7   : > { %v10579_v15 = vadd.f32 %v8552_v10, %v15559_v16  ;;  %v8554_v37 = vpop.f32.mrb[223].mxu1  ;;  %10144 = vmatpush1.bf16.msra.mxu0 %v10143_v60  ;;  %v8625_v17 = vmax.f32 %v10577_v30, 0.0  ;;  %v12196_v16 = vld [vmem:[%s15705_s4 + $0x200] sm:$0xff]  }
 0xdf8   : > { %v10580_v20 = vadd.f32 %v8554_v37, %v15562_v51  ;;  %v8626_v44 = vmax.f32 %v10578_v34, 0.0  ;;  %v12197_v51 = vld [vmem:[%s15705_s4 + $0x248] sm:$0xff]  }
 0xdf9   : > { %v8627_v43 = vmax.f32 %v10579_v15, 0.0 }
 0xdfa   : > { %v8628_v63 = vmax.f32 %v10580_v20, 0.0 }
 0xdfb   : > { %v10147_v14 = vpack.c.bf16 %v8627_v43, %v8625_v17 }
 0xdfc   : > { %v10145_v50 = vpack.c.bf16 %v8628_v63, %v8626_v44 }
 0xdfe   : > { %10146 = vmatprep.subr.bf16.mxu0 %v10145_v50 }
 0xdff   : > { %10148 = vmatpush1.bf16.msra.mxu0 %v10147_v14 }
 0xe00   : > { %9767 = vmatprep.subr.bf16.mxu0 %v12195_v0 }
 0xe02   : > { %9660 = vmatmul.mubr.msk.f32.vlgmr.msra.gmra.mrb[232].mxu0 %vm2179_vm0, %v12616_v35 }
 0xe03   : > { %9768 = vmatpush3.bf16.msra.mxu0 %v12196_v16 }
 0xe04   : > { %9769 = vmatprep.subr.bf16.mxu0 %v12197_v51 }
 0xe07   : > { %9770 = vmatpush3.bf16.msra.mxu0 %v12198_v11 }
 0xe08   : > { %9771 = vmatprep.subr.bf16.mxu0 %v12199_v23 }
 0xe0b   : > { %9772 = vmatpush3.bf16.msra.mxu0 %v12200_v32 }
 0xe0c   : > { %9773 = vmatprep.subr.bf16.mxu0 %v12201_v18 }
 0xe0f   : > { %9774 = vmatpush3.bf16.msra.mxu0 %v12202_v61 }
 0xe10   : > { %9775 = vmatprep.subr.bf16.mxu0 %v12203_v40 }
 0xe13   : > { %9776 = vmatpush3.bf16.msra.mxu0 %v12204_v47 }
 0xe14   : > { %9777 = vmatprep.subr.bf16.mxu0 %v12205_v19 }
 0xe17   : > { %9778 = vmatpush3.bf16.msra.mxu0 %v12206_v56 }
 0xe18   : > { %9779 = vmatprep.subr.bf16.mxu0 %v12207_v53 }
 0xe1b   : > { %9780 = vmatpush3.bf16.msra.mxu0 %v12208_v33 }
 0xe1c   : > { %9781 = vmatprep.subr.bf16.mxu0 %v12209_v62 }
 0xe1f   : > { %9782 = vmatpush3.bf16.msra.mxu0 %v12210_v12 }
 0xed5   : > { %v8766_v26 = vpop.f32.mrb[232].mxu0 }
 0xed6   : > { %v8768_v31 = vpop.f32.mrb[233].mxu0  ;;  %v8771_v54 = vpack.c.bf16 %v8766_v26, %v8766_v26 }
 0xed7   : > { %v8772_v25 = vpack.c.bf16 %v8768_v31, %v8768_v31 }
 0xed9   : > { %8933 = vmatprep.mubr.bf16.mxu0 %v8772_v25 }
 0xeda   : > { %8934 = vmatmul.mubr.bf16.vlgmr.msra.gmra.mrb[236].mxu0 %v8771_v54 }
 0xfad   : > { %v9783_v46 = vpop.f32.mrb[236].mxu0 }
 0xfae   : > { %v9784_v58 = vpop.f32.mrb[237].mxu0 }
 0xfaf   : > { %v9785_v27 = vadd.f32 %v9784_v58, %v9783_v46  ;;  %v9786_v57 = vpop.f32.mrb[238].mxu0 }
 0xfb0   : > { %v9787_v42 = vpop.f32.mrb[239].mxu0 }
 0xfb1   : > { %v8941_v13 = vadd.f32 %v9785_v27, %v15409_v45 }
 0xfb3   : > { %8943 = vst.msk [vmem:[%s227_s10] sm:$0xff] %vm8942_vm1, %v8941_v13 }
 0xfb4 PF: > { %s15_s18 = sadd.s32 1, %s12623_s18  }
 0xfb5   : > { %p12_p5 = scmp.ge.s32.totalorder %s15_s18, 6  }
 0xfb7   :  { %14 = sbr.rel (!%p12_p5) target bundleno = 1 (0x1), region = 70 }

</bundles_post_ra>
